<compile_context>
chip_gen: v7x
topology: tpu7x:2x2x1
jax: 0.10.0
libtpu: 0.0.40
codegen_flags: <defaults>
</compile_context>

<pallas_src>
import math

import jax
import jax.numpy as jnp
from jax import lax
from jax.experimental import pallas as pl
from jax.experimental.pallas import tpu as pltpu

# ---------------------------------------------------------------------------
# Channel constants fixed by the PyTorch InceptionModule spec.
# ---------------------------------------------------------------------------
C1X1 = 16                       # branch1x1
C5MID, C5OUT = 16, 24           # branch5x5_1 -> branch5x5_2
C3MID, C3MID2, C3OUT = 16, 24, 24   # branch3x3dbl_1 -> _2 -> _3
CPOOL = 24                      # branch_pool (1x1 after avg-pool)
C_CAT = C1X1 + C5OUT + C3OUT + CPOOL       # 88, torch.cat channel order
C_OUT = 128                                # lane-dense output slab (88 -> 128)
POOL_SLAB = C_OUT - (C1X1 + C5OUT + C3OUT)  # 64: pool chunk zero-padded so the
                                            # 4 output chunks tile 128 lanes
NA = C1X1 + C5MID + C3MID + POOL_SLAB       # 112: stage-A fused matmul width


# ---------------------------------------------------------------------------
# Fused Pallas kernel (one grid step == one batch element)
# ---------------------------------------------------------------------------
def _inception_kernel(xpad_ref, wA_ref, bA_ref, w5_ref, b5_ref,
                      w3b_ref, b3b_ref, w3c_ref, b3c_ref,
                      out_ref, cv5, cv3a, cv3b, col):
    H, W, _ = out_ref.shape
    HW = H * W
    cin = xpad_ref.shape[-1]

    def im2col(read_tap, k, c):
        # Assemble a (HW, k*k*c) bf16 im2col block in the shared `col` scratch:
        # one deep-contraction MXU matmul per conv instead of k*k shallow dots.
        for kh in range(k):
            for kw in range(k):
                t = kh * k + kw
                tap = read_tap(kh, kw)                          # (H, W, c) f32
                col[:, t * c:(t + 1) * c] = tap.reshape(HW, c).astype(col.dtype)
        return col[:, :k * k * c]

    # -- stage A: every conv that reads x, fused into ONE matmul --------------
    #    columns: [branch1x1 | 5x5-mid | 3x3-mid | pool branch (+zero pad)]
    #    1x1s occupy only the centre tap; avg_pool(3x3)+1x1 == 3x3 conv, w/9.
    colA = im2col(lambda kh, kw: xpad_ref[1 + kh:1 + kh + H,
                                          1 + kw:1 + kw + W, :], 3, cin)
    actA = jnp.dot(colA, wA_ref[...], preferred_element_type=jnp.float32) + bA_ref[...]

    # -- branch5x5: 1x1 (stage A) -> 5x5; mid activation stays in VMEM --------
    #    zero-padding the mid canvas (not x) keeps the bias/padding border
    #    semantics identical to PyTorch (the convs do NOT compose into one).
    cv5[...] = jnp.zeros(cv5.shape, cv5.dtype)                  # zero halo (pad=2)
    cv5[2:2 + H, 2:2 + W, :] = actA[:, C1X1:C1X1 + C5MID].reshape(H, W, C5MID)
    col5 = im2col(lambda kh, kw: cv5[kh:kh + H, kw:kw + W, :], 5, C5MID)
    b5 = jnp.dot(col5, w5_ref[...], preferred_element_type=jnp.float32) + b5_ref[...]

    # -- branch3x3dbl: 1x1 (stage A) -> 3x3 -> 3x3 -----------------------------
    cv3a[...] = jnp.zeros(cv3a.shape, cv3a.dtype)               # zero halo (pad=1)
    cv3a[1:1 + H, 1:1 + W, :] = actA[:, C1X1 + C5MID:
                                     C1X1 + C5MID + C3MID].reshape(H, W, C3MID)
    col3 = im2col(lambda kh, kw: cv3a[kh:kh + H, kw:kw + W, :], 3, C3MID)
    mid3 = jnp.dot(col3, w3b_ref[...], preferred_element_type=jnp.float32) + b3b_ref[...]

    cv3b[...] = jnp.zeros(cv3b.shape, cv3b.dtype)
    cv3b[1:1 + H, 1:1 + W, :] = mid3.reshape(H, W, C3MID2)
    col3c = im2col(lambda kh, kw: cv3b[kh:kh + H, kw:kw + W, :], 3, C3MID2)
    b3 = jnp.dot(col3c, w3c_ref[...], preferred_element_type=jnp.float32) + b3c_ref[...]

    # -- lane-dense 128-wide output slab, ONE unmasked dense writeback --------
    #    [0:16) 1x1 | [16:40) 5x5 | [40:64) 3x3dbl | [64:88) pool | [88:128) 0
    out_slab = jnp.concatenate(
        [actA[:, 0:C1X1],                           # branch1x1        (16)
         b5,                                        # branch5x5        (24)
         b3,                                        # branch3x3dbl     (24)
         actA[:, C1X1 + C5MID + C3MID:]],           # pool + zero pad  (64)
        axis=-1)                                    # (HW, 128) f32
    out_ref[...] = out_slab.reshape(H, W, C_OUT)


# ---------------------------------------------------------------------------
# Weight packing (pure JAX, outside the kernel)
# ---------------------------------------------------------------------------
def pack_inception_weights(params, cin):
    w1, b1 = params["branch1x1"]          # (1,1,cin,16)
    w5a, b5a = params["branch5x5_1"]      # (1,1,cin,16)
    w5b, b5b = params["branch5x5_2"]      # (5,5,16,24)
    w3a, b3a = params["branch3x3dbl_1"]   # (1,1,cin,16)
    w3b, b3b = params["branch3x3dbl_2"]   # (3,3,16,24)
    w3c, b3c = params["branch3x3dbl_3"]   # (3,3,24,24)
    wp, bp = params["branch_pool"]        # (1,1,cin,24)

    # Stage-A combined 3x3 weight: 1x1 branches in the centre tap, pool branch
    # (avg_pool + 1x1) as w/9 in every tap, zero-padded columns up to NA=112.
    wA = jnp.zeros((3, 3, cin, NA), jnp.float32)
    wA = wA.at[1, 1, :, 0:C1X1].set(w1[0, 0])
    wA = wA.at[1, 1, :, C1X1:C1X1 + C5MID].set(w5a[0, 0])
    wA = wA.at[1, 1, :, C1X1 + C5MID:C1X1 + C5MID + C3MID].set(w3a[0, 0])
    wA = wA.at[:, :, :, C1X1 + C5MID + C3MID:
               C1X1 + C5MID + C3MID + CPOOL].set(wp[0, 0] / 9.0)
    bA = jnp.zeros((NA,), jnp.float32)
    bA = bA.at[0:C1X1].set(b1)
    bA = bA.at[C1X1:C1X1 + C5MID].set(b5a)
    bA = bA.at[C1X1 + C5MID:C1X1 + C5MID + C3MID].set(b3a)
    bA = bA.at[C1X1 + C5MID + C3MID:C1X1 + C5MID + C3MID + CPOOL].set(bp)

    def taps(w):  # (k,k,ci,co) -> (k*k*ci, co), row-major tap order
        k, _, ci, co = w.shape
        return w.reshape(k * k * ci, co)

    return dict(
        wA=wA.reshape(9 * cin, NA).astype(jnp.bfloat16),
        bA=bA.reshape(1, NA),
        w5=taps(w5b).astype(jnp.bfloat16), b5=b5b.reshape(1, C5OUT),
        w3b=taps(w3b).astype(jnp.bfloat16), b3b=b3b.reshape(1, C3MID2),
        w3c=taps(w3c).astype(jnp.bfloat16), b3c=b3c.reshape(1, C3OUT),
    )


# ---------------------------------------------------------------------------
# pallas_call wrapper
# ---------------------------------------------------------------------------
def _inception_pallas_call(xpad, pw, H, W):
    B = xpad.shape[0]
    cin = xpad.shape[-1]
    Hp, Wp = H + 4, W + 4

    def whole(arr):  # resident (constant-block) weight / bias spec
        return pl.BlockSpec(arr.shape, lambda b: (0,) * arr.ndim)

    return pl.pallas_call(
        _inception_kernel,
        out_shape=jax.ShapeDtypeStruct((B, H, W, C_OUT), jnp.float32),
        grid=(B,),
        in_specs=[
            pl.BlockSpec((None, Hp, Wp, cin), lambda b: (b, 0, 0, 0)),
            whole(pw["wA"]), whole(pw["bA"]),
            whole(pw["w5"]), whole(pw["b5"]),
            whole(pw["w3b"]), whole(pw["b3b"]),
            whole(pw["w3c"]), whole(pw["b3c"]),
        ],
        out_specs=pl.BlockSpec((None, H, W, C_OUT), lambda b: (b, 0, 0, 0)),
        scratch_shapes=[
            pltpu.VMEM((Hp, Wp, C5MID), jnp.float32),          # 5x5 mid canvas (pad 2)
            pltpu.VMEM((H + 2, W + 2, C3MID), jnp.float32),    # 3x3 mid canvas (pad 1)
            pltpu.VMEM((H + 2, W + 2, C3MID2), jnp.float32),   # 3x3 mid2 canvas (pad 1)
            pltpu.VMEM((H * W, 25 * C5MID), jnp.bfloat16),     # shared im2col scratch
        ],
        compiler_params=pltpu.CompilerParams(
            dimension_semantics=("parallel",),                 # megacore on v7x
        ),
    )(xpad, pw["wA"], pw["bA"], pw["w5"], pw["b5"],
      pw["w3b"], pw["b3b"], pw["w3c"], pw["b3c"])


def inception_forward(params, x_nchw):
    x = jnp.transpose(x_nchw, (0, 2, 3, 1)).astype(jnp.float32)   # NCHW -> NHWC
    B, H, W, cin = x.shape
    assert H % 8 == 0 and W % 8 == 0, "spatial dims must be multiples of 8"
    pw = pack_inception_weights(params, cin)
    xpad = jnp.pad(x, ((0, 0), (2, 2), (2, 2), (0, 0)))           # +2 halo for the 3x3 stage
    out = _inception_pallas_call(xpad, pw, H, W)                  # (B, H, W, 128) f32
    # drop the zero pad + back to NCHW (single fused XLA slice+transpose)
    return jnp.transpose(out[..., :C_CAT], (0, 3, 1, 2))


# ---------------------------------------------------------------------------
# Parameters + pure-JAX reference (for a numerical sanity check)
# ---------------------------------------------------------------------------
def make_conv_params(key, k, cin, cout):
    kw_, kb_ = jax.random.split(key)
    fan_in = k * k * cin
    w = jax.random.normal(kw_, (k, k, cin, cout), jnp.float32) / math.sqrt(fan_in)
    b = 0.01 * jax.random.normal(kb_, (cout,), jnp.float32)
    return w, b   # HWIO


def init_inception_params(key, in_channels):
    keys = jax.random.split(key, 7)
    return {
        "branch1x1":      make_conv_params(keys[0], 1, in_channels, C1X1),
        "branch5x5_1":    make_conv_params(keys[1], 1, in_channels, C5MID),
        "branch5x5_2":    make_conv_params(keys[2], 5, C5MID, C5OUT),
        "branch3x3dbl_1": make_conv_params(keys[3], 1, in_channels, C3MID),
        "branch3x3dbl_2": make_conv_params(keys[4], 3, C3MID, C3MID2),
        "branch3x3dbl_3": make_conv_params(keys[5], 3, C3MID2, C3OUT),
        "branch_pool":    make_conv_params(keys[6], 1, in_channels, CPOOL),
    }


def _conv_ref(x, w, b, pad):
    y = lax.conv_general_dilated(
        x, w, window_strides=(1, 1), padding=[(pad, pad), (pad, pad)],
        dimension_numbers=("NHWC", "HWIO", "NHWC"),
        precision=lax.Precision.HIGHEST)
    return y + b


def inception_reference(params, x_nchw):
    x = jnp.transpose(x_nchw, (0, 2, 3, 1)).astype(jnp.float32)
    b1 = _conv_ref(x, *params["branch1x1"], 0)
    b5 = _conv_ref(x, *params["branch5x5_1"], 0)
    b5 = _conv_ref(b5, *params["branch5x5_2"], 2)
    b3 = _conv_ref(x, *params["branch3x3dbl_1"], 0)
    b3 = _conv_ref(b3, *params["branch3x3dbl_2"], 1)
    b3 = _conv_ref(b3, *params["branch3x3dbl_3"], 1)
    pooled = lax.reduce_window(x, 0.0, lax.add, (1, 3, 3, 1), (1, 1, 1, 1),
                               [(0, 0), (1, 1), (1, 1), (0, 0)]) / 9.0
    bp = _conv_ref(pooled, *params["branch_pool"], 0)
    out = jnp.concatenate([b1, b5, b3, bp], axis=-1)
    return jnp.transpose(out, (0, 3, 1, 2))


if __name__ == "__main__":
    key = jax.random.PRNGKey(0)
    k_x, k_p = jax.random.split(key)

    B, C, H, W = 2, 4, 16, 16
    x = jax.random.normal(k_x, (B, C, H, W), jnp.float32)   # NCHW, like PyTorch
    params = init_inception_params(k_p, in_channels=C)

    out = jax.jit(inception_forward)(params, x)
    out = jax.block_until_ready(out)
    assert out.shape == (B, C_CAT, H, W), out.shape
    assert bool(jnp.all(jnp.isfinite(out)))

    ref = jax.block_until_ready(jax.jit(inception_reference)(params, x))
    max_err = float(jnp.max(jnp.abs(out - ref)))
    assert max_err < 1e-1, f"mismatch vs reference: max abs err {max_err}"

    print("KERNEL_OK")
</pallas_src>

<mosaic_0001>
module attributes {stable_mosaic.version = 11 : i64} {
  func.func @_inception_kernel(%arg0: i32, %arg1: memref<1x20x20x4xf32, #tpu.memory_space<vmem>>, %arg2: memref<36x112xbf16, #tpu.memory_space<vmem>>, %arg3: memref<1x112xf32, #tpu.memory_space<vmem>>, %arg4: memref<400x24xbf16, #tpu.memory_space<vmem>>, %arg5: memref<1x24xf32, #tpu.memory_space<vmem>>, %arg6: memref<144x24xbf16, #tpu.memory_space<vmem>>, %arg7: memref<1x24xf32, #tpu.memory_space<vmem>>, %arg8: memref<216x24xbf16, #tpu.memory_space<vmem>>, %arg9: memref<1x24xf32, #tpu.memory_space<vmem>>, %arg10: memref<1x16x16x128xf32, #tpu.memory_space<vmem>>, %arg11: memref<20x20x16xf32, #tpu.memory_space<vmem>>, %arg12: memref<18x18x16xf32, #tpu.memory_space<vmem>>, %arg13: memref<18x18x24xf32, #tpu.memory_space<vmem>>, %arg14: memref<256x400xbf16, #tpu.memory_space<vmem>>) attributes {dimension_semantics = [#tpu.dimension_semantics<parallel>], iteration_bounds = array<i64: 2>, scalar_prefetch = 0 : i64, scratch_operands = 4 : i64, tpu.core_type = #tpu.core_type<tc>, window_params = [{transform_indices = @transform_0, window_bounds = array<i64: 1, 20, 20, 4>}, {pipeline_mode = #tpu.pipeline_mode<synchronous>, transform_indices = @transform_1, window_bounds = array<i64: 36, 112>}, {pipeline_mode = #tpu.pipeline_mode<synchronous>, transform_indices = @transform_2, window_bounds = array<i64: 1, 112>}, {pipeline_mode = #tpu.pipeline_mode<synchronous>, transform_indices = @transform_3, window_bounds = array<i64: 400, 24>}, {pipeline_mode = #tpu.pipeline_mode<synchronous>, transform_indices = @transform_4, window_bounds = array<i64: 1, 24>}, {pipeline_mode = #tpu.pipeline_mode<synchronous>, transform_indices = @transform_5, window_bounds = array<i64: 144, 24>}, {pipeline_mode = #tpu.pipeline_mode<synchronous>, transform_indices = @transform_6, window_bounds = array<i64: 1, 24>}, {pipeline_mode = #tpu.pipeline_mode<synchronous>, transform_indices = @transform_7, window_bounds = array<i64: 216, 24>}, {pipeline_mode = #tpu.pipeline_mode<synchronous>, transform_indices = @transform_8, window_bounds = array<i64: 1, 24>}, {transform_indices = @transform_9, window_bounds = array<i64: 1, 16, 16, 128>}]} {
    %c0 = arith.constant 0 : index
    %c1 = arith.constant 1 : index
    %c1_0 = arith.constant 1 : index
    %c0_1 = arith.constant 0 : index
    %0 = vector.load %arg1[%c0, %c1, %c1_0, %c0_1] : memref<1x20x20x4xf32, #tpu.memory_space<vmem>>, vector<1x16x16x4xf32>
    %1 = vector.shape_cast %0 : vector<1x16x16x4xf32> to vector<16x16x4xf32>
    %2 = vector.shape_cast %1 : vector<16x16x4xf32> to vector<256x4xf32>
    %3 = arith.truncf %2 : vector<256x4xf32> to vector<256x4xbf16>
    %c0_2 = arith.constant 0 : index
    %c0_3 = arith.constant 0 : index
    %4 = vector.load %arg14[%c0_2, %c0_3] : memref<256x400xbf16, #tpu.memory_space<vmem>>, vector<256x4xbf16>
    tpu.vector_store %arg14[%c0_2, %c0_3], %3 {strides = array<i32>} : memref<256x400xbf16, #tpu.memory_space<vmem>>, vector<256x4xbf16>,
    %c0_4 = arith.constant 0 : index
    %c1_5 = arith.constant 1 : index
    %c2 = arith.constant 2 : index
    %c0_6 = arith.constant 0 : index
    %5 = vector.load %arg1[%c0_4, %c1_5, %c2, %c0_6] : memref<1x20x20x4xf32, #tpu.memory_space<vmem>>, vector<1x16x16x4xf32>
    %6 = vector.shape_cast %5 : vector<1x16x16x4xf32> to vector<16x16x4xf32>
    %7 = vector.shape_cast %6 : vector<16x16x4xf32> to vector<256x4xf32>
    %8 = arith.truncf %7 : vector<256x4xf32> to vector<256x4xbf16>
    %c0_7 = arith.constant 0 : index
    %c4 = arith.constant 4 : index
    %9 = vector.load %arg14[%c0_7, %c4] : memref<256x400xbf16, #tpu.memory_space<vmem>>, vector<256x4xbf16>
    tpu.vector_store %arg14[%c0_7, %c4], %8 {strides = array<i32>} : memref<256x400xbf16, #tpu.memory_space<vmem>>, vector<256x4xbf16>,
    %c0_8 = arith.constant 0 : index
    %c1_9 = arith.constant 1 : index
    %c3 = arith.constant 3 : index
    %c0_10 = arith.constant 0 : index
    %10 = vector.load %arg1[%c0_8, %c1_9, %c3, %c0_10] : memref<1x20x20x4xf32, #tpu.memory_space<vmem>>, vector<1x16x16x4xf32>
    %11 = vector.shape_cast %10 : vector<1x16x16x4xf32> to vector<16x16x4xf32>
    %12 = vector.shape_cast %11 : vector<16x16x4xf32> to vector<256x4xf32>
    %13 = arith.truncf %12 : vector<256x4xf32> to vector<256x4xbf16>
    %c0_11 = arith.constant 0 : index
    %c8 = arith.constant 8 : index
    %14 = vector.load %arg14[%c0_11, %c8] : memref<256x400xbf16, #tpu.memory_space<vmem>>, vector<256x4xbf16>
    tpu.vector_store %arg14[%c0_11, %c8], %13 {strides = array<i32>} : memref<256x400xbf16, #tpu.memory_space<vmem>>, vector<256x4xbf16>,
    %c0_12 = arith.constant 0 : index
    %c2_13 = arith.constant 2 : index
    %c1_14 = arith.constant 1 : index
    %c0_15 = arith.constant 0 : index
    %15 = vector.load %arg1[%c0_12, %c2_13, %c1_14, %c0_15] : memref<1x20x20x4xf32, #tpu.memory_space<vmem>>, vector<1x16x16x4xf32>
    %16 = vector.shape_cast %15 : vector<1x16x16x4xf32> to vector<16x16x4xf32>
    %17 = vector.shape_cast %16 : vector<16x16x4xf32> to vector<256x4xf32>
    %18 = arith.truncf %17 : vector<256x4xf32> to vector<256x4xbf16>
    %c0_16 = arith.constant 0 : index
    %c12 = arith.constant 12 : index
    %19 = vector.load %arg14[%c0_16, %c12] : memref<256x400xbf16, #tpu.memory_space<vmem>>, vector<256x4xbf16>
    tpu.vector_store %arg14[%c0_16, %c12], %18 {strides = array<i32>} : memref<256x400xbf16, #tpu.memory_space<vmem>>, vector<256x4xbf16>,
    %c0_17 = arith.constant 0 : index
    %c2_18 = arith.constant 2 : index
    %c2_19 = arith.constant 2 : index
    %c0_20 = arith.constant 0 : index
    %20 = vector.load %arg1[%c0_17, %c2_18, %c2_19, %c0_20] : memref<1x20x20x4xf32, #tpu.memory_space<vmem>>, vector<1x16x16x4xf32>
    %21 = vector.shape_cast %20 : vector<1x16x16x4xf32> to vector<16x16x4xf32>
    %22 = vector.shape_cast %21 : vector<16x16x4xf32> to vector<256x4xf32>
    %23 = arith.truncf %22 : vector<256x4xf32> to vector<256x4xbf16>
    %c0_21 = arith.constant 0 : index
    %c16 = arith.constant 16 : index
    %24 = vector.load %arg14[%c0_21, %c16] : memref<256x400xbf16, #tpu.memory_space<vmem>>, vector<256x4xbf16>
    tpu.vector_store %arg14[%c0_21, %c16], %23 {strides = array<i32>} : memref<256x400xbf16, #tpu.memory_space<vmem>>, vector<256x4xbf16>,
    %c0_22 = arith.constant 0 : index
    %c2_23 = arith.constant 2 : index
    %c3_24 = arith.constant 3 : index
    %c0_25 = arith.constant 0 : index
    %25 = vector.load %arg1[%c0_22, %c2_23, %c3_24, %c0_25] : memref<1x20x20x4xf32, #tpu.memory_space<vmem>>, vector<1x16x16x4xf32>
    %26 = vector.shape_cast %25 : vector<1x16x16x4xf32> to vector<16x16x4xf32>
    %27 = vector.shape_cast %26 : vector<16x16x4xf32> to vector<256x4xf32>
    %28 = arith.truncf %27 : vector<256x4xf32> to vector<256x4xbf16>
    %c0_26 = arith.constant 0 : index
    %c20 = arith.constant 20 : index
    %29 = vector.load %arg14[%c0_26, %c20] : memref<256x400xbf16, #tpu.memory_space<vmem>>, vector<256x4xbf16>
    tpu.vector_store %arg14[%c0_26, %c20], %28 {strides = array<i32>} : memref<256x400xbf16, #tpu.memory_space<vmem>>, vector<256x4xbf16>,
    %c0_27 = arith.constant 0 : index
    %c3_28 = arith.constant 3 : index
    %c1_29 = arith.constant 1 : index
    %c0_30 = arith.constant 0 : index
    %30 = vector.load %arg1[%c0_27, %c3_28, %c1_29, %c0_30] : memref<1x20x20x4xf32, #tpu.memory_space<vmem>>, vector<1x16x16x4xf32>
    %31 = vector.shape_cast %30 : vector<1x16x16x4xf32> to vector<16x16x4xf32>
    %32 = vector.shape_cast %31 : vector<16x16x4xf32> to vector<256x4xf32>
    %33 = arith.truncf %32 : vector<256x4xf32> to vector<256x4xbf16>
    %c0_31 = arith.constant 0 : index
    %c24 = arith.constant 24 : index
    %34 = vector.load %arg14[%c0_31, %c24] : memref<256x400xbf16, #tpu.memory_space<vmem>>, vector<256x4xbf16>
    tpu.vector_store %arg14[%c0_31, %c24], %33 {strides = array<i32>} : memref<256x400xbf16, #tpu.memory_space<vmem>>, vector<256x4xbf16>,
    %c0_32 = arith.constant 0 : index
    %c3_33 = arith.constant 3 : index
    %c2_34 = arith.constant 2 : index
    %c0_35 = arith.constant 0 : index
    %35 = vector.load %arg1[%c0_32, %c3_33, %c2_34, %c0_35] : memref<1x20x20x4xf32, #tpu.memory_space<vmem>>, vector<1x16x16x4xf32>
    %36 = vector.shape_cast %35 : vector<1x16x16x4xf32> to vector<16x16x4xf32>
    %37 = vector.shape_cast %36 : vector<16x16x4xf32> to vector<256x4xf32>
    %38 = arith.truncf %37 : vector<256x4xf32> to vector<256x4xbf16>
    %c0_36 = arith.constant 0 : index
    %c28 = arith.constant 28 : index
    %39 = vector.load %arg14[%c0_36, %c28] : memref<256x400xbf16, #tpu.memory_space<vmem>>, vector<256x4xbf16>
    tpu.vector_store %arg14[%c0_36, %c28], %38 {strides = array<i32>} : memref<256x400xbf16, #tpu.memory_space<vmem>>, vector<256x4xbf16>,
    %c0_37 = arith.constant 0 : index
    %c3_38 = arith.constant 3 : index
    %c3_39 = arith.constant 3 : index
    %c0_40 = arith.constant 0 : index
    %40 = vector.load %arg1[%c0_37, %c3_38, %c3_39, %c0_40] : memref<1x20x20x4xf32, #tpu.memory_space<vmem>>, vector<1x16x16x4xf32>
    %41 = vector.shape_cast %40 : vector<1x16x16x4xf32> to vector<16x16x4xf32>
    %42 = vector.shape_cast %41 : vector<16x16x4xf32> to vector<256x4xf32>
    %43 = arith.truncf %42 : vector<256x4xf32> to vector<256x4xbf16>
    %c0_41 = arith.constant 0 : index
    %c32 = arith.constant 32 : index
    %44 = vector.load %arg14[%c0_41, %c32] : memref<256x400xbf16, #tpu.memory_space<vmem>>, vector<256x4xbf16>
    tpu.vector_store %arg14[%c0_41, %c32], %43 {strides = array<i32>} : memref<256x400xbf16, #tpu.memory_space<vmem>>, vector<256x4xbf16>,
    %c0_42 = arith.constant 0 : index
    %c0_43 = arith.constant 0 : index
    %45 = vector.load %arg14[%c0_42, %c0_43] : memref<256x400xbf16, #tpu.memory_space<vmem>>, vector<256x36xbf16>
    %c0_44 = arith.constant 0 : index
    %c0_45 = arith.constant 0 : index
    %46 = vector.load %arg2[%c0_44, %c0_45] : memref<36x112xbf16, #tpu.memory_space<vmem>>, vector<36x112xbf16>
    %cst = arith.constant dense<0.000000e+00> : vector<256x112xf32>
    %47 = tpu.matmul %45, %46, %cst {dimension_numbers = #tpu.dot_dimension_numbers<[1], [0], [0], [1], [0, 0, 1, 1], [], []>} : vector<256x36xbf16>, vector<36x112xbf16>, vector<256x112xf32> -> vector<256x112xf32>
    %c0_46 = arith.constant 0 : index
    %c0_47 = arith.constant 0 : index
    %48 = vector.load %arg3[%c0_46, %c0_47] : memref<1x112xf32, #tpu.memory_space<vmem>>, vector<1x112xf32>
    %49 = vector.broadcast %48 : vector<1x112xf32> to vector<256x112xf32>
    %50 = arith.addf %47, %49 : vector<256x112xf32>
    %cst_48 = arith.constant 0.000000e+00 : f32
    %51 = vector.broadcast %cst_48 : f32 to vector<20x20x16xf32>
    %c0_49 = arith.constant 0 : index
    %c0_50 = arith.constant 0 : index
    %c0_51 = arith.constant 0 : index
    %52 = vector.load %arg11[%c0_49, %c0_50, %c0_51] : memref<20x20x16xf32, #tpu.memory_space<vmem>>, vector<20x20x16xf32>
    tpu.vector_store %arg11[%c0_49, %c0_50, %c0_51], %51 {strides = array<i32>} : memref<20x20x16xf32, #tpu.memory_space<vmem>>, vector<20x20x16xf32>,
    %53 = vector.extract_strided_slice %50 {offsets = [0, 16], sizes = [256, 16], strides = [1, 1]} : vector<256x112xf32> to vector<256x16xf32>
    %54 = vector.shape_cast %53 : vector<256x16xf32> to vector<16x16x16xf32>
    %c2_52 = arith.constant 2 : index
    %c2_53 = arith.constant 2 : index
    %c0_54 = arith.constant 0 : index
    %55 = vector.load %arg11[%c2_52, %c2_53, %c0_54] : memref<20x20x16xf32, #tpu.memory_space<vmem>>, vector<16x16x16xf32>
    tpu.vector_store %arg11[%c2_52, %c2_53, %c0_54], %54 {strides = array<i32>} : memref<20x20x16xf32, #tpu.memory_space<vmem>>, vector<16x16x16xf32>,
    %c0_55 = arith.constant 0 : index
    %c0_56 = arith.constant 0 : index
    %c0_57 = arith.constant 0 : index
    %56 = vector.load %arg11[%c0_55, %c0_56, %c0_57] : memref<20x20x16xf32, #tpu.memory_space<vmem>>, vector<16x16x16xf32>
    %57 = vector.shape_cast %56 : vector<16x16x16xf32> to vector<256x16xf32>
    %58 = arith.truncf %57 : vector<256x16xf32> to vector<256x16xbf16>
    %c0_58 = arith.constant 0 : index
    %c0_59 = arith.constant 0 : index
    %59 = vector.load %arg14[%c0_58, %c0_59] : memref<256x400xbf16, #tpu.memory_space<vmem>>, vector<256x16xbf16>
    tpu.vector_store %arg14[%c0_58, %c0_59], %58 {strides = array<i32>} : memref<256x400xbf16, #tpu.memory_space<vmem>>, vector<256x16xbf16>,
    %c0_60 = arith.constant 0 : index
    %c1_61 = arith.constant 1 : index
    %c0_62 = arith.constant 0 : index
    %60 = vector.load %arg11[%c0_60, %c1_61, %c0_62] : memref<20x20x16xf32, #tpu.memory_space<vmem>>, vector<16x16x16xf32>
    %61 = vector.shape_cast %60 : vector<16x16x16xf32> to vector<256x16xf32>
    %62 = arith.truncf %61 : vector<256x16xf32> to vector<256x16xbf16>
    %c0_63 = arith.constant 0 : index
    %c16_64 = arith.constant 16 : index
    %63 = vector.load %arg14[%c0_63, %c16_64] : memref<256x400xbf16, #tpu.memory_space<vmem>>, vector<256x16xbf16>
    tpu.vector_store %arg14[%c0_63, %c16_64], %62 {strides = array<i32>} : memref<256x400xbf16, #tpu.memory_space<vmem>>, vector<256x16xbf16>,
    %c0_65 = arith.constant 0 : index
    %c2_66 = arith.constant 2 : index
    %c0_67 = arith.constant 0 : index
    %64 = vector.load %arg11[%c0_65, %c2_66, %c0_67] : memref<20x20x16xf32, #tpu.memory_space<vmem>>, vector<16x16x16xf32>
    %65 = vector.shape_cast %64 : vector<16x16x16xf32> to vector<256x16xf32>
    %66 = arith.truncf %65 : vector<256x16xf32> to vector<256x16xbf16>
    %c0_68 = arith.constant 0 : index
    %c32_69 = arith.constant 32 : index
    %67 = vector.load %arg14[%c0_68, %c32_69] : memref<256x400xbf16, #tpu.memory_space<vmem>>, vector<256x16xbf16>
    tpu.vector_store %arg14[%c0_68, %c32_69], %66 {strides = array<i32>} : memref<256x400xbf16, #tpu.memory_space<vmem>>, vector<256x16xbf16>,
    %c0_70 = arith.constant 0 : index
    %c3_71 = arith.constant 3 : index
    %c0_72 = arith.constant 0 : index
    %68 = vector.load %arg11[%c0_70, %c3_71, %c0_72] : memref<20x20x16xf32, #tpu.memory_space<vmem>>, vector<16x16x16xf32>
    %69 = vector.shape_cast %68 : vector<16x16x16xf32> to vector<256x16xf32>
    %70 = arith.truncf %69 : vector<256x16xf32> to vector<256x16xbf16>
    %c0_73 = arith.constant 0 : index
    %c48 = arith.constant 48 : index
    %71 = vector.load %arg14[%c0_73, %c48] : memref<256x400xbf16, #tpu.memory_space<vmem>>, vector<256x16xbf16>
    tpu.vector_store %arg14[%c0_73, %c48], %70 {strides = array<i32>} : memref<256x400xbf16, #tpu.memory_space<vmem>>, vector<256x16xbf16>,
    %c0_74 = arith.constant 0 : index
    %c4_75 = arith.constant 4 : index
    %c0_76 = arith.constant 0 : index
    %72 = vector.load %arg11[%c0_74, %c4_75, %c0_76] : memref<20x20x16xf32, #tpu.memory_space<vmem>>, vector<16x16x16xf32>
    %73 = vector.shape_cast %72 : vector<16x16x16xf32> to vector<256x16xf32>
    %74 = arith.truncf %73 : vector<256x16xf32> to vector<256x16xbf16>
    %c0_77 = arith.constant 0 : index
    %c64 = arith.constant 64 : index
    %75 = vector.load %arg14[%c0_77, %c64] : memref<256x400xbf16, #tpu.memory_space<vmem>>, vector<256x16xbf16>
    tpu.vector_store %arg14[%c0_77, %c64], %74 {strides = array<i32>} : memref<256x400xbf16, #tpu.memory_space<vmem>>, vector<256x16xbf16>,
    %c1_78 = arith.constant 1 : index
    %c0_79 = arith.constant 0 : index
    %c0_80 = arith.constant 0 : index
    %76 = vector.load %arg11[%c1_78, %c0_79, %c0_80] : memref<20x20x16xf32, #tpu.memory_space<vmem>>, vector<16x16x16xf32>
    %77 = vector.shape_cast %76 : vector<16x16x16xf32> to vector<256x16xf32>
    %78 = arith.truncf %77 : vector<256x16xf32> to vector<256x16xbf16>
    %c0_81 = arith.constant 0 : index
    %c80 = arith.constant 80 : index
    %79 = vector.load %arg14[%c0_81, %c80] : memref<256x400xbf16, #tpu.memory_space<vmem>>, vector<256x16xbf16>
    tpu.vector_store %arg14[%c0_81, %c80], %78 {strides = array<i32>} : memref<256x400xbf16, #tpu.memory_space<vmem>>, vector<256x16xbf16>,
    %c1_82 = arith.constant 1 : index
    %c1_83 = arith.constant 1 : index
    %c0_84 = arith.constant 0 : index
    %80 = vector.load %arg11[%c1_82, %c1_83, %c0_84] : memref<20x20x16xf32, #tpu.memory_space<vmem>>, vector<16x16x16xf32>
    %81 = vector.shape_cast %80 : vector<16x16x16xf32> to vector<256x16xf32>
    %82 = arith.truncf %81 : vector<256x16xf32> to vector<256x16xbf16>
    %c0_85 = arith.constant 0 : index
    %c96 = arith.constant 96 : index
    %83 = vector.load %arg14[%c0_85, %c96] : memref<256x400xbf16, #tpu.memory_space<vmem>>, vector<256x16xbf16>
    tpu.vector_store %arg14[%c0_85, %c96], %82 {strides = array<i32>} : memref<256x400xbf16, #tpu.memory_space<vmem>>, vector<256x16xbf16>,
    %c1_86 = arith.constant 1 : index
    %c2_87 = arith.constant 2 : index
    %c0_88 = arith.constant 0 : index
    %84 = vector.load %arg11[%c1_86, %c2_87, %c0_88] : memref<20x20x16xf32, #tpu.memory_space<vmem>>, vector<16x16x16xf32>
    %85 = vector.shape_cast %84 : vector<16x16x16xf32> to vector<256x16xf32>
    %86 = arith.truncf %85 : vector<256x16xf32> to vector<256x16xbf16>
    %c0_89 = arith.constant 0 : index
    %c112 = arith.constant 112 : index
    %87 = vector.load %arg14[%c0_89, %c112] : memref<256x400xbf16, #tpu.memory_space<vmem>>, vector<256x16xbf16>
    tpu.vector_store %arg14[%c0_89, %c112], %86 {strides = array<i32>} : memref<256x400xbf16, #tpu.memory_space<vmem>>, vector<256x16xbf16>,
    %c1_90 = arith.constant 1 : index
    %c3_91 = arith.constant 3 : index
    %c0_92 = arith.constant 0 : index
    %88 = vector.load %arg11[%c1_90, %c3_91, %c0_92] : memref<20x20x16xf32, #tpu.memory_space<vmem>>, vector<16x16x16xf32>
    %89 = vector.shape_cast %88 : vector<16x16x16xf32> to vector<256x16xf32>
    %90 = arith.truncf %89 : vector<256x16xf32> to vector<256x16xbf16>
    %c0_93 = arith.constant 0 : index
    %c128 = arith.constant 128 : index
    %91 = vector.load %arg14[%c0_93, %c128] : memref<256x400xbf16, #tpu.memory_space<vmem>>, vector<256x16xbf16>
    tpu.vector_store %arg14[%c0_93, %c128], %90 {strides = array<i32>} : memref<256x400xbf16, #tpu.memory_space<vmem>>, vector<256x16xbf16>,
    %c1_94 = arith.constant 1 : index
    %c4_95 = arith.constant 4 : index
    %c0_96 = arith.constant 0 : index
    %92 = vector.load %arg11[%c1_94, %c4_95, %c0_96] : memref<20x20x16xf32, #tpu.memory_space<vmem>>, vector<16x16x16xf32>
    %93 = vector.shape_cast %92 : vector<16x16x16xf32> to vector<256x16xf32>
    %94 = arith.truncf %93 : vector<256x16xf32> to vector<256x16xbf16>
    %c0_97 = arith.constant 0 : index
    %c144 = arith.constant 144 : index
    %95 = vector.load %arg14[%c0_97, %c144] : memref<256x400xbf16, #tpu.memory_space<vmem>>, vector<256x16xbf16>
    tpu.vector_store %arg14[%c0_97, %c144], %94 {strides = array<i32>} : memref<256x400xbf16, #tpu.memory_space<vmem>>, vector<256x16xbf16>,
    %c2_98 = arith.constant 2 : index
    %c0_99 = arith.constant 0 : index
    %c0_100 = arith.constant 0 : index
    %96 = vector.load %arg11[%c2_98, %c0_99, %c0_100] : memref<20x20x16xf32, #tpu.memory_space<vmem>>, vector<16x16x16xf32>
    %97 = vector.shape_cast %96 : vector<16x16x16xf32> to vector<256x16xf32>
    %98 = arith.truncf %97 : vector<256x16xf32> to vector<256x16xbf16>
    %c0_101 = arith.constant 0 : index
    %c160 = arith.constant 160 : index
    %99 = vector.load %arg14[%c0_101, %c160] : memref<256x400xbf16, #tpu.memory_space<vmem>>, vector<256x16xbf16>
    tpu.vector_store %arg14[%c0_101, %c160], %98 {strides = array<i32>} : memref<256x400xbf16, #tpu.memory_space<vmem>>, vector<256x16xbf16>,
    %c2_102 = arith.constant 2 : index
    %c1_103 = arith.constant 1 : index
    %c0_104 = arith.constant 0 : index
    %100 = vector.load %arg11[%c2_102, %c1_103, %c0_104] : memref<20x20x16xf32, #tpu.memory_space<vmem>>, vector<16x16x16xf32>
    %101 = vector.shape_cast %100 : vector<16x16x16xf32> to vector<256x16xf32>
    %102 = arith.truncf %101 : vector<256x16xf32> to vector<256x16xbf16>
    %c0_105 = arith.constant 0 : index
    %c176 = arith.constant 176 : index
    %103 = vector.load %arg14[%c0_105, %c176] : memref<256x400xbf16, #tpu.memory_space<vmem>>, vector<256x16xbf16>
    tpu.vector_store %arg14[%c0_105, %c176], %102 {strides = array<i32>} : memref<256x400xbf16, #tpu.memory_space<vmem>>, vector<256x16xbf16>,
    %c2_106 = arith.constant 2 : index
    %c2_107 = arith.constant 2 : index
    %c0_108 = arith.constant 0 : index
    %104 = vector.load %arg11[%c2_106, %c2_107, %c0_108] : memref<20x20x16xf32, #tpu.memory_space<vmem>>, vector<16x16x16xf32>
    %105 = vector.shape_cast %104 : vector<16x16x16xf32> to vector<256x16xf32>
    %106 = arith.truncf %105 : vector<256x16xf32> to vector<256x16xbf16>
    %c0_109 = arith.constant 0 : index
    %c192 = arith.constant 192 : index
    %107 = vector.load %arg14[%c0_109, %c192] : memref<256x400xbf16, #tpu.memory_space<vmem>>, vector<256x16xbf16>
    tpu.vector_store %arg14[%c0_109, %c192], %106 {strides = array<i32>} : memref<256x400xbf16, #tpu.memory_space<vmem>>, vector<256x16xbf16>,
    %c2_110 = arith.constant 2 : index
    %c3_111 = arith.constant 3 : index
    %c0_112 = arith.constant 0 : index
    %108 = vector.load %arg11[%c2_110, %c3_111, %c0_112] : memref<20x20x16xf32, #tpu.memory_space<vmem>>, vector<16x16x16xf32>
    %109 = vector.shape_cast %108 : vector<16x16x16xf32> to vector<256x16xf32>
    %110 = arith.truncf %109 : vector<256x16xf32> to vector<256x16xbf16>
    %c0_113 = arith.constant 0 : index
    %c208 = arith.constant 208 : index
    %111 = vector.load %arg14[%c0_113, %c208] : memref<256x400xbf16, #tpu.memory_space<vmem>>, vector<256x16xbf16>
    tpu.vector_store %arg14[%c0_113, %c208], %110 {strides = array<i32>} : memref<256x400xbf16, #tpu.memory_space<vmem>>, vector<256x16xbf16>,
    %c2_114 = arith.constant 2 : index
    %c4_115 = arith.constant 4 : index
    %c0_116 = arith.constant 0 : index
    %112 = vector.load %arg11[%c2_114, %c4_115, %c0_116] : memref<20x20x16xf32, #tpu.memory_space<vmem>>, vector<16x16x16xf32>
    %113 = vector.shape_cast %112 : vector<16x16x16xf32> to vector<256x16xf32>
    %114 = arith.truncf %113 : vector<256x16xf32> to vector<256x16xbf16>
    %c0_117 = arith.constant 0 : index
    %c224 = arith.constant 224 : index
    %115 = vector.load %arg14[%c0_117, %c224] : memref<256x400xbf16, #tpu.memory_space<vmem>>, vector<256x16xbf16>
    tpu.vector_store %arg14[%c0_117, %c224], %114 {strides = array<i32>} : memref<256x400xbf16, #tpu.memory_space<vmem>>, vector<256x16xbf16>,
    %c3_118 = arith.constant 3 : index
    %c0_119 = arith.constant 0 : index
    %c0_120 = arith.constant 0 : index
    %116 = vector.load %arg11[%c3_118, %c0_119, %c0_120] : memref<20x20x16xf32, #tpu.memory_space<vmem>>, vector<16x16x16xf32>
    %117 = vector.shape_cast %116 : vector<16x16x16xf32> to vector<256x16xf32>
    %118 = arith.truncf %117 : vector<256x16xf32> to vector<256x16xbf16>
    %c0_121 = arith.constant 0 : index
    %c240 = arith.constant 240 : index
    %119 = vector.load %arg14[%c0_121, %c240] : memref<256x400xbf16, #tpu.memory_space<vmem>>, vector<256x16xbf16>
    tpu.vector_store %arg14[%c0_121, %c240], %118 {strides = array<i32>} : memref<256x400xbf16, #tpu.memory_space<vmem>>, vector<256x16xbf16>,
    %c3_122 = arith.constant 3 : index
    %c1_123 = arith.constant 1 : index
    %c0_124 = arith.constant 0 : index
    %120 = vector.load %arg11[%c3_122, %c1_123, %c0_124] : memref<20x20x16xf32, #tpu.memory_space<vmem>>, vector<16x16x16xf32>
    %121 = vector.shape_cast %120 : vector<16x16x16xf32> to vector<256x16xf32>
    %122 = arith.truncf %121 : vector<256x16xf32> to vector<256x16xbf16>
    %c0_125 = arith.constant 0 : index
    %c256 = arith.constant 256 : index
    %123 = vector.load %arg14[%c0_125, %c256] : memref<256x400xbf16, #tpu.memory_space<vmem>>, vector<256x16xbf16>
    tpu.vector_store %arg14[%c0_125, %c256], %122 {strides = array<i32>} : memref<256x400xbf16, #tpu.memory_space<vmem>>, vector<256x16xbf16>,
    %c3_126 = arith.constant 3 : index
    %c2_127 = arith.constant 2 : index
    %c0_128 = arith.constant 0 : index
    %124 = vector.load %arg11[%c3_126, %c2_127, %c0_128] : memref<20x20x16xf32, #tpu.memory_space<vmem>>, vector<16x16x16xf32>
    %125 = vector.shape_cast %124 : vector<16x16x16xf32> to vector<256x16xf32>
    %126 = arith.truncf %125 : vector<256x16xf32> to vector<256x16xbf16>
    %c0_129 = arith.constant 0 : index
    %c272 = arith.constant 272 : index
    %127 = vector.load %arg14[%c0_129, %c272] : memref<256x400xbf16, #tpu.memory_space<vmem>>, vector<256x16xbf16>
    tpu.vector_store %arg14[%c0_129, %c272], %126 {strides = array<i32>} : memref<256x400xbf16, #tpu.memory_space<vmem>>, vector<256x16xbf16>,
    %c3_130 = arith.constant 3 : index
    %c3_131 = arith.constant 3 : index
    %c0_132 = arith.constant 0 : index
    %128 = vector.load %arg11[%c3_130, %c3_131, %c0_132] : memref<20x20x16xf32, #tpu.memory_space<vmem>>, vector<16x16x16xf32>
    %129 = vector.shape_cast %128 : vector<16x16x16xf32> to vector<256x16xf32>
    %130 = arith.truncf %129 : vector<256x16xf32> to vector<256x16xbf16>
    %c0_133 = arith.constant 0 : index
    %c288 = arith.constant 288 : index
    %131 = vector.load %arg14[%c0_133, %c288] : memref<256x400xbf16, #tpu.memory_space<vmem>>, vector<256x16xbf16>
    tpu.vector_store %arg14[%c0_133, %c288], %130 {strides = array<i32>} : memref<256x400xbf16, #tpu.memory_space<vmem>>, vector<256x16xbf16>,
    %c3_134 = arith.constant 3 : index
    %c4_135 = arith.constant 4 : index
    %c0_136 = arith.constant 0 : index
    %132 = vector.load %arg11[%c3_134, %c4_135, %c0_136] : memref<20x20x16xf32, #tpu.memory_space<vmem>>, vector<16x16x16xf32>
    %133 = vector.shape_cast %132 : vector<16x16x16xf32> to vector<256x16xf32>
    %134 = arith.truncf %133 : vector<256x16xf32> to vector<256x16xbf16>
    %c0_137 = arith.constant 0 : index
    %c304 = arith.constant 304 : index
    %135 = vector.load %arg14[%c0_137, %c304] : memref<256x400xbf16, #tpu.memory_space<vmem>>, vector<256x16xbf16>
    tpu.vector_store %arg14[%c0_137, %c304], %134 {strides = array<i32>} : memref<256x400xbf16, #tpu.memory_space<vmem>>, vector<256x16xbf16>,
    %c4_138 = arith.constant 4 : index
    %c0_139 = arith.constant 0 : index
    %c0_140 = arith.constant 0 : index
    %136 = vector.load %arg11[%c4_138, %c0_139, %c0_140] : memref<20x20x16xf32, #tpu.memory_space<vmem>>, vector<16x16x16xf32>
    %137 = vector.shape_cast %136 : vector<16x16x16xf32> to vector<256x16xf32>
    %138 = arith.truncf %137 : vector<256x16xf32> to vector<256x16xbf16>
    %c0_141 = arith.constant 0 : index
    %c320 = arith.constant 320 : index
    %139 = vector.load %arg14[%c0_141, %c320] : memref<256x400xbf16, #tpu.memory_space<vmem>>, vector<256x16xbf16>
    tpu.vector_store %arg14[%c0_141, %c320], %138 {strides = array<i32>} : memref<256x400xbf16, #tpu.memory_space<vmem>>, vector<256x16xbf16>,
    %c4_142 = arith.constant 4 : index
    %c1_143 = arith.constant 1 : index
    %c0_144 = arith.constant 0 : index
    %140 = vector.load %arg11[%c4_142, %c1_143, %c0_144] : memref<20x20x16xf32, #tpu.memory_space<vmem>>, vector<16x16x16xf32>
    %141 = vector.shape_cast %140 : vector<16x16x16xf32> to vector<256x16xf32>
    %142 = arith.truncf %141 : vector<256x16xf32> to vector<256x16xbf16>
    %c0_145 = arith.constant 0 : index
    %c336 = arith.constant 336 : index
    %143 = vector.load %arg14[%c0_145, %c336] : memref<256x400xbf16, #tpu.memory_space<vmem>>, vector<256x16xbf16>
    tpu.vector_store %arg14[%c0_145, %c336], %142 {strides = array<i32>} : memref<256x400xbf16, #tpu.memory_space<vmem>>, vector<256x16xbf16>,
    %c4_146 = arith.constant 4 : index
    %c2_147 = arith.constant 2 : index
    %c0_148 = arith.constant 0 : index
    %144 = vector.load %arg11[%c4_146, %c2_147, %c0_148] : memref<20x20x16xf32, #tpu.memory_space<vmem>>, vector<16x16x16xf32>
    %145 = vector.shape_cast %144 : vector<16x16x16xf32> to vector<256x16xf32>
    %146 = arith.truncf %145 : vector<256x16xf32> to vector<256x16xbf16>
    %c0_149 = arith.constant 0 : index
    %c352 = arith.constant 352 : index
    %147 = vector.load %arg14[%c0_149, %c352] : memref<256x400xbf16, #tpu.memory_space<vmem>>, vector<256x16xbf16>
    tpu.vector_store %arg14[%c0_149, %c352], %146 {strides = array<i32>} : memref<256x400xbf16, #tpu.memory_space<vmem>>, vector<256x16xbf16>,
    %c4_150 = arith.constant 4 : index
    %c3_151 = arith.constant 3 : index
    %c0_152 = arith.constant 0 : index
    %148 = vector.load %arg11[%c4_150, %c3_151, %c0_152] : memref<20x20x16xf32, #tpu.memory_space<vmem>>, vector<16x16x16xf32>
    %149 = vector.shape_cast %148 : vector<16x16x16xf32> to vector<256x16xf32>
    %150 = arith.truncf %149 : vector<256x16xf32> to vector<256x16xbf16>
    %c0_153 = arith.constant 0 : index
    %c368 = arith.constant 368 : index
    %151 = vector.load %arg14[%c0_153, %c368] : memref<256x400xbf16, #tpu.memory_space<vmem>>, vector<256x16xbf16>
    tpu.vector_store %arg14[%c0_153, %c368], %150 {strides = array<i32>} : memref<256x400xbf16, #tpu.memory_space<vmem>>, vector<256x16xbf16>,
    %c4_154 = arith.constant 4 : index
    %c4_155 = arith.constant 4 : index
    %c0_156 = arith.constant 0 : index
    %152 = vector.load %arg11[%c4_154, %c4_155, %c0_156] : memref<20x20x16xf32, #tpu.memory_space<vmem>>, vector<16x16x16xf32>
    %153 = vector.shape_cast %152 : vector<16x16x16xf32> to vector<256x16xf32>
    %154 = arith.truncf %153 : vector<256x16xf32> to vector<256x16xbf16>
    %c0_157 = arith.constant 0 : index
    %c384 = arith.constant 384 : index
    %155 = vector.load %arg14[%c0_157, %c384] : memref<256x400xbf16, #tpu.memory_space<vmem>>, vector<256x16xbf16>
    tpu.vector_store %arg14[%c0_157, %c384], %154 {strides = array<i32>} : memref<256x400xbf16, #tpu.memory_space<vmem>>, vector<256x16xbf16>,
    %c0_158 = arith.constant 0 : index
    %c0_159 = arith.constant 0 : index
    %156 = vector.load %arg14[%c0_158, %c0_159] : memref<256x400xbf16, #tpu.memory_space<vmem>>, vector<256x400xbf16>
    %c0_160 = arith.constant 0 : index
    %c0_161 = arith.constant 0 : index
    %157 = vector.load %arg4[%c0_160, %c0_161] : memref<400x24xbf16, #tpu.memory_space<vmem>>, vector<400x24xbf16>
    %cst_162 = arith.constant dense<0.000000e+00> : vector<256x24xf32>
    %158 = tpu.matmul %156, %157, %cst_162 {dimension_numbers = #tpu.dot_dimension_numbers<[1], [0], [0], [1], [0, 0, 1, 1], [], []>} : vector<256x400xbf16>, vector<400x24xbf16>, vector<256x24xf32> -> vector<256x24xf32>
    %c0_163 = arith.constant 0 : index
    %c0_164 = arith.constant 0 : index
    %159 = vector.load %arg5[%c0_163, %c0_164] : memref<1x24xf32, #tpu.memory_space<vmem>>, vector<1x24xf32>
    %160 = vector.broadcast %159 : vector<1x24xf32> to vector<256x24xf32>
    %161 = arith.addf %158, %160 : vector<256x24xf32>
    %cst_165 = arith.constant 0.000000e+00 : f32
    %162 = vector.broadcast %cst_165 : f32 to vector<18x18x16xf32>
    %c0_166 = arith.constant 0 : index
    %c0_167 = arith.constant 0 : index
    %c0_168 = arith.constant 0 : index
    %163 = vector.load %arg12[%c0_166, %c0_167, %c0_168] : memref<18x18x16xf32, #tpu.memory_space<vmem>>, vector<18x18x16xf32>
    tpu.vector_store %arg12[%c0_166, %c0_167, %c0_168], %162 {strides = array<i32>} : memref<18x18x16xf32, #tpu.memory_space<vmem>>, vector<18x18x16xf32>,
    %164 = vector.extract_strided_slice %50 {offsets = [0, 32], sizes = [256, 16], strides = [1, 1]} : vector<256x112xf32> to vector<256x16xf32>
    %165 = vector.shape_cast %164 : vector<256x16xf32> to vector<16x16x16xf32>
    %c1_169 = arith.constant 1 : index
    %c1_170 = arith.constant 1 : index
    %c0_171 = arith.constant 0 : index
    %166 = vector.load %arg12[%c1_169, %c1_170, %c0_171] : memref<18x18x16xf32, #tpu.memory_space<vmem>>, vector<16x16x16xf32>
    tpu.vector_store %arg12[%c1_169, %c1_170, %c0_171], %165 {strides = array<i32>} : memref<18x18x16xf32, #tpu.memory_space<vmem>>, vector<16x16x16xf32>,
    %c0_172 = arith.constant 0 : index
    %c0_173 = arith.constant 0 : index
    %c0_174 = arith.constant 0 : index
    %167 = vector.load %arg12[%c0_172, %c0_173, %c0_174] : memref<18x18x16xf32, #tpu.memory_space<vmem>>, vector<16x16x16xf32>
    %168 = vector.shape_cast %167 : vector<16x16x16xf32> to vector<256x16xf32>
    %169 = arith.truncf %168 : vector<256x16xf32> to vector<256x16xbf16>
    %c0_175 = arith.constant 0 : index
    %c0_176 = arith.constant 0 : index
    %170 = vector.load %arg14[%c0_175, %c0_176] : memref<256x400xbf16, #tpu.memory_space<vmem>>, vector<256x16xbf16>
    tpu.vector_store %arg14[%c0_175, %c0_176], %169 {strides = array<i32>} : memref<256x400xbf16, #tpu.memory_space<vmem>>, vector<256x16xbf16>,
    %c0_177 = arith.constant 0 : index
    %c1_178 = arith.constant 1 : index
    %c0_179 = arith.constant 0 : index
    %171 = vector.load %arg12[%c0_177, %c1_178, %c0_179] : memref<18x18x16xf32, #tpu.memory_space<vmem>>, vector<16x16x16xf32>
    %172 = vector.shape_cast %171 : vector<16x16x16xf32> to vector<256x16xf32>
    %173 = arith.truncf %172 : vector<256x16xf32> to vector<256x16xbf16>
    %c0_180 = arith.constant 0 : index
    %c16_181 = arith.constant 16 : index
    %174 = vector.load %arg14[%c0_180, %c16_181] : memref<256x400xbf16, #tpu.memory_space<vmem>>, vector<256x16xbf16>
    tpu.vector_store %arg14[%c0_180, %c16_181], %173 {strides = array<i32>} : memref<256x400xbf16, #tpu.memory_space<vmem>>, vector<256x16xbf16>,
    %c0_182 = arith.constant 0 : index
    %c2_183 = arith.constant 2 : index
    %c0_184 = arith.constant 0 : index
    %175 = vector.load %arg12[%c0_182, %c2_183, %c0_184] : memref<18x18x16xf32, #tpu.memory_space<vmem>>, vector<16x16x16xf32>
    %176 = vector.shape_cast %175 : vector<16x16x16xf32> to vector<256x16xf32>
    %177 = arith.truncf %176 : vector<256x16xf32> to vector<256x16xbf16>
    %c0_185 = arith.constant 0 : index
    %c32_186 = arith.constant 32 : index
    %178 = vector.load %arg14[%c0_185, %c32_186] : memref<256x400xbf16, #tpu.memory_space<vmem>>, vector<256x16xbf16>
    tpu.vector_store %arg14[%c0_185, %c32_186], %177 {strides = array<i32>} : memref<256x400xbf16, #tpu.memory_space<vmem>>, vector<256x16xbf16>,
    %c1_187 = arith.constant 1 : index
    %c0_188 = arith.constant 0 : index
    %c0_189 = arith.constant 0 : index
    %179 = vector.load %arg12[%c1_187, %c0_188, %c0_189] : memref<18x18x16xf32, #tpu.memory_space<vmem>>, vector<16x16x16xf32>
    %180 = vector.shape_cast %179 : vector<16x16x16xf32> to vector<256x16xf32>
    %181 = arith.truncf %180 : vector<256x16xf32> to vector<256x16xbf16>
    %c0_190 = arith.constant 0 : index
    %c48_191 = arith.constant 48 : index
    %182 = vector.load %arg14[%c0_190, %c48_191] : memref<256x400xbf16, #tpu.memory_space<vmem>>, vector<256x16xbf16>
    tpu.vector_store %arg14[%c0_190, %c48_191], %181 {strides = array<i32>} : memref<256x400xbf16, #tpu.memory_space<vmem>>, vector<256x16xbf16>,
    %c1_192 = arith.constant 1 : index
    %c1_193 = arith.constant 1 : index
    %c0_194 = arith.constant 0 : index
    %183 = vector.load %arg12[%c1_192, %c1_193, %c0_194] : memref<18x18x16xf32, #tpu.memory_space<vmem>>, vector<16x16x16xf32>
    %184 = vector.shape_cast %183 : vector<16x16x16xf32> to vector<256x16xf32>
    %185 = arith.truncf %184 : vector<256x16xf32> to vector<256x16xbf16>
    %c0_195 = arith.constant 0 : index
    %c64_196 = arith.constant 64 : index
    %186 = vector.load %arg14[%c0_195, %c64_196] : memref<256x400xbf16, #tpu.memory_space<vmem>>, vector<256x16xbf16>
    tpu.vector_store %arg14[%c0_195, %c64_196], %185 {strides = array<i32>} : memref<256x400xbf16, #tpu.memory_space<vmem>>, vector<256x16xbf16>,
    %c1_197 = arith.constant 1 : index
    %c2_198 = arith.constant 2 : index
    %c0_199 = arith.constant 0 : index
    %187 = vector.load %arg12[%c1_197, %c2_198, %c0_199] : memref<18x18x16xf32, #tpu.memory_space<vmem>>, vector<16x16x16xf32>
    %188 = vector.shape_cast %187 : vector<16x16x16xf32> to vector<256x16xf32>
    %189 = arith.truncf %188 : vector<256x16xf32> to vector<256x16xbf16>
    %c0_200 = arith.constant 0 : index
    %c80_201 = arith.constant 80 : index
    %190 = vector.load %arg14[%c0_200, %c80_201] : memref<256x400xbf16, #tpu.memory_space<vmem>>, vector<256x16xbf16>
    tpu.vector_store %arg14[%c0_200, %c80_201], %189 {strides = array<i32>} : memref<256x400xbf16, #tpu.memory_space<vmem>>, vector<256x16xbf16>,
    %c2_202 = arith.constant 2 : index
    %c0_203 = arith.constant 0 : index
    %c0_204 = arith.constant 0 : index
    %191 = vector.load %arg12[%c2_202, %c0_203, %c0_204] : memref<18x18x16xf32, #tpu.memory_space<vmem>>, vector<16x16x16xf32>
    %192 = vector.shape_cast %191 : vector<16x16x16xf32> to vector<256x16xf32>
    %193 = arith.truncf %192 : vector<256x16xf32> to vector<256x16xbf16>
    %c0_205 = arith.constant 0 : index
    %c96_206 = arith.constant 96 : index
    %194 = vector.load %arg14[%c0_205, %c96_206] : memref<256x400xbf16, #tpu.memory_space<vmem>>, vector<256x16xbf16>
    tpu.vector_store %arg14[%c0_205, %c96_206], %193 {strides = array<i32>} : memref<256x400xbf16, #tpu.memory_space<vmem>>, vector<256x16xbf16>,
    %c2_207 = arith.constant 2 : index
    %c1_208 = arith.constant 1 : index
    %c0_209 = arith.constant 0 : index
    %195 = vector.load %arg12[%c2_207, %c1_208, %c0_209] : memref<18x18x16xf32, #tpu.memory_space<vmem>>, vector<16x16x16xf32>
    %196 = vector.shape_cast %195 : vector<16x16x16xf32> to vector<256x16xf32>
    %197 = arith.truncf %196 : vector<256x16xf32> to vector<256x16xbf16>
    %c0_210 = arith.constant 0 : index
    %c112_211 = arith.constant 112 : index
    %198 = vector.load %arg14[%c0_210, %c112_211] : memref<256x400xbf16, #tpu.memory_space<vmem>>, vector<256x16xbf16>
    tpu.vector_store %arg14[%c0_210, %c112_211], %197 {strides = array<i32>} : memref<256x400xbf16, #tpu.memory_space<vmem>>, vector<256x16xbf16>,
    %c2_212 = arith.constant 2 : index
    %c2_213 = arith.constant 2 : index
    %c0_214 = arith.constant 0 : index
    %199 = vector.load %arg12[%c2_212, %c2_213, %c0_214] : memref<18x18x16xf32, #tpu.memory_space<vmem>>, vector<16x16x16xf32>
    %200 = vector.shape_cast %199 : vector<16x16x16xf32> to vector<256x16xf32>
    %201 = arith.truncf %200 : vector<256x16xf32> to vector<256x16xbf16>
    %c0_215 = arith.constant 0 : index
    %c128_216 = arith.constant 128 : index
    %202 = vector.load %arg14[%c0_215, %c128_216] : memref<256x400xbf16, #tpu.memory_space<vmem>>, vector<256x16xbf16>
    tpu.vector_store %arg14[%c0_215, %c128_216], %201 {strides = array<i32>} : memref<256x400xbf16, #tpu.memory_space<vmem>>, vector<256x16xbf16>,
    %c0_217 = arith.constant 0 : index
    %c0_218 = arith.constant 0 : index
    %203 = vector.load %arg14[%c0_217, %c0_218] : memref<256x400xbf16, #tpu.memory_space<vmem>>, vector<256x144xbf16>
    %c0_219 = arith.constant 0 : index
    %c0_220 = arith.constant 0 : index
    %204 = vector.load %arg6[%c0_219, %c0_220] : memref<144x24xbf16, #tpu.memory_space<vmem>>, vector<144x24xbf16>
    %cst_221 = arith.constant dense<0.000000e+00> : vector<256x24xf32>
    %205 = tpu.matmul %203, %204, %cst_221 {dimension_numbers = #tpu.dot_dimension_numbers<[1], [0], [0], [1], [0, 0, 1, 1], [], []>} : vector<256x144xbf16>, vector<144x24xbf16>, vector<256x24xf32> -> vector<256x24xf32>
    %c0_222 = arith.constant 0 : index
    %c0_223 = arith.constant 0 : index
    %206 = vector.load %arg7[%c0_222, %c0_223] : memref<1x24xf32, #tpu.memory_space<vmem>>, vector<1x24xf32>
    %207 = vector.broadcast %206 : vector<1x24xf32> to vector<256x24xf32>
    %208 = arith.addf %205, %207 : vector<256x24xf32>
    %cst_224 = arith.constant 0.000000e+00 : f32
    %209 = vector.broadcast %cst_224 : f32 to vector<18x18x24xf32>
    %c0_225 = arith.constant 0 : index
    %c0_226 = arith.constant 0 : index
    %c0_227 = arith.constant 0 : index
    %210 = vector.load %arg13[%c0_225, %c0_226, %c0_227] : memref<18x18x24xf32, #tpu.memory_space<vmem>>, vector<18x18x24xf32>
    tpu.vector_store %arg13[%c0_225, %c0_226, %c0_227], %209 {strides = array<i32>} : memref<18x18x24xf32, #tpu.memory_space<vmem>>, vector<18x18x24xf32>,
    %211 = vector.shape_cast %208 : vector<256x24xf32> to vector<16x16x24xf32>
    %c1_228 = arith.constant 1 : index
    %c1_229 = arith.constant 1 : index
    %c0_230 = arith.constant 0 : index
    %212 = vector.load %arg13[%c1_228, %c1_229, %c0_230] : memref<18x18x24xf32, #tpu.memory_space<vmem>>, vector<16x16x24xf32>
    tpu.vector_store %arg13[%c1_228, %c1_229, %c0_230], %211 {strides = array<i32>} : memref<18x18x24xf32, #tpu.memory_space<vmem>>, vector<16x16x24xf32>,
    %c0_231 = arith.constant 0 : index
    %c0_232 = arith.constant 0 : index
    %c0_233 = arith.constant 0 : index
    %213 = vector.load %arg13[%c0_231, %c0_232, %c0_233] : memref<18x18x24xf32, #tpu.memory_space<vmem>>, vector<16x16x24xf32>
    %214 = vector.shape_cast %213 : vector<16x16x24xf32> to vector<256x24xf32>
    %215 = arith.truncf %214 : vector<256x24xf32> to vector<256x24xbf16>
    %c0_234 = arith.constant 0 : index
    %c0_235 = arith.constant 0 : index
    %216 = vector.load %arg14[%c0_234, %c0_235] : memref<256x400xbf16, #tpu.memory_space<vmem>>, vector<256x24xbf16>
    tpu.vector_store %arg14[%c0_234, %c0_235], %215 {strides = array<i32>} : memref<256x400xbf16, #tpu.memory_space<vmem>>, vector<256x24xbf16>,
    %c0_236 = arith.constant 0 : index
    %c1_237 = arith.constant 1 : index
    %c0_238 = arith.constant 0 : index
    %217 = vector.load %arg13[%c0_236, %c1_237, %c0_238] : memref<18x18x24xf32, #tpu.memory_space<vmem>>, vector<16x16x24xf32>
    %218 = vector.shape_cast %217 : vector<16x16x24xf32> to vector<256x24xf32>
    %219 = arith.truncf %218 : vector<256x24xf32> to vector<256x24xbf16>
    %c0_239 = arith.constant 0 : index
    %c24_240 = arith.constant 24 : index
    %220 = vector.load %arg14[%c0_239, %c24_240] : memref<256x400xbf16, #tpu.memory_space<vmem>>, vector<256x24xbf16>
    tpu.vector_store %arg14[%c0_239, %c24_240], %219 {strides = array<i32>} : memref<256x400xbf16, #tpu.memory_space<vmem>>, vector<256x24xbf16>,
    %c0_241 = arith.constant 0 : index
    %c2_242 = arith.constant 2 : index
    %c0_243 = arith.constant 0 : index
    %221 = vector.load %arg13[%c0_241, %c2_242, %c0_243] : memref<18x18x24xf32, #tpu.memory_space<vmem>>, vector<16x16x24xf32>
    %222 = vector.shape_cast %221 : vector<16x16x24xf32> to vector<256x24xf32>
    %223 = arith.truncf %222 : vector<256x24xf32> to vector<256x24xbf16>
    %c0_244 = arith.constant 0 : index
    %c48_245 = arith.constant 48 : index
    %224 = vector.load %arg14[%c0_244, %c48_245] : memref<256x400xbf16, #tpu.memory_space<vmem>>, vector<256x24xbf16>
    tpu.vector_store %arg14[%c0_244, %c48_245], %223 {strides = array<i32>} : memref<256x400xbf16, #tpu.memory_space<vmem>>, vector<256x24xbf16>,
    %c1_246 = arith.constant 1 : index
    %c0_247 = arith.constant 0 : index
    %c0_248 = arith.constant 0 : index
    %225 = vector.load %arg13[%c1_246, %c0_247, %c0_248] : memref<18x18x24xf32, #tpu.memory_space<vmem>>, vector<16x16x24xf32>
    %226 = vector.shape_cast %225 : vector<16x16x24xf32> to vector<256x24xf32>
    %227 = arith.truncf %226 : vector<256x24xf32> to vector<256x24xbf16>
    %c0_249 = arith.constant 0 : index
    %c72 = arith.constant 72 : index
    %228 = vector.load %arg14[%c0_249, %c72] : memref<256x400xbf16, #tpu.memory_space<vmem>>, vector<256x24xbf16>
    tpu.vector_store %arg14[%c0_249, %c72], %227 {strides = array<i32>} : memref<256x400xbf16, #tpu.memory_space<vmem>>, vector<256x24xbf16>,
    %c1_250 = arith.constant 1 : index
    %c1_251 = arith.constant 1 : index
    %c0_252 = arith.constant 0 : index
    %229 = vector.load %arg13[%c1_250, %c1_251, %c0_252] : memref<18x18x24xf32, #tpu.memory_space<vmem>>, vector<16x16x24xf32>
    %230 = vector.shape_cast %229 : vector<16x16x24xf32> to vector<256x24xf32>
    %231 = arith.truncf %230 : vector<256x24xf32> to vector<256x24xbf16>
    %c0_253 = arith.constant 0 : index
    %c96_254 = arith.constant 96 : index
    %232 = vector.load %arg14[%c0_253, %c96_254] : memref<256x400xbf16, #tpu.memory_space<vmem>>, vector<256x24xbf16>
    tpu.vector_store %arg14[%c0_253, %c96_254], %231 {strides = array<i32>} : memref<256x400xbf16, #tpu.memory_space<vmem>>, vector<256x24xbf16>,
    %c1_255 = arith.constant 1 : index
    %c2_256 = arith.constant 2 : index
    %c0_257 = arith.constant 0 : index
    %233 = vector.load %arg13[%c1_255, %c2_256, %c0_257] : memref<18x18x24xf32, #tpu.memory_space<vmem>>, vector<16x16x24xf32>
    %234 = vector.shape_cast %233 : vector<16x16x24xf32> to vector<256x24xf32>
    %235 = arith.truncf %234 : vector<256x24xf32> to vector<256x24xbf16>
    %c0_258 = arith.constant 0 : index
    %c120 = arith.constant 120 : index
    %236 = vector.load %arg14[%c0_258, %c120] : memref<256x400xbf16, #tpu.memory_space<vmem>>, vector<256x24xbf16>
    tpu.vector_store %arg14[%c0_258, %c120], %235 {strides = array<i32>} : memref<256x400xbf16, #tpu.memory_space<vmem>>, vector<256x24xbf16>,
    %c2_259 = arith.constant 2 : index
    %c0_260 = arith.constant 0 : index
    %c0_261 = arith.constant 0 : index
    %237 = vector.load %arg13[%c2_259, %c0_260, %c0_261] : memref<18x18x24xf32, #tpu.memory_space<vmem>>, vector<16x16x24xf32>
    %238 = vector.shape_cast %237 : vector<16x16x24xf32> to vector<256x24xf32>
    %239 = arith.truncf %238 : vector<256x24xf32> to vector<256x24xbf16>
    %c0_262 = arith.constant 0 : index
    %c144_263 = arith.constant 144 : index
    %240 = vector.load %arg14[%c0_262, %c144_263] : memref<256x400xbf16, #tpu.memory_space<vmem>>, vector<256x24xbf16>
    tpu.vector_store %arg14[%c0_262, %c144_263], %239 {strides = array<i32>} : memref<256x400xbf16, #tpu.memory_space<vmem>>, vector<256x24xbf16>,
    %c2_264 = arith.constant 2 : index
    %c1_265 = arith.constant 1 : index
    %c0_266 = arith.constant 0 : index
    %241 = vector.load %arg13[%c2_264, %c1_265, %c0_266] : memref<18x18x24xf32, #tpu.memory_space<vmem>>, vector<16x16x24xf32>
    %242 = vector.shape_cast %241 : vector<16x16x24xf32> to vector<256x24xf32>
    %243 = arith.truncf %242 : vector<256x24xf32> to vector<256x24xbf16>
    %c0_267 = arith.constant 0 : index
    %c168 = arith.constant 168 : index
    %244 = vector.load %arg14[%c0_267, %c168] : memref<256x400xbf16, #tpu.memory_space<vmem>>, vector<256x24xbf16>
    tpu.vector_store %arg14[%c0_267, %c168], %243 {strides = array<i32>} : memref<256x400xbf16, #tpu.memory_space<vmem>>, vector<256x24xbf16>,
    %c2_268 = arith.constant 2 : index
    %c2_269 = arith.constant 2 : index
    %c0_270 = arith.constant 0 : index
    %245 = vector.load %arg13[%c2_268, %c2_269, %c0_270] : memref<18x18x24xf32, #tpu.memory_space<vmem>>, vector<16x16x24xf32>
    %246 = vector.shape_cast %245 : vector<16x16x24xf32> to vector<256x24xf32>
    %247 = arith.truncf %246 : vector<256x24xf32> to vector<256x24xbf16>
    %c0_271 = arith.constant 0 : index
    %c192_272 = arith.constant 192 : index
    %248 = vector.load %arg14[%c0_271, %c192_272] : memref<256x400xbf16, #tpu.memory_space<vmem>>, vector<256x24xbf16>
    tpu.vector_store %arg14[%c0_271, %c192_272], %247 {strides = array<i32>} : memref<256x400xbf16, #tpu.memory_space<vmem>>, vector<256x24xbf16>,
    %c0_273 = arith.constant 0 : index
    %c0_274 = arith.constant 0 : index
    %249 = vector.load %arg14[%c0_273, %c0_274] : memref<256x400xbf16, #tpu.memory_space<vmem>>, vector<256x216xbf16>
    %c0_275 = arith.constant 0 : index
    %c0_276 = arith.constant 0 : index
    %250 = vector.load %arg8[%c0_275, %c0_276] : memref<216x24xbf16, #tpu.memory_space<vmem>>, vector<216x24xbf16>
    %cst_277 = arith.constant dense<0.000000e+00> : vector<256x24xf32>
    %251 = tpu.matmul %249, %250, %cst_277 {dimension_numbers = #tpu.dot_dimension_numbers<[1], [0], [0], [1], [0, 0, 1, 1], [], []>} : vector<256x216xbf16>, vector<216x24xbf16>, vector<256x24xf32> -> vector<256x24xf32>
    %c0_278 = arith.constant 0 : index
    %c0_279 = arith.constant 0 : index
    %252 = vector.load %arg9[%c0_278, %c0_279] : memref<1x24xf32, #tpu.memory_space<vmem>>, vector<1x24xf32>
    %253 = vector.broadcast %252 : vector<1x24xf32> to vector<256x24xf32>
    %254 = arith.addf %251, %253 : vector<256x24xf32>
    %255 = vector.extract_strided_slice %50 {offsets = [0, 0], sizes = [256, 16], strides = [1, 1]} : vector<256x112xf32> to vector<256x16xf32>
    %256 = vector.extract_strided_slice %50 {offsets = [0, 48], sizes = [256, 64], strides = [1, 1]} : vector<256x112xf32> to vector<256x64xf32>
    %257 = tpu.concatenate %255, %161, %254, %256 in 1 : vector<256x16xf32>, vector<256x24xf32>, vector<256x24xf32>, vector<256x64xf32> -> vector<256x128xf32>
    %258 = vector.shape_cast %257 : vector<256x128xf32> to vector<16x16x128xf32>
    %c0_280 = arith.constant 0 : index
    %c0_281 = arith.constant 0 : index
    %c0_282 = arith.constant 0 : index
    %c0_283 = arith.constant 0 : index
    %259 = vector.load %arg10[%c0_280, %c0_281, %c0_282, %c0_283] : memref<1x16x16x128xf32, #tpu.memory_space<vmem>>, vector<1x16x16x128xf32>
    %260 = vector.shape_cast %259 : vector<1x16x16x128xf32> to vector<16x16x128xf32>
    %261 = vector.shape_cast %258 : vector<16x16x128xf32> to vector<1x16x16x128xf32>
    tpu.vector_store %arg10[%c0_280, %c0_281, %c0_282, %c0_283], %261 {strides = array<i32>} : memref<1x16x16x128xf32, #tpu.memory_space<vmem>>, vector<1x16x16x128xf32>,
    return
  }
  func.func @transform_0(%arg0: i32) -> (i32, i32, i32, i32) {
    %c0_i32 = arith.constant 0 : i32
    %c0_i32_0 = arith.constant 0 : i32
    %c0_i32_1 = arith.constant 0 : i32
    %c0_i32_2 = arith.constant 0 : i32
    return %arg0, %c0_i32, %c0_i32_0, %c0_i32_1 : i32, i32, i32, i32
  }
  func.func @transform_1(%arg0: i32) -> (i32, i32) {
    %c0_i32 = arith.constant 0 : i32
    %c0_i32_0 = arith.constant 0 : i32
    %c0_i32_1 = arith.constant 0 : i32
    return %c0_i32, %c0_i32_0 : i32, i32
  }
  func.func @transform_2(%arg0: i32) -> (i32, i32) {
    %c0_i32 = arith.constant 0 : i32
    %c0_i32_0 = arith.constant 0 : i32
    %c0_i32_1 = arith.constant 0 : i32
    return %c0_i32, %c0_i32_0 : i32, i32
  }
  func.func @transform_3(%arg0: i32) -> (i32, i32) {
    %c0_i32 = arith.constant 0 : i32
    %c0_i32_0 = arith.constant 0 : i32
    %c0_i32_1 = arith.constant 0 : i32
    return %c0_i32, %c0_i32_0 : i32, i32
  }
  func.func @transform_4(%arg0: i32) -> (i32, i32) {
    %c0_i32 = arith.constant 0 : i32
    %c0_i32_0 = arith.constant 0 : i32
    %c0_i32_1 = arith.constant 0 : i32
    return %c0_i32, %c0_i32_0 : i32, i32
  }
  func.func @transform_5(%arg0: i32) -> (i32, i32) {
    %c0_i32 = arith.constant 0 : i32
    %c0_i32_0 = arith.constant 0 : i32
    %c0_i32_1 = arith.constant 0 : i32
    return %c0_i32, %c0_i32_0 : i32, i32
  }
  func.func @transform_6(%arg0: i32) -> (i32, i32) {
    %c0_i32 = arith.constant 0 : i32
    %c0_i32_0 = arith.constant 0 : i32
    %c0_i32_1 = arith.constant 0 : i32
    return %c0_i32, %c0_i32_0 : i32, i32
  }
  func.func @transform_7(%arg0: i32) -> (i32, i32) {
    %c0_i32 = arith.constant 0 : i32
    %c0_i32_0 = arith.constant 0 : i32
    %c0_i32_1 = arith.constant 0 : i32
    return %c0_i32, %c0_i32_0 : i32, i32
  }
  func.func @transform_8(%arg0: i32) -> (i32, i32) {
    %c0_i32 = arith.constant 0 : i32
    %c0_i32_0 = arith.constant 0 : i32
    %c0_i32_1 = arith.constant 0 : i32
    return %c0_i32, %c0_i32_0 : i32, i32
  }
  func.func @transform_9(%arg0: i32) -> (i32, i32, i32, i32) {
    %c0_i32 = arith.constant 0 : i32
    %c0_i32_0 = arith.constant 0 : i32
    %c0_i32_1 = arith.constant 0 : i32
    %c0_i32_2 = arith.constant 0 : i32
    return %arg0, %c0_i32, %c0_i32_0, %c0_i32_1 : i32, i32, i32, i32
  }
}

</mosaic_0001>

<bundles_post_ra>
// kernel: inception_forward.1
= control target key start
LH: loop header
LB: loop body
LE: loop exit
PB: predicated region body
PF: predicated region fallthrough
CT: control target
= control target key end

     0   :  { %s9888_s30 = smov 0   ;;  %s14085_s0 = inlined_call_operand.vmem [shape: f32[2,20,20,4], index: 0, kind: input, shape index: {}]   ;;  %s14086_s1 = inlined_call_operand.vmem [shape: bf16[36,112], index: 1, kind: input, shape index: {}]   ;;  %s14087_s2 = inlined_call_operand.vmem [shape: f32[1,112], index: 2, kind: input, shape index: {}]   ;;  %s14088_s3 = inlined_call_operand.vmem [shape: bf16[400,24], index: 3, kind: input, shape index: {}]   ;;  %s14089_s4 = inlined_call_operand.vmem [shape: f32[1,24], index: 4, kind: input, shape index: {}]   ;;  %s14090_s5 = inlined_call_operand.vmem [shape: bf16[144,24], index: 5, kind: input, shape index: {}]   ;;  %s14091_s6 = inlined_call_operand.vmem [shape: f32[1,24], index: 6, kind: input, shape index: {}]   ;;  %s14092_s7 = inlined_call_operand.vmem [shape: bf16[216,24], index: 7, kind: input, shape index: {}]   ;;  %s14093_s8 = inlined_call_operand.vmem [shape: f32[1,24], index: 8, kind: input, shape index: {}]   ;;  %s14094_s9 = inlined_call_operand.vmem [shape: f32[2,16,16,128], index: 9, kind: output, shape index: {}]  }
   0x1 LB: > { %s9138_s10 = sadd.s32 4294967295, %s9818_s30   ;;  %p9142_p0 = scmp.ge.s32.totalorder %s9818_s30, 1  ;;  %s9818_s30 = sphi %s9888_s30, %s19_s30  }
   0x2   : > { %p287_p1 = scmp.lt.s32.totalorder %s9818_s30, 3 }
   0x4   : > { %p288_p2 = pnand %p9142_p0, %p287_p1 }
   0x6   : > { %291 = sbr.rel (%p288_p2) target bundleno = 2563 (0xa03), region = 56 }
   0xd   : > { %p323_p3 = scmp.lt.s32.totalorder %s9138_s10, 1  ;;  %s9820_s15 = smov 4   ;;  %vm383_vm0 = vcmask 31744   ;;  %vm512_vm1 = vcmask 64544   ;;  %vm641_vm2 = vcmask 97344   ;;  %vm771_vm3 = vcmask 130144  }
   0xe   : > { %s9821_s16 = smov 8   ;;  %s9822_s17 = smov 12   ;;  %vm900_vm4 = vcmask 162944   ;;  %vm1526_vm5 = vcmask 1041408   ;;  %vm1029_vm6 = vcmask 195744   ;;  %vm1691_vm7 = vcmask 130048  }
   0xf   : > { %s14398_s10 = smov (!%p323_p3, %s9138_s10), 1  ;;  %s9823_s18 = smov 16   ;;  %vm1694_vm8 = vcmask 125952   ;;  %vm1159_vm9 = vcmask 228544   ;;  %vm1288_vm10 = vcmask 261344   ;;  %vm1417_vm11 = vcmask 294144  }
  0x10   : > { %s9733_s11 = smul.u32 480, %s14398_s10  ;;  %s9824_s19 = smov 20   ;;  %vm1477_vm12 = vcmask 293888   ;;  %vm2090_vm13 = vcmask 261248   ;;  %vm2219_vm14 = vcmask 392448   ;;  %vm2348_vm15 = vcmask 523648  }
  0x11   : > { %s9825_s20 = smov 24   ;;  %s9826_s21 = smov 28  }
  0x12   : > { %s9902_s14 = scalar_lea.vmem %s14085_s0, %s9733_s11  ;;  %s9827_s28 = smov 32  }
  0x13   : > { %v9178_v0 = vld [vmem:[%s9902_s14 + $0x1a] sm:$0xff]  ;;  %v9179_v1 = vld [vmem:[%s9902_s14 + $0x22] sm:$0xff]  ;;  %v9182_v2 = vld [vmem:[%s9902_s14 + $0x4a] sm:$0xff]  ;;  %s9829_s29 = smov 48   ;;  %s9830_s11 = smov 64  }
  0x14   : > { %v432_v3 = vpack.c.bf16 %v9179_v1, %v9178_v0  ;;  %v9183_v4 = vld [vmem:[%s9902_s14 + $0x52] sm:$0xff]  ;;  %v9181_v6 = vld [vmem:[%s9902_s14 + $0x3a] sm:$0xff]  ;;  %v9184_v8 = vld [vmem:[%s9902_s14 + $0x62] sm:$0xff]  ;;  %s9831_s12 = smov 80   ;;  %s9832_s13 = smov 96  }
  0x15   : > { %v9180_v5 = vld [vmem:[%s9902_s14 + $0x32] sm:$0xff]  ;;  %v9910_v7 = vpack.c.bf16 %v9183_v4, %v9182_v2  ;;  %v9185_v9 = vld [vmem:[%s9902_s14 + $0x6a] sm:$0xff]  ;;  %v9186_v12 = vld [vmem:[%s9902_s14 + $0x7a] sm:$0xff]  ;;  %s9837_s26 = smov 40  }
  0x16   : > { %464 = vrot.lane.b32.xlu0 %v432_v3, %s9820_s15  ;;  %v9915_v10 = vpack.c.bf16 %v9181_v6, %v9180_v5  ;;  %v9919_v11 = vpack.c.bf16 %v9185_v9, %v9184_v8  ;;  %v9187_v13 = vld [vmem:[%s9902_s14 + $0x82] sm:$0xff]  ;;  %v9188_v14 = vld [vmem:[%s9902_s14 + $0x92] sm:$0xff]  ;;  %v9189_v15 = vld [vmem:[%s9902_s14 + $0x9a] sm:$0xff] }
  0x17   : > { %468 = vrot.lane.b32.xlu1 %v9910_v7, %s9820_s15  ;;  %v9927_v16 = vpack.c.bf16 %v9187_v13, %v9186_v12  ;;  %v9931_v17 = vpack.c.bf16 %v9189_v15, %v9188_v14  ;;  %v9190_v18 = vld [vmem:[%s9902_s14 + $0xaa] sm:$0xff]  ;;  %v9191_v19 = vld [vmem:[%s9902_s14 + $0xb2] sm:$0xff]  ;;  %v9192_v20 = vld [vmem:[%s9902_s14 + $0xc2] sm:$0xff] }
  0x18   : > { %v9193_v21 = vld [vmem:[%s9902_s14 + $0xca] sm:$0xff]  ;;  %v9939_v22 = vpack.c.bf16 %v9191_v19, %v9190_v18  ;;  %v9194_v24 = vld [vmem:[%s9902_s14 + $0xda] sm:$0xff]  ;;  %v9195_v25 = vld [vmem:[%s9902_s14 + $0xe2] sm:$0xff] }
  0x19   : > { %v9943_v23 = vpack.c.bf16 %v9193_v21, %v9192_v20  ;;  %v9196_v26 = vld [vmem:[%s9902_s14 + $0xf2] sm:$0xff]  ;;  %v9197_v27 = vld [vmem:[%s9902_s14 + $0xfa] sm:$0xff]  ;;  %v9951_v28 = vpack.c.bf16 %v9195_v25, %v9194_v24  ;;  %v9198_v30 = vld [vmem:[%s9902_s14 + $0x10a] sm:$0xff] }
  0x1a   : > { %466 = vrot.lane.b32.xlu0 %v9915_v10, %s9820_s15  ;;  %v9955_v29 = vpack.c.bf16 %v9197_v27, %v9196_v26  ;;  %v9199_v31 = vld [vmem:[%s9902_s14 + $0x112] sm:$0xff]  ;;  %v9200_v32 = vld [vmem:[%s9902_s14 + $0x122] sm:$0xff]  ;;  %v9201_v33 = vld [vmem:[%s9902_s14 + $0x12a] sm:$0xff] }
  0x1b   : > { %470 = vrot.lane.b32.xlu1 %v9919_v11, %s9820_s15  ;;  %v9963_v34 = vpack.c.bf16 %v9199_v31, %v9198_v30  ;;  %v9967_v35 = vpack.c.bf16 %v9201_v33, %v9200_v32  ;;  %v9202_v36 = vld [vmem:[%s9902_s14 + $0x13a] sm:$0xff]  ;;  %v9203_v37 = vld [vmem:[%s9902_s14 + $0x142] sm:$0xff]  ;;  %v9204_v38 = vld [vmem:[%s9902_s14 + $0x152] sm:$0xff] }
  0x1c   : > { %v9205_v39 = vld [vmem:[%s9902_s14 + $0x15a] sm:$0xff]  ;;  %v9242_v40 = vld [vmem:[%s9902_s14 + $0x31] sm:$0xff]  ;;  %v9244_v45 = vld [vmem:[%s9902_s14 + $0x49] sm:$0xff]  ;;  %v9984_v48 = vpack.c.bf16 %v9203_v37, %v9202_v36 }
  0x1d   : > { %v9243_v41 = vld [vmem:[%s9902_s14 + $0x39] sm:$0xff]  ;;  %v9206_v42 = vld [vmem:[%s9902_s14 + $0x16a] sm:$0xff]  ;;  %v9246_v47 = vld [vmem:[%s9902_s14 + $0x61] sm:$0xff]  ;;  %v9995_v55 = vpack.c.bf16 %v9205_v39, %v9204_v38 }
  0x1e   : > { %472 = vrot.lane.b32.xlu0 %v9927_v16, %s9820_s15  ;;  %v9207_v43 = vld [vmem:[%s9902_s14 + $0x172] sm:$0xff]  ;;  %v9977_v44 = vpack.c.bf16 %v9243_v41, %v9242_v40  ;;  %v9208_v49 = vld [vmem:[%s9902_s14 + $0x182] sm:$0xff]  ;;  %v9209_v50 = vld [vmem:[%s9902_s14 + $0x18a] sm:$0xff] }
  0x1f   : > { %474 = vrot.lane.b32.xlu1 %v9931_v17, %s9820_s15  ;;  %v9245_v46 = vld [vmem:[%s9902_s14 + $0x51] sm:$0xff]  ;;  %v9247_v52 = vld [vmem:[%s9902_s14 + $0x69] sm:$0xff]  ;;  %v9248_v53 = vld [vmem:[%s9902_s14 + $0x79] sm:$0xff]  ;;  %v10028_v9 = vpack.c.bf16 %v9207_v43, %v9206_v42  ;;  %v10041_v20 = vpack.c.bf16 %v9209_v50, %v9208_v49 }
  0x20   : > { %v9988_v51 = vpack.c.bf16 %v9245_v46, %v9244_v45  ;;  %v9249_v54 = vld [vmem:[%s9902_s14 + $0x81] sm:$0xff]  ;;  %v9997_v56 = vpack.c.bf16 %v9247_v52, %v9246_v47  ;;  %v9250_v58 = vld [vmem:[%s9902_s14 + $0x91] sm:$0xff]  ;;  %v9251_v59 = vld [vmem:[%s9902_s14 + $0x99] sm:$0xff]  ;;  %385 = vst.msk [vmem:[#allocation5 + $0x20] sm:$0xff] %vm383_vm0, %v9977_v44 }
  0x21   : > { %v9999_v57 = vpack.c.bf16 %v9249_v54, %v9248_v53  ;;  %v9252_v60 = vld [vmem:[%s9902_s14 + $0xa9] sm:$0xff]  ;;  %v10006_v61 = vpack.c.bf16 %v9251_v59, %v9250_v58  ;;  %v9253_v62 = vld [vmem:[%s9902_s14 + $0xb1] sm:$0xff]  ;;  %v9254_v63 = vld [vmem:[%s9902_s14 + $0xc1] sm:$0xff] }
  0x22   : > { %476 = vrot.lane.b32.xlu0 %v9939_v22, %s9820_s15  ;;  %v9255_v0 = vld [vmem:[%s9902_s14 + $0xc9] sm:$0xff]  ;;  %386 = vst.msk [vmem:[#allocation5 + $0x40] sm:$0xff] %vm383_vm0, %v9988_v51  ;;  %v9210_v1 = vld [vmem:[%s9902_s14 + $0x1b] sm:$0xff]  ;;  %v10015_v3 = vpack.c.bf16 %v9253_v62, %v9252_v60  ;;  %v9258_v8 = vld [vmem:[%s9902_s14 + $0xf1] sm:$0xff] }
  0x23   : > { %478 = vrot.lane.b32.xlu1 %v9943_v23, %s9820_s15  ;;  %v9211_v2 = vld [vmem:[%s9902_s14 + $0x23] sm:$0xff]  ;;  %v10017_v4 = vpack.c.bf16 %v9255_v0, %v9254_v63  ;;  %v9256_v5 = vld [vmem:[%s9902_s14 + $0xd9] sm:$0xff]  ;;  %387 = vst.msk [vmem:[#allocation5 + $0x60] sm:$0xff] %vm383_vm0, %v9997_v56  ;;  %388 = vst.msk [vmem:[#allocation5 + $0x80] sm:$0xff] %vm383_vm0, %v9999_v57 }
  0x24   : > { %v9257_v6 = vld [vmem:[%s9902_s14 + $0xe1] sm:$0xff]  ;;  %v9212_v12 = vld [vmem:[%s9902_s14 + $0x33] sm:$0xff]  ;;  %v9260_v18 = vld [vmem:[%s9902_s14 + $0x109] sm:$0xff]  ;;  %389 = vst.msk [vmem:[#allocation5 + $0xa0] sm:$0xff] %vm383_vm0, %v10006_v61  ;;  %v561_v41 = vpack.c.bf16 %v9211_v2, %v9210_v1 }
  0x25   : > { %v9213_v13 = vld [vmem:[%s9902_s14 + $0x3b] sm:$0xff]  ;;  %v10032_v14 = vpack.c.bf16 %v9257_v6, %v9256_v5  ;;  %v9261_v19 = vld [vmem:[%s9902_s14 + $0x111] sm:$0xff]  ;;  %v9263_v26 = vld [vmem:[%s9902_s14 + $0x129] sm:$0xff]  ;;  %390 = vst.msk [vmem:[#allocation5 + $0xc0] sm:$0xff] %vm383_vm0, %v10015_v3 }
  0x26   : > { %480 = vrot.lane.b32.xlu0 %v9951_v28, %s9820_s15  ;;  %v9259_v15 = vld [vmem:[%s9902_s14 + $0xf9] sm:$0xff]  ;;  %v10045_v24 = vpack.c.bf16 %v9261_v19, %v9260_v18  ;;  %v9262_v25 = vld [vmem:[%s9902_s14 + $0x121] sm:$0xff]  ;;  %391 = vst.msk [vmem:[#allocation5 + $0xe0] sm:$0xff] %vm383_vm0, %v10017_v4  ;;  %v9266_v32 = vld [vmem:[%s9902_s14 + $0x151] sm:$0xff]  ;;  %v10082_v46 = vpack.c.bf16 %v9213_v13, %v9212_v12 }
  0x27   : > { %482 = vrot.lane.b32.xlu1 %v9955_v29, %s9820_s15  ;;  %v10043_v21 = vpack.c.bf16 %v9259_v15, %v9258_v8  ;;  %v9264_v27 = vld [vmem:[%s9902_s14 + $0x139] sm:$0xff]  ;;  %v10054_v30 = vpack.c.bf16 %v9263_v26, %v9262_v25  ;;  %v9265_v31 = vld [vmem:[%s9902_s14 + $0x141] sm:$0xff]  ;;  %392 = vst.msk [vmem:[#allocation5 + $0x100] sm:$0xff] %vm383_vm0, %v10032_v14  ;;  %v9268_v38 = vld [vmem:[%s9902_s14 + $0x169] sm:$0xff] }
  0x28   : > { %v9267_v33 = vld [vmem:[%s9902_s14 + $0x159] sm:$0xff]  ;;  %v10061_v36 = vpack.c.bf16 %v9265_v31, %v9264_v27  ;;  %v9269_v39 = vld [vmem:[%s9902_s14 + $0x171] sm:$0xff]  ;;  %v9270_v40 = vld [vmem:[%s9902_s14 + $0x181] sm:$0xff]  ;;  %394 = vst.msk [vmem:[#allocation5 + $0x140] sm:$0xff] %vm383_vm0, %v10045_v24 }
  0x29   : > { %v10063_v37 = vpack.c.bf16 %v9267_v33, %v9266_v32  ;;  %393 = vst.msk [vmem:[#allocation5 + $0x120] sm:$0xff] %vm383_vm0, %v10043_v21  ;;  %v9214_v42 = vld [vmem:[%s9902_s14 + $0x4b] sm:$0xff]  ;;  %v10075_v43 = vpack.c.bf16 %v9269_v39, %v9268_v38  ;;  %395 = vst.msk [vmem:[#allocation5 + $0x160] sm:$0xff] %vm383_vm0, %v10054_v30  ;;  %v9215_v47 = vld [vmem:[%s9902_s14 + $0x53] sm:$0xff] }
  0x2a   : > { %484 = vrot.lane.b32.xlu0 %v9963_v34, %s9820_s15  ;;  %v9271_v45 = vld [vmem:[%s9902_s14 + $0x189] sm:$0xff]  ;;  %v9146_v50 = vld [vmem:[%s9902_s14 + $0x19] sm:$0xff]  ;;  %v9147_v52 = vld [vmem:[%s9902_s14 + $0x21] sm:$0xff]  ;;  %396 = vst.msk [vmem:[#allocation5 + $0x180] sm:$0xff] %vm383_vm0, %v10061_v36  ;;  %v10102_v62 = vpack.c.bf16 %v9215_v47, %v9214_v42 }
  0x2b   : > { %486 = vrot.lane.b32.xlu1 %v9967_v35, %s9820_s15  ;;  %v10085_v49 = vpack.c.bf16 %v9271_v45, %v9270_v40  ;;  %397 = vst.msk [vmem:[#allocation5 + $0x1a0] sm:$0xff] %vm383_vm0, %v10063_v37  ;;  %v9216_v53 = vld [vmem:[%s9902_s14 + $0x63] sm:$0xff]  ;;  %v9217_v54 = vld [vmem:[%s9902_s14 + $0x6b] sm:$0xff]  ;;  %v367_v58 = vpack.c.bf16 %v9147_v52, %v9146_v50  ;;  %398 = vst.msk [vmem:[#allocation5 + $0x1c0] sm:$0xff] %vm383_vm0, %v10075_v43 }
  0x2c   : > { %v9218_v59 = vld [vmem:[%s9902_s14 + $0x7b] sm:$0xff]  ;;  %v9219_v60 = vld [vmem:[%s9902_s14 + $0x83] sm:$0xff]  ;;  %v9220_v63 = vld [vmem:[%s9902_s14 + $0x93] sm:$0xff]  ;;  %v10109_v1 = vpack.c.bf16 %v9217_v54, %v9216_v53 }
  0x2d   : > { %399 = vst.msk [vmem:[#allocation5 + $0x1e0] sm:$0xff] %vm383_vm0, %v10085_v49  ;;  %v9221_v0 = vld [vmem:[%s9902_s14 + $0x9b] sm:$0xff]  ;;  %384 = vst.msk [vmem:[#allocation5] sm:$0xff] %vm383_vm0, %v367_v58  ;;  %v9222_v2 = vld [vmem:[%s9902_s14 + $0xab] sm:$0xff]  ;;  %v10115_v6 = vpack.c.bf16 %v9219_v60, %v9218_v59  ;;  %vm2477_vm0 = vcmask 654848  }
  0x2e   : > { %488 = vrot.lane.b32.xlu0 %v9984_v48, %s9820_s15  ;;  %v9223_v5 = vld [vmem:[%s9902_s14 + $0xb3] sm:$0xff]  ;;  %v9224_v8 = vld [vmem:[%s9902_s14 + $0xc3] sm:$0xff]  ;;  %v9225_v12 = vld [vmem:[%s9902_s14 + $0xcb] sm:$0xff]  ;;  %v10121_v13 = vpack.c.bf16 %v9221_v0, %v9220_v63 }
  0x2f   : > { %490 = vrot.lane.b32.xlu1 %v9995_v55, %s9820_s15  ;;  %v9226_v15 = vld [vmem:[%s9902_s14 + $0xdb] sm:$0xff]  ;;  %v9227_v18 = vld [vmem:[%s9902_s14 + $0xe3] sm:$0xff]  ;;  %v10127_v19 = vpack.c.bf16 %v9223_v5, %v9222_v2  ;;  %v9228_v25 = vld [vmem:[%s9902_s14 + $0xf3] sm:$0xff]  ;;  %v10133_v27 = vpack.c.bf16 %v9225_v12, %v9224_v8 }
  0x30   : > { %v9229_v26 = vld [vmem:[%s9902_s14 + $0xfb] sm:$0xff]  ;;  %v9230_v31 = vld [vmem:[%s9902_s14 + $0x10b] sm:$0xff]  ;;  %v9231_v32 = vld [vmem:[%s9902_s14 + $0x113] sm:$0xff]  ;;  %v10139_v33 = vpack.c.bf16 %v9227_v18, %v9226_v15 }
  0x31   : > { %v9232_v38 = vld [vmem:[%s9902_s14 + $0x123] sm:$0xff]  ;;  %v9233_v39 = vld [vmem:[%s9902_s14 + $0x12b] sm:$0xff]  ;;  %v10145_v40 = vpack.c.bf16 %v9229_v26, %v9228_v25  ;;  %v10151_v45 = vpack.c.bf16 %v9231_v32, %v9230_v31  ;;  %v9236_v47 = vld [vmem:[%s9902_s14 + $0x153] sm:$0xff] }
  0x32   : > { %492 = vrot.lane.b32.xlu0 %v10028_v9, %s9820_s15  ;;  %v9235_v42 = vld [vmem:[%s9902_s14 + $0x143] sm:$0xff]  ;;  %v10156_v50 = vpack.c.bf16 %v9233_v39, %v9232_v38  ;;  %v9237_v52 = vld [vmem:[%s9902_s14 + $0x15b] sm:$0xff]  ;;  %v9238_v53 = vld [vmem:[%s9902_s14 + $0x16b] sm:$0xff] }
  0x33   : > { %494 = vrot.lane.b32.xlu1 %v10041_v20, %s9820_s15  ;;  %v9239_v54 = vld [vmem:[%s9902_s14 + $0x173] sm:$0xff]  ;;  %v9240_v59 = vld [vmem:[%s9902_s14 + $0x183] sm:$0xff]  ;;  %v9241_v60 = vld [vmem:[%s9902_s14 + $0x18b] sm:$0xff]  ;;  %v10169_v63 = vpack.c.bf16 %v9237_v52, %v9236_v47 }
  0x34   : > { %v10173_v0 = vpack.c.bf16 %v9239_v54, %v9238_v53  ;;  %v10177_v2 = vpack.c.bf16 %v9241_v60, %v9240_v59  ;;  %v9273_v5 = vld [vmem:[%s9902_s14 + $0x1a1] sm:$0xff]  ;;  %v9376_v59 = vld [vmem:[%s9902_s14 + $0x92] sm:$0xff] }
  0x35   : > { %v9336_v18 = vld [vmem:[%s9902_s14 + $0x19b] sm:$0xff] }
  0x36   : > { %593 = vrot.lane.b32.xlu0 %v561_v41, %s9821_s16  ;;  %v9234_v41 = vld [vmem:[%s9902_s14 + $0x13b] sm:$0xff] }
  0x37   : > { %595 = vrot.lane.b32.xlu1 %v10082_v46, %s9821_s16  ;;  %v10163_v58 = vpack.c.bf16 %v9235_v42, %v9234_v41  ;;  %v9370_v42 = vld [vmem:[%s9902_s14 + $0x4a] sm:$0xff]  ;;  %v9372_v47 = vld [vmem:[%s9902_s14 + $0x62] sm:$0xff]  ;;  %v9374_v53 = vld [vmem:[%s9902_s14 + $0x7a] sm:$0xff] }
  0x38   : > { %v9375_v54 = vld [vmem:[%s9902_s14 + $0x82] sm:$0xff]  ;;  %v9377_v60 = vld [vmem:[%s9902_s14 + $0x9a] sm:$0xff] }
  0x3a   : > { %597 = vrot.lane.b32.xlu0 %v10102_v62, %s9821_s16 }
  0x3b   : > { %599 = vrot.lane.b32.xlu1 %v10109_v1, %s9821_s16 }
  0x3e   : > { %601 = vrot.lane.b32.xlu0 %v10115_v6, %s9821_s16 }
  0x3f   : > { %603 = vrot.lane.b32.xlu1 %v10121_v13, %s9821_s16 }
  0x42   : > { %605 = vrot.lane.b32.xlu0 %v10127_v19, %s9821_s16 }
  0x43   : > { %607 = vrot.lane.b32.xlu1 %v10133_v27, %s9821_s16 }
  0x46   : > { %609 = vrot.lane.b32.xlu0 %v10139_v33, %s9821_s16 }
  0x47   : > { %611 = vrot.lane.b32.xlu1 %v10145_v40, %s9821_s16 }
  0x4a   : > { %613 = vrot.lane.b32.xlu0 %v10151_v45, %s9821_s16 }
  0x4b   : > { %615 = vrot.lane.b32.xlu1 %v10156_v50, %s9821_s16 }
  0x4e   : > { %617 = vrot.lane.b32.xlu0 %v10163_v58, %s9821_s16 }
  0x4f   : > { %619 = vrot.lane.b32.xlu1 %v10169_v63, %s9821_s16 }
  0x52   : > { %621 = vrot.lane.b32.xlu0 %v10173_v0, %s9821_s16 }
  0x53   : > { %623 = vrot.lane.b32.xlu1 %v10177_v2, %s9821_s16 }
  0x56   : > { %723 = vrot.lane.b32.xlu0 %v9977_v44, %s9822_s17  ;;  %v9272_v44 = vld [vmem:[%s9902_s14 + $0x199] sm:$0xff] }
  0x57   : > { %725 = vrot.lane.b32.xlu1 %v9988_v51, %s9822_s17  ;;  %v10199_v8 = vpack.c.bf16 %v9273_v5, %v9272_v44  ;;  %v9378_v44 = vld [vmem:[%s9902_s14 + $0xaa] sm:$0xff]  ;;  %v9379_v5 = vld [vmem:[%s9902_s14 + $0xb2] sm:$0xff] }
  0x5a   : > { %727 = vrot.lane.b32.xlu0 %v9997_v56, %s9822_s17 }
  0x5b   : > { %729 = vrot.lane.b32.xlu1 %v9999_v57, %s9822_s17 }
  0x5e   : > { %731 = vrot.lane.b32.xlu0 %v10006_v61, %s9822_s17 }
  0x5f   : > { %733 = vrot.lane.b32.xlu1 %v10015_v3, %s9822_s17 }
  0x62   : > { %735 = vrot.lane.b32.xlu0 %v10017_v4, %s9822_s17 }
  0x63   : > { %737 = vrot.lane.b32.xlu1 %v10032_v14, %s9822_s17 }
  0x66   : > { %739 = vrot.lane.b32.xlu0 %v10043_v21, %s9822_s17 }
  0x67   : > { %741 = vrot.lane.b32.xlu1 %v10045_v24, %s9822_s17 }
  0x6a   : > { %743 = vrot.lane.b32.xlu0 %v10054_v30, %s9822_s17 }
  0x6b   : > { %745 = vrot.lane.b32.xlu1 %v10061_v36, %s9822_s17 }
  0x6e   : > { %747 = vrot.lane.b32.xlu0 %v10063_v37, %s9822_s17 }
  0x6f   : > { %749 = vrot.lane.b32.xlu1 %v10075_v43, %s9822_s17 }
  0x72   : > { %751 = vrot.lane.b32.xlu0 %v10085_v49, %s9822_s17 }
  0x73   : > { %753 = vrot.lane.b32.xlu1 %v10199_v8, %s9822_s17 }
  0x76   : > { %852 = vrot.lane.b32.xlu0 %v9915_v10, %s9823_s18 }
  0x77   : > { %854 = vrot.lane.b32.xlu1 %v9910_v7, %s9823_s18 }
  0x7a   : > { %856 = vrot.lane.b32.xlu0 %v9919_v11, %s9823_s18 }
  0x7b   : > { %858 = vrot.lane.b32.xlu1 %v9927_v16, %s9823_s18  ;;  %v9304_v16 = vld [vmem:[%s9902_s14 + $0x19a] sm:$0xff] }
  0x7e   : > { %860 = vrot.lane.b32.xlu0 %v9931_v17, %s9823_s18  ;;  %v9305_v17 = vld [vmem:[%s9902_s14 + $0x1a2] sm:$0xff] }
  0x7f   : > { %862 = vrot.lane.b32.xlu1 %v9939_v22, %s9823_s18 }
  0x82   : > { %864 = vrot.lane.b32.xlu0 %v9943_v23, %s9823_s18  ;;  %v10237_v23 = vpack.c.bf16 %v9305_v17, %v9304_v16  ;;  %v1212_v16 = vpack.c.bf16 %v9379_v5, %v9378_v44 }
  0x83   : > { %866 = vrot.lane.b32.xlu1 %v9951_v28, %s9823_s18 }
  0x86   : > { %868 = vrot.lane.b32.xlu0 %v9955_v29, %s9823_s18 }
  0x87   : > { %870 = vrot.lane.b32.xlu1 %v9963_v34, %s9823_s18 }
  0x88   : > { %v465_v7 = vpop.permute.xlu0 %464 }
  0x89   : > { %513 = vst.msk [vmem:[#allocation5] sm:$0xff] %vm512_vm1, %v465_v7  ;;  %v469_v10 = vpop.permute.xlu1 %468  ;;  %v9380_v7 = vld [vmem:[%s9902_s14 + $0xc2] sm:$0xff] }
  0x8a   : > { %515 = vst.msk [vmem:[#allocation5 + $0x40] sm:$0xff] %vm512_vm1, %v469_v10  ;;  %872 = vrot.lane.b32.xlu0 %v9967_v35, %s9823_s18  ;;  %v9381_v10 = vld [vmem:[%s9902_s14 + $0xca] sm:$0xff] }
  0x8b   : > { %874 = vrot.lane.b32.xlu1 %v9984_v48, %s9823_s18  ;;  %v1213_v17 = vpack.c.bf16 %v9381_v10, %v9380_v7  ;;  %v9411_v7 = vld [vmem:[%s9902_s14 + $0xb3] sm:$0xff] }
  0x8c   : > { %v467_v11 = vpop.permute.xlu0 %466 }
  0x8d   : > { %514 = vst.msk [vmem:[#allocation5 + $0x20] sm:$0xff] %vm512_vm1, %v467_v11  ;;  %v471_v22 = vpop.permute.xlu1 %470 }
  0x8e   : > { %516 = vst.msk [vmem:[#allocation5 + $0x60] sm:$0xff] %vm512_vm1, %v471_v22  ;;  %876 = vrot.lane.b32.xlu0 %v9995_v55, %s9823_s18  ;;  %v9382_v22 = vld [vmem:[%s9902_s14 + $0xda] sm:$0xff] }
  0x8f   : > { %878 = vrot.lane.b32.xlu1 %v10028_v9, %s9823_s18 }
  0x90   : > { %v473_v28 = vpop.permute.xlu0 %472 }
  0x91   : > { %517 = vst.msk [vmem:[#allocation5 + $0x80] sm:$0xff] %vm512_vm1, %v473_v28  ;;  %v475_v29 = vpop.permute.xlu1 %474  ;;  %v9383_v28 = vld [vmem:[%s9902_s14 + $0xe2] sm:$0xff] }
  0x92   : > { %518 = vst.msk [vmem:[#allocation5 + $0xa0] sm:$0xff] %vm512_vm1, %v475_v29  ;;  %880 = vrot.lane.b32.xlu0 %v10041_v20, %s9823_s18 }
  0x93   : > { %882 = vrot.lane.b32.xlu1 %v10237_v23, %s9823_s18 }
  0x94   : > { %v477_v34 = vpop.permute.xlu0 %476 }
  0x95   : > { %519 = vst.msk [vmem:[#allocation5 + $0xc0] sm:$0xff] %vm512_vm1, %v477_v34  ;;  %v479_v35 = vpop.permute.xlu1 %478  ;;  %v9384_v34 = vld [vmem:[%s9902_s14 + $0xf2] sm:$0xff] }
  0x96   : > { %520 = vst.msk [vmem:[#allocation5 + $0xe0] sm:$0xff] %vm512_vm1, %v479_v35  ;;  %981 = vrot.lane.b32.xlu0 %v10082_v46, %s9824_s19  ;;  %v9385_v35 = vld [vmem:[%s9902_s14 + $0xfa] sm:$0xff] }
  0x97   : > { %983 = vrot.lane.b32.xlu1 %v10102_v62, %s9824_s19 }
  0x98   : > { %v481_v48 = vpop.permute.xlu0 %480 }
  0x99   : > { %521 = vst.msk [vmem:[#allocation5 + $0x100] sm:$0xff] %vm512_vm1, %v481_v48  ;;  %v483_v55 = vpop.permute.xlu1 %482 }
  0x9a   : > { %522 = vst.msk [vmem:[#allocation5 + $0x120] sm:$0xff] %vm512_vm1, %v483_v55  ;;  %985 = vrot.lane.b32.xlu0 %v10109_v1, %s9824_s19  ;;  %v1214_v55 = vpack.c.bf16 %v9383_v28, %v9382_v22 }
  0x9b   : > { %987 = vrot.lane.b32.xlu1 %v10115_v6, %s9824_s19 }
  0x9c   : > { %v485_v9 = vpop.permute.xlu0 %484 }
  0x9d   : > { %523 = vst.msk [vmem:[#allocation5 + $0x140] sm:$0xff] %vm512_vm1, %v485_v9  ;;  %v487_v20 = vpop.permute.xlu1 %486  ;;  %v1215_v9 = vpack.c.bf16 %v9385_v35, %v9384_v34  ;;  %v9415_v34 = vld [vmem:[%s9902_s14 + $0xe3] sm:$0xff] }
  0x9e   : > { %524 = vst.msk [vmem:[#allocation5 + $0x160] sm:$0xff] %vm512_vm1, %v487_v20  ;;  %989 = vrot.lane.b32.xlu0 %v10121_v13, %s9824_s19  ;;  %v9386_v20 = vld [vmem:[%s9902_s14 + $0x10a] sm:$0xff] }
  0x9f   : > { %991 = vrot.lane.b32.xlu1 %v10127_v19, %s9824_s19  ;;  %v9337_v19 = vld [vmem:[%s9902_s14 + $0x1a3] sm:$0xff] }
  0xa0   : > { %v489_v46 = vpop.permute.xlu0 %488  ;;  %v10289_v26 = vpack.c.bf16 %v9337_v19, %v9336_v18  ;;  %v9390_v18 = vld [vmem:[%s9902_s14 + $0x13a] sm:$0xff]  ;;  %v9391_v19 = vld [vmem:[%s9902_s14 + $0x142] sm:$0xff] }
  0xa1   : > { %525 = vst.msk [vmem:[#allocation5 + $0x180] sm:$0xff] %vm512_vm1, %v489_v46  ;;  %v491_v62 = vpop.permute.xlu1 %490  ;;  %v9387_v46 = vld [vmem:[%s9902_s14 + $0x112] sm:$0xff] }
  0xa2   : > { %526 = vst.msk [vmem:[#allocation5 + $0x1a0] sm:$0xff] %vm512_vm1, %v491_v62  ;;  %993 = vrot.lane.b32.xlu0 %v10133_v27, %s9824_s19 }
  0xa3   : > { %995 = vrot.lane.b32.xlu1 %v10139_v33, %s9824_s19 }
  0xa4   : > { %v493_v1 = vpop.permute.xlu0 %492 }
  0xa5   : > { %527 = vst.msk [vmem:[#allocation5 + $0x1c0] sm:$0xff] %vm512_vm1, %v493_v1  ;;  %v495_v6 = vpop.permute.xlu1 %494  ;;  %v9388_v1 = vld [vmem:[%s9902_s14 + $0x122] sm:$0xff] }
  0xa6   : > { %528 = vst.msk [vmem:[#allocation5 + $0x1e0] sm:$0xff] %vm512_vm1, %v495_v6  ;;  %997 = vrot.lane.b32.xlu0 %v10145_v40, %s9824_s19  ;;  %v9389_v6 = vld [vmem:[%s9902_s14 + $0x12a] sm:$0xff]  ;;  %vm2607_vm1 = vcmask 786048  }
  0xa7   : > { %999 = vrot.lane.b32.xlu1 %v10151_v45, %s9824_s19 }
  0xa8   : > { %v594_v12 = vpop.permute.xlu0 %593 }
  0xa9   : > { %642 = vst.msk [vmem:[#allocation5] sm:$0xff] %vm641_vm2, %v594_v12  ;;  %v596_v13 = vpop.permute.xlu1 %595 }
  0xaa   : > { %643 = vst.msk [vmem:[#allocation5 + $0x20] sm:$0xff] %vm641_vm2, %v596_v13  ;;  %1001 = vrot.lane.b32.xlu0 %v10156_v50, %s9824_s19  ;;  %v9373_v50 = vld [vmem:[%s9902_s14 + $0x6a] sm:$0xff]  ;;  %v1216_v13 = vpack.c.bf16 %v9387_v46, %v9386_v20 }
  0xab   : > { %1003 = vrot.lane.b32.xlu1 %v10163_v58, %s9824_s19 }
  0xac   : > { %v598_v15 = vpop.permute.xlu0 %597 }
  0xad   : > { %644 = vst.msk [vmem:[#allocation5 + $0x40] sm:$0xff] %vm641_vm2, %v598_v15  ;;  %v600_v25 = vpop.permute.xlu1 %599  ;;  %v1217_v15 = vpack.c.bf16 %v9389_v6, %v9388_v1  ;;  %v9419_v1 = vld [vmem:[%s9902_s14 + $0x113] sm:$0xff] }
  0xae   : > { %645 = vst.msk [vmem:[#allocation5 + $0x60] sm:$0xff] %vm641_vm2, %v600_v25  ;;  %1005 = vrot.lane.b32.xlu0 %v10169_v63, %s9824_s19 }
  0xaf   : > { %1007 = vrot.lane.b32.xlu1 %v10173_v0, %s9824_s19  ;;  %v1210_v0 = vpack.c.bf16 %v9375_v54, %v9374_v53 }
  0xb0   : > { %v602_v27 = vpop.permute.xlu0 %601 }
  0xb1   : > { %646 = vst.msk [vmem:[#allocation5 + $0x80] sm:$0xff] %vm641_vm2, %v602_v27  ;;  %v604_v31 = vpop.permute.xlu1 %603  ;;  %v9392_v27 = vld [vmem:[%s9902_s14 + $0x152] sm:$0xff] }
  0xb2   : > { %647 = vst.msk [vmem:[#allocation5 + $0xa0] sm:$0xff] %vm641_vm2, %v604_v31  ;;  %1009 = vrot.lane.b32.xlu0 %v10177_v2, %s9824_s19  ;;  %v1211_v2 = vpack.c.bf16 %v9377_v60, %v9376_v59  ;;  %v9393_v31 = vld [vmem:[%s9902_s14 + $0x15a] sm:$0xff]  ;;  %v9407_v60 = vld [vmem:[%s9902_s14 + $0x83] sm:$0xff] }
  0xb3   : > { %1011 = vrot.lane.b32.xlu1 %v10289_v26, %s9824_s19  ;;  %v9406_v59 = vld [vmem:[%s9902_s14 + $0x7b] sm:$0xff]  ;;  %s9835_s19 = smov 120  }
  0xb4   : > { %v606_v32 = vpop.permute.xlu0 %605 }
  0xb5   : > { %648 = vst.msk [vmem:[#allocation5 + $0xc0] sm:$0xff] %vm641_vm2, %v606_v32  ;;  %v608_v33 = vpop.permute.xlu1 %607  ;;  %v9760_v32 = vld [vmem:[%s14086_s1] sm:$0xff]  }
  0xb6   : > { %649 = vst.msk [vmem:[#allocation5 + $0xe0] sm:$0xff] %vm641_vm2, %v608_v33  ;;  %1111 = vrot.lane.b32.xlu0 %v9988_v51, %s9825_s20  ;;  %9687 = vmatprep.subr.bf16.mxu0 %v9760_v32 }
  0xb7   : > { %1113 = vrot.lane.b32.xlu1 %v9997_v56, %s9825_s20  ;;  %9688 = vmatpush3.bf16.msra.mxu0 %v9760_v32 }
  0xb8   : > { %v610_v38 = vpop.permute.xlu0 %609  ;;  %9725 = vmatprep.subr.bf16.mxu1 %v9760_v32 }
  0xb9   : > { %650 = vst.msk [vmem:[#allocation5 + $0x100] sm:$0xff] %vm641_vm2, %v610_v38  ;;  %v612_v39 = vpop.permute.xlu1 %611  ;;  %v1218_v38 = vpack.c.bf16 %v9391_v19, %v9390_v18  ;;  %9728 = vmatpush3.bf16.msra.mxu1 %v9760_v32  ;;  %v9424_v32 = vld [vmem:[%s9902_s14 + $0x153] sm:$0xff] }
  0xba   : > { %651 = vst.msk [vmem:[#allocation5 + $0x120] sm:$0xff] %vm641_vm2, %v612_v39  ;;  %1115 = vrot.lane.b32.xlu0 %v9999_v57, %s9825_s20  ;;  %v1219_v39 = vpack.c.bf16 %v9393_v31, %v9392_v27  ;;  %v9423_v27 = vld [vmem:[%s9902_s14 + $0x143] sm:$0xff] }
  0xbb   : > { %1117 = vrot.lane.b32.xlu1 %v10006_v61, %s9825_s20 }
  0xbc   : > { %v614_v40 = vpop.permute.xlu0 %613 }
  0xbd   : > { %652 = vst.msk [vmem:[#allocation5 + $0x140] sm:$0xff] %vm641_vm2, %v614_v40  ;;  %v616_v41 = vpop.permute.xlu1 %615  ;;  %v9394_v40 = vld [vmem:[%s9902_s14 + $0x16a] sm:$0xff] }
  0xbe   : > { %653 = vst.msk [vmem:[#allocation5 + $0x160] sm:$0xff] %vm641_vm2, %v616_v41  ;;  %1119 = vrot.lane.b32.xlu0 %v10015_v3, %s9825_s20  ;;  %v9395_v41 = vld [vmem:[%s9902_s14 + $0x172] sm:$0xff] }
  0xbf   : > { %1121 = vrot.lane.b32.xlu1 %v10017_v4, %s9825_s20 }
  0xc0   : > { %v618_v51 = vpop.permute.xlu0 %617 }
  0xc1   : > { %654 = vst.msk [vmem:[#allocation5 + $0x180] sm:$0xff] %vm641_vm2, %v618_v51  ;;  %v620_v56 = vpop.permute.xlu1 %619 }
  0xc2   : > { %655 = vst.msk [vmem:[#allocation5 + $0x1a0] sm:$0xff] %vm641_vm2, %v620_v56  ;;  %1123 = vrot.lane.b32.xlu0 %v10032_v14, %s9825_s20  ;;  %v9396_v56 = vld [vmem:[%s9902_s14 + $0x182] sm:$0xff] }
  0xc3   : > { %1125 = vrot.lane.b32.xlu1 %v10043_v21, %s9825_s20  ;;  %v9368_v21 = vld [vmem:[%s9902_s14 + $0x1b1] sm:$0xff] }
  0xc4   : > { %v622_v57 = vpop.permute.xlu0 %621 }
  0xc5   : > { %656 = vst.msk [vmem:[#allocation5 + $0x1c0] sm:$0xff] %vm641_vm2, %v622_v57  ;;  %v624_v61 = vpop.permute.xlu1 %623  ;;  %v9397_v57 = vld [vmem:[%s9902_s14 + $0x18a] sm:$0xff] }
  0xc6   : > { %657 = vst.msk [vmem:[#allocation5 + $0x1e0] sm:$0xff] %vm641_vm2, %v624_v61  ;;  %1127 = vrot.lane.b32.xlu0 %v10045_v24, %s9825_s20  ;;  %v9369_v24 = vld [vmem:[%s9902_s14 + $0x1b9] sm:$0xff]  ;;  %v9761_v61 = vld [vmem:[%s14086_s1 + $0x8] sm:$0xff]   ;;  %vm2736_vm2 = vcmask 917248  }
  0xc7   : > { %1129 = vrot.lane.b32.xlu1 %v10054_v30, %s9825_s20  ;;  %9689 = vmatprep.subr.bf16.mxu0 %v9761_v61 }
  0xc8   : > { %v724_v3 = vpop.permute.xlu0 %723  ;;  %9690 = vmatpush3.bf16.msra.mxu0 %v9761_v61  ;;  %9726 = vmatprep.subr.bf16.mxu1 %v9761_v61 }
  0xc9   : > { %772 = vst.msk [vmem:[#allocation5] sm:$0xff] %vm771_vm3, %v724_v3  ;;  %v726_v4 = vpop.permute.xlu1 %725  ;;  %9729 = vmatpush3.bf16.msra.mxu1 %v9761_v61  ;;  %v9429_v61 = vld [vmem:[%s9902_s14 + $0x18b] sm:$0xff] }
  0xca   : > { %773 = vst.msk [vmem:[#allocation5 + $0x20] sm:$0xff] %vm771_vm3, %v726_v4  ;;  %1131 = vrot.lane.b32.xlu0 %v10061_v36, %s9825_s20  ;;  %v1094_v36 = vpack.c.bf16 %v9369_v24, %v9368_v21  ;;  %v1220_v4 = vpack.c.bf16 %v9395_v41, %v9394_v40  ;;  %v9400_v24 = vld [vmem:[%s9902_s14 + $0x1b2] sm:$0xff] }
  0xcb   : > { %1133 = vrot.lane.b32.xlu1 %v10063_v37, %s9825_s20  ;;  %v9371_v37 = vld [vmem:[%s9902_s14 + $0x52] sm:$0xff] }
  0xcc   : > { %v728_v14 = vpop.permute.xlu0 %727  ;;  %v9426_v41 = vld [vmem:[%s9902_s14 + $0x16b] sm:$0xff] }
  0xcd   : > { %774 = vst.msk [vmem:[#allocation5 + $0x40] sm:$0xff] %vm771_vm3, %v728_v14  ;;  %v730_v30 = vpop.permute.xlu1 %729  ;;  %v1221_v14 = vpack.c.bf16 %v9397_v57, %v9396_v56  ;;  %v9428_v57 = vld [vmem:[%s9902_s14 + $0x183] sm:$0xff] }
  0xce   : > { %775 = vst.msk [vmem:[#allocation5 + $0x60] sm:$0xff] %vm771_vm3, %v730_v30  ;;  %1135 = vrot.lane.b32.xlu0 %v10075_v43, %s9825_s20  ;;  %v1208_v43 = vpack.c.bf16 %v9371_v37, %v9370_v42  ;;  %v9401_v30 = vld [vmem:[%s9902_s14 + $0x1ba] sm:$0xff] }
  0xcf   : > { %1137 = vrot.lane.b32.xlu1 %v10085_v49, %s9825_s20  ;;  %v1209_v49 = vpack.c.bf16 %v9373_v50, %v9372_v47  ;;  %v9402_v47 = vld [vmem:[%s9902_s14 + $0x4b] sm:$0xff]  ;;  %v9403_v50 = vld [vmem:[%s9902_s14 + $0x53] sm:$0xff] }
  0xd0   : > { %v732_v45 = vpop.permute.xlu0 %731  ;;  %v1337_v54 = vpack.c.bf16 %v9403_v50, %v9402_v47 }
  0xd1   : > { %776 = vst.msk [vmem:[#allocation5 + $0x80] sm:$0xff] %vm771_vm3, %v732_v45  ;;  %v734_v52 = vpop.permute.xlu1 %733  ;;  %v1223_v45 = vpack.c.bf16 %v9401_v30, %v9400_v24  ;;  %v9432_v24 = vld [vmem:[%s9902_s14 + $0x1b3] sm:$0xff]  ;;  %v9433_v30 = vld [vmem:[%s9902_s14 + $0x1bb] sm:$0xff] }
  0xd2   : > { %777 = vst.msk [vmem:[#allocation5 + $0xa0] sm:$0xff] %vm771_vm3, %v734_v52  ;;  %1139 = vrot.lane.b32.xlu0 %v10199_v8, %s9825_s20 }
  0xd3   : > { %1141 = vrot.lane.b32.xlu1 %v1094_v36, %s9825_s20  ;;  %v9762_v36 = vld [vmem:[%s14086_s1 + $0x10] ss:$0 sps:$4 sm:$0x33]  }
  0xd4   : > { %v736_v58 = vpop.permute.xlu0 %735  ;;  %9731 = vmatprep.subr.msk.bf16.mxu0 %vm1526_vm5, %v9762_v36  ;;  %v1528_v37 = vsel %vm1526_vm5, %v9762_v36, 0  ;;  %9732 = vmatprep.subr.msk.bf16.mxu1 %vm1526_vm5, %v9762_v36  ;;  %vm7038_vm5 = vcmask 195584  }
  0xd5   : > { %778 = vst.msk [vmem:[#allocation5 + $0xc0] sm:$0xff] %vm771_vm3, %v736_v58  ;;  %v738_v63 = vpop.permute.xlu1 %737  ;;  %9692 = vmatpush3.bf16.msra.mxu0 %v1528_v37  ;;  %9730 = vmatpush3.bf16.msra.mxu1 %v1528_v37 }
  0xd6   : > { %779 = vst.msk [vmem:[#allocation5 + $0xe0] sm:$0xff] %vm771_vm3, %v738_v63  ;;  %1240 = vrot.lane.b32.xlu0 %v1208_v43, %s9826_s21  ;;  %v9404_v43 = vld [vmem:[%s9902_s14 + $0x63] sm:$0xff] }
  0xd7   : > { %1242 = vrot.lane.b32.xlu1 %v1209_v49, %s9826_s21  ;;  %v9405_v49 = vld [vmem:[%s9902_s14 + $0x6b] sm:$0xff] }
  0xd8   : > { %v740_v8 = vpop.permute.xlu0 %739  ;;  %v1338_v58 = vpack.c.bf16 %v9405_v49, %v9404_v43 }
  0xd9   : > { %780 = vst.msk [vmem:[#allocation5 + $0x100] sm:$0xff] %vm771_vm3, %v740_v8  ;;  %v742_v11 = vpop.permute.xlu1 %741  ;;  %v9410_v8 = vld [vmem:[%s9902_s14 + $0xab] sm:$0xff] }
  0xda   : > { %781 = vst.msk [vmem:[#allocation5 + $0x120] sm:$0xff] %vm771_vm3, %v742_v11  ;;  %1244 = vrot.lane.b32.xlu0 %v1210_v0, %s9826_s21  ;;  %v9408_v0 = vld [vmem:[%s9902_s14 + $0x93] sm:$0xff]  ;;  %v9412_v11 = vld [vmem:[%s9902_s14 + $0xc3] sm:$0xff]  ;;  %v1341_v22 = vpack.c.bf16 %v9411_v7, %v9410_v8 }
  0xdb   : > { %1246 = vrot.lane.b32.xlu1 %v1211_v2, %s9826_s21  ;;  %v9409_v2 = vld [vmem:[%s9902_s14 + $0x9b] sm:$0xff] }
  0xdc   : > { %v744_v29 = vpop.permute.xlu0 %743  ;;  %v1340_v5 = vpack.c.bf16 %v9409_v2, %v9408_v0 }
  0xdd   : > { %782 = vst.msk [vmem:[#allocation5 + $0x140] sm:$0xff] %vm771_vm3, %v744_v29  ;;  %v746_v48 = vpop.permute.xlu1 %745  ;;  %v9414_v29 = vld [vmem:[%s9902_s14 + $0xdb] sm:$0xff] }
  0xde   : > { %783 = vst.msk [vmem:[#allocation5 + $0x160] sm:$0xff] %vm771_vm3, %v746_v48  ;;  %1248 = vrot.lane.b32.xlu0 %v1212_v16, %s9826_s21  ;;  %v9413_v16 = vld [vmem:[%s9902_s14 + $0xcb] sm:$0xff]  ;;  %v9416_v48 = vld [vmem:[%s9902_s14 + $0xf3] sm:$0xff]  ;;  %v1343_v20 = vpack.c.bf16 %v9415_v34, %v9414_v29 }
  0xdf   : > { %1250 = vrot.lane.b32.xlu1 %v1213_v17, %s9826_s21  ;;  %v1342_v28 = vpack.c.bf16 %v9413_v16, %v9412_v11 }
  0xe0   : > { %v748_v62 = vpop.permute.xlu0 %747 }
  0xe1   : > { %784 = vst.msk [vmem:[#allocation5 + $0x180] sm:$0xff] %vm771_vm3, %v748_v62  ;;  %v750_v12 = vpop.permute.xlu1 %749  ;;  %v9418_v62 = vld [vmem:[%s9902_s14 + $0x10b] sm:$0xff] }
  0xe2   : > { %785 = vst.msk [vmem:[#allocation5 + $0x1a0] sm:$0xff] %vm771_vm3, %v750_v12  ;;  %1252 = vrot.lane.b32.xlu0 %v1214_v55, %s9826_s21  ;;  %v9417_v55 = vld [vmem:[%s9902_s14 + $0xfb] sm:$0xff]  ;;  %v9420_v12 = vld [vmem:[%s9902_s14 + $0x123] sm:$0xff]  ;;  %v1345_v18 = vpack.c.bf16 %v9419_v1, %v9418_v62 }
  0xe3   : > { %1254 = vrot.lane.b32.xlu1 %v1215_v9, %s9826_s21  ;;  %v1344_v46 = vpack.c.bf16 %v9417_v55, %v9416_v48 }
  0xe4   : > { %v752_v25 = vpop.permute.xlu0 %751 }
  0xe5   : > { %786 = vst.msk [vmem:[#allocation5 + $0x1c0] sm:$0xff] %vm771_vm3, %v752_v25  ;;  %v754_v33 = vpop.permute.xlu1 %753  ;;  %v9422_v25 = vld [vmem:[%s9902_s14 + $0x13b] sm:$0xff] }
  0xe6   : > { %787 = vst.msk [vmem:[#allocation5 + $0x1e0] sm:$0xff] %vm771_vm3, %v754_v33  ;;  %1256 = vrot.lane.b32.xlu0 %v1216_v13, %s9826_s21  ;;  %v9421_v13 = vld [vmem:[%s9902_s14 + $0x12b] sm:$0xff]  ;;  %v9425_v33 = vld [vmem:[%s9902_s14 + $0x15b] sm:$0xff]  ;;  %vm2865_vm3 = vcmask 1048448  }
  0xe7   : > { %1258 = vrot.lane.b32.xlu1 %v1217_v15, %s9826_s21  ;;  %v1346_v19 = vpack.c.bf16 %v9421_v13, %v9420_v12  ;;  %v1348_v40 = vpack.c.bf16 %v9425_v33, %v9424_v32 }
  0xe8   : > { %v853_v51 = vpop.permute.xlu0 %852 }
  0xe9   : > { %901 = vst.msk [vmem:[#allocation5] sm:$0xff] %vm900_vm4, %v853_v51  ;;  %v855_v3 = vpop.permute.xlu1 %854  ;;  %v9427_v51 = vld [vmem:[%s9902_s14 + $0x173] sm:$0xff]  ;;  %s9833_s14 = smov 112  }
  0xea   : > { %902 = vst.msk [vmem:[#allocation5 + $0x20] sm:$0xff] %vm900_vm4, %v855_v3  ;;  %1260 = vrot.lane.b32.xlu0 %v1218_v38, %s9826_s21 }
  0xeb   : > { %1262 = vrot.lane.b32.xlu1 %v1219_v39, %s9826_s21  ;;  %v1347_v39 = vpack.c.bf16 %v9423_v27, %v9422_v25 }
  0xec   : > { %v857_v21 = vpop.permute.xlu0 %856 }
  0xed   : > { %903 = vst.msk [vmem:[#allocation5 + $0x40] sm:$0xff] %vm900_vm4, %v857_v21  ;;  %v859_v42 = vpop.permute.xlu1 %858 }
  0xee   : > { %904 = vst.msk [vmem:[#allocation5 + $0x60] sm:$0xff] %vm900_vm4, %v859_v42  ;;  %1264 = vrot.lane.b32.xlu0 %v1220_v4, %s9826_s21  ;;  %v1349_v4 = vpack.c.bf16 %v9427_v51, %v9426_v41  ;;  %v1352_v42 = vpack.c.bf16 %v9433_v30, %v9432_v24 }
  0xef   : > { %1266 = vrot.lane.b32.xlu1 %v1221_v14, %s9826_s21  ;;  %v1350_v14 = vpack.c.bf16 %v9429_v61, %v9428_v57 }
  0xf0   : > { %v861_v52 = vpop.permute.xlu0 %860 }
  0xf1   : > { %905 = vst.msk [vmem:[#allocation5 + $0x80] sm:$0xff] %vm900_vm4, %v861_v52  ;;  %v863_v53 = vpop.permute.xlu1 %862  ;;  %v14095_v52 = vmov 0.0  }
  0xf2   : > { %906 = vst.msk [vmem:[#allocation5 + $0xa0] sm:$0xff] %vm900_vm4, %v863_v53  ;;  %1268 = vrot.lane.b32.xlu0 %v10237_v23, %s9826_s21  ;;  %v1339_v23 = vpack.c.bf16 %v9407_v60, %v9406_v59 }
  0xf3   : > { %1270 = vrot.lane.b32.xlu1 %v1223_v45, %s9826_s21  ;;  %1692 = vst.msk [vmem:[#allocation2] sm:$0xff] %vm1691_vm7, %v14095_v52  ;;  %1693 = vst.msk [vmem:[#allocation2 + $0x8] sm:$0xff] %vm1691_vm7, %v14095_v52  ;;  %s9836_s21 = smov 72  }
  0xf4   : > { %v865_v63 = vpop.permute.xlu0 %864  ;;  %1695 = vst.msk [vmem:[#allocation2 + $0x10] sm:$0xf] %vm1694_vm8, %v14095_v52  ;;  %1698 = vst.msk [vmem:[#allocation2 + $0x28] sm:$0xf] %vm1694_vm8, %v14095_v52 }
  0xf5   : > { %907 = vst.msk [vmem:[#allocation5 + $0xc0] sm:$0xff] %vm900_vm4, %v865_v63  ;;  %v867_v44 = vpop.permute.xlu1 %866 }
  0xf6   : > { %908 = vst.msk [vmem:[#allocation5 + $0xe0] sm:$0xff] %vm900_vm4, %v867_v44  ;;  %1369 = vrot.lane.b32.xlu0 %v1337_v54, %s9827_s28 }
  0xf7   : > { %1371 = vrot.lane.b32.xlu1 %v1338_v58, %s9827_s28  ;;  %1696 = vst.msk [vmem:[#allocation2 + $0x18] sm:$0xff] %vm1691_vm7, %v14095_v52  ;;  %1697 = vst.msk [vmem:[#allocation2 + $0x20] sm:$0xff] %vm1691_vm7, %v14095_v52 }
  0xf8   : > { %v869_v10 = vpop.permute.xlu0 %868  ;;  %1699 = vst.msk [vmem:[#allocation2 + $0x30] sm:$0xff] %vm1691_vm7, %v14095_v52  ;;  %1700 = vst.msk [vmem:[#allocation2 + $0x38] sm:$0xff] %vm1691_vm7, %v14095_v52 }
  0xf9   : > { %909 = vst.msk [vmem:[#allocation5 + $0x100] sm:$0xff] %vm900_vm4, %v869_v10  ;;  %v871_v17 = vpop.permute.xlu1 %870 }
  0xfa   : > { %910 = vst.msk [vmem:[#allocation5 + $0x120] sm:$0xff] %vm900_vm4, %v871_v17  ;;  %1373 = vrot.lane.b32.xlu0 %v1339_v23, %s9827_s28  ;;  %v1978_v54 = vld [vmem:[#allocation2 + $0x1] sm:$0xff] }
  0xfb   : > { %1375 = vrot.lane.b32.xlu1 %v1340_v5, %s9827_s28  ;;  %1701 = vst.msk [vmem:[#allocation2 + $0x40] sm:$0xf] %vm1694_vm8, %v14095_v52  ;;  %1704 = vst.msk [vmem:[#allocation2 + $0x58] sm:$0xf] %vm1694_vm8, %v14095_v52  ;;  %v1979_v58 = vld [vmem:[#allocation2 + $0x9] sm:$0xff] }
  0xfc   : > { %v873_v35 = vpop.permute.xlu0 %872  ;;  %1702 = vst.msk [vmem:[#allocation2 + $0x48] sm:$0xff] %vm1691_vm7, %v14095_v52  ;;  %1703 = vst.msk [vmem:[#allocation2 + $0x50] sm:$0xff] %vm1691_vm7, %v14095_v52  ;;  %v2107_v59 = vld [vmem:[#allocation2 + $0x2] sm:$0xff]  ;;  %v2010_v60 = vpack.c.bf16 %v1979_v58, %v1978_v54  ;;  %v2108_v63 = vld [vmem:[#allocation2 + $0xa] sm:$0xff] }
  0xfd   : > { %911 = vst.msk [vmem:[#allocation5 + $0x140] sm:$0xff] %vm900_vm4, %v873_v35  ;;  %v875_v9 = vpop.permute.xlu1 %874  ;;  %v2139_v23 = vpack.c.bf16 %v2108_v63, %v2107_v59  ;;  %v2236_v5 = vld [vmem:[#allocation2 + $0x3] sm:$0xff]  ;;  %v2237_v7 = vld [vmem:[#allocation2 + $0xb] sm:$0xff] }
  0xfe   : > { %912 = vst.msk [vmem:[#allocation5 + $0x160] sm:$0xff] %vm900_vm4, %v875_v9  ;;  %1377 = vrot.lane.b32.xlu0 %v1341_v22, %s9827_s28  ;;  %v1980_v2 = vld [vmem:[#allocation2 + $0x19] sm:$0xff]  ;;  %v1981_v8 = vld [vmem:[#allocation2 + $0x21] sm:$0xff]  ;;  %v2268_v29 = vpack.c.bf16 %v2237_v7, %v2236_v5  ;;  %v2366_v55 = vld [vmem:[#allocation2 + $0xc] sm:$0xff] }
  0xff   : > { %1379 = vrot.lane.b32.xlu1 %v1342_v28, %s9827_s28  ;;  %1705 = vst.msk [vmem:[#allocation2 + $0x60] sm:$0xff] %vm1691_vm7, %v14095_v52  ;;  %1706 = vst.msk [vmem:[#allocation2 + $0x68] sm:$0xff] %vm1691_vm7, %v14095_v52  ;;  %v2011_v10 = vpack.c.bf16 %v1981_v8, %v1980_v2  ;;  %v2109_v11 = vld [vmem:[#allocation2 + $0x1a] sm:$0xff]  ;;  %v2110_v16 = vld [vmem:[#allocation2 + $0x22] sm:$0xff] }
 0x100   : > { %v877_v6 = vpop.permute.xlu0 %876  ;;  %1707 = vst.msk [vmem:[#allocation2 + $0x70] sm:$0xf] %vm1694_vm8, %v14095_v52  ;;  %1710 = vst.msk [vmem:[#allocation2 + $0x88] sm:$0xf] %vm1694_vm8, %v14095_v52  ;;  %v2140_v22 = vpack.c.bf16 %v2110_v16, %v2109_v11  ;;  %v2238_v34 = vld [vmem:[#allocation2 + $0x1b] sm:$0xff]  ;;  %v2239_v35 = vld [vmem:[#allocation2 + $0x23] sm:$0xff] }
 0x101   : > { %913 = vst.msk [vmem:[#allocation5 + $0x180] sm:$0xff] %vm900_vm4, %v877_v6  ;;  %v879_v15 = vpop.permute.xlu1 %878  ;;  %v2365_v48 = vld [vmem:[#allocation2 + $0x4] sm:$0xff]  ;;  %v2495_v1 = vld [vmem:[#allocation2 + $0x18] sm:$0xff] }
 0x102   : > { %914 = vst.msk [vmem:[#allocation5 + $0x1a0] sm:$0xff] %vm900_vm4, %v879_v15  ;;  %1381 = vrot.lane.b32.xlu0 %v1343_v20, %s9827_s28  ;;  %v2269_v20 = vpack.c.bf16 %v2239_v35, %v2238_v34  ;;  %v2397_v62 = vpack.c.bf16 %v2366_v55, %v2365_v48  ;;  %v2496_v6 = vld [vmem:[#allocation2 + $0x20] sm:$0xff] }
 0x103   : > { %1383 = vrot.lane.b32.xlu1 %v1344_v46, %s9827_s28  ;;  %1708 = vst.msk [vmem:[#allocation2 + $0x78] sm:$0xff] %vm1691_vm7, %v14095_v52  ;;  %1709 = vst.msk [vmem:[#allocation2 + $0x80] sm:$0xff] %vm1691_vm7, %v14095_v52  ;;  %v10693_v15 = vpack.c.bf16 %v2496_v6, %v2495_v1 }
 0x104   : > { %v881_v31 = vpop.permute.xlu0 %880  ;;  %1711 = vst.msk [vmem:[#allocation2 + $0x90] sm:$0xff] %vm1691_vm7, %v14095_v52  ;;  %1712 = vst.msk [vmem:[#allocation2 + $0x98] sm:$0xff] %vm1691_vm7, %v14095_v52 }
 0x105   : > { %915 = vst.msk [vmem:[#allocation5 + $0x1c0] sm:$0xff] %vm900_vm4, %v881_v31  ;;  %v883_v38 = vpop.permute.xlu1 %882 }
 0x106   : > { %916 = vst.msk [vmem:[#allocation5 + $0x1e0] sm:$0xff] %vm900_vm4, %v883_v38  ;;  %1385 = vrot.lane.b32.xlu0 %v1345_v18, %s9827_s28  ;;  %vm5511_vm4 = vcmask 123904  }
 0x107   : > { %1387 = vrot.lane.b32.xlu1 %v1346_v19, %s9827_s28  ;;  %1713 = vst.msk [vmem:[#allocation2 + $0xa0] sm:$0xf] %vm1694_vm8, %v14095_v52  ;;  %1716 = vst.msk [vmem:[#allocation2 + $0xb8] sm:$0xf] %vm1694_vm8, %v14095_v52 }
 0x108   : > { %v982_v56 = vpop.permute.xlu0 %981  ;;  %1714 = vst.msk [vmem:[#allocation2 + $0xa8] sm:$0xff] %vm1691_vm7, %v14095_v52  ;;  %1715 = vst.msk [vmem:[#allocation2 + $0xb0] sm:$0xff] %vm1691_vm7, %v14095_v52 }
 0x109   : > { %1030 = vst.msk [vmem:[#allocation5] sm:$0xff] %vm1029_vm6, %v982_v56  ;;  %v984_v3 = vpop.permute.xlu1 %983 }
 0x10a   : > { %1031 = vst.msk [vmem:[#allocation5 + $0x20] sm:$0xff] %vm1029_vm6, %v984_v3  ;;  %1389 = vrot.lane.b32.xlu0 %v1347_v39, %s9827_s28 }
 0x10b   : > { %1391 = vrot.lane.b32.xlu1 %v1348_v40, %s9827_s28  ;;  %1717 = vst.msk [vmem:[#allocation2 + $0xc0] sm:$0xff] %vm1691_vm7, %v14095_v52  ;;  %1718 = vst.msk [vmem:[#allocation2 + $0xc8] sm:$0xff] %vm1691_vm7, %v14095_v52 }
 0x10c   : > { %v986_v21 = vpop.permute.xlu0 %985  ;;  %1719 = vst.msk [vmem:[#allocation2 + $0xd0] sm:$0xf] %vm1694_vm8, %v14095_v52  ;;  %1722 = vst.msk [vmem:[#allocation2 + $0xe8] sm:$0xf] %vm1694_vm8, %v14095_v52 }
 0x10d   : > { %1032 = vst.msk [vmem:[#allocation5 + $0x40] sm:$0xff] %vm1029_vm6, %v986_v21  ;;  %v988_v36 = vpop.permute.xlu1 %987 }
 0x10e   : > { %1033 = vst.msk [vmem:[#allocation5 + $0x60] sm:$0xff] %vm1029_vm6, %v988_v36  ;;  %1393 = vrot.lane.b32.xlu0 %v1349_v4, %s9827_s28 }
 0x10f   : > { %1395 = vrot.lane.b32.xlu1 %v1350_v14, %s9827_s28  ;;  %1720 = vst.msk [vmem:[#allocation2 + $0xd8] sm:$0xff] %vm1691_vm7, %v14095_v52  ;;  %1721 = vst.msk [vmem:[#allocation2 + $0xe0] sm:$0xff] %vm1691_vm7, %v14095_v52 }
 0x110   : > { %v990_v37 = vpop.permute.xlu0 %989  ;;  %1723 = vst.msk [vmem:[#allocation2 + $0xf0] sm:$0xff] %vm1691_vm7, %v14095_v52  ;;  %1724 = vst.msk [vmem:[#allocation2 + $0xf8] sm:$0xff] %vm1691_vm7, %v14095_v52 }
 0x111   : > { %1034 = vst.msk [vmem:[#allocation5 + $0x80] sm:$0xff] %vm1029_vm6, %v990_v37  ;;  %v992_v45 = vpop.permute.xlu1 %991 }
 0x112   : > { %1035 = vst.msk [vmem:[#allocation5 + $0xa0] sm:$0xff] %vm1029_vm6, %v992_v45  ;;  %1397 = vrot.lane.b32.xlu0 %v10289_v26, %s9827_s28 }
 0x113   : > { %1399 = vrot.lane.b32.xlu1 %v1352_v42, %s9827_s28  ;;  %1725 = vst.msk [vmem:[#allocation2 + $0x100] sm:$0xf] %vm1694_vm8, %v14095_v52  ;;  %1728 = vst.msk [vmem:[#allocation2 + $0x118] sm:$0xf] %vm1694_vm8, %v14095_v52 }
 0x114   : > { %v994_v47 = vpop.permute.xlu0 %993  ;;  %1726 = vst.msk [vmem:[#allocation2 + $0x108] sm:$0xff] %vm1691_vm7, %v14095_v52  ;;  %1727 = vst.msk [vmem:[#allocation2 + $0x110] sm:$0xff] %vm1691_vm7, %v14095_v52 }
 0x115   : > { %1036 = vst.msk [vmem:[#allocation5 + $0xc0] sm:$0xff] %vm1029_vm6, %v994_v47  ;;  %v996_v50 = vpop.permute.xlu1 %995 }
 0x116   : > { %1037 = vst.msk [vmem:[#allocation5 + $0xe0] sm:$0xff] %vm1029_vm6, %v996_v50  ;;  %2042 = vrot.lane.b32.xlu0 %v2010_v60, %s9823_s18 }
 0x117   : > { %1729 = vst.msk [vmem:[#allocation2 + $0x120] sm:$0xff] %vm1691_vm7, %v14095_v52  ;;  %1730 = vst.msk [vmem:[#allocation2 + $0x128] sm:$0xff] %vm1691_vm7, %v14095_v52  ;;  %2044 = vrot.lane.b32.xlu1 %v2011_v10, %s9823_s18 }
 0x118   : > { %1731 = vst.msk [vmem:[#allocation2 + $0x130] sm:$0xf] %vm1694_vm8, %v14095_v52  ;;  %1734 = vst.msk [vmem:[#allocation2 + $0x148] sm:$0xf] %vm1694_vm8, %v14095_v52  ;;  %v998_v26 = vpop.permute.xlu0 %997 }
 0x119   : > { %1732 = vst.msk [vmem:[#allocation2 + $0x138] sm:$0xff] %vm1691_vm7, %v14095_v52  ;;  %1733 = vst.msk [vmem:[#allocation2 + $0x140] sm:$0xff] %vm1691_vm7, %v14095_v52  ;;  %v1000_v43 = vpop.permute.xlu1 %999 }
 0x11a   : > { %1735 = vst.msk [vmem:[#allocation2 + $0x150] sm:$0xff] %vm1691_vm7, %v14095_v52  ;;  %1736 = vst.msk [vmem:[#allocation2 + $0x158] sm:$0xff] %vm1691_vm7, %v14095_v52  ;;  %2171 = vrot.lane.b32.xlu0 %v2139_v23, %s9827_s28 }
 0x11b   : > { %1737 = vst.msk [vmem:[#allocation2 + $0x160] sm:$0xf] %vm1694_vm8, %v14095_v52  ;;  %1740 = vst.msk [vmem:[#allocation2 + $0x178] sm:$0xf] %vm1694_vm8, %v14095_v52  ;;  %2173 = vrot.lane.b32.xlu1 %v2140_v22, %s9827_s28 }
 0x11c   : > { %1738 = vst.msk [vmem:[#allocation2 + $0x168] sm:$0xff] %vm1691_vm7, %v14095_v52  ;;  %1739 = vst.msk [vmem:[#allocation2 + $0x170] sm:$0xff] %vm1691_vm7, %v14095_v52  ;;  %v1002_v49 = vpop.permute.xlu0 %1001 }
 0x11d   : > { %1741 = vst.msk [vmem:[#allocation2 + $0x180] sm:$0xff] %vm1691_vm7, %v14095_v52  ;;  %1742 = vst.msk [vmem:[#allocation2 + $0x188] sm:$0xff] %vm1691_vm7, %v14095_v52  ;;  %v1004_v53 = vpop.permute.xlu1 %1003 }
 0x11e   : > { %1743 = vst.msk [vmem:[#allocation2 + $0x190] sm:$0xf] %vm1694_vm8, %v14095_v52  ;;  %1746 = vst.msk [vmem:[#allocation2 + $0x1a8] sm:$0xf] %vm1694_vm8, %v14095_v52  ;;  %2300 = vrot.lane.b32.xlu0 %v2268_v29, %s9829_s29 }
 0x11f   : > { %1744 = vst.msk [vmem:[#allocation2 + $0x198] sm:$0xff] %vm1691_vm7, %v14095_v52  ;;  %1745 = vst.msk [vmem:[#allocation2 + $0x1a0] sm:$0xff] %vm1691_vm7, %v14095_v52  ;;  %2302 = vrot.lane.b32.xlu1 %v2269_v20, %s9829_s29 }
 0x120   : > { %1747 = vst.msk [vmem:[#allocation2 + $0x1b0] sm:$0xff] %vm1691_vm7, %v14095_v52  ;;  %1748 = vst.msk [vmem:[#allocation2 + $0x1b8] sm:$0xff] %vm1691_vm7, %v14095_v52  ;;  %v1006_v0 = vpop.permute.xlu0 %1005 }
 0x121   : > { %1749 = vst.msk [vmem:[#allocation2 + $0x1c0] sm:$0xf] %vm1694_vm8, %v14095_v52  ;;  %1752 = vst.msk [vmem:[#allocation2 + $0x1d8] sm:$0xf] %vm1694_vm8, %v14095_v52  ;;  %v1008_v44 = vpop.permute.xlu1 %1007  ;;  %vm8436_vm8 = vcmask 1043456  }
 0x122   : > { %1750 = vst.msk [vmem:[#allocation2 + $0x1c8] sm:$0xff] %vm1691_vm7, %v14095_v52  ;;  %1751 = vst.msk [vmem:[#allocation2 + $0x1d0] sm:$0xff] %vm1691_vm7, %v14095_v52  ;;  %2429 = vrot.lane.b32.xlu0 %v2397_v62, %s9830_s11 }
 0x123   : > { %5509 = vst.msk [vmem:[#allocation3] sm:$0xff] %vm1691_vm7, %v14095_v52  ;;  %5510 = vst.msk [vmem:[#allocation3 + $0x8] sm:$0xff] %vm1691_vm7, %v14095_v52 }
 0x124   : > { %5513 = vst.msk [vmem:[#allocation3 + $0x18] sm:$0xff] %vm1691_vm7, %v14095_v52  ;;  %5514 = vst.msk [vmem:[#allocation3 + $0x20] sm:$0xff] %vm1691_vm7, %v14095_v52  ;;  %v1010_v17 = vpop.permute.xlu0 %1009 }
 0x125   : > { %5516 = vst.msk [vmem:[#allocation3 + $0x30] sm:$0xff] %vm1691_vm7, %v14095_v52  ;;  %5517 = vst.msk [vmem:[#allocation3 + $0x38] sm:$0xff] %vm1691_vm7, %v14095_v52  ;;  %v1012_v28 = vpop.permute.xlu1 %1011 }
 0x126   : > { %5519 = vst.msk [vmem:[#allocation3 + $0x48] sm:$0xff] %vm1691_vm7, %v14095_v52  ;;  %5520 = vst.msk [vmem:[#allocation3 + $0x50] sm:$0xff] %vm1691_vm7, %v14095_v52  ;;  %2559 = vrot.lane.b32.xlu0 %v10693_v15, %s9831_s12 }
 0x127   : > { %5522 = vst.msk [vmem:[#allocation3 + $0x60] sm:$0xff] %vm1691_vm7, %v14095_v52  ;;  %5523 = vst.msk [vmem:[#allocation3 + $0x68] sm:$0xff] %vm1691_vm7, %v14095_v52 }
 0x128   : > { %5525 = vst.msk [vmem:[#allocation3 + $0x78] sm:$0xff] %vm1691_vm7, %v14095_v52  ;;  %5526 = vst.msk [vmem:[#allocation3 + $0x80] sm:$0xff] %vm1691_vm7, %v14095_v52  ;;  %v1112_v9 = vpop.permute.xlu0 %1111 }
 0x129   : > { %5528 = vst.msk [vmem:[#allocation3 + $0x90] sm:$0xff] %vm1691_vm7, %v14095_v52  ;;  %5529 = vst.msk [vmem:[#allocation3 + $0x98] sm:$0xff] %vm1691_vm7, %v14095_v52  ;;  %v1114_v46 = vpop.permute.xlu1 %1113 }
 0x12a   : > { %5531 = vst.msk [vmem:[#allocation3 + $0xa8] sm:$0xff] %vm1691_vm7, %v14095_v52  ;;  %5532 = vst.msk [vmem:[#allocation3 + $0xb0] sm:$0xff] %vm1691_vm7, %v14095_v52  ;;  %2688 = vrot.lane.b32.xlu0 %v2011_v10, %s9832_s13 }
 0x12b   : > { %5534 = vst.msk [vmem:[#allocation3 + $0xc0] sm:$0xff] %vm1691_vm7, %v14095_v52  ;;  %5535 = vst.msk [vmem:[#allocation3 + $0xc8] sm:$0xff] %vm1691_vm7, %v14095_v52 }
 0x12c   : > { %5537 = vst.msk [vmem:[#allocation3 + $0xd8] sm:$0xff] %vm1691_vm7, %v14095_v52  ;;  %5538 = vst.msk [vmem:[#allocation3 + $0xe0] sm:$0xff] %vm1691_vm7, %v14095_v52  ;;  %v1116_v12 = vpop.permute.xlu0 %1115 }
 0x12d   : > { %5540 = vst.msk [vmem:[#allocation3 + $0xf0] sm:$0xff] %vm1691_vm7, %v14095_v52  ;;  %5541 = vst.msk [vmem:[#allocation3 + $0xf8] sm:$0xff] %vm1691_vm7, %v14095_v52  ;;  %v1118_v13 = vpop.permute.xlu1 %1117 }
 0x12e   : > { %5543 = vst.msk [vmem:[#allocation3 + $0x108] sm:$0xff] %vm1691_vm7, %v14095_v52  ;;  %5544 = vst.msk [vmem:[#allocation3 + $0x110] sm:$0xff] %vm1691_vm7, %v14095_v52  ;;  %2817 = vrot.lane.b32.xlu0 %v2140_v22, %s9833_s14 }
 0x12f   : > { %5546 = vst.msk [vmem:[#allocation3 + $0x120] sm:$0xff] %vm1691_vm7, %v14095_v52  ;;  %5547 = vst.msk [vmem:[#allocation3 + $0x128] sm:$0xff] %vm1691_vm7, %v14095_v52 }
 0x130   : > { %5549 = vst.msk [vmem:[#allocation3 + $0x138] sm:$0xff] %vm1691_vm7, %v14095_v52  ;;  %5550 = vst.msk [vmem:[#allocation3 + $0x140] sm:$0xff] %vm1691_vm7, %v14095_v52  ;;  %v1120_v18 = vpop.permute.xlu0 %1119 }
 0x131   : > { %5552 = vst.msk [vmem:[#allocation3 + $0x150] sm:$0xff] %vm1691_vm7, %v14095_v52  ;;  %5553 = vst.msk [vmem:[#allocation3 + $0x158] sm:$0xff] %vm1691_vm7, %v14095_v52  ;;  %v1122_v19 = vpop.permute.xlu1 %1121 }
 0x132   : > { %5555 = vst.msk [vmem:[#allocation3 + $0x168] sm:$0xff] %vm1691_vm7, %v14095_v52  ;;  %5556 = vst.msk [vmem:[#allocation3 + $0x170] sm:$0xff] %vm1691_vm7, %v14095_v52 }
 0x133   : > { %5558 = vst.msk [vmem:[#allocation3 + $0x180] sm:$0xff] %vm1691_vm7, %v14095_v52  ;;  %5559 = vst.msk [vmem:[#allocation3 + $0x188] sm:$0xff] %vm1691_vm7, %v14095_v52 }
 0x134   : > { %5561 = vst.msk [vmem:[#allocation3 + $0x198] sm:$0xff] %vm1691_vm7, %v14095_v52  ;;  %5562 = vst.msk [vmem:[#allocation3 + $0x1a0] sm:$0xff] %vm1691_vm7, %v14095_v52  ;;  %v1124_v25 = vpop.permute.xlu0 %1123 }
 0x135   : > { %1038 = vst.msk [vmem:[#allocation5 + $0x100] sm:$0xff] %vm1029_vm6, %v998_v26  ;;  %1039 = vst.msk [vmem:[#allocation5 + $0x120] sm:$0xff] %vm1029_vm6, %v1000_v43  ;;  %v1126_v27 = vpop.permute.xlu1 %1125 }
 0x136   : > { %1040 = vst.msk [vmem:[#allocation5 + $0x140] sm:$0xff] %vm1029_vm6, %v1002_v49  ;;  %1041 = vst.msk [vmem:[#allocation5 + $0x160] sm:$0xff] %vm1029_vm6, %v1004_v53 }
 0x137   : > { %1042 = vst.msk [vmem:[#allocation5 + $0x180] sm:$0xff] %vm1029_vm6, %v1006_v0  ;;  %1043 = vst.msk [vmem:[#allocation5 + $0x1a0] sm:$0xff] %vm1029_vm6, %v1008_v44 }
 0x138   : > { %1044 = vst.msk [vmem:[#allocation5 + $0x1c0] sm:$0xff] %vm1029_vm6, %v1010_v17  ;;  %1045 = vst.msk [vmem:[#allocation5 + $0x1e0] sm:$0xff] %vm1029_vm6, %v1012_v28  ;;  %v1128_v31 = vpop.permute.xlu0 %1127  ;;  %vm7041_vm6 = vcmask 189440  }
 0x139   : > { %1160 = vst.msk [vmem:[#allocation5] sm:$0xff] %vm1159_vm9, %v1112_v9  ;;  %1161 = vst.msk [vmem:[#allocation5 + $0x20] sm:$0xff] %vm1159_vm9, %v1114_v46  ;;  %v1130_v32 = vpop.permute.xlu1 %1129 }
 0x13a   : > { %1162 = vst.msk [vmem:[#allocation5 + $0x40] sm:$0xff] %vm1159_vm9, %v1116_v12  ;;  %1163 = vst.msk [vmem:[#allocation5 + $0x60] sm:$0xff] %vm1159_vm9, %v1118_v13  ;;  %v2367_v12 = vld [vmem:[#allocation2 + $0x1c] sm:$0xff]  ;;  %v2368_v13 = vld [vmem:[#allocation2 + $0x24] sm:$0xff] }
 0x13b   : > { %1164 = vst.msk [vmem:[#allocation5 + $0x80] sm:$0xff] %vm1159_vm9, %v1120_v18  ;;  %1165 = vst.msk [vmem:[#allocation5 + $0xa0] sm:$0xff] %vm1159_vm9, %v1122_v19  ;;  %v1914_v18 = vld [vmem:[#allocation2] sm:$0xff]  ;;  %v1915_v19 = vld [vmem:[#allocation2 + $0x8] sm:$0xff] }
 0x13c   : > { %1166 = vst.msk [vmem:[#allocation5 + $0xc0] sm:$0xff] %vm1159_vm9, %v1124_v25  ;;  %1167 = vst.msk [vmem:[#allocation5 + $0xe0] sm:$0xff] %vm1159_vm9, %v1126_v27  ;;  %v1132_v33 = vpop.permute.xlu0 %1131 }
 0x13d   : > { %1168 = vst.msk [vmem:[#allocation5 + $0x100] sm:$0xff] %vm1159_vm9, %v1128_v31  ;;  %1169 = vst.msk [vmem:[#allocation5 + $0x120] sm:$0xff] %vm1159_vm9, %v1130_v32  ;;  %v1134_v38 = vpop.permute.xlu1 %1133  ;;  %v1946_v31 = vpack.c.bf16 %v1915_v19, %v1914_v18 }
 0x13e   : > { %1170 = vst.msk [vmem:[#allocation5 + $0x140] sm:$0xff] %vm1159_vm9, %v1132_v33  ;;  %1171 = vst.msk [vmem:[#allocation5 + $0x160] sm:$0xff] %vm1159_vm9, %v1134_v38 }
 0x140   : > { %v1136_v39 = vpop.permute.xlu0 %1135 }
 0x141   : > { %1172 = vst.msk [vmem:[#allocation5 + $0x180] sm:$0xff] %vm1159_vm9, %v1136_v39  ;;  %v1138_v40 = vpop.permute.xlu1 %1137 }
 0x142   : > { %1173 = vst.msk [vmem:[#allocation5 + $0x1a0] sm:$0xff] %vm1159_vm9, %v1138_v40 }
 0x144   : > { %v1140_v41 = vpop.permute.xlu0 %1139 }
 0x145   : > { %1174 = vst.msk [vmem:[#allocation5 + $0x1c0] sm:$0xff] %vm1159_vm9, %v1140_v41  ;;  %v1142_v51 = vpop.permute.xlu1 %1141 }
 0x146   : > { %1175 = vst.msk [vmem:[#allocation5 + $0x1e0] sm:$0xff] %vm1159_vm9, %v1142_v51  ;;  %vm7303_vm9 = vcmask 392384  }
 0x148   : > { %v1241_v56 = vpop.permute.xlu0 %1240 }
 0x149   : > { %1289 = vst.msk [vmem:[#allocation5] sm:$0xff] %vm1288_vm10, %v1241_v56  ;;  %v1243_v57 = vpop.permute.xlu1 %1242 }
 0x14a   : > { %1290 = vst.msk [vmem:[#allocation5 + $0x20] sm:$0xff] %vm1288_vm10, %v1243_v57 }
 0x14c   : > { %v1245_v61 = vpop.permute.xlu0 %1244 }
 0x14d   : > { %1291 = vst.msk [vmem:[#allocation5 + $0x40] sm:$0xff] %vm1288_vm10, %v1245_v61  ;;  %v1247_v3 = vpop.permute.xlu1 %1246  ;;  %v10778_v61 = vld [vmem:[%s14087_s2] ss:$0 sm:$0xff] }
 0x14e   : > { %1292 = vst.msk [vmem:[#allocation5 + $0x60] sm:$0xff] %vm1288_vm10, %v1247_v3 }
 0x150   : > { %v1249_v4 = vpop.permute.xlu0 %1248 }
 0x151   : > { %1293 = vst.msk [vmem:[#allocation5 + $0x80] sm:$0xff] %vm1288_vm10, %v1249_v4  ;;  %v1251_v14 = vpop.permute.xlu1 %1250 }
 0x152   : > { %1294 = vst.msk [vmem:[#allocation5 + $0xa0] sm:$0xff] %vm1288_vm10, %v1251_v14 }
 0x154   : > { %v1253_v21 = vpop.permute.xlu0 %1252 }
 0x155   : > { %1295 = vst.msk [vmem:[#allocation5 + $0xc0] sm:$0xff] %vm1288_vm10, %v1253_v21  ;;  %v1255_v24 = vpop.permute.xlu1 %1254 }
 0x156   : > { %1296 = vst.msk [vmem:[#allocation5 + $0xe0] sm:$0xff] %vm1288_vm10, %v1255_v24 }
 0x158   : > { %v1257_v30 = vpop.permute.xlu0 %1256 }
 0x159   : > { %1297 = vst.msk [vmem:[#allocation5 + $0x100] sm:$0xff] %vm1288_vm10, %v1257_v30  ;;  %v1259_v36 = vpop.permute.xlu1 %1258 }
 0x15a   : > { %1298 = vst.msk [vmem:[#allocation5 + $0x120] sm:$0xff] %vm1288_vm10, %v1259_v36 }
 0x15c   : > { %v1261_v42 = vpop.permute.xlu0 %1260 }
 0x15d   : > { %1299 = vst.msk [vmem:[#allocation5 + $0x140] sm:$0xff] %vm1288_vm10, %v1261_v42  ;;  %v1263_v37 = vpop.permute.xlu1 %1262 }
 0x15e   : > { %1300 = vst.msk [vmem:[#allocation5 + $0x160] sm:$0xff] %vm1288_vm10, %v1263_v37 }
 0x160   : > { %v1265_v45 = vpop.permute.xlu0 %1264 }
 0x161   : > { %1301 = vst.msk [vmem:[#allocation5 + $0x180] sm:$0xff] %vm1288_vm10, %v1265_v45  ;;  %v1267_v47 = vpop.permute.xlu1 %1266 }
 0x162   : > { %1302 = vst.msk [vmem:[#allocation5 + $0x1a0] sm:$0xff] %vm1288_vm10, %v1267_v47 }
 0x164   : > { %v1269_v50 = vpop.permute.xlu0 %1268 }
 0x165   : > { %1303 = vst.msk [vmem:[#allocation5 + $0x1c0] sm:$0xff] %vm1288_vm10, %v1269_v50  ;;  %v1271_v26 = vpop.permute.xlu1 %1270 }
 0x166   : > { %1304 = vst.msk [vmem:[#allocation5 + $0x1e0] sm:$0xff] %vm1288_vm10, %v1271_v26  ;;  %vm7432_vm10 = vcmask 589184  }
 0x168   : > { %v1370_v43 = vpop.permute.xlu0 %1369 }
 0x169   : > { %1418 = vst.msk [vmem:[#allocation5] sm:$0xff] %vm1417_vm11, %v1370_v43  ;;  %v1372_v49 = vpop.permute.xlu1 %1371 }
 0x16a   : > { %1419 = vst.msk [vmem:[#allocation5 + $0x20] sm:$0xff] %vm1417_vm11, %v1372_v49 }
 0x16c   : > { %v1374_v53 = vpop.permute.xlu0 %1373 }
 0x16d   : > { %1420 = vst.msk [vmem:[#allocation5 + $0x40] sm:$0xff] %vm1417_vm11, %v1374_v53  ;;  %v1376_v54 = vpop.permute.xlu1 %1375 }
 0x16e   : > { %1421 = vst.msk [vmem:[#allocation5 + $0x60] sm:$0xff] %vm1417_vm11, %v1376_v54 }
 0x170   : > { %v1378_v58 = vpop.permute.xlu0 %1377  ;;  %v1434_v59 = vld [vmem:[#allocation5] sm:$0xff] }
 0x171   : > { %1422 = vst.msk [vmem:[#allocation5 + $0x80] sm:$0xff] %vm1417_vm11, %v1378_v58  ;;  %v1380_v60 = vpop.permute.xlu1 %1379  ;;  %9693 = vmatprep.mubr.msk.bf16.mxu0 %vm1477_vm12, %v1434_v59  ;;  %v1435_v63 = vld [vmem:[#allocation5 + $0x20] sm:$0xff] }
 0x172   : > { %1423 = vst.msk [vmem:[#allocation5 + $0xa0] sm:$0xff] %vm1417_vm11, %v1380_v60  ;;  %9694 = vmatmul.mubr.msk.bf16.vlgmr.msra.gmra.mrb[0].mxu0 %vm1477_vm12, %v1435_v63 }
 0x173   : > { %1963 = vst.msk [vmem:[#allocation5 + $0x20] sm:$0xff] %vm1691_vm7, %v10693_v15  ;;  %v2398_v15 = vpack.c.bf16 %v2368_v13, %v2367_v12  ;;  %1962 = vst.msk [vmem:[#allocation5] sm:$0xff] %vm1691_vm7, %v1946_v31 }
 0x174   : > { %v1382_v0 = vpop.permute.xlu0 %1381  ;;  %v1436_v2 = vld [vmem:[#allocation5 + $0x40] sm:$0xff] }
 0x175   : > { %1424 = vst.msk [vmem:[#allocation5 + $0xc0] sm:$0xff] %vm1417_vm11, %v1382_v0  ;;  %v1384_v44 = vpop.permute.xlu1 %1383  ;;  %9697 = vmatprep.mubr.msk.bf16.mxu0 %vm1477_vm12, %v1436_v2  ;;  %v1437_v8 = vld [vmem:[#allocation5 + $0x60] sm:$0xff]  ;;  %2431 = vrot.lane.b32.xlu1 %v2398_v15, %s9830_s11 }
 0x176   : > { %1425 = vst.msk [vmem:[#allocation5 + $0xe0] sm:$0xff] %vm1417_vm11, %v1384_v44 }
 0x178   : > { %v1386_v23 = vpop.permute.xlu0 %1385  ;;  %v1438_v7 = vld [vmem:[#allocation5 + $0x80] sm:$0xff] }
 0x179   : > { %1426 = vst.msk [vmem:[#allocation5 + $0x100] sm:$0xff] %vm1417_vm11, %v1386_v23  ;;  %v1388_v5 = vpop.permute.xlu1 %1387  ;;  %v1439_v17 = vld [vmem:[#allocation5 + $0xa0] sm:$0xff] }
 0x17a   : > { %1427 = vst.msk [vmem:[#allocation5 + $0x120] sm:$0xff] %vm1417_vm11, %v1388_v5  ;;  %9698 = vmatmul.mubr.msk.bf16.gmra.mrb[4].mxu0 %vm1477_vm12, %v1437_v8 }
 0x17b   : > { %9701 = vmatprep.mubr.msk.bf16.mxu0 %vm1477_vm12, %v1438_v7 }
 0x17c   : > { %v1390_v10 = vpop.permute.xlu0 %1389  ;;  %v1440_v28 = vld [vmem:[#allocation5 + $0xc0] sm:$0xff] }
 0x17d   : > { %1428 = vst.msk [vmem:[#allocation5 + $0x140] sm:$0xff] %vm1417_vm11, %v1390_v10  ;;  %v1392_v11 = vpop.permute.xlu1 %1391  ;;  %v1441_v9 = vld [vmem:[#allocation5 + $0xe0] sm:$0xff] }
 0x17e   : > { %1429 = vst.msk [vmem:[#allocation5 + $0x160] sm:$0xff] %vm1417_vm11, %v1392_v11 }
 0x180   : > { %v1394_v16 = vpop.permute.xlu0 %1393  ;;  %v1442_v20 = vld [vmem:[#allocation5 + $0x100] sm:$0xff] }
 0x181   : > { %1430 = vst.msk [vmem:[#allocation5 + $0x180] sm:$0xff] %vm1417_vm11, %v1394_v16  ;;  %v1396_v22 = vpop.permute.xlu1 %1395  ;;  %v1443_v1 = vld [vmem:[#allocation5 + $0x120] sm:$0xff] }
 0x182   : > { %9702 = vmatmul.mubr.msk.bf16.gmra.mrb[8].mxu0 %vm1477_vm12, %v1439_v17  ;;  %1431 = vst.msk [vmem:[#allocation5 + $0x1a0] sm:$0xff] %vm1417_vm11, %v1396_v22 }
 0x183   : > { %9705 = vmatprep.mubr.msk.bf16.mxu0 %vm1477_vm12, %v1440_v28 }
 0x184   : > { %v1444_v29 = vld [vmem:[#allocation5 + $0x140] sm:$0xff]  ;;  %v1398_v34 = vpop.permute.xlu0 %1397 }
 0x185   : > { %9713 = vmatprep.mubr.msk.bf16.mxu1 %vm1477_vm12, %v1444_v29  ;;  %v1445_v35 = vld [vmem:[#allocation5 + $0x160] sm:$0xff]  ;;  %1432 = vst.msk [vmem:[#allocation5 + $0x1c0] sm:$0xff] %vm1417_vm11, %v1398_v34  ;;  %v1400_v48 = vpop.permute.xlu1 %1399 }
 0x186   : > { %9714 = vmatmul.mubr.msk.bf16.vlgmr.msra.gmra.mrb[0].mxu1 %vm1477_vm12, %v1445_v35  ;;  %1433 = vst.msk [vmem:[#allocation5 + $0x1e0] sm:$0xff] %vm1417_vm11, %v1400_v48  ;;  %vm7561_vm11 = vcmask 785984  }
 0x188   : > { %v1446_v55 = vld [vmem:[#allocation5 + $0x180] sm:$0xff]  ;;  %v2043_v25 = vpop.permute.xlu0 %2042 }
 0x189   : > { %9717 = vmatprep.mubr.msk.bf16.mxu1 %vm1477_vm12, %v1446_v55  ;;  %v1447_v46 = vld [vmem:[#allocation5 + $0x1a0] sm:$0xff]  ;;  %v2045_v27 = vpop.permute.xlu1 %2044  ;;  %2091 = vst.msk [vmem:[#allocation5] sm:$0xff] %vm2090_vm13, %v2043_v25 }
 0x18a   : > { %9706 = vmatmul.mubr.msk.bf16.gmra.mrb[12].mxu0 %vm1477_vm12, %v1441_v9  ;;  %2092 = vst.msk [vmem:[#allocation5 + $0x20] sm:$0xff] %vm2090_vm13, %v2045_v27 }
 0x18b   : > { %9709 = vmatprep.mubr.msk.bf16.mxu0 %vm1477_vm12, %v1442_v20 }
 0x18c   : > { %v1448_v62 = vld [vmem:[#allocation5 + $0x1c0] sm:$0xff]  ;;  %v2172_v32 = vpop.permute.xlu0 %2171 }
 0x18d   : > { %v1449_v6 = vld [vmem:[#allocation5 + $0x1e0] sm:$0xff]  ;;  %v2174_v33 = vpop.permute.xlu1 %2173  ;;  %2220 = vst.msk [vmem:[#allocation5] sm:$0xff] %vm2219_vm14, %v2172_v32 }
 0x18e   : > { %9718 = vmatmul.mubr.msk.bf16.gmra.mrb[4].mxu1 %vm1477_vm12, %v1447_v46  ;;  %2221 = vst.msk [vmem:[#allocation5 + $0x20] sm:$0xff] %vm2219_vm14, %v2174_v33 }
 0x18f   : > { %9721 = vmatprep.mubr.msk.bf16.mxu1 %vm1477_vm12, %v1448_v62 }
 0x190   : > { %v2301_v38 = vpop.permute.xlu0 %2300 }
 0x191   : > { %v2303_v39 = vpop.permute.xlu1 %2302  ;;  %2349 = vst.msk [vmem:[#allocation5] sm:$0xff] %vm2348_vm15, %v2301_v38 }
 0x192   : > { %9710 = vmatmul.mubr.msk.bf16.gmra.mrb[16].mxu0 %vm1477_vm12, %v1443_v1  ;;  %2350 = vst.msk [vmem:[#allocation5 + $0x20] sm:$0xff] %vm2348_vm15, %v2303_v39 }
 0x194   : > { %v2430_v40 = vpop.permute.xlu0 %2429 }
 0x195   : > { %2478 = vst.msk [vmem:[#allocation5] sm:$0xff] %vm2477_vm0, %v2430_v40 }
 0x196   : > { %9722 = vmatmul.mubr.msk.bf16.gmra.mrb[8].mxu1 %vm1477_vm12, %v1449_v6  ;;  %vm7690_vm12 = vcmask 982784  }
 0x198   : > { %v2560_v41 = vpop.permute.xlu0 %2559 }
 0x199   : > { %2608 = vst.msk [vmem:[#allocation5] sm:$0xff] %vm2607_vm1, %v2560_v41 }
 0x19c   : > { %v2689_v51 = vpop.permute.xlu0 %2688 }
 0x19d   : > { %2737 = vst.msk [vmem:[#allocation5] sm:$0xff] %vm2736_vm2, %v2689_v51 }
 0x1a0   : > { %v2818_v56 = vpop.permute.xlu0 %2817 }
 0x1a1   : > { %2866 = vst.msk [vmem:[#allocation5] sm:$0xff] %vm2865_vm3, %v2818_v56 }
 0x1e7   : > { %v2432_v57 = vpop.permute.xlu1 %2431 }
 0x1e8   : > { %2479 = vst.msk [vmem:[#allocation5 + $0x20] sm:$0xff] %vm2477_vm0, %v2432_v57 }
 0x245   : > { %v9695_v3 = vpop.f32.mrb[0].mxu0 }
 0x246   : > { %v10781_v4 = vadd.f32 %v9695_v3, %v10778_v61  ;;  %v1564_v14 = vpop.f32.mrb[1].mxu0 }
 0x247   : > { %v9696_v21 = vpop.f32.mrb[2].mxu0  ;;  %v10803_v0 = vadd.f32 %v10778_v61, %v1564_v14 }
 0x248   : > { %14197 = vst [vmem:[#allocation6_spill] sm:$0xff] %v10781_v4  ;;  %v10784_v24 = vadd.f32 %v9696_v21, %v10778_v61  ;;  %1789 = vrot.lane.b32.xlu0 %v10781_v4, %s9833_s14  ;;  %v1567_v30 = vpop.f32.mrb[3].mxu0 }
 0x249   : > { %14201 = vst [vmem:[#allocation10_spill] sm:$0xff] %v10803_v0  ;;  %v10814_v8 = vadd.f32 %v10778_v61, %v1567_v30 }
 0x24a   : > { %14198 = vst [vmem:[#allocation7_spill] sm:$0xff] %v10784_v24  ;;  %1791 = vrot.lane.b32.xlu1 %v10784_v24, %s9833_s14 }
 0x24b   : > { %14204 = vst [vmem:[#allocation13_spill] sm:$0xff] %v10814_v8 }
 0x24d   : > { %v9699_v36 = vpop.f32.mrb[4].mxu0 }
 0x24e   : > { %v1580_v42 = vpop.f32.mrb[5].mxu0  ;;  %v10835_v48 = vadd.f32 %v9699_v36, %v10778_v61 }
 0x24f   : > { %v9700_v37 = vpop.f32.mrb[6].mxu0  ;;  %v10867_v31 = vadd.f32 %v10778_v61, %v1580_v42 }
 0x250   : > { %v1583_v45 = vpop.f32.mrb[7].mxu0  ;;  %14209 = vst [vmem:[#allocation18_spill] sm:$0xff] %v10835_v48  ;;  %v10846_v62 = vadd.f32 %v9700_v37, %v10778_v61 }
 0x251   : > { %14217 = vst [vmem:[#allocation26_spill] sm:$0xff] %v10867_v31  ;;  %v10872_v32 = vadd.f32 %v10778_v61, %v1583_v45 }
 0x252   : > { %14212 = vst [vmem:[#allocation21_spill] sm:$0xff] %v10846_v62 }
 0x253   : > { %14218 = vst [vmem:[#allocation27_spill] sm:$0xff] %v10872_v32 }
 0x255   : > { %v9703_v47 = vpop.f32.mrb[8].mxu0 }
 0x256   : > { %v10790_v50 = vpop.f32.mrb[9].mxu0  ;;  %v10887_v39 = vadd.f32 %v9703_v47, %v10778_v61 }
 0x257   : > { %v9704_v26 = vpop.f32.mrb[10].mxu0  ;;  %v10908_v56 = vadd.f32 %v10778_v61, %v10790_v50 }
 0x258   : > { %v10792_v43 = vpop.f32.mrb[11].mxu0  ;;  %14221 = vst [vmem:[#allocation30_spill] sm:$0xff] %v10887_v39  ;;  %v10892_v40 = vadd.f32 %v9704_v26, %v10778_v61 }
 0x259   : > { %v9715_v49 = vpop.f32.mrb[0].mxu1  ;;  %14225 = vst [vmem:[#allocation34_spill] sm:$0xff] %v10908_v56  ;;  %v10914_v57 = vadd.f32 %v10778_v61, %v10792_v43 }
 0x25a   : > { %v10795_v53 = vadd.f32 %v9715_v49, %v10778_v61  ;;  %v1644_v54 = vpop.f32.mrb[1].mxu1  ;;  %14222 = vst [vmem:[#allocation31_spill] sm:$0xff] %v10892_v40 }
 0x25b   : > { %v9716_v58 = vpop.f32.mrb[2].mxu1  ;;  %v10825_v17 = vadd.f32 %v10778_v61, %v1644_v54  ;;  %14226 = vst [vmem:[#allocation35_spill] sm:$0xff] %v10914_v57 }
 0x25c   : > { %14199 = vst [vmem:[#allocation8_spill] sm:$0xff] %v10795_v53  ;;  %v10798_v59 = vadd.f32 %v9716_v58, %v10778_v61  ;;  %v1647_v60 = vpop.f32.mrb[3].mxu1  ;;  %1829 = vrot.lane.b32.xlu0 %v10795_v53, %s9833_s14 }
 0x25d   : > { %v9707_v63 = vpop.f32.mrb[12].mxu0  ;;  %14207 = vst [vmem:[#allocation16_spill] sm:$0xff] %v10825_v17  ;;  %v10830_v29 = vadd.f32 %v10778_v61, %v1647_v60 }
 0x25e   : > { %14200 = vst [vmem:[#allocation9_spill] sm:$0xff] %v10798_v59  ;;  %v10806_v2 = vadd.f32 %v9707_v63, %v10778_v61  ;;  %1831 = vrot.lane.b32.xlu1 %v10798_v59, %s9833_s14  ;;  %v1612_v44 = vpop.f32.mrb[13].mxu0 }
 0x25f   : > { %v10811_v23 = vadd.f32 %v10778_v61, %v1612_v44  ;;  %v9708_v5 = vpop.f32.mrb[14].mxu0  ;;  %14208 = vst [vmem:[#allocation17_spill] sm:$0xff] %v10830_v29 }
 0x260   : > { %14202 = vst [vmem:[#allocation11_spill] sm:$0xff] %v10806_v2  ;;  %v10817_v7 = vadd.f32 %v9708_v5, %v10778_v61  ;;  %v1615_v10 = vpop.f32.mrb[15].mxu0  ;;  %1785 = vrot.lane.b32.xlu0 %v10803_v0, %s9833_s14 }
 0x261   : > { %14203 = vst [vmem:[#allocation12_spill] sm:$0xff] %v10811_v23  ;;  %v10822_v11 = vadd.f32 %v10778_v61, %v1615_v10  ;;  %v9719_v16 = vpop.f32.mrb[4].mxu1 }
 0x262   : > { %14205 = vst [vmem:[#allocation14_spill] sm:$0xff] %v10817_v7  ;;  %1787 = vrot.lane.b32.xlu1 %v10814_v8, %s9833_s14  ;;  %v1660_v22 = vpop.f32.mrb[5].mxu1  ;;  %v10854_v12 = vadd.f32 %v9719_v16, %v10778_v61 }
 0x263   : > { %14206 = vst [vmem:[#allocation15_spill] sm:$0xff] %v10822_v11  ;;  %v9720_v28 = vpop.f32.mrb[6].mxu1  ;;  %v10875_v33 = vadd.f32 %v10778_v61, %v1660_v22 }
 0x264   : > { %1825 = vrot.lane.b32.xlu0 %v10825_v17, %s9833_s14  ;;  %v1663_v34 = vpop.f32.mrb[7].mxu1  ;;  %14214 = vst [vmem:[#allocation23_spill] sm:$0xff] %v10854_v12  ;;  %v10862_v18 = vadd.f32 %v9720_v28, %v10778_v61 }
 0x265   : > { %v9711_v35 = vpop.f32.mrb[16].mxu0  ;;  %14219 = vst [vmem:[#allocation28_spill] sm:$0xff] %v10875_v33  ;;  %v10882_v38 = vadd.f32 %v10778_v61, %v1663_v34 }
 0x266   : > { %v10838_v55 = vadd.f32 %v9711_v35, %v10778_v61  ;;  %v1628_v9 = vpop.f32.mrb[17].mxu0  ;;  %1827 = vrot.lane.b32.xlu1 %v10830_v29, %s9833_s14  ;;  %14216 = vst [vmem:[#allocation25_spill] sm:$0xff] %v10862_v18 }
 0x267   : > { %v10843_v20 = vadd.f32 %v10778_v61, %v1628_v9  ;;  %v9712_v46 = vpop.f32.mrb[18].mxu0  ;;  %14220 = vst [vmem:[#allocation29_spill] sm:$0xff] %v10882_v38 }
 0x268   : > { %14210 = vst [vmem:[#allocation19_spill] sm:$0xff] %v10838_v55  ;;  %v10849_v1 = vadd.f32 %v9712_v46, %v10778_v61  ;;  %v1631_v6 = vpop.f32.mrb[19].mxu0  ;;  %1797 = vrot.lane.b32.xlu0 %v10835_v48, %s9833_s14 }
 0x269   : > { %14211 = vst [vmem:[#allocation20_spill] sm:$0xff] %v10843_v20  ;;  %v10857_v13 = vadd.f32 %v10778_v61, %v1631_v6  ;;  %v9723_v15 = vpop.f32.mrb[8].mxu1 }
 0x26a   : > { %14213 = vst [vmem:[#allocation22_spill] sm:$0xff] %v10849_v1  ;;  %1799 = vrot.lane.b32.xlu1 %v10846_v62, %s9833_s14  ;;  %v1676_v19 = vpop.f32.mrb[9].mxu1  ;;  %v10897_v41 = vadd.f32 %v9723_v15, %v10778_v61 }
 0x26b   : > { %14215 = vst [vmem:[#allocation24_spill] sm:$0xff] %v10857_v13  ;;  %v9724_v25 = vpop.f32.mrb[10].mxu1  ;;  %v10917_v3 = vadd.f32 %v10778_v61, %v1676_v19 }
 0x26c   : > { %1837 = vrot.lane.b32.xlu0 %v10854_v12, %s9833_s14  ;;  %v1679_v27 = vpop.f32.mrb[11].mxu1  ;;  %14223 = vst [vmem:[#allocation32_spill] sm:$0xff] %v10897_v41  ;;  %v10902_v51 = vadd.f32 %v9724_v25, %v10778_v61 }
 0x26d   : > { %14227 = vst [vmem:[#allocation36_spill] sm:$0xff] %v10917_v3  ;;  %v10924_v14 = vadd.f32 %v10778_v61, %v1679_v27 }
 0x26e   : > { %1839 = vrot.lane.b32.xlu1 %v10862_v18, %s9833_s14  ;;  %14224 = vst [vmem:[#allocation33_spill] sm:$0xff] %v10902_v51 }
 0x26f   : > { %14228 = vst [vmem:[#allocation37_spill] sm:$0xff] %v10924_v14 }
 0x270   : > { %1793 = vrot.lane.b32.xlu0 %v10867_v31, %s9833_s14 }
 0x272   : > { %1795 = vrot.lane.b32.xlu1 %v10872_v32, %s9833_s14 }
 0x274   : > { %1833 = vrot.lane.b32.xlu0 %v10875_v33, %s9833_s14 }
 0x276   : > { %1835 = vrot.lane.b32.xlu1 %v10882_v38, %s9833_s14 }
 0x278   : > { %1805 = vrot.lane.b32.xlu0 %v10887_v39, %s9833_s14 }
 0x27a   : > { %1807 = vrot.lane.b32.xlu1 %v10892_v40, %s9833_s14 }
 0x27c   : > { %1845 = vrot.lane.b32.xlu0 %v10897_v41, %s9833_s14 }
 0x27e   : > { %1847 = vrot.lane.b32.xlu1 %v10902_v51, %s9833_s14 }
 0x280   : > { %1801 = vrot.lane.b32.xlu0 %v10908_v56, %s9833_s14 }
 0x282   : > { %1803 = vrot.lane.b32.xlu1 %v10914_v57, %s9833_s14 }
 0x284   : > { %1841 = vrot.lane.b32.xlu0 %v10917_v3, %s9833_s14 }
 0x286   : > { %1843 = vrot.lane.b32.xlu1 %v10924_v14, %s9833_s14 }
 0x288   : > { %1813 = vrot.lane.b32.xlu0 %v10806_v2, %s9833_s14 }
 0x28a   : > { %1815 = vrot.lane.b32.xlu1 %v10817_v7, %s9833_s14 }
 0x28c   : > { %1809 = vrot.lane.b32.xlu0 %v10811_v23, %s9833_s14 }
 0x28e   : > { %1811 = vrot.lane.b32.xlu1 %v10822_v11, %s9833_s14 }
 0x290   : > { %1821 = vrot.lane.b32.xlu0 %v10838_v55, %s9833_s14 }
 0x292   : > { %1823 = vrot.lane.b32.xlu1 %v10849_v1, %s9833_s14 }
 0x294   : > { %1817 = vrot.lane.b32.xlu0 %v10843_v20, %s9833_s14 }
 0x296   : > { %1819 = vrot.lane.b32.xlu1 %v10857_v13, %s9833_s14 }
 0x2ba   : > { %v1790_v61 = vpop.permute.xlu0 %1789 }
 0x2bb   : > { %1884 = vst.msk [vmem:[#allocation2 + $0x4a] sm:$0xff] %vm1691_vm7, %v1790_v61 }
 0x2bc   : > { %v1792_v21 = vpop.permute.xlu1 %1791 }
 0x2bd   : > { %1885 = vst.msk [vmem:[#allocation2 + $0x52] sm:$0xff] %vm1691_vm7, %v1792_v21 }
 0x2c2   : > { %v1984_v30 = vld [vmem:[#allocation2 + $0x49] sm:$0xff] }
 0x2c3   : > { %v2499_v42 = vld [vmem:[#allocation2 + $0x48] sm:$0xff] }
 0x2c4   : > { %v1985_v36 = vld [vmem:[#allocation2 + $0x51] sm:$0xff]  ;;  %v3843_v49 = vld [vmem:[#allocation2 + $0x49] sm:$0xff] }
 0x2c5   : > { %v2500_v37 = vld [vmem:[#allocation2 + $0x50] sm:$0xff]  ;;  %v2013_v45 = vpack.c.bf16 %v1985_v36, %v1984_v30 }
 0x2c6   : > { %v2529_v47 = vpack.c.bf16 %v2500_v37, %v2499_v42  ;;  %v2886_v50 = vld [vmem:[#allocation2 + $0x4b] sm:$0xff]  ;;  %v2887_v26 = vld [vmem:[#allocation2 + $0x53] sm:$0xff] }
 0x2c7   : > { %2048 = vrot.lane.b32.xlu1 %v2013_v45, %s9823_s18  ;;  %v10951_v43 = vpack.c.bf16 %v2887_v26, %v2886_v50  ;;  %v3844_v54 = vld [vmem:[#allocation2 + $0x51] sm:$0xff] }
 0x2c8   : > { %2563 = vrot.lane.b32.xlu0 %v2529_v47, %s9831_s12  ;;  %1965 = vst.msk [vmem:[#allocation5 + $0x60] sm:$0xff] %vm1691_vm7, %v2529_v47  ;;  %v3875_v58 = vpack.c.bf16 %v3844_v54, %v3843_v49  ;;  %v2114_v15 = vld [vmem:[#allocation2 + $0x52] sm:$0xff]  ;;  %v2113_v25 = vld [vmem:[#allocation2 + $0x4a] sm:$0xff] }
 0x2c9   : > { %2932 = vst.msk [vmem:[#allocation5 + $0x48] sm:$0xff] %vm1691_vm7, %v10951_v43  ;;  %v10967_v21 = vpack.c.bf16 %v2114_v15, %v2113_v25 }
 0x2ca   : > { %3891 = vst.msk [vmem:[#allocation5 + $0x10] sm:$0xff] %vm1691_vm7, %v3875_v58 }
 0x2ce   : > { %v1830_v60 = vpop.permute.xlu0 %1829 }
 0x2cf   : > { %1904 = vst.msk [vmem:[#allocation2 + $0x13a] sm:$0xff] %vm1691_vm7, %v1830_v60  ;;  %v2242_v60 = vld [vmem:[#allocation2 + $0x4b] sm:$0xff] }
 0x2d0   : > { %v1832_v63 = vpop.permute.xlu1 %1831 }
 0x2d1   : > { %1905 = vst.msk [vmem:[#allocation2 + $0x142] sm:$0xff] %vm1691_vm7, %v1832_v63  ;;  %v2243_v63 = vld [vmem:[#allocation2 + $0x53] sm:$0xff] }
 0x2d2   : > { %v1786_v44 = vpop.permute.xlu0 %1785 }
 0x2d3   : > { %1882 = vst.msk [vmem:[#allocation2 + $0x32] sm:$0xff] %vm1691_vm7, %v1786_v44 }
 0x2d4   : > { %v1788_v5 = vpop.permute.xlu1 %1787 }
 0x2d5   : > { %1883 = vst.msk [vmem:[#allocation2 + $0x3a] sm:$0xff] %vm1691_vm7, %v1788_v5 }
 0x2d6   : > { %v1826_v10 = vpop.permute.xlu0 %1825  ;;  %v2004_v16 = vld [vmem:[#allocation2 + $0x139] sm:$0xff] }
 0x2d7   : > { %1902 = vst.msk [vmem:[#allocation2 + $0x122] sm:$0xff] %vm1691_vm7, %v1826_v10  ;;  %v2519_v34 = vld [vmem:[#allocation2 + $0x138] sm:$0xff] }
 0x2d8   : > { %v1828_v22 = vpop.permute.xlu1 %1827  ;;  %v2005_v28 = vld [vmem:[#allocation2 + $0x141] sm:$0xff]  ;;  %v3863_v31 = vld [vmem:[#allocation2 + $0x139] sm:$0xff] }
 0x2d9   : > { %v2520_v35 = vld [vmem:[#allocation2 + $0x140] sm:$0xff]  ;;  %1903 = vst.msk [vmem:[#allocation2 + $0x12a] sm:$0xff] %vm1691_vm7, %v1828_v22  ;;  %v2023_v9 = vpack.c.bf16 %v2005_v28, %v2004_v16  ;;  %v2271_v22 = vpack.c.bf16 %v2243_v63, %v2242_v60 }
 0x2da   : > { %v2539_v46 = vpack.c.bf16 %v2520_v35, %v2519_v34  ;;  %v1798_v6 = vpop.permute.xlu0 %1797  ;;  %v2497_v27 = vld [vmem:[#allocation2 + $0x30] sm:$0xff]  ;;  %v2134_v42 = vld [vmem:[#allocation2 + $0x142] sm:$0xff]  ;;  %v2133_v47 = vld [vmem:[#allocation2 + $0x13a] sm:$0xff] }
 0x2db   : > { %1888 = vst.msk [vmem:[#allocation2 + $0x7a] sm:$0xff] %vm1691_vm7, %v1798_v6  ;;  %2068 = vrot.lane.b32.xlu1 %v2023_v9, %s9823_s18  ;;  %v10978_v49 = vpack.c.bf16 %v2134_v42, %v2133_v47  ;;  %v1982_v5 = vld [vmem:[#allocation2 + $0x31] sm:$0xff]  ;;  %v2262_v34 = vld [vmem:[#allocation2 + $0x13b] sm:$0xff]  ;;  %v2263_v6 = vld [vmem:[#allocation2 + $0x143] sm:$0xff] }
 0x2dc   : > { %2583 = vrot.lane.b32.xlu0 %v2539_v46, %s9831_s12  ;;  %1975 = vst.msk [vmem:[#allocation5 + $0x1a0] sm:$0xff] %vm1691_vm7, %v2539_v46  ;;  %v1800_v19 = vpop.permute.xlu1 %1799  ;;  %v2498_v61 = vld [vmem:[#allocation2 + $0x38] sm:$0xff]  ;;  %v2371_v47 = vld [vmem:[#allocation2 + $0x4c] sm:$0xff]  ;;  %v2907_v1 = vld [vmem:[#allocation2 + $0x143] sm:$0xff] }
 0x2dd   : > { %1889 = vst.msk [vmem:[#allocation2 + $0x82] sm:$0xff] %vm1691_vm7, %v1800_v19  ;;  %v10969_v30 = vpack.c.bf16 %v2498_v61, %v2497_v27  ;;  %v1983_v44 = vld [vmem:[#allocation2 + $0x39] sm:$0xff]  ;;  %v2281_v61 = vpack.c.bf16 %v2263_v6, %v2262_v34  ;;  %v3864_v24 = vld [vmem:[#allocation2 + $0x141] sm:$0xff] }
 0x2de   : > { %v1838_v36 = vpop.permute.xlu0 %1837  ;;  %v2517_v50 = vld [vmem:[#allocation2 + $0x120] sm:$0xff]  ;;  %v10989_v28 = vpack.c.bf16 %v1983_v44, %v1982_v5  ;;  %v2111_v60 = vld [vmem:[#allocation2 + $0x32] sm:$0xff] }
 0x2df   : > { %1908 = vst.msk [vmem:[#allocation2 + $0x16a] sm:$0xff] %vm1691_vm7, %v1838_v36  ;;  %2177 = vrot.lane.b32.xlu1 %v10967_v21, %s9827_s28  ;;  %1964 = vst.msk [vmem:[#allocation5 + $0x40] sm:$0xff] %vm1691_vm7, %v10969_v30  ;;  %v2002_v25 = vld [vmem:[#allocation2 + $0x121] sm:$0xff]  ;;  %v2884_v14 = vld [vmem:[#allocation2 + $0x33] sm:$0xff] }
 0x2e0   : > { %2692 = vrot.lane.b32.xlu0 %v2013_v45, %s9832_s13  ;;  %v1840_v37 = vpop.permute.xlu1 %1839  ;;  %v2518_v26 = vld [vmem:[#allocation2 + $0x128] sm:$0xff]  ;;  %v2906_v17 = vld [vmem:[#allocation2 + $0x13b] sm:$0xff] }
 0x2e1   : > { %1909 = vst.msk [vmem:[#allocation2 + $0x172] sm:$0xff] %vm1691_vm7, %v1840_v37  ;;  %v10980_v54 = vpack.c.bf16 %v2518_v26, %v2517_v50  ;;  %v2003_v15 = vld [vmem:[#allocation2 + $0x129] sm:$0xff]  ;;  %v2372_v50 = vld [vmem:[#allocation2 + $0x54] sm:$0xff] }
 0x2e2   : > { %v1794_v58 = vpop.permute.xlu0 %1793  ;;  %v2503_v10 = vld [vmem:[#allocation2 + $0x78] sm:$0xff]  ;;  %v11000_v36 = vpack.c.bf16 %v2003_v15, %v2002_v25  ;;  %v2905_v55 = vld [vmem:[#allocation2 + $0x12b] sm:$0xff] }
 0x2e3   : > { %1886 = vst.msk [vmem:[#allocation2 + $0x62] sm:$0xff] %vm1691_vm7, %v1794_v58  ;;  %2197 = vrot.lane.b32.xlu1 %v10978_v49, %s9827_s28  ;;  %1974 = vst.msk [vmem:[#allocation5 + $0x180] sm:$0xff] %vm1691_vm7, %v10980_v54  ;;  %v2112_v26 = vld [vmem:[#allocation2 + $0x3a] sm:$0xff] }
 0x2e4   : > { %2712 = vrot.lane.b32.xlu0 %v2023_v9, %s9832_s13  ;;  %v1796_v45 = vpop.permute.xlu1 %1795  ;;  %v2504_v16 = vld [vmem:[#allocation2 + $0x80] sm:$0xff]  ;;  %v11013_v5 = vpack.c.bf16 %v2112_v26, %v2111_v60  ;;  %v2240_v26 = vld [vmem:[#allocation2 + $0x33] sm:$0xff] }
 0x2e5   : > { %1887 = vst.msk [vmem:[#allocation2 + $0x6a] sm:$0xff] %vm1691_vm7, %v1796_v45  ;;  %v10991_v35 = vpack.c.bf16 %v2504_v16, %v2503_v10  ;;  %v11011_v45 = vpack.c.bf16 %v2372_v50, %v2371_v47  ;;  %v2391_v10 = vld [vmem:[#allocation2 + $0x13c] sm:$0xff]  ;;  %v2392_v16 = vld [vmem:[#allocation2 + $0x144] sm:$0xff] }
 0x2e6   : > { %v1834_v46 = vpop.permute.xlu0 %1833  ;;  %v2523_v19 = vld [vmem:[#allocation2 + $0x168] sm:$0xff]  ;;  %v2375_v52 = vld [vmem:[#allocation2 + $0x7c] sm:$0xff] }
 0x2e7   : > { %1906 = vst.msk [vmem:[#allocation2 + $0x152] sm:$0xff] %vm1691_vm7, %v1834_v46  ;;  %2306 = vrot.lane.b32.xlu1 %v2271_v22, %s9829_s29  ;;  %1967 = vst.msk [vmem:[#allocation5 + $0xa0] sm:$0xff] %vm1691_vm7, %v10991_v35  ;;  %v2132_v46 = vld [vmem:[#allocation2 + $0x12a] sm:$0xff] }
 0x2e8   : > { %2046 = vrot.lane.b32.xlu0 %v10989_v28, %s9823_s18  ;;  %v1836_v9 = vpop.permute.xlu1 %1835  ;;  %v2524_v27 = vld [vmem:[#allocation2 + $0x170] sm:$0xff]  ;;  %v2376_v51 = vld [vmem:[#allocation2 + $0x84] sm:$0xff] }
 0x2e9   : > { %1907 = vst.msk [vmem:[#allocation2 + $0x15a] sm:$0xff] %vm1691_vm7, %v1836_v9  ;;  %v11002_v42 = vpack.c.bf16 %v2524_v27, %v2523_v19  ;;  %v2131_v27 = vld [vmem:[#allocation2 + $0x122] sm:$0xff] }
 0x2ea   : > { %v1806_v37 = vpop.permute.xlu0 %1805  ;;  %v2501_v6 = vld [vmem:[#allocation2 + $0x60] sm:$0xff] }
 0x2eb   : > { %1892 = vst.msk [vmem:[#allocation2 + $0xaa] sm:$0xff] %vm1691_vm7, %v1806_v37  ;;  %2326 = vrot.lane.b32.xlu1 %v2281_v61, %s9829_s29  ;;  %1977 = vst.msk [vmem:[#allocation5 + $0x1e0] sm:$0xff] %vm1691_vm7, %v11002_v42  ;;  %v2410_v61 = vpack.c.bf16 %v2392_v16, %v2391_v10  ;;  %v11027_v37 = vpack.c.bf16 %v2132_v46, %v2131_v27  ;;  %v3845_v11 = vld [vmem:[#allocation2 + $0x61] sm:$0xff] }
 0x2ec   : > { %2066 = vrot.lane.b32.xlu0 %v11000_v36, %s9823_s18  ;;  %v1808_v58 = vpop.permute.xlu1 %1807  ;;  %v4804_v63 = vld [vmem:[#allocation2 + $0x64] sm:$0xff]  ;;  %v4805_v44 = vld [vmem:[#allocation2 + $0x6c] sm:$0xff] }
 0x2ed   : > { %1893 = vst.msk [vmem:[#allocation2 + $0xb2] sm:$0xff] %vm1691_vm7, %v1808_v58  ;;  %v11015_v22 = vpack.c.bf16 %v4805_v44, %v4804_v63  ;;  %v2502_v15 = vld [vmem:[#allocation2 + $0x68] sm:$0xff]  ;;  %v2241_v58 = vld [vmem:[#allocation2 + $0x3b] sm:$0xff] }
 0x2ee   : > { %v1846_v34 = vpop.permute.xlu0 %1845  ;;  %v11024_v19 = vpack.c.bf16 %v2502_v15, %v2501_v6  ;;  %v2521_v9 = vld [vmem:[#allocation2 + $0x150] sm:$0xff]  ;;  %v2270_v16 = vpack.c.bf16 %v2241_v58, %v2240_v26  ;;  %v2260_v15 = vld [vmem:[#allocation2 + $0x123] sm:$0xff] }
 0x2ef   : > { %1912 = vst.msk [vmem:[#allocation2 + $0x19a] sm:$0xff] %vm1691_vm7, %v1846_v34  ;;  %2435 = vrot.lane.b32.xlu1 %v11011_v45, %s9830_s11  ;;  %4852 = vst.msk [vmem:[#allocation5 + $0x18] sm:$0xff] %vm1691_vm7, %v11015_v22  ;;  %v2369_v58 = vld [vmem:[#allocation2 + $0x34] sm:$0xff]  ;;  %v2888_v12 = vld [vmem:[#allocation2 + $0x63] sm:$0xff] }
 0x2f0   : > { %2175 = vrot.lane.b32.xlu0 %v11013_v5, %s9827_s28  ;;  %v1848_v25 = vpop.permute.xlu1 %1847  ;;  %v2522_v47 = vld [vmem:[#allocation2 + $0x158] sm:$0xff]  ;;  %1966 = vst.msk [vmem:[#allocation5 + $0x80] sm:$0xff] %vm1691_vm7, %v11024_v19  ;;  %v2244_v53 = vld [vmem:[#allocation2 + $0x63] sm:$0xff]  ;;  %v2245_v29 = vld [vmem:[#allocation2 + $0x6b] sm:$0xff] }
 0x2f1   : > { %1913 = vst.msk [vmem:[#allocation2 + $0x1a2] sm:$0xff] %vm1691_vm7, %v1848_v25  ;;  %v11031_v60 = vpack.c.bf16 %v2522_v47, %v2521_v9  ;;  %v2261_v9 = vld [vmem:[#allocation2 + $0x12b] sm:$0xff]  ;;  %v2136_v3 = vld [vmem:[#allocation2 + $0x15a] sm:$0xff]  ;;  %v2272_v13 = vpack.c.bf16 %v2245_v29, %v2244_v53 }
 0x2f2   : > { %v1802_v50 = vpop.permute.xlu0 %1801  ;;  %v2507_v44 = vld [vmem:[#allocation2 + $0xa8] sm:$0xff]  ;;  %v2135_v41 = vld [vmem:[#allocation2 + $0x152] sm:$0xff]  ;;  %v2265_v2 = vld [vmem:[#allocation2 + $0x15b] sm:$0xff] }
 0x2f3   : > { %1890 = vst.msk [vmem:[#allocation2 + $0x92] sm:$0xff] %vm1691_vm7, %v1802_v50  ;;  %2455 = vrot.lane.b32.xlu1 %v2410_v61, %s9830_s11  ;;  %1976 = vst.msk [vmem:[#allocation5 + $0x1c0] sm:$0xff] %vm1691_vm7, %v11031_v60  ;;  %v2280_v50 = vpack.c.bf16 %v2261_v9, %v2260_v15  ;;  %v2390_v15 = vld [vmem:[#allocation2 + $0x12c] sm:$0xff]  ;;  %v11142_v59 = vpack.c.bf16 %v2136_v3, %v2135_v41  ;;  %v11162_v41 = vpack.c.bf16 %v2907_v1, %v2906_v17 }
 0x2f4   : > { %2195 = vrot.lane.b32.xlu0 %v11027_v37, %s9827_s28  ;;  %v1804_v63 = vpop.permute.xlu1 %1803  ;;  %v2508_v10 = vld [vmem:[#allocation2 + $0xb0] sm:$0xff] }
 0x2f5   : > { %1891 = vst.msk [vmem:[#allocation2 + $0x9a] sm:$0xff] %vm1691_vm7, %v1804_v63  ;;  %v11040_v34 = vpack.c.bf16 %v2508_v10, %v2507_v44  ;;  %v2370_v63 = vld [vmem:[#allocation2 + $0x3c] sm:$0xff]  ;;  %v2895_v18 = vld [vmem:[#allocation2 + $0xb3] sm:$0xff]  ;;  %14232 = vst [vmem:[#allocation41_spill] sm:$0xff] %v11162_v41 }
 0x2f6   : > { %v1842_v46 = vpop.permute.xlu0 %1841  ;;  %v4871_v6 = vld [vmem:[#allocation5 + $0x18] sm:$0xff]  ;;  %v11056_v44 = vpack.c.bf16 %v2370_v63, %v2369_v58  ;;  %2942 = vst.msk [vmem:[#allocation5 + $0x188] sm:$0xff] %vm1691_vm7, %v11162_v41  ;;  %v3846_v39 = vld [vmem:[#allocation2 + $0x69] sm:$0xff] }
 0x2f7   : > { %1910 = vst.msk [vmem:[#allocation2 + $0x182] sm:$0xff] %vm1691_vm7, %v1842_v46  ;;  %2561 = vrot.lane.b32.xlu1 %v10969_v30, %s9831_s12  ;;  %1969 = vst.msk [vmem:[#allocation5 + $0xe0] sm:$0xff] %vm1691_vm7, %v11040_v34  ;;  %9480 = vmatprep.mubr.msk.bf16.mxu0 %vm1691_vm7, %v4871_v6  ;;  %v2389_v6 = vld [vmem:[#allocation2 + $0x124] sm:$0xff]  ;;  %v2908_v1 = vld [vmem:[#allocation2 + $0x153] sm:$0xff]  ;;  %v11221_v56 = vpack.c.bf16 %v3846_v39, %v3845_v11 }
 0x2f8   : > { %2304 = vrot.lane.b32.xlu0 %v2270_v16, %s9829_s29  ;;  %v4830_v25 = vld [vmem:[#allocation2 + $0x19c] sm:$0xff]  ;;  %v4831_v27 = vld [vmem:[#allocation2 + $0x1a4] sm:$0xff]  ;;  %v1844_v61 = vpop.permute.xlu1 %1843  ;;  %v3852_v7 = vld [vmem:[#allocation2 + $0xb1] sm:$0xff] }
 0x2f9   : > { %v4849_v47 = vpack.c.bf16 %v4831_v27, %v4830_v25  ;;  %1911 = vst.msk [vmem:[#allocation2 + $0x18a] sm:$0xff] %vm1691_vm7, %v1844_v61  ;;  %14240 = vst [vmem:[#allocation49_spill] sm:$0xff] %v11221_v56  ;;  %v4811_v4 = vld [vmem:[#allocation2 + $0xb4] sm:$0xff] }
 0x2fa   : > { %v1814_v26 = vpop.permute.xlu0 %1813  ;;  %v2505_v10 = vld [vmem:[#allocation2 + $0x90] sm:$0xff]  ;;  %3892 = vst.msk [vmem:[#allocation5 + $0x30] sm:$0xff] %vm1691_vm7, %v11221_v56 }
 0x2fb   : > { %4865 = vst.msk [vmem:[#allocation5 + $0x1b8] sm:$0xff] %vm1691_vm7, %v4849_v47  ;;  %1896 = vst.msk [vmem:[#allocation2 + $0xda] sm:$0xff] %vm1691_vm7, %v1814_v26  ;;  %2581 = vrot.lane.b32.xlu1 %v10980_v54, %s9831_s12  ;;  %v2409_v47 = vpack.c.bf16 %v2390_v15, %v2389_v6  ;;  %v2008_v6 = vld [vmem:[#allocation2 + $0x169] sm:$0xff]  ;;  %v2009_v15 = vld [vmem:[#allocation2 + $0x171] sm:$0xff] }
 0x2fc   : > { %2324 = vrot.lane.b32.xlu0 %v2280_v50, %s9829_s29  ;;  %v1816_v30 = vpop.permute.xlu1 %1815  ;;  %v2506_v16 = vld [vmem:[#allocation2 + $0x98] sm:$0xff] }
 0x2fd   : > { %1897 = vst.msk [vmem:[#allocation2 + $0xe2] sm:$0xff] %vm1691_vm7, %v1816_v30  ;;  %v11058_v9 = vpack.c.bf16 %v2506_v16, %v2505_v10  ;;  %v1989_v10 = vld [vmem:[#allocation2 + $0x81] sm:$0xff]  ;;  %v1988_v16 = vld [vmem:[#allocation2 + $0x79] sm:$0xff]  ;;  %v3849_v48 = vld [vmem:[#allocation2 + $0x91] sm:$0xff] }
 0x2fe   : > { %v1810_v46 = vpop.permute.xlu0 %1809  ;;  %v2119_v40 = vld [vmem:[#allocation2 + $0x92] sm:$0xff] }
 0x2ff   : > { %1894 = vst.msk [vmem:[#allocation2 + $0xc2] sm:$0xff] %vm1691_vm7, %v1810_v46  ;;  %2690 = vrot.lane.b32.xlu1 %v10989_v28, %s9832_s13  ;;  %1968 = vst.msk [vmem:[#allocation5 + $0xc0] sm:$0xff] %vm1691_vm7, %v11058_v9  ;;  %v2015_v46 = vpack.c.bf16 %v1989_v10, %v1988_v16  ;;  %v3850_v62 = vld [vmem:[#allocation2 + $0x99] sm:$0xff] }
 0x300   : > { %2433 = vrot.lane.b32.xlu0 %v11056_v44, %s9830_s11  ;;  %v4828_v54 = vld [vmem:[#allocation2 + $0x184] sm:$0xff]  ;;  %v4829_v25 = vld [vmem:[#allocation2 + $0x18c] sm:$0xff]  ;;  %v1812_v27 = vpop.permute.xlu1 %1811 }
 0x301   : > { %v4848_v61 = vpack.c.bf16 %v4829_v25, %v4828_v54  ;;  %1895 = vst.msk [vmem:[#allocation2 + $0xca] sm:$0xff] %vm1691_vm7, %v1812_v27  ;;  %v2913_v53 = vld [vmem:[#allocation2 + $0x18b] sm:$0xff] }
 0x302   : > { %v1822_v50 = vpop.permute.xlu0 %1821  ;;  %v2511_v26 = vld [vmem:[#allocation2 + $0xd8] sm:$0xff] }
 0x303   : > { %4864 = vst.msk [vmem:[#allocation5 + $0x198] sm:$0xff] %vm1691_vm7, %v4848_v61  ;;  %1900 = vst.msk [vmem:[#allocation2 + $0x10a] sm:$0xff] %vm1691_vm7, %v1822_v50  ;;  %2710 = vrot.lane.b32.xlu1 %v11000_v36, %s9832_s13  ;;  %v2025_v61 = vpack.c.bf16 %v2009_v15, %v2008_v6  ;;  %v2118_v50 = vld [vmem:[#allocation2 + $0x82] sm:$0xff] }
 0x304   : > { %2453 = vrot.lane.b32.xlu0 %v2409_v47, %s9830_s11  ;;  %v1824_v28 = vpop.permute.xlu1 %1823  ;;  %v2512_v58 = vld [vmem:[#allocation2 + $0xe0] sm:$0xff] }
 0x305   : > { %1901 = vst.msk [vmem:[#allocation2 + $0x112] sm:$0xff] %vm1691_vm7, %v1824_v28  ;;  %v11074_v63 = vpack.c.bf16 %v2512_v58, %v2511_v26  ;;  %v2117_v28 = vld [vmem:[#allocation2 + $0x7a] sm:$0xff]  ;;  %v2137_v26 = vld [vmem:[#allocation2 + $0x16a] sm:$0xff]  ;;  %v2138_v58 = vld [vmem:[#allocation2 + $0x172] sm:$0xff] }
 0x306   : > { %v1818_v30 = vpop.permute.xlu0 %1817  ;;  %v2509_v54 = vld [vmem:[#allocation2 + $0xc0] sm:$0xff]  ;;  %v11104_v6 = vpack.c.bf16 %v2138_v58, %v2137_v26  ;;  %v2267_v26 = vld [vmem:[#allocation2 + $0x173] sm:$0xff]  ;;  %v2116_v58 = vld [vmem:[#allocation2 + $0x6a] sm:$0xff] }
 0x307   : > { %1898 = vst.msk [vmem:[#allocation2 + $0xf2] sm:$0xff] %vm1691_vm7, %v1818_v30  ;;  %2819 = vrot.lane.b32.xlu1 %v11013_v5, %s9833_s14  ;;  %1971 = vst.msk [vmem:[#allocation5 + $0x120] sm:$0xff] %vm1691_vm7, %v11074_v63  ;;  %v1987_v30 = vld [vmem:[#allocation2 + $0x69] sm:$0xff]  ;;  %v3856_v57 = vld [vmem:[#allocation2 + $0xe1] sm:$0xff] }
 0x308   : > { %2567 = vrot.lane.b32.xlu0 %v10991_v35, %s9831_s12  ;;  %v1820_v36 = vpop.permute.xlu1 %1819  ;;  %v2510_v25 = vld [vmem:[#allocation2 + $0xc8] sm:$0xff] }
 0x309   : > { %1899 = vst.msk [vmem:[#allocation2 + $0xfa] sm:$0xff] %vm1691_vm7, %v1820_v36  ;;  %v11087_v5 = vpack.c.bf16 %v2510_v25, %v2509_v54  ;;  %v2246_v54 = vld [vmem:[#allocation2 + $0x7b] sm:$0xff]  ;;  %v2247_v25 = vld [vmem:[#allocation2 + $0x83] sm:$0xff] }
 0x30a   : > { %v2515_v35 = vld [vmem:[#allocation2 + $0x108] sm:$0xff] }
 0x30b   : > { %2052 = vrot.lane.b32.xlu1 %v2015_v46, %s9823_s18  ;;  %1970 = vst.msk [vmem:[#allocation5 + $0x100] sm:$0xff] %vm1691_vm7, %v11087_v5  ;;  %v2899_v33 = vld [vmem:[#allocation2 + $0xe3] sm:$0xff] }
 0x30c   : > { %2587 = vrot.lane.b32.xlu0 %v11002_v42, %s9831_s12  ;;  %v2516_v27 = vld [vmem:[#allocation2 + $0x110] sm:$0xff]  ;;  %v11097_v42 = vpack.c.bf16 %v2118_v50, %v2117_v28  ;;  %v4812_v0 = vld [vmem:[#allocation2 + $0xc4] sm:$0xff] }
 0x30d   : > { %v11089_v47 = vpack.c.bf16 %v2516_v27, %v2515_v35  ;;  %v2006_v35 = vld [vmem:[#allocation2 + $0x151] sm:$0xff]  ;;  %v2007_v27 = vld [vmem:[#allocation2 + $0x159] sm:$0xff]  ;;  %v3859_v11 = vld [vmem:[#allocation2 + $0x109] sm:$0xff] }
 0x30e   : > { %v2513_v10 = vld [vmem:[#allocation2 + $0xf0] sm:$0xff]  ;;  %v11114_v50 = vpack.c.bf16 %v2007_v27, %v2006_v35 }
 0x30f   : > { %2072 = vrot.lane.b32.xlu1 %v2025_v61, %s9823_s18  ;;  %1973 = vst.msk [vmem:[#allocation5 + $0x160] sm:$0xff] %vm1691_vm7, %v11089_v47  ;;  %v2266_v28 = vld [vmem:[#allocation2 + $0x16b] sm:$0xff] }
 0x310   : > { %2696 = vrot.lane.b32.xlu0 %v2015_v46, %s9832_s13  ;;  %v2514_v36 = vld [vmem:[#allocation2 + $0xf8] sm:$0xff]  ;;  %v1986_v46 = vld [vmem:[#allocation2 + $0x61] sm:$0xff]  ;;  %v2283_v35 = vpack.c.bf16 %v2267_v26, %v2266_v28 }
 0x311   : > { %v11102_v16 = vpack.c.bf16 %v2514_v36, %v2513_v10  ;;  %v11106_v15 = vpack.c.bf16 %v1987_v30, %v1986_v46  ;;  %v2890_v30 = vld [vmem:[#allocation2 + $0x7b] sm:$0xff]  ;;  %v2891_v10 = vld [vmem:[#allocation2 + $0x83] sm:$0xff]  ;;  %v3860_v39 = vld [vmem:[#allocation2 + $0x111] sm:$0xff] }
 0x312   : > { %v2115_v36 = vld [vmem:[#allocation2 + $0x62] sm:$0xff]  ;;  %v11119_v46 = vpack.c.bf16 %v2891_v10, %v2890_v30  ;;  %v2889_v30 = vld [vmem:[#allocation2 + $0x6b] sm:$0xff]  ;;  %v3858_v56 = vld [vmem:[#allocation2 + $0xf9] sm:$0xff] }
 0x313   : > { %2181 = vrot.lane.b32.xlu1 %v11097_v42, %s9827_s28  ;;  %1972 = vst.msk [vmem:[#allocation5 + $0x140] sm:$0xff] %vm1691_vm7, %v11102_v16  ;;  %v11121_v27 = vpack.c.bf16 %v2116_v58, %v2115_v36  ;;  %v2898_v10 = vld [vmem:[#allocation2 + $0xdb] sm:$0xff]  ;;  %v11134_v28 = vpack.c.bf16 %v2889_v30, %v2888_v12  ;;  %v2395_v58 = vld [vmem:[#allocation2 + $0x16c] sm:$0xff]  ;;  %v2896_v30 = vld [vmem:[#allocation2 + $0xc3] sm:$0xff] }
 0x314   : > { %2716 = vrot.lane.b32.xlu0 %v2025_v61, %s9832_s13  ;;  %v2273_v61 = vpack.c.bf16 %v2247_v25, %v2246_v54  ;;  %v2885_v54 = vld [vmem:[#allocation2 + $0x3b] sm:$0xff]  ;;  %v2894_v25 = vld [vmem:[#allocation2 + $0xab] sm:$0xff]  ;;  %2934 = vst.msk [vmem:[#allocation5 + $0x88] sm:$0xff] %vm1691_vm7, %v11119_v46  ;;  %v11136_v26 = vpack.c.bf16 %v2899_v33, %v2898_v10 }
 0x315   : > { %v11127_v38 = vpack.c.bf16 %v2895_v18, %v2894_v25  ;;  %v2396_v36 = vld [vmem:[#allocation2 + $0x174] sm:$0xff]  ;;  %2933 = vst.msk [vmem:[#allocation5 + $0x68] sm:$0xff] %vm1691_vm7, %v11134_v28  ;;  %v2897_v10 = vld [vmem:[#allocation2 + $0xcb] sm:$0xff] }
 0x316   : > { %14230 = vst [vmem:[#allocation39_spill] sm:$0xff] %v11136_v26  ;;  %v2893_v18 = vld [vmem:[#allocation2 + $0x9b] sm:$0xff]  ;;  %v2903_v25 = vld [vmem:[#allocation2 + $0x113] sm:$0xff]  ;;  %2938 = vst.msk [vmem:[#allocation5 + $0x108] sm:$0xff] %vm1691_vm7, %v11136_v26  ;;  %v11166_v20 = vpack.c.bf16 %v2396_v36, %v2395_v58 }
 0x317   : > { %2201 = vrot.lane.b32.xlu1 %v11104_v6, %s9827_s28  ;;  %14229 = vst [vmem:[#allocation38_spill] sm:$0xff] %v11127_v38  ;;  %2936 = vst.msk [vmem:[#allocation5 + $0xc8] sm:$0xff] %vm1691_vm7, %v11127_v38  ;;  %v2901_v3 = vld [vmem:[#allocation2 + $0xfb] sm:$0xff] }
 0x318   : > { %2050 = vrot.lane.b32.xlu0 %v11106_v15, %s9823_s18  ;;  %v2394_v36 = vld [vmem:[#allocation2 + $0x15c] sm:$0xff]  ;;  %v4816_v41 = vld [vmem:[#allocation2 + $0xf4] sm:$0xff] }
 0x31b   : > { %2310 = vrot.lane.b32.xlu1 %v2273_v61, %s9829_s29  ;;  %v11125_v61 = vpack.c.bf16 %v2885_v54, %v2884_v14  ;;  %v2892_v14 = vld [vmem:[#allocation2 + $0x93] sm:$0xff]  ;;  %v2902_v54 = vld [vmem:[#allocation2 + $0x10b] sm:$0xff] }
 0x31c   : > { %2070 = vrot.lane.b32.xlu0 %v11114_v50, %s9823_s18  ;;  %v11148_v12 = vpack.c.bf16 %v2893_v18, %v2892_v14  ;;  %v11150_v33 = vpack.c.bf16 %v2903_v25, %v2902_v54  ;;  %v2910_v14 = vld [vmem:[#allocation2 + $0x16b] sm:$0xff]  ;;  %v2911_v54 = vld [vmem:[#allocation2 + $0x173] sm:$0xff]  ;;  %v2904_v25 = vld [vmem:[#allocation2 + $0x123] sm:$0xff] }
 0x31d   : > { %2931 = vst.msk [vmem:[#allocation5 + $0x28] sm:$0xff] %vm1691_vm7, %v11125_v61  ;;  %v11174_v17 = vpack.c.bf16 %v2905_v55, %v2904_v25 }
 0x31e   : > { %14231 = vst [vmem:[#allocation40_spill] sm:$0xff] %v11150_v33  ;;  %2935 = vst.msk [vmem:[#allocation5 + $0xa8] sm:$0xff] %vm1691_vm7, %v11148_v12 }
 0x31f   : > { %2330 = vrot.lane.b32.xlu1 %v2283_v35, %s9829_s29  ;;  %v11140_v35 = vpack.c.bf16 %v2376_v51, %v2375_v52  ;;  %2940 = vst.msk [vmem:[#allocation5 + $0x148] sm:$0xff] %vm1691_vm7, %v11150_v33  ;;  %v11160_v52 = vpack.c.bf16 %v2897_v10, %v2896_v30  ;;  %v2900_v51 = vld [vmem:[#allocation2 + $0xf3] sm:$0xff]  ;;  %v11172_v30 = vpack.c.bf16 %v2911_v54, %v2910_v14  ;;  %14235 = vst [vmem:[#allocation44_spill] sm:$0xff] %v11174_v17  ;;  %v2909_v10 = vld [vmem:[#allocation2 + $0x15b] sm:$0xff] }
 0x320   : > { %2179 = vrot.lane.b32.xlu0 %v11121_v27, %s9827_s28  ;;  %v11164_v18 = vpack.c.bf16 %v2901_v3, %v2900_v51  ;;  %v2912_v51 = vld [vmem:[#allocation2 + $0x183] sm:$0xff]  ;;  %v2264_v3 = vld [vmem:[#allocation2 + $0x153] sm:$0xff]  ;;  %v11178_v58 = vpack.c.bf16 %v2909_v10, %v2908_v1  ;;  %2941 = vst.msk [vmem:[#allocation5 + $0x168] sm:$0xff] %vm1691_vm7, %v11174_v17 }
 0x321   : > { %2937 = vst.msk [vmem:[#allocation5 + $0xe8] sm:$0xff] %vm1691_vm7, %v11160_v52  ;;  %14234 = vst [vmem:[#allocation43_spill] sm:$0xff] %v11172_v30  ;;  %v11187_v29 = vpack.c.bf16 %v2913_v53, %v2912_v51  ;;  %v2282_v55 = vpack.c.bf16 %v2265_v2, %v2264_v3  ;;  %v2637_v2 = vld [vmem:[#allocation2 + $0xb1] sm:$0xff]  ;;  %v2636_v54 = vld [vmem:[#allocation2 + $0xa9] sm:$0xff] }
 0x322   : > { %14233 = vst [vmem:[#allocation42_spill] sm:$0xff] %v11164_v18  ;;  %2939 = vst.msk [vmem:[#allocation5 + $0x128] sm:$0xff] %vm1691_vm7, %v11164_v18  ;;  %v2662_v25 = vpack.c.bf16 %v2637_v2, %v2636_v54  ;;  %v2122_v1 = vld [vmem:[#allocation2 + $0xb2] sm:$0xff]  ;;  %v4822_v18 = vld [vmem:[#allocation2 + $0x13c] sm:$0xff] }
 0x323   : > { %2439 = vrot.lane.b32.xlu1 %v11140_v35, %s9830_s11  ;;  %14236 = vst [vmem:[#allocation45_spill] sm:$0xff] %v11178_v58  ;;  %2944 = vst.msk [vmem:[#allocation5 + $0x1c8] sm:$0xff] %vm1691_vm7, %v11172_v30  ;;  %v1991_v10 = vld [vmem:[#allocation2 + $0x99] sm:$0xff]  ;;  %v1990_v51 = vld [vmem:[#allocation2 + $0x91] sm:$0xff] }
 0x324   : > { %2199 = vrot.lane.b32.xlu0 %v11142_v59, %s9827_s28  ;;  %14237 = vst [vmem:[#allocation46_spill] sm:$0xff] %v11187_v29  ;;  %2943 = vst.msk [vmem:[#allocation5 + $0x1a8] sm:$0xff] %vm1691_vm7, %v11178_v58  ;;  %v3847_v3 = vld [vmem:[#allocation2 + $0x79] sm:$0xff]  ;;  %v2250_v53 = vld [vmem:[#allocation2 + $0xab] sm:$0xff]  ;;  %v11215_v2 = vpack.c.bf16 %v1991_v10, %v1990_v51 }
 0x325   : > { %2945 = vst.msk [vmem:[#allocation5 + $0x1e8] sm:$0xff] %vm1691_vm7, %v11187_v29  ;;  %v3853_v10 = vld [vmem:[#allocation2 + $0xc1] sm:$0xff]  ;;  %v2380_v51 = vld [vmem:[#allocation2 + $0xb4] sm:$0xff]  ;;  %v4813_v30 = vld [vmem:[#allocation2 + $0xcc] sm:$0xff] }
 0x326   : > { %v2255_v29 = vld [vmem:[#allocation2 + $0xe3] sm:$0xff]  ;;  %v2382_v33 = vld [vmem:[#allocation2 + $0xcc] sm:$0xff] }
 0x327   : > { %2459 = vrot.lane.b32.xlu1 %v11166_v20, %s9830_s11  ;;  %v4818_v58 = vld [vmem:[#allocation2 + $0x10c] sm:$0xff] }
 0x328   : > { %2308 = vrot.lane.b32.xlu0 %v2272_v13, %s9829_s29  ;;  %v2393_v13 = vld [vmem:[#allocation2 + $0x154] sm:$0xff] }
 0x329   : > { %v11200_v14 = vpack.c.bf16 %v2394_v36, %v2393_v13  ;;  %v3848_v13 = vld [vmem:[#allocation2 + $0x81] sm:$0xff]  ;;  %v3851_v36 = vld [vmem:[#allocation2 + $0xa9] sm:$0xff] }
 0x32a   : > { %v11217_v54 = vpack.c.bf16 %v3848_v13, %v3847_v3  ;;  %v2248_v3 = vld [vmem:[#allocation2 + $0x93] sm:$0xff]  ;;  %v2249_v13 = vld [vmem:[#allocation2 + $0x9b] sm:$0xff] }
 0x32b   : > { %2565 = vrot.lane.b32.xlu1 %v11024_v19, %s9831_s12 }
 0x32c   : > { %2328 = vrot.lane.b32.xlu0 %v2282_v55, %s9829_s29  ;;  %v2251_v55 = vld [vmem:[#allocation2 + $0xb3] sm:$0xff]  ;;  %14238 = vst [vmem:[#allocation47_spill] sm:$0xff] %v11217_v54  ;;  %3893 = vst.msk [vmem:[#allocation5 + $0x50] sm:$0xff] %vm1691_vm7, %v11217_v54  ;;  %v3854_v54 = vld [vmem:[#allocation2 + $0xc9] sm:$0xff] }
 0x32f   : > { %2585 = vrot.lane.b32.xlu1 %v11031_v60, %s9831_s12 }
 0x330   : > { %2437 = vrot.lane.b32.xlu0 %v11015_v22, %s9830_s11 }
 0x333   : > { %2694 = vrot.lane.b32.xlu1 %v11106_v15, %s9832_s13  ;;  %v2121_v15 = vld [vmem:[#allocation2 + $0xaa] sm:$0xff] }
 0x334   : > { %2457 = vrot.lane.b32.xlu0 %v11200_v14, %s9830_s11  ;;  %v11213_v23 = vpack.c.bf16 %v2122_v1, %v2121_v15  ;;  %v11233_v1 = vpack.c.bf16 %v3850_v62, %v3849_v48  ;;  %v2379_v15 = vld [vmem:[#allocation2 + $0xac] sm:$0xff]  ;;  %v11245_v48 = vpack.c.bf16 %v3854_v54, %v3853_v10  ;;  %v11247_v62 = vpack.c.bf16 %v3864_v24, %v3863_v31  ;;  %v3866_v10 = vld [vmem:[#allocation2 + $0x159] sm:$0xff] }
 0x335   : > { %v3865_v54 = vld [vmem:[#allocation2 + $0x151] sm:$0xff] }
 0x336   : > { %14242 = vst [vmem:[#allocation51_spill] sm:$0xff] %v11233_v1  ;;  %3894 = vst.msk [vmem:[#allocation5 + $0x70] sm:$0xff] %vm1691_vm7, %v11233_v1 }
 0x337   : > { %2714 = vrot.lane.b32.xlu1 %v11114_v50, %s9832_s13  ;;  %v2120_v50 = vld [vmem:[#allocation2 + $0x9a] sm:$0xff]  ;;  %14244 = vst [vmem:[#allocation53_spill] sm:$0xff] %v11245_v48  ;;  %14245 = vst [vmem:[#allocation54_spill] sm:$0xff] %v11247_v62 }
 0x338   : > { %2571 = vrot.lane.b32.xlu0 %v11040_v34, %s9831_s12  ;;  %3896 = vst.msk [vmem:[#allocation5 + $0xb0] sm:$0xff] %vm1691_vm7, %v11245_v48  ;;  %3901 = vst.msk [vmem:[#allocation5 + $0x150] sm:$0xff] %vm1691_vm7, %v11247_v62  ;;  %v2274_v48 = vpack.c.bf16 %v2249_v13, %v2248_v3  ;;  %v2525_v3 = vld [vmem:[#allocation2 + $0x180] sm:$0xff]  ;;  %v2526_v13 = vld [vmem:[#allocation2 + $0x188] sm:$0xff] }
 0x339   : > { %v2049_v60 = vpop.permute.xlu1 %2048 }
 0x33a   : > { %2094 = vst.msk [vmem:[#allocation5 + $0x60] sm:$0xff] %vm2090_vm13, %v2049_v60  ;;  %v11219_v60 = vpack.c.bf16 %v3852_v7, %v3851_v36  ;;  %v11237_v36 = vpack.c.bf16 %v3860_v39, %v3859_v11  ;;  %v3867_v11 = vld [vmem:[#allocation2 + $0x169] sm:$0xff] }
 0x33b   : > { %2056 = vrot.lane.b32.xlu1 %v2662_v25, %s9823_s18 }
 0x33c   : > { %2700 = vrot.lane.b32.xlu0 %v2662_v25, %s9832_s13  ;;  %14239 = vst [vmem:[#allocation48_spill] sm:$0xff] %v11219_v60  ;;  %v3855_v25 = vld [vmem:[#allocation2 + $0xd9] sm:$0xff]  ;;  %3895 = vst.msk [vmem:[#allocation5 + $0x90] sm:$0xff] %vm1691_vm7, %v11219_v60  ;;  %v2275_v60 = vpack.c.bf16 %v2251_v55, %v2250_v53  ;;  %v3861_v53 = vld [vmem:[#allocation2 + $0x121] sm:$0xff] }
 0x33d   : > { %v11231_v7 = vpack.c.bf16 %v3856_v57, %v3855_v25  ;;  %14243 = vst [vmem:[#allocation52_spill] sm:$0xff] %v11237_v36  ;;  %v11239_v57 = vpack.c.bf16 %v2120_v50, %v2119_v40  ;;  %v3857_v25 = vld [vmem:[#allocation2 + $0xf1] sm:$0xff]  ;;  %3899 = vst.msk [vmem:[#allocation5 + $0x110] sm:$0xff] %vm1691_vm7, %v11237_v36  ;;  %v3862_v55 = vld [vmem:[#allocation2 + $0x129] sm:$0xff] }
 0x33e   : > { %v11251_v39 = vpack.c.bf16 %v3858_v56, %v3857_v25  ;;  %v3868_v40 = vld [vmem:[#allocation2 + $0x171] sm:$0xff]  ;;  %v11262_v31 = vpack.c.bf16 %v3862_v55, %v3861_v53  ;;  %v3871_v56 = vld [vmem:[#allocation2 + $0x199] sm:$0xff]  ;;  %v3872_v50 = vld [vmem:[#allocation2 + $0x1a1] sm:$0xff] }
 0x33f   : > { %2185 = vrot.lane.b32.xlu1 %v11213_v23, %s9827_s28  ;;  %14241 = vst [vmem:[#allocation50_spill] sm:$0xff] %v11231_v7  ;;  %3897 = vst.msk [vmem:[#allocation5 + $0xd0] sm:$0xff] %vm1691_vm7, %v11231_v7  ;;  %v11260_v24 = vpack.c.bf16 %v3868_v40, %v3867_v11  ;;  %v3869_v25 = vld [vmem:[#allocation2 + $0x181] sm:$0xff]  ;;  %v3870_v36 = vld [vmem:[#allocation2 + $0x189] sm:$0xff]  ;;  %v11266_v7 = vpack.c.bf16 %v2380_v51, %v2379_v15  ;;  %v11272_v11 = vpack.c.bf16 %v3866_v10, %v3865_v54  ;;  %v11284_v15 = vpop.permute.xlu0 %2563 }
 0x340   : > { %2054 = vrot.lane.b32.xlu0 %v11215_v2, %s9823_s18  ;;  %14246 = vst [vmem:[#allocation55_spill] sm:$0xff] %v11251_v39  ;;  %14248 = vst [vmem:[#allocation57_spill] sm:$0xff] %v11262_v31  ;;  %v11274_v40 = vpack.c.bf16 %v3870_v36, %v3869_v25  ;;  %v2377_v53 = vld [vmem:[#allocation2 + $0x94] sm:$0xff]  ;;  %v2378_v55 = vld [vmem:[#allocation2 + $0x9c] sm:$0xff] }
 0x341   : > { %14247 = vst [vmem:[#allocation56_spill] sm:$0xff] %v11260_v24  ;;  %3898 = vst.msk [vmem:[#allocation5 + $0xf0] sm:$0xff] %vm1691_vm7, %v11251_v39  ;;  %v11286_v51 = vpack.c.bf16 %v2378_v55, %v2377_v53  ;;  %v2640_v54 = vld [vmem:[#allocation2 + $0xd9] sm:$0xff]  ;;  %v2654_v53 = vld [vmem:[#allocation2 + $0x181] sm:$0xff] }
 0x342   : > { %3903 = vst.msk [vmem:[#allocation5 + $0x190] sm:$0xff] %vm1691_vm7, %v11260_v24  ;;  %3900 = vst.msk [vmem:[#allocation5 + $0x130] sm:$0xff] %vm1691_vm7, %v11262_v31  ;;  %v2655_v55 = vld [vmem:[#allocation2 + $0x189] sm:$0xff]  ;;  %v4806_v31 = vld [vmem:[#allocation2 + $0x7c] sm:$0xff] }
 0x343   : > { %2314 = vrot.lane.b32.xlu1 %v2275_v60, %s9829_s29  ;;  %v3889_v60 = vpack.c.bf16 %v3872_v50, %v3871_v56  ;;  %14249 = vst [vmem:[#allocation58_spill] sm:$0xff] %v11272_v11  ;;  %14250 = vst [vmem:[#allocation59_spill] sm:$0xff] %v11274_v40  ;;  %v11294_v56 = vpack.c.bf16 %v2526_v13, %v2525_v3  ;;  %v2641_v50 = vld [vmem:[#allocation2 + $0xe1] sm:$0xff]  ;;  %v1995_v3 = vld [vmem:[#allocation2 + $0xc9] sm:$0xff] }
 0x344   : > { %2183 = vrot.lane.b32.xlu0 %v11239_v57, %s9827_s28  ;;  %3902 = vst.msk [vmem:[#allocation5 + $0x170] sm:$0xff] %vm1691_vm7, %v11272_v11  ;;  %3904 = vst.msk [vmem:[#allocation5 + $0x1b0] sm:$0xff] %vm1691_vm7, %v11274_v40  ;;  %v2664_v25 = vpack.c.bf16 %v2641_v50, %v2640_v54  ;;  %v1994_v13 = vld [vmem:[#allocation2 + $0xc1] sm:$0xff]  ;;  %v2671_v40 = vpack.c.bf16 %v2655_v55, %v2654_v53  ;;  %v2124_v50 = vld [vmem:[#allocation2 + $0xca] sm:$0xff] }
 0x345   : > { %3905 = vst.msk [vmem:[#allocation5 + $0x1d0] sm:$0xff] %vm1691_vm7, %v3889_v60  ;;  %v11309_v62 = vpack.c.bf16 %v1995_v3, %v1994_v13  ;;  %v2123_v54 = vld [vmem:[#allocation2 + $0xc2] sm:$0xff]  ;;  %v2253_v11 = vld [vmem:[#allocation2 + $0xcb] sm:$0xff]  ;;  %v4808_v55 = vld [vmem:[#allocation2 + $0x94] sm:$0xff] }
 0x346   : > { %v4807_v39 = vld [vmem:[#allocation2 + $0x84] sm:$0xff]  ;;  %v11315_v8 = vpack.c.bf16 %v2124_v50, %v2123_v54  ;;  %v4809_v3 = vld [vmem:[#allocation2 + $0x9c] sm:$0xff]  ;;  %v4810_v13 = vld [vmem:[#allocation2 + $0xac] sm:$0xff] }
 0x347   : > { %2443 = vrot.lane.b32.xlu1 %v11266_v7, %s9830_s11  ;;  %v4837_v53 = vpack.c.bf16 %v4807_v39, %v4806_v31  ;;  %v4839_v39 = vpack.c.bf16 %v4811_v4, %v4810_v13  ;;  %v4840_v31 = vpack.c.bf16 %v4813_v30, %v4812_v0  ;;  %v4814_v50 = vld [vmem:[#allocation2 + $0xdc] sm:$0xff]  ;;  %v4815_v54 = vld [vmem:[#allocation2 + $0xe4] sm:$0xff]  ;;  %v4821_v13 = vld [vmem:[#allocation2 + $0x12c] sm:$0xff] }
 0x348   : > { %2312 = vrot.lane.b32.xlu0 %v2274_v48, %s9829_s29  ;;  %v4820_v30 = vld [vmem:[#allocation2 + $0x124] sm:$0xff] }
 0x349   : > { %4853 = vst.msk [vmem:[#allocation5 + $0x38] sm:$0xff] %vm1691_vm7, %v4837_v53  ;;  %4855 = vst.msk [vmem:[#allocation5 + $0x78] sm:$0xff] %vm1691_vm7, %v4839_v39 }
 0x34a   : > { %4856 = vst.msk [vmem:[#allocation5 + $0x98] sm:$0xff] %vm1691_vm7, %v4840_v31 }
 0x34b   : > { %2569 = vrot.lane.b32.xlu1 %v11058_v9, %s9831_s12 }
 0x34c   : > { %2441 = vrot.lane.b32.xlu0 %v11286_v51, %s9830_s11 }
 0x34d   : > { %v2069_v36 = vpop.permute.xlu1 %2068 }
 0x34e   : > { %v11292_v48 = vpop.permute.xlu0 %2583  ;;  %2104 = vst.msk [vmem:[#allocation5 + $0x1a0] sm:$0xff] %vm2090_vm13, %v2069_v36 }
 0x34f   : > { %2589 = vrot.lane.b32.xlu1 %v11294_v56, %s9831_s12 }
 0x350   : > { %2575 = vrot.lane.b32.xlu0 %v11074_v63, %s9831_s12 }
 0x351   : > { %v2178_v60 = vpop.permute.xlu1 %2177 }
 0x352   : > { %v11301_v10 = vpop.permute.xlu0 %2692  ;;  %2223 = vst.msk [vmem:[#allocation5 + $0x60] sm:$0xff] %vm2219_vm14, %v2178_v60  ;;  %v2126_v60 = vld [vmem:[#allocation2 + $0xe2] sm:$0xff] }
 0x353   : > { %2698 = vrot.lane.b32.xlu1 %v11215_v2, %s9832_s13  ;;  %v2252_v2 = vld [vmem:[#allocation2 + $0xc3] sm:$0xff] }
 0x354   : > { %2704 = vrot.lane.b32.xlu0 %v2664_v25, %s9832_s13  ;;  %v2276_v53 = vpack.c.bf16 %v2253_v11, %v2252_v2  ;;  %v4827_v11 = vld [vmem:[#allocation2 + $0x174] sm:$0xff] }
 0x355   : > { %v2198_v36 = vpop.permute.xlu1 %2197 }
 0x356   : > { %v11307_v24 = vpop.permute.xlu0 %2712  ;;  %2233 = vst.msk [vmem:[#allocation5 + $0x1a0] sm:$0xff] %vm2219_vm14, %v2198_v36  ;;  %v4838_v36 = vpack.c.bf16 %v4809_v3, %v4808_v55  ;;  %v4841_v55 = vpack.c.bf16 %v4815_v54, %v4814_v50  ;;  %v4817_v3 = vld [vmem:[#allocation2 + $0xfc] sm:$0xff]  ;;  %v4823_v50 = vld [vmem:[#allocation2 + $0x144] sm:$0xff] }
 0x357   : > { %2718 = vrot.lane.b32.xlu1 %v2671_v40, %s9832_s13  ;;  %v2125_v40 = vld [vmem:[#allocation2 + $0xda] sm:$0xff]  ;;  %v4842_v4 = vpack.c.bf16 %v4817_v3, %v4816_v41  ;;  %v4845_v41 = vpack.c.bf16 %v4823_v50, %v4822_v18  ;;  %v2644_v3 = vld [vmem:[#allocation2 + $0x109] sm:$0xff] }
 0x358   : > { %2058 = vrot.lane.b32.xlu0 %v11309_v62, %s9823_s18  ;;  %4854 = vst.msk [vmem:[#allocation5 + $0x58] sm:$0xff] %vm1691_vm7, %v4838_v36  ;;  %v11324_v38 = vpack.c.bf16 %v2126_v60, %v2125_v40  ;;  %4857 = vst.msk [vmem:[#allocation5 + $0xb8] sm:$0xff] %vm1691_vm7, %v4841_v55  ;;  %v4844_v36 = vpack.c.bf16 %v4821_v13, %v4820_v30  ;;  %v4824_v60 = vld [vmem:[#allocation2 + $0x154] sm:$0xff]  ;;  %v4825_v40 = vld [vmem:[#allocation2 + $0x15c] sm:$0xff] }
 0x359   : > { %v2307_v1 = vpop.permute.xlu1 %2306  ;;  %4858 = vst.msk [vmem:[#allocation5 + $0xd8] sm:$0xff] %vm1691_vm7, %v4842_v4  ;;  %4861 = vst.msk [vmem:[#allocation5 + $0x138] sm:$0xff] %vm1691_vm7, %v4845_v41  ;;  %v2383_v18 = vld [vmem:[#allocation2 + $0xdc] sm:$0xff]  ;;  %v2384_v55 = vld [vmem:[#allocation2 + $0xe4] sm:$0xff] }
 0x35a   : > { %v2047_v32 = vpop.permute.xlu0 %2046  ;;  %2352 = vst.msk [vmem:[#allocation5 + $0x60] sm:$0xff] %vm2348_vm15, %v2307_v1  ;;  %v2254_v1 = vld [vmem:[#allocation2 + $0xdb] sm:$0xff]  ;;  %v1998_v30 = vld [vmem:[#allocation2 + $0xf1] sm:$0xff] }
 0x35b   : > { %2093 = vst.msk [vmem:[#allocation5 + $0x40] sm:$0xff] %vm2090_vm13, %v2047_v32  ;;  %2060 = vrot.lane.b32.xlu1 %v2664_v25, %s9823_s18  ;;  %v2381_v32 = vld [vmem:[#allocation2 + $0xc4] sm:$0xff]  ;;  %v4819_v25 = vld [vmem:[#allocation2 + $0x114] sm:$0xff]  ;;  %v2277_v31 = vpack.c.bf16 %v2255_v29, %v2254_v1  ;;  %v11347_v1 = vpack.c.bf16 %v2384_v55, %v2383_v18 }
 0x35c   : > { %2187 = vrot.lane.b32.xlu0 %v11315_v8, %s9827_s28  ;;  %v4843_v0 = vpack.c.bf16 %v4819_v25, %v4818_v58  ;;  %v4846_v58 = vpack.c.bf16 %v4825_v40, %v4824_v60  ;;  %4860 = vst.msk [vmem:[#allocation5 + $0x118] sm:$0xff] %vm1691_vm7, %v4844_v36  ;;  %v11337_v54 = vpack.c.bf16 %v2382_v33, %v2381_v32  ;;  %v2645_v32 = vld [vmem:[#allocation2 + $0x111] sm:$0xff]  ;;  %v2128_v60 = vld [vmem:[#allocation2 + $0xfa] sm:$0xff] }
 0x35d   : > { %v2327_v26 = vpop.permute.xlu1 %2326  ;;  %v11355_v4 = vpack.c.bf16 %v2645_v32, %v2644_v3  ;;  %v2127_v40 = vld [vmem:[#allocation2 + $0xf2] sm:$0xff]  ;;  %v2386_v3 = vld [vmem:[#allocation2 + $0xfc] sm:$0xff] }
 0x35e   : > { %v2067_v17 = vpop.permute.xlu0 %2066  ;;  %2362 = vst.msk [vmem:[#allocation5 + $0x1a0] sm:$0xff] %vm2348_vm15, %v2327_v26  ;;  %v4826_v26 = vld [vmem:[#allocation2 + $0x16c] sm:$0xff] }
 0x35f   : > { %2103 = vst.msk [vmem:[#allocation5 + $0x180] sm:$0xff] %vm2090_vm13, %v2067_v17  ;;  %2189 = vrot.lane.b32.xlu1 %v11324_v38, %s9827_s28  ;;  %v4847_v17 = vpack.c.bf16 %v4827_v11, %v4826_v26  ;;  %v11372_v26 = vpack.c.bf16 %v2128_v60, %v2127_v40  ;;  %v2130_v11 = vld [vmem:[#allocation2 + $0x112] sm:$0xff] }
 0x360   : > { %2316 = vrot.lane.b32.xlu0 %v2276_v53, %s9829_s29  ;;  %4859 = vst.msk [vmem:[#allocation5 + $0xf8] sm:$0xff] %vm1691_vm7, %v4843_v0  ;;  %4862 = vst.msk [vmem:[#allocation5 + $0x158] sm:$0xff] %vm1691_vm7, %v4846_v58  ;;  %v1999_v0 = vld [vmem:[#allocation2 + $0xf9] sm:$0xff] }
 0x361   : > { %v2436_v2 = vpop.permute.xlu1 %2435  ;;  %4863 = vst.msk [vmem:[#allocation5 + $0x178] sm:$0xff] %vm1691_vm7, %v4847_v17  ;;  %v11365_v50 = vpack.c.bf16 %v1999_v0, %v1998_v30  ;;  %v2256_v17 = vld [vmem:[#allocation2 + $0xf3] sm:$0xff] }
 0x362   : > { %v2176_v39 = vpop.permute.xlu0 %2175  ;;  %2481 = vst.msk [vmem:[#allocation5 + $0x60] sm:$0xff] %vm2477_vm0, %v2436_v2  ;;  %v2257_v2 = vld [vmem:[#allocation2 + $0xfb] sm:$0xff]  ;;  %v2259_v32 = vld [vmem:[#allocation2 + $0x113] sm:$0xff] }
 0x363   : > { %2222 = vst.msk [vmem:[#allocation5 + $0x40] sm:$0xff] %vm2219_vm14, %v2176_v39  ;;  %2318 = vrot.lane.b32.xlu1 %v2277_v31, %s9829_s29  ;;  %v2129_v39 = vld [vmem:[#allocation2 + $0x10a] sm:$0xff] }
 0x364   : > { %2445 = vrot.lane.b32.xlu0 %v11337_v54, %s9830_s11  ;;  %v2150_v55 = vpack.c.bf16 %v2130_v11, %v2129_v39  ;;  %v2387_v30 = vld [vmem:[#allocation2 + $0x10c] sm:$0xff]  ;;  %v2882_v39 = vld [vmem:[#allocation2 + $0x1b] sm:$0xff] }
 0x365   : > { %v2456_v29 = vpop.permute.xlu1 %2455 }
 0x366   : > { %v2196_v33 = vpop.permute.xlu0 %2195  ;;  %2491 = vst.msk [vmem:[#allocation5 + $0x1a0] sm:$0xff] %vm2477_vm0, %v2456_v29  ;;  %v2278_v29 = vpack.c.bf16 %v2257_v2, %v2256_v17 }
 0x367   : > { %2232 = vst.msk [vmem:[#allocation5 + $0x180] sm:$0xff] %vm2219_vm14, %v2196_v33  ;;  %2447 = vrot.lane.b32.xlu1 %v11347_v1, %s9830_s11  ;;  %v2258_v33 = vld [vmem:[#allocation2 + $0x10b] sm:$0xff] }
 0x368   : > { %2579 = vrot.lane.b32.xlu0 %v11089_v47, %s9831_s12 }
 0x369   : > { %v2562_v25 = vpop.permute.xlu1 %2561 }
 0x36a   : > { %v2305_v53 = vpop.permute.xlu0 %2304  ;;  %2609 = vst.msk [vmem:[#allocation5 + $0x20] sm:$0xff] %vm2607_vm1, %v2562_v25 }
 0x36b   : > { %2351 = vst.msk [vmem:[#allocation5 + $0x40] sm:$0xff] %vm2348_vm15, %v2305_v53  ;;  %2573 = vrot.lane.b32.xlu1 %v11087_v5, %s9831_s12  ;;  %v2279_v53 = vpack.c.bf16 %v2259_v32, %v2258_v33 }
 0x36c   : > { %2708 = vrot.lane.b32.xlu0 %v11355_v4, %s9832_s13 }
 0x36d   : > { %v11363_v13 = vpop.permute.xlu1 %2581 }
 0x36e   : > { %v2325_v36 = vpop.permute.xlu0 %2324 }
 0x36f   : > { %2361 = vst.msk [vmem:[#allocation5 + $0x180] sm:$0xff] %vm2348_vm15, %v2325_v36  ;;  %2702 = vrot.lane.b32.xlu1 %v11309_v62, %s9832_s13  ;;  %v2388_v36 = vld [vmem:[#allocation2 + $0x114] sm:$0xff] }
 0x370   : > { %2062 = vrot.lane.b32.xlu0 %v11365_v50, %s9823_s18  ;;  %v11403_v40 = vpack.c.bf16 %v2388_v36, %v2387_v30 }
 0x371   : > { %v2691_v41 = vpop.permute.xlu1 %2690 }
 0x372   : > { %v2434_v58 = vpop.permute.xlu0 %2433  ;;  %2738 = vst.msk [vmem:[#allocation5 + $0x20] sm:$0xff] %vm2736_vm2, %v2691_v41 }
 0x373   : > { %2480 = vst.msk [vmem:[#allocation5 + $0x40] sm:$0xff] %vm2477_vm0, %v2434_v58  ;;  %2064 = vrot.lane.b32.xlu1 %v11355_v4, %s9823_s18 }
 0x374   : > { %2610 = vst.msk [vmem:[#allocation5 + $0x40] sm:$0xff] %vm2607_vm1, %v11284_v15  ;;  %2191 = vrot.lane.b32.xlu0 %v11372_v26, %s9827_s28  ;;  %v2385_v15 = vld [vmem:[#allocation2 + $0xf4] sm:$0xff] }
 0x375   : > { %2739 = vst.msk [vmem:[#allocation5 + $0x40] sm:$0xff] %vm2736_vm2, %v11301_v10  ;;  %v11384_v31 = vpop.permute.xlu1 %2710  ;;  %v11395_v0 = vpack.c.bf16 %v2386_v3, %v2385_v15 }
 0x376   : > { %v2454_v18 = vpop.permute.xlu0 %2453 }
 0x377   : > { %2490 = vst.msk [vmem:[#allocation5 + $0x180] sm:$0xff] %vm2477_vm0, %v2454_v18  ;;  %2193 = vrot.lane.b32.xlu1 %v2150_v55, %s9827_s28 }
 0x378   : > { %2620 = vst.msk [vmem:[#allocation5 + $0x180] sm:$0xff] %vm2607_vm1, %v11292_v48  ;;  %2320 = vrot.lane.b32.xlu0 %v2278_v29, %s9829_s29 }
 0x379   : > { %2749 = vst.msk [vmem:[#allocation5 + $0x180] sm:$0xff] %vm2736_vm2, %v11307_v24  ;;  %v2820_v10 = vpop.permute.xlu1 %2819 }
 0x37a   : > { %v11393_v25 = vpop.permute.xlu0 %2567  ;;  %2867 = vst.msk [vmem:[#allocation5 + $0x20] sm:$0xff] %vm2865_vm3, %v2820_v10  ;;  %v2783_v10 = vld [vmem:[#allocation2 + $0x182] sm:$0xff] }
 0x37b   : > { %2322 = vrot.lane.b32.xlu1 %v2279_v53, %s9829_s29 }
 0x37c   : > { %2449 = vrot.lane.b32.xlu0 %v11395_v0, %s9830_s11 }
 0x37d   : > { %v2053_v48 = vpop.permute.xlu1 %2052 }
 0x37e   : > { %v11401_v60 = vpop.permute.xlu0 %2587  ;;  %2096 = vst.msk [vmem:[#allocation5 + $0xa0] sm:$0xff] %vm2090_vm13, %v2053_v48 }
 0x37f   : > { %2451 = vrot.lane.b32.xlu1 %v11403_v40, %s9830_s11 }
 0x380   : > { %2821 = vrot.lane.b32.xlu0 %v10967_v21, %s9833_s14 }
 0x381   : > { %v2073_v24 = vpop.permute.xlu1 %2072 }
 0x382   : > { %v2697_v41 = vpop.permute.xlu0 %2696  ;;  %2106 = vst.msk [vmem:[#allocation5 + $0x1e0] sm:$0xff] %vm2090_vm13, %v2073_v24 }
 0x383   : > { %2577 = vrot.lane.b32.xlu1 %v11102_v16, %s9831_s12 }
 0x384   : > { %2825 = vrot.lane.b32.xlu0 %v11097_v42, %s9833_s14 }
 0x385   : > { %v2182_v58 = vpop.permute.xlu1 %2181 }
 0x386   : > { %v11415_v11 = vpop.permute.xlu0 %2716  ;;  %2225 = vst.msk [vmem:[#allocation5 + $0xa0] sm:$0xff] %vm2219_vm14, %v2182_v58  ;;  %v3075_v58 = vld [vmem:[#allocation2 + $0x38] sm:$0xff] }
 0x387   : > { %2706 = vrot.lane.b32.xlu1 %v11365_v50, %s9832_s13 }
 0x388   : > { %2829 = vrot.lane.b32.xlu0 %v11213_v23, %s9833_s14  ;;  %v2883_v23 = vld [vmem:[#allocation2 + $0x23] sm:$0xff] }
 0x389   : > { %v2202_v21 = vpop.permute.xlu1 %2201  ;;  %v2914_v18 = vpack.c.bf16 %v2883_v23, %v2882_v39 }
 0x38a   : > { %v2051_v17 = vpop.permute.xlu0 %2050  ;;  %2235 = vst.msk [vmem:[#allocation5 + $0x1e0] sm:$0xff] %vm2219_vm14, %v2202_v21 }
 0x38b   : > { %2095 = vst.msk [vmem:[#allocation5 + $0x80] sm:$0xff] %vm2090_vm13, %v2051_v17  ;;  %2823 = vrot.lane.b32.xlu1 %v11121_v27, %s9833_s14  ;;  %v2947_v27 = vld [vmem:[#allocation2 + $0x24] sm:$0xff] }
 0x38c   : > { %2833 = vrot.lane.b32.xlu0 %v11324_v38, %s9833_s14  ;;  %2930 = vst.msk [vmem:[#allocation5 + $0x8] sm:$0xff] %vm1691_vm7, %v2914_v18  ;;  %v2946_v38 = vld [vmem:[#allocation2 + $0x1c] sm:$0xff] }
 0x38d   : > { %v2311_v42 = vpop.permute.xlu1 %2310 }
 0x38e   : > { %v2071_v2 = vpop.permute.xlu0 %2070  ;;  %2354 = vst.msk [vmem:[#allocation5 + $0xa0] sm:$0xff] %vm2348_vm15, %v2311_v42 }
 0x38f   : > { %2105 = vst.msk [vmem:[#allocation5 + $0x1c0] sm:$0xff] %vm2090_vm13, %v2071_v2  ;;  %2827 = vrot.lane.b32.xlu1 %v11239_v57, %s9833_s14 }
 0x390   : > { %2837 = vrot.lane.b32.xlu0 %v2150_v55, %s9833_s14  ;;  %v2978_v55 = vpack.c.bf16 %v2947_v27, %v2946_v38  ;;  %v3076_v38 = vld [vmem:[#allocation2 + $0x48] sm:$0xff] }
 0x391   : > { %v2331_v29 = vpop.permute.xlu1 %2330 }
 0x392   : > { %v2180_v33 = vpop.permute.xlu0 %2179  ;;  %2364 = vst.msk [vmem:[#allocation5 + $0x1e0] sm:$0xff] %vm2348_vm15, %v2331_v29 }
 0x393   : > { %2224 = vst.msk [vmem:[#allocation5 + $0x80] sm:$0xff] %vm2219_vm14, %v2180_v33  ;;  %2831 = vrot.lane.b32.xlu1 %v11315_v8, %s9833_s14  ;;  %v3077_v33 = vld [vmem:[#allocation2 + $0x50] sm:$0xff] }
 0x394   : > { %2841 = vrot.lane.b32.xlu0 %v10978_v49, %s9833_s14 }
 0x395   : > { %v2440_v57 = vpop.permute.xlu1 %2439 }
 0x396   : > { %v2200_v32 = vpop.permute.xlu0 %2199  ;;  %2483 = vst.msk [vmem:[#allocation5 + $0xa0] sm:$0xff] %vm2477_vm0, %v2440_v57 }
 0x397   : > { %2234 = vst.msk [vmem:[#allocation5 + $0x1c0] sm:$0xff] %vm2219_vm14, %v2200_v32  ;;  %2835 = vrot.lane.b32.xlu1 %v11372_v26, %s9833_s14  ;;  %v3080_v32 = vld [vmem:[#allocation2 + $0x78] sm:$0xff] }
 0x398   : > { %2845 = vrot.lane.b32.xlu0 %v11104_v6, %s9833_s14  ;;  %v2784_v6 = vld [vmem:[#allocation2 + $0x18a] sm:$0xff] }
 0x399   : > { %v2460_v15 = vpop.permute.xlu1 %2459  ;;  %v11457_v36 = vpack.c.bf16 %v2784_v6, %v2783_v10 }
 0x39a   : > { %v2309_v8 = vpop.permute.xlu0 %2308  ;;  %2493 = vst.msk [vmem:[#allocation5 + $0x1e0] sm:$0xff] %vm2477_vm0, %v2460_v15 }
 0x39b   : > { %2353 = vst.msk [vmem:[#allocation5 + $0x80] sm:$0xff] %vm2348_vm15, %v2309_v8  ;;  %2839 = vrot.lane.b32.xlu1 %v11027_v37, %s9833_s14 }
 0x39c   : > { %3010 = vrot.lane.b32.xlu0 %v2978_v55, %s9823_s18 }
 0x39d   : > { %v2566_v49 = vpop.permute.xlu1 %2565 }
 0x39e   : > { %v2329_v3 = vpop.permute.xlu0 %2328  ;;  %2611 = vst.msk [vmem:[#allocation5 + $0x60] sm:$0xff] %vm2607_vm1, %v2566_v49  ;;  %v3094_v49 = vld [vmem:[#allocation2 + $0x120] sm:$0xff] }
 0x39f   : > { %2363 = vst.msk [vmem:[#allocation5 + $0x1c0] sm:$0xff] %vm2348_vm15, %v2329_v3  ;;  %2843 = vrot.lane.b32.xlu1 %v11142_v59, %s9833_s14 }
 0x3a0   : > { %3014 = vrot.lane.b32.xlu0 %v11011_v45, %s9823_s18 }
 0x3a1   : > { %v2586_v53 = vpop.permute.xlu1 %2585 }
 0x3a2   : > { %v2438_v30 = vpop.permute.xlu0 %2437  ;;  %2621 = vst.msk [vmem:[#allocation5 + $0x1a0] sm:$0xff] %vm2607_vm1, %v2586_v53  ;;  %v3099_v53 = vld [vmem:[#allocation2 + $0x158] sm:$0xff] }
 0x3a3   : > { %2482 = vst.msk [vmem:[#allocation5 + $0x80] sm:$0xff] %vm2477_vm0, %v2438_v30  ;;  %2847 = vrot.lane.b32.xlu1 %v11457_v36, %s9833_s14 }
 0x3a4   : > { %2612 = vst.msk [vmem:[#allocation5 + $0x80] sm:$0xff] %vm2607_vm1, %v11393_v25  ;;  %3018 = vrot.lane.b32.xlu0 %v11140_v35, %s9823_s18 }
 0x3a5   : > { %2741 = vst.msk [vmem:[#allocation5 + $0x80] sm:$0xff] %vm2736_vm2, %v2697_v41  ;;  %v2695_v59 = vpop.permute.xlu1 %2694 }
 0x3a6   : > { %v2458_v45 = vpop.permute.xlu0 %2457  ;;  %2740 = vst.msk [vmem:[#allocation5 + $0x60] sm:$0xff] %vm2736_vm2, %v2695_v59 }
 0x3a7   : > { %2492 = vst.msk [vmem:[#allocation5 + $0x1c0] sm:$0xff] %vm2477_vm0, %v2458_v45  ;;  %3012 = vrot.lane.b32.xlu1 %v11056_v44, %s9823_s18  ;;  %v2970_v44 = vld [vmem:[#allocation2 + $0x13c] sm:$0xff] }
 0x3a8   : > { %2622 = vst.msk [vmem:[#allocation5 + $0x1c0] sm:$0xff] %vm2607_vm1, %v11401_v60  ;;  %3022 = vrot.lane.b32.xlu0 %v11266_v7, %s9823_s18  ;;  %v2971_v60 = vld [vmem:[#allocation2 + $0x144] sm:$0xff] }
 0x3a9   : > { %2751 = vst.msk [vmem:[#allocation5 + $0x1c0] sm:$0xff] %vm2736_vm2, %v11415_v11  ;;  %v2715_v37 = vpop.permute.xlu1 %2714  ;;  %v2990_v41 = vpack.c.bf16 %v2971_v60, %v2970_v44  ;;  %v3074_v11 = vld [vmem:[#allocation2 + $0x30] sm:$0xff] }
 0x3aa   : > { %v2572_v35 = vpop.permute.xlu0 %2571  ;;  %2750 = vst.msk [vmem:[#allocation5 + $0x1a0] sm:$0xff] %vm2736_vm2, %v2715_v37  ;;  %v3106_v42 = vpack.c.bf16 %v3075_v58, %v3074_v11  ;;  %v3104_v58 = vld [vmem:[#allocation2 + $0x198] sm:$0xff]  ;;  %v3105_v11 = vld [vmem:[#allocation2 + $0x1a0] sm:$0xff] }
 0x3ab   : > { %3016 = vrot.lane.b32.xlu1 %v11015_v22, %s9823_s18 }
 0x3ac   : > { %3026 = vrot.lane.b32.xlu0 %v11347_v1, %s9823_s18 }
 0x3ad   : > { %v2057_v25 = vpop.permute.xlu1 %2056 }
 0x3ae   : > { %v2701_v48 = vpop.permute.xlu0 %2700  ;;  %2098 = vst.msk [vmem:[#allocation5 + $0xe0] sm:$0xff] %vm2090_vm13, %v2057_v25  ;;  %v3202_v25 = vld [vmem:[#allocation2 + $0x31] sm:$0xff] }
 0x3af   : > { %3020 = vrot.lane.b32.xlu1 %v11286_v51, %s9823_s18  ;;  %v2968_v51 = vld [vmem:[#allocation2 + $0x124] sm:$0xff] }
 0x3b0   : > { %3030 = vrot.lane.b32.xlu0 %v11403_v40, %s9823_s18  ;;  %v2969_v40 = vld [vmem:[#allocation2 + $0x12c] sm:$0xff] }
 0x3b1   : > { %v2186_v7 = vpop.permute.xlu1 %2185  ;;  %v2989_v17 = vpack.c.bf16 %v2969_v40, %v2968_v51 }
 0x3b2   : > { %v2055_v24 = vpop.permute.xlu0 %2054  ;;  %2227 = vst.msk [vmem:[#allocation5 + $0xe0] sm:$0xff] %vm2219_vm14, %v2186_v7 }
 0x3b3   : > { %2097 = vst.msk [vmem:[#allocation5 + $0xc0] sm:$0xff] %vm2090_vm13, %v2055_v24  ;;  %3024 = vrot.lane.b32.xlu1 %v11337_v54, %s9823_s18  ;;  %v3100_v24 = vld [vmem:[#allocation2 + $0x168] sm:$0xff] }
 0x3b4   : > { %3034 = vrot.lane.b32.xlu0 %v2990_v41, %s9823_s18  ;;  %v3101_v41 = vld [vmem:[#allocation2 + $0x170] sm:$0xff] }
 0x3b5   : > { %v2315_v22 = vpop.permute.xlu1 %2314  ;;  %v3119_v51 = vpack.c.bf16 %v3101_v41, %v3100_v24  ;;  %v3228_v24 = vld [vmem:[#allocation2 + $0x169] sm:$0xff]  ;;  %v3229_v41 = vld [vmem:[#allocation2 + $0x171] sm:$0xff] }
 0x3b6   : > { %v2184_v1 = vpop.permute.xlu0 %2183  ;;  %2356 = vst.msk [vmem:[#allocation5 + $0xe0] sm:$0xff] %vm2348_vm15, %v2315_v22  ;;  %v3207_v22 = vld [vmem:[#allocation2 + $0x69] sm:$0xff] }
 0x3b7   : > { %2226 = vst.msk [vmem:[#allocation5 + $0xc0] sm:$0xff] %vm2219_vm14, %v2184_v1  ;;  %3028 = vrot.lane.b32.xlu1 %v11395_v0, %s9823_s18  ;;  %v2977_v0 = vld [vmem:[#allocation2 + $0x18c] sm:$0xff] }
 0x3b8   : > { %3038 = vrot.lane.b32.xlu0 %v11166_v20, %s9823_s18  ;;  %v2976_v20 = vld [vmem:[#allocation2 + $0x184] sm:$0xff] }
 0x3b9   : > { %v2444_v21 = vpop.permute.xlu1 %2443  ;;  %v2993_v29 = vpack.c.bf16 %v2977_v0, %v2976_v20  ;;  %v3205_v20 = vld [vmem:[#allocation2 + $0x51] sm:$0xff]  ;;  %v3204_v0 = vld [vmem:[#allocation2 + $0x49] sm:$0xff] }
 0x3ba   : > { %v2313_v54 = vpop.permute.xlu0 %2312  ;;  %2485 = vst.msk [vmem:[#allocation5 + $0xe0] sm:$0xff] %vm2477_vm0, %v2444_v21  ;;  %v3211_v21 = vld [vmem:[#allocation2 + $0x99] sm:$0xff] }
 0x3bb   : > { %2355 = vst.msk [vmem:[#allocation5 + $0xc0] sm:$0xff] %vm2348_vm15, %v2313_v54  ;;  %3032 = vrot.lane.b32.xlu1 %v2989_v17, %s9823_s18  ;;  %v3210_v54 = vld [vmem:[#allocation2 + $0x91] sm:$0xff] }
 0x3bc   : > { %3138 = vrot.lane.b32.xlu0 %v3106_v42, %s9827_s28 }
 0x3bd   : > { %v2570_v2 = vpop.permute.xlu1 %2569 }
 0x3be   : > { %v2442_v39 = vpop.permute.xlu0 %2441  ;;  %2613 = vst.msk [vmem:[#allocation5 + $0xa0] sm:$0xff] %vm2607_vm1, %v2570_v2  ;;  %v3121_v2 = vpack.c.bf16 %v3105_v11, %v3104_v58  ;;  %v3233_v58 = vld [vmem:[#allocation2 + $0x1a1] sm:$0xff] }
 0x3bf   : > { %2484 = vst.msk [vmem:[#allocation5 + $0xc0] sm:$0xff] %vm2477_vm0, %v2442_v39  ;;  %3036 = vrot.lane.b32.xlu1 %v11200_v14, %s9823_s18  ;;  %v3107_v14 = vpack.c.bf16 %v3077_v33, %v3076_v38  ;;  %v3238_v39 = vpack.c.bf16 %v3211_v21, %v3210_v54  ;;  %v3209_v33 = vld [vmem:[#allocation2 + $0x81] sm:$0xff]  ;;  %v3208_v38 = vld [vmem:[#allocation2 + $0x79] sm:$0xff] }
 0x3c0   : > { %2614 = vst.msk [vmem:[#allocation5 + $0xc0] sm:$0xff] %vm2607_vm1, %v2572_v35  ;;  %3142 = vrot.lane.b32.xlu0 %v11024_v19, %s9827_s28  ;;  %v3081_v19 = vld [vmem:[#allocation2 + $0x80] sm:$0xff]  ;;  %v3338_v21 = vld [vmem:[#allocation2 + $0x92] sm:$0xff] }
 0x3c1   : > { %2743 = vst.msk [vmem:[#allocation5 + $0xc0] sm:$0xff] %vm2736_vm2, %v2701_v48  ;;  %v2590_v23 = vpop.permute.xlu1 %2589  ;;  %v3109_v8 = vpack.c.bf16 %v3081_v19, %v3080_v32  ;;  %v3203_v35 = vld [vmem:[#allocation2 + $0x39] sm:$0xff]  ;;  %v3213_v19 = vld [vmem:[#allocation2 + $0xb1] sm:$0xff]  ;;  %v3223_v32 = vld [vmem:[#allocation2 + $0x129] sm:$0xff] }
 0x3c2   : > { %v2576_v18 = vpop.permute.xlu0 %2575  ;;  %2623 = vst.msk [vmem:[#allocation5 + $0x1e0] sm:$0xff] %vm2607_vm1, %v2590_v23  ;;  %v3234_v7 = vpack.c.bf16 %v3203_v35, %v3202_v25  ;;  %v3331_v25 = vld [vmem:[#allocation2 + $0x3a] sm:$0xff] }
 0x3c3   : > { %3040 = vrot.lane.b32.xlu1 %v2993_v29, %s9823_s18  ;;  %v3235_v29 = vpack.c.bf16 %v3205_v20, %v3204_v0  ;;  %v3339_v11 = vld [vmem:[#allocation2 + $0x9a] sm:$0xff]  ;;  %v3343_v20 = vld [vmem:[#allocation2 + $0xca] sm:$0xff] }
 0x3c4   : > { %3146 = vrot.lane.b32.xlu0 %v11058_v9, %s9827_s28  ;;  %v3095_v9 = vld [vmem:[#allocation2 + $0x128] sm:$0xff] }
 0x3c5   : > { %v2699_v27 = vpop.permute.xlu1 %2698  ;;  %v3116_v6 = vpack.c.bf16 %v3095_v9, %v3094_v49  ;;  %v3332_v0 = vld [vmem:[#allocation2 + $0x4a] sm:$0xff] }
 0x3c6   : > { %v2705_v57 = vpop.permute.xlu0 %2704  ;;  %2742 = vst.msk [vmem:[#allocation5 + $0xa0] sm:$0xff] %vm2736_vm2, %v2699_v27 }
 0x3c7   : > { %3140 = vrot.lane.b32.xlu1 %v3107_v14, %s9827_s28  ;;  %v3237_v14 = vpack.c.bf16 %v3209_v33, %v3208_v38 }
 0x3c8   : > { %3150 = vrot.lane.b32.xlu0 %v11087_v5, %s9827_s28  ;;  %v3098_v5 = vld [vmem:[#allocation2 + $0x150] sm:$0xff] }
 0x3c9   : > { %v2719_v55 = vpop.permute.xlu1 %2718  ;;  %v3118_v45 = vpack.c.bf16 %v3099_v53, %v3098_v5 }
 0x3ca   : > { %v2059_v15 = vpop.permute.xlu0 %2058  ;;  %2752 = vst.msk [vmem:[#allocation5 + $0x1e0] sm:$0xff] %vm2736_vm2, %v2719_v55  ;;  %v3212_v55 = vld [vmem:[#allocation2 + $0xa9] sm:$0xff] }
 0x3cb   : > { %2099 = vst.msk [vmem:[#allocation5 + $0x100] sm:$0xff] %vm2090_vm13, %v2059_v15  ;;  %3144 = vrot.lane.b32.xlu1 %v3109_v8, %s9827_s28  ;;  %v3222_v15 = vld [vmem:[#allocation2 + $0x121] sm:$0xff] }
 0x3cc   : > { %3154 = vrot.lane.b32.xlu0 %v11102_v16, %s9827_s28  ;;  %v3244_v49 = vpack.c.bf16 %v3223_v32, %v3222_v15  ;;  %v3351_v15 = vld [vmem:[#allocation2 + $0x12a] sm:$0xff] }
 0x3cd   : > { %v2061_v3 = vpop.permute.xlu1 %2060 }
 0x3ce   : > { %v2188_v10 = vpop.permute.xlu0 %2187  ;;  %2100 = vst.msk [vmem:[#allocation5 + $0x120] sm:$0xff] %vm2090_vm13, %v2061_v3  ;;  %v3217_v3 = vld [vmem:[#allocation2 + $0xe1] sm:$0xff] }
 0x3cf   : > { %2228 = vst.msk [vmem:[#allocation5 + $0x100] sm:$0xff] %vm2219_vm14, %v2188_v10  ;;  %3148 = vrot.lane.b32.xlu1 %v11040_v34, %s9827_s28  ;;  %v3097_v34 = vld [vmem:[#allocation2 + $0x140] sm:$0xff]  ;;  %v3226_v10 = vld [vmem:[#allocation2 + $0x151] sm:$0xff] }
 0x3d0   : > { %3158 = vrot.lane.b32.xlu0 %v3116_v6, %s9827_s28  ;;  %v3227_v6 = vld [vmem:[#allocation2 + $0x159] sm:$0xff] }
 0x3d1   : > { %v2190_v30 = vpop.permute.xlu1 %2189 }
 0x3d2   : > { %v2317_v59 = vpop.permute.xlu0 %2316  ;;  %2229 = vst.msk [vmem:[#allocation5 + $0x120] sm:$0xff] %vm2219_vm14, %v2190_v30 }
 0x3d3   : > { %2357 = vst.msk [vmem:[#allocation5 + $0x100] sm:$0xff] %vm2348_vm15, %v2317_v59  ;;  %3152 = vrot.lane.b32.xlu1 %v11074_v63, %s9827_s28  ;;  %v3096_v63 = vld [vmem:[#allocation2 + $0x138] sm:$0xff]  ;;  %v3246_v59 = vpack.c.bf16 %v3227_v6, %v3226_v10  ;;  %v3345_v6 = vld [vmem:[#allocation2 + $0xe2] sm:$0xff] }
 0x3d4   : > { %3162 = vrot.lane.b32.xlu0 %v3118_v45, %s9827_s28  ;;  %v3117_v60 = vpack.c.bf16 %v3097_v34, %v3096_v63  ;;  %v3230_v45 = vld [vmem:[#allocation2 + $0x181] sm:$0xff] }
 0x3d5   : > { %v2319_v16 = vpop.permute.xlu1 %2318  ;;  %v3225_v63 = vld [vmem:[#allocation2 + $0x141] sm:$0xff] }
 0x3d6   : > { %v2446_v37 = vpop.permute.xlu0 %2445  ;;  %2358 = vst.msk [vmem:[#allocation5 + $0x120] sm:$0xff] %vm2348_vm15, %v2319_v16  ;;  %v3231_v16 = vld [vmem:[#allocation2 + $0x189] sm:$0xff] }
 0x3d7   : > { %2486 = vst.msk [vmem:[#allocation5 + $0x100] sm:$0xff] %vm2477_vm0, %v2446_v37  ;;  %3156 = vrot.lane.b32.xlu1 %v11089_v47, %s9827_s28  ;;  %v3206_v47 = vld [vmem:[#allocation2 + $0x61] sm:$0xff]  ;;  %v3248_v35 = vpack.c.bf16 %v3231_v16, %v3230_v45  ;;  %v3349_v16 = vld [vmem:[#allocation2 + $0x112] sm:$0xff] }
 0x3d8   : > { %2616 = vst.msk [vmem:[#allocation5 + $0x100] sm:$0xff] %vm2607_vm1, %v2576_v18  ;;  %3166 = vrot.lane.b32.xlu0 %v11294_v56, %s9827_s28  ;;  %v3236_v40 = vpack.c.bf16 %v3207_v22, %v3206_v47  ;;  %v3335_v22 = vld [vmem:[#allocation2 + $0x6a] sm:$0xff] }
 0x3d9   : > { %2745 = vst.msk [vmem:[#allocation5 + $0x100] sm:$0xff] %vm2736_vm2, %v2705_v57  ;;  %v2448_v48 = vpop.permute.xlu1 %2447 }
 0x3da   : > { %v2580_v44 = vpop.permute.xlu0 %2579  ;;  %2487 = vst.msk [vmem:[#allocation5 + $0x120] sm:$0xff] %vm2477_vm0, %v2448_v48  ;;  %v3330_v48 = vld [vmem:[#allocation2 + $0x32] sm:$0xff] }
 0x3db   : > { %3160 = vrot.lane.b32.xlu1 %v3117_v60, %s9827_s28 }
 0x3dc   : > { %3266 = vrot.lane.b32.xlu0 %v3234_v7, %s9829_s29 }
 0x3dd   : > { %v2574_v1 = vpop.permute.xlu1 %2573 }
 0x3de   : > { %v2709_v56 = vpop.permute.xlu0 %2708  ;;  %2615 = vst.msk [vmem:[#allocation5 + $0xe0] sm:$0xff] %vm2607_vm1, %v2574_v1 }
 0x3df   : > { %3164 = vrot.lane.b32.xlu1 %v3119_v51, %s9827_s28 }
 0x3e0   : > { %3270 = vrot.lane.b32.xlu0 %v3236_v40, %s9829_s29  ;;  %v3232_v40 = vld [vmem:[#allocation2 + $0x199] sm:$0xff] }
 0x3e1   : > { %v2703_v17 = vpop.permute.xlu1 %2702 }
 0x3e2   : > { %v2063_v42 = vpop.permute.xlu0 %2062  ;;  %2744 = vst.msk [vmem:[#allocation5 + $0xe0] sm:$0xff] %vm2736_vm2, %v2703_v17 }
 0x3e3   : > { %2101 = vst.msk [vmem:[#allocation5 + $0x140] sm:$0xff] %vm2090_vm13, %v2063_v42  ;;  %3168 = vrot.lane.b32.xlu1 %v3121_v2, %s9827_s28  ;;  %v3249_v42 = vpack.c.bf16 %v3233_v58, %v3232_v40  ;;  %v11592_v2 = vpack.c.bf16 %v3339_v11, %v3338_v21  ;;  %v14251_v21 = vld [vmem:[#allocation42_spill] sm:$0xff] }
 0x3e4   : > { %3274 = vrot.lane.b32.xlu0 %v3238_v39, %s9829_s29  ;;  %v3333_v39 = vld [vmem:[#allocation2 + $0x52] sm:$0xff] }
 0x3e5   : > { %v2065_v23 = vpop.permute.xlu1 %2064  ;;  %v11599_v33 = vpack.c.bf16 %v3333_v39, %v3332_v0  ;;  %v14253_v39 = vld [vmem:[#allocation44_spill] sm:$0xff] }
 0x3e6   : > { %v2192_v18 = vpop.permute.xlu0 %2191  ;;  %2102 = vst.msk [vmem:[#allocation5 + $0x160] sm:$0xff] %vm2090_vm13, %v2065_v23  ;;  %v3342_v23 = vld [vmem:[#allocation2 + $0xc2] sm:$0xff] }
 0x3e7   : > { %2230 = vst.msk [vmem:[#allocation5 + $0x140] sm:$0xff] %vm2219_vm14, %v2192_v18  ;;  %3268 = vrot.lane.b32.xlu1 %v3235_v29, %s9829_s29  ;;  %v11601_v38 = vpack.c.bf16 %v3343_v20, %v3342_v23  ;;  %v14254_v23 = vld [vmem:[#allocation39_spill] sm:$0xff] }
 0x3e8   : > { %3278 = vrot.lane.b32.xlu0 %v11309_v62, %s9829_s29  ;;  %v3239_v62 = vpack.c.bf16 %v3213_v19, %v3212_v55  ;;  %v3341_v55 = vld [vmem:[#allocation2 + $0xb2] sm:$0xff] }
 0x3e9   : > { %v2194_v27 = vpop.permute.xlu1 %2193 }
 0x3ea   : > { %v2321_v57 = vpop.permute.xlu0 %2320  ;;  %2231 = vst.msk [vmem:[#allocation5 + $0x160] sm:$0xff] %vm2219_vm14, %v2194_v27  ;;  %v3337_v27 = vld [vmem:[#allocation2 + $0x82] sm:$0xff] }
 0x3eb   : > { %2359 = vst.msk [vmem:[#allocation5 + $0x140] sm:$0xff] %vm2348_vm15, %v2321_v57  ;;  %3272 = vrot.lane.b32.xlu1 %v3237_v14, %s9829_s29  ;;  %v3336_v57 = vld [vmem:[#allocation2 + $0x7a] sm:$0xff] }
 0x3ec   : > { %3282 = vrot.lane.b32.xlu0 %v11365_v50, %s9829_s29  ;;  %v3216_v50 = vld [vmem:[#allocation2 + $0xd9] sm:$0xff]  ;;  %v11609_v32 = vpack.c.bf16 %v3337_v27, %v3336_v57 }
 0x3ed   : > { %v2323_v8 = vpop.permute.xlu1 %2322  ;;  %v3241_v30 = vpack.c.bf16 %v3217_v3, %v3216_v50  ;;  %v3354_v50 = vld [vmem:[#allocation2 + $0x152] sm:$0xff] }
 0x3ee   : > { %v2450_v9 = vpop.permute.xlu0 %2449  ;;  %2360 = vst.msk [vmem:[#allocation5 + $0x160] sm:$0xff] %vm2348_vm15, %v2323_v8  ;;  %v3340_v8 = vld [vmem:[#allocation2 + $0xaa] sm:$0xff]  ;;  %v3586_v57 = vld [vmem:[#allocation2 + $0x34] sm:$0xff] }
 0x3ef   : > { %2488 = vst.msk [vmem:[#allocation5 + $0x140] sm:$0xff] %vm2477_vm0, %v2450_v9  ;;  %3276 = vrot.lane.b32.xlu1 %v3239_v62, %s9829_s29  ;;  %v3350_v9 = vld [vmem:[#allocation2 + $0x122] sm:$0xff]  ;;  %v11617_v3 = vpack.c.bf16 %v3341_v55, %v3340_v8  ;;  %v14256_v55 = vld [vmem:[#allocation40_spill] sm:$0xff] }
 0x3f0   : > { %2618 = vst.msk [vmem:[#allocation5 + $0x140] sm:$0xff] %vm2607_vm1, %v2580_v44  ;;  %3286 = vrot.lane.b32.xlu0 %v3244_v49, %s9829_s29  ;;  %v11619_v10 = vpack.c.bf16 %v3351_v15, %v3350_v9  ;;  %v14257_v15 = vld [vmem:[#allocation46_spill] sm:$0xff] }
 0x3f1   : > { %2747 = vst.msk [vmem:[#allocation5 + $0x140] sm:$0xff] %vm2736_vm2, %v2709_v56  ;;  %v2452_v5 = vpop.permute.xlu1 %2451  ;;  %v3247_v56 = vpack.c.bf16 %v3229_v41, %v3228_v24  ;;  %v9764_v8 = vld [vmem:[%s14088_s3] sm:$0xff]  }
 0x3f2   : > { %v2822_v53 = vpop.permute.xlu0 %2821  ;;  %2489 = vst.msk [vmem:[#allocation5 + $0x160] sm:$0xff] %vm2477_vm0, %v2452_v5  ;;  %v3355_v5 = vld [vmem:[#allocation2 + $0x15a] sm:$0xff] }
 0x3f3   : > { %2868 = vst.msk [vmem:[#allocation5 + $0x40] sm:$0xff] %vm2865_vm3, %v2822_v53  ;;  %3280 = vrot.lane.b32.xlu1 %v3241_v30, %s9829_s29  ;;  %v11629_v45 = vpack.c.bf16 %v3355_v5, %v3354_v50  ;;  %v3591_v50 = vld [vmem:[#allocation2 + $0x6c] sm:$0xff] }
 0x3f4   : > { %2619 = vst.msk [vmem:[#allocation5 + $0x160] sm:$0xff] %vm2607_vm1, %v11363_v13  ;;  %3290 = vrot.lane.b32.xlu0 %v3246_v59, %s9829_s29  ;;  %v3224_v13 = vld [vmem:[#allocation2 + $0x139] sm:$0xff]  ;;  %v9765_v5 = vld [vmem:[%s14088_s3 + $0x48] sm:$0xff]  }
 0x3f5   : > { %2748 = vst.msk [vmem:[#allocation5 + $0x160] sm:$0xff] %vm2736_vm2, %v11384_v31  ;;  %v2578_v37 = vpop.permute.xlu1 %2577  ;;  %v3245_v7 = vpack.c.bf16 %v3225_v63, %v3224_v13  ;;  %v3362_v31 = vpack.c.bf16 %v3331_v25, %v3330_v48  ;;  %v3353_v25 = vld [vmem:[#allocation2 + $0x142] sm:$0xff]  ;;  %v3352_v13 = vld [vmem:[#allocation2 + $0x13a] sm:$0xff] }
 0x3f6   : > { %v2826_v34 = vpop.permute.xlu0 %2825  ;;  %2617 = vst.msk [vmem:[#allocation5 + $0x120] sm:$0xff] %vm2607_vm1, %v2578_v37  ;;  %v3348_v37 = vld [vmem:[#allocation2 + $0x10a] sm:$0xff] }
 0x3f7   : > { %2870 = vst.msk [vmem:[#allocation5 + $0x80] sm:$0xff] %vm2865_vm3, %v2826_v34  ;;  %3284 = vrot.lane.b32.xlu1 %v11355_v4, %s9829_s29  ;;  %v3334_v4 = vld [vmem:[#allocation2 + $0x62] sm:$0xff]  ;;  %v11637_v63 = vpack.c.bf16 %v3349_v16, %v3348_v37 }
 0x3f8   : > { %3294 = vrot.lane.b32.xlu0 %v3248_v35, %s9829_s29  ;;  %v11585_v51 = vpack.c.bf16 %v3335_v22, %v3334_v4  ;;  %v3360_v22 = vld [vmem:[#allocation2 + $0x19a] sm:$0xff]  ;;  %v3361_v4 = vld [vmem:[#allocation2 + $0x1a2] sm:$0xff] }
 0x3f9   : > { %v2707_v44 = vpop.permute.xlu1 %2706 }
 0x3fa   : > { %v2830_v60 = vpop.permute.xlu0 %2829  ;;  %2746 = vst.msk [vmem:[#allocation5 + $0x120] sm:$0xff] %vm2736_vm2, %v2707_v44 }
 0x3fb   : > { %2872 = vst.msk [vmem:[#allocation5 + $0xc0] sm:$0xff] %vm2865_vm3, %v2830_v60  ;;  %3288 = vrot.lane.b32.xlu1 %v3245_v7, %s9829_s29  ;;  %v11645_v60 = vpack.c.bf16 %v3353_v25, %v3352_v13  ;;  %v3356_v7 = vld [vmem:[#allocation2 + $0x16a] sm:$0xff]  ;;  %v3594_v25 = vld [vmem:[#allocation2 + $0x94] sm:$0xff]  ;;  %v3595_v13 = vld [vmem:[#allocation2 + $0x9c] sm:$0xff] }
 0x3fc   : > { %3394 = vrot.lane.b32.xlu0 %v3362_v31, %s9830_s11  ;;  %v3357_v31 = vld [vmem:[#allocation2 + $0x172] sm:$0xff] }
 0x3fd   : > { %v2824_v47 = vpop.permute.xlu1 %2823 }
 0x3fe   : > { %v2834_v1 = vpop.permute.xlu0 %2833  ;;  %2869 = vst.msk [vmem:[#allocation5 + $0x60] sm:$0xff] %vm2865_vm3, %v2824_v47 }
 0x3ff   : > { %2874 = vst.msk [vmem:[#allocation5 + $0x100] sm:$0xff] %vm2865_vm3, %v2834_v1  ;;  %3292 = vrot.lane.b32.xlu1 %v3247_v56, %s9829_s29  ;;  %v11661_v56 = vpack.c.bf16 %v3361_v4, %v3360_v22  ;;  %v11732_v22 = vpack.c.bf16 %v3595_v13, %v3594_v25  ;;  %v3588_v4 = vld [vmem:[#allocation2 + $0x4c] sm:$0xff] }
 0x400   : > { %3398 = vrot.lane.b32.xlu0 %v11585_v51, %s9830_s11 }
 0x401   : > { %v2828_v54 = vpop.permute.xlu1 %2827 }
 0x402   : > { %v2838_v17 = vpop.permute.xlu0 %2837  ;;  %2871 = vst.msk [vmem:[#allocation5 + $0xa0] sm:$0xff] %vm2865_vm3, %v2828_v54 }
 0x403   : > { %2876 = vst.msk [vmem:[#allocation5 + $0x140] sm:$0xff] %vm2865_vm3, %v2838_v17  ;;  %3296 = vrot.lane.b32.xlu1 %v3249_v42, %s9829_s29  ;;  %v14252_v42 = vld [vmem:[#allocation38_spill] sm:$0xff] }
 0x404   : > { %3402 = vrot.lane.b32.xlu0 %v11592_v2, %s9830_s11 }
 0x405   : > { %v2832_v18 = vpop.permute.xlu1 %2831 }
 0x406   : > { %v2842_v29 = vpop.permute.xlu0 %2841  ;;  %2873 = vst.msk [vmem:[#allocation5 + $0xe0] sm:$0xff] %vm2865_vm3, %v2832_v18  ;;  %v14255_v18 = vld [vmem:[#allocation45_spill] sm:$0xff] }
 0x407   : > { %2878 = vst.msk [vmem:[#allocation5 + $0x180] sm:$0xff] %vm2865_vm3, %v2842_v29  ;;  %3396 = vrot.lane.b32.xlu1 %v11599_v33, %s9830_s11 }
 0x408   : > { %3406 = vrot.lane.b32.xlu0 %v11601_v38, %s9830_s11 }
 0x409   : > { %v2836_v14 = vpop.permute.xlu1 %2835 }
 0x40a   : > { %v2846_v19 = vpop.permute.xlu0 %2845  ;;  %2875 = vst.msk [vmem:[#allocation5 + $0x120] sm:$0xff] %vm2865_vm3, %v2836_v14  ;;  %v3587_v14 = vld [vmem:[#allocation2 + $0x3c] sm:$0xff] }
 0x40b   : > { %2880 = vst.msk [vmem:[#allocation5 + $0x1c0] sm:$0xff] %vm2865_vm3, %v2846_v19  ;;  %3400 = vrot.lane.b32.xlu1 %v11609_v32, %s9830_s11  ;;  %v9763_v19 = vld [vmem:[%s14088_s3 + $0x40] sm:$0xff]  }
 0x40c   : > { %3410 = vrot.lane.b32.xlu0 %v11372_v26, %s9830_s11  ;;  %v3344_v26 = vld [vmem:[#allocation2 + $0xda] sm:$0xff]  ;;  %9575 = vmatprep.subr.bf16.mxu1 %v9763_v19 }
 0x40d   : > { %v2840_v62 = vpop.permute.xlu1 %2839  ;;  %v11627_v59 = vpack.c.bf16 %v3345_v6, %v3344_v26  ;;  %9576 = vmatpush3.bf16.msra.mxu1 %v9764_v8  ;;  %v3590_v6 = vld [vmem:[#allocation2 + $0x64] sm:$0xff]  ;;  %v14258_v26 = vld [vmem:[#allocation41_spill] sm:$0xff] }
 0x40e   : > { %v3011_v49 = vpop.permute.xlu0 %3010  ;;  %2877 = vst.msk [vmem:[#allocation5 + $0x160] sm:$0xff] %vm2865_vm3, %v2840_v62  ;;  %9577 = vmatprep.subr.bf16.mxu1 %v9765_v5  ;;  %v11716_v37 = vpack.c.bf16 %v3591_v50, %v3590_v6  ;;  %v9772_v19 = vld [vmem:[%s14088_s3 + $0x20] sm:$0xff]   ;;  %v3596_v6 = vld [vmem:[#allocation2 + $0xac] sm:$0xff]  ;;  %v3597_v50 = vld [vmem:[#allocation2 + $0xb4] sm:$0xff] }
 0x40f   : > { %3058 = vst.msk [vmem:[#allocation5 + $0x8] sm:$0xff] %vm2090_vm13, %v3011_v49  ;;  %3404 = vrot.lane.b32.xlu1 %v11617_v3, %s9830_s11  ;;  %v3618_v49 = vpack.c.bf16 %v3587_v14, %v3586_v57  ;;  %v3603_v57 = vld [vmem:[#allocation2 + $0xfc] sm:$0xff]  ;;  %v3606_v5 = vld [vmem:[#allocation2 + $0x124] sm:$0xff]  ;;  %v11778_v25 = vpack.c.bf16 %v3597_v50, %v3596_v6 }
 0x410   : > { %3414 = vrot.lane.b32.xlu0 %v11619_v10, %s9830_s11  ;;  %v9771_v14 = vld [vmem:[%s14088_s3 + $0x60] sm:$0xff]  }
 0x411   : > { %v2844_v53 = vpop.permute.xlu1 %2843  ;;  %v3608_v6 = vld [vmem:[#allocation2 + $0x13c] sm:$0xff]  ;;  %v3609_v50 = vld [vmem:[#allocation2 + $0x144] sm:$0xff] }
 0x412   : > { %v3015_v30 = vpop.permute.xlu0 %3014  ;;  %2879 = vst.msk [vmem:[#allocation5 + $0x1a0] sm:$0xff] %vm2865_vm3, %v2844_v53  ;;  %v9766_v53 = vld [vmem:[%s14088_s3 + $0x8] sm:$0xff]  }
 0x413   : > { %3060 = vst.msk [vmem:[#allocation5 + $0x48] sm:$0xff] %vm2090_vm13, %v3015_v30  ;;  %3408 = vrot.lane.b32.xlu1 %v11627_v59, %s9830_s11  ;;  %9578 = vmatpush3.bf16.msra.mxu1 %v9766_v53  ;;  %v3607_v53 = vld [vmem:[#allocation2 + $0x12c] sm:$0xff] }
 0x414   : > { %3418 = vrot.lane.b32.xlu0 %v11629_v45, %s9830_s11  ;;  %v11780_v13 = vpack.c.bf16 %v3607_v53, %v3606_v5  ;;  %v3716_v5 = vld [vmem:[#allocation2 + $0x50] sm:$0xff]  ;;  %v3715_v53 = vld [vmem:[#allocation2 + $0x48] sm:$0xff] }
 0x415   : > { %v2848_v34 = vpop.permute.xlu1 %2847 }
 0x416   : > { %v3019_v35 = vpop.permute.xlu0 %3018  ;;  %2881 = vst.msk [vmem:[#allocation5 + $0x1e0] sm:$0xff] %vm2865_vm3, %v2848_v34  ;;  %v3488_v34 = vld [vmem:[#allocation2 + $0x19b] sm:$0xff] }
 0x417   : > { %3062 = vst.msk [vmem:[#allocation5 + $0x88] sm:$0xff] %vm2090_vm13, %v3019_v35  ;;  %3412 = vrot.lane.b32.xlu1 %v11637_v63, %s9830_s11  ;;  %v3489_v35 = vld [vmem:[#allocation2 + $0x1a3] sm:$0xff] }
 0x418   : > { %3422 = vrot.lane.b32.xlu0 %v11457_v36, %s9830_s11  ;;  %v11653_v36 = vpack.c.bf16 %v3357_v31, %v3356_v7  ;;  %v9768_v7 = vld [vmem:[%s14088_s3 + $0x10] sm:$0xff]  }
 0x419   : > { %v3013_v48 = vpop.permute.xlu1 %3012 }
 0x41a   : > { %v3023_v44 = vpop.permute.xlu0 %3022  ;;  %3059 = vst.msk [vmem:[#allocation5 + $0x28] sm:$0xff] %vm2090_vm13, %v3013_v48  ;;  %v9767_v48 = vld [vmem:[%s14088_s3 + $0x50] sm:$0xff]  }
 0x41b   : > { %3064 = vst.msk [vmem:[#allocation5 + $0xc8] sm:$0xff] %vm2090_vm13, %v3023_v44  ;;  %3416 = vrot.lane.b32.xlu1 %v11645_v60, %s9830_s11  ;;  %v14259_v44 = vld [vmem:[#allocation43_spill] sm:$0xff]  ;;  %9579 = vmatprep.subr.bf16.mxu1 %v9767_v48  ;;  %v3600_v48 = vld [vmem:[#allocation2 + $0xdc] sm:$0xff] }
 0x41c   : > { %3522 = vrot.lane.b32.xlu0 %v11125_v61, %s9831_s12  ;;  %9580 = vmatpush3.bf16.msra.mxu1 %v9768_v7  ;;  %v3601_v7 = vld [vmem:[#allocation2 + $0xe4] sm:$0xff] }
 0x41d   : > { %v3017_v24 = vpop.permute.xlu1 %3016 }
 0x41e   : > { %v3027_v41 = vpop.permute.xlu0 %3026  ;;  %3061 = vst.msk [vmem:[#allocation5 + $0x68] sm:$0xff] %vm2090_vm13, %v3017_v24 }
 0x41f   : > { %3066 = vst.msk [vmem:[#allocation5 + $0x108] sm:$0xff] %vm2090_vm13, %v3027_v41  ;;  %3420 = vrot.lane.b32.xlu1 %v11653_v36, %s9830_s11  ;;  %v11730_v41 = vpack.c.bf16 %v3489_v35, %v3488_v34 }
 0x420   : > { %3526 = vrot.lane.b32.xlu0 %v11134_v28, %s9831_s12 }
 0x421   : > { %v3021_v47 = vpop.permute.xlu1 %3020 }
 0x422   : > { %v3031_v1 = vpop.permute.xlu0 %3030  ;;  %3063 = vst.msk [vmem:[#allocation5 + $0xa8] sm:$0xff] %vm2090_vm13, %v3021_v47  ;;  %v3589_v47 = vld [vmem:[#allocation2 + $0x54] sm:$0xff] }
 0x423   : > { %3068 = vst.msk [vmem:[#allocation5 + $0x148] sm:$0xff] %vm2090_vm13, %v3031_v1  ;;  %3424 = vrot.lane.b32.xlu1 %v11661_v56, %s9830_s11  ;;  %v3598_v1 = vld [vmem:[#allocation2 + $0xc4] sm:$0xff] }
 0x424   : > { %3530 = vrot.lane.b32.xlu0 %v11148_v12, %s9831_s12 }
 0x425   : > { %v3025_v61 = vpop.permute.xlu1 %3024 }
 0x426   : > { %v3035_v40 = vpop.permute.xlu0 %3034  ;;  %3065 = vst.msk [vmem:[#allocation5 + $0xe8] sm:$0xff] %vm2090_vm13, %v3025_v61  ;;  %v3599_v61 = vld [vmem:[#allocation2 + $0xcc] sm:$0xff] }
 0x427   : > { %3070 = vst.msk [vmem:[#allocation5 + $0x188] sm:$0xff] %vm2090_vm13, %v3035_v40  ;;  %3524 = vrot.lane.b32.xlu1 %v10951_v43, %s9831_s12  ;;  %v9769_v40 = vld [vmem:[%s14088_s3 + $0x58] sm:$0xff]  }
 0x428   : > { %3534 = vrot.lane.b32.xlu0 %v11160_v52, %s9831_s12  ;;  %9581 = vmatprep.subr.bf16.mxu1 %v9769_v40  ;;  %v11794_v40 = vpack.c.bf16 %v3601_v7, %v3600_v48  ;;  %v3612_v48 = vld [vmem:[#allocation2 + $0x16c] sm:$0xff]  ;;  %v3613_v7 = vld [vmem:[#allocation2 + $0x174] sm:$0xff] }
 0x429   : > { %v3029_v58 = vpop.permute.xlu1 %3028 }
 0x42a   : > { %v3039_v11 = vpop.permute.xlu0 %3038  ;;  %3067 = vst.msk [vmem:[#allocation5 + $0x128] sm:$0xff] %vm2090_vm13, %v3029_v58  ;;  %v9770_v58 = vld [vmem:[%s14088_s3 + $0x18] sm:$0xff]  }
 0x42b   : > { %3072 = vst.msk [vmem:[#allocation5 + $0x1c8] sm:$0xff] %vm2090_vm13, %v3039_v11  ;;  %3528 = vrot.lane.b32.xlu1 %v11119_v46, %s9831_s12  ;;  %9582 = vmatpush3.bf16.msra.mxu1 %v9770_v58 }
 0x42c   : > { %3538 = vrot.lane.b32.xlu0 %v14251_v21, %s9831_s12  ;;  %9583 = vmatprep.subr.bf16.mxu1 %v9771_v14 }
 0x42d   : > { %v3033_v54 = vpop.permute.xlu1 %3032 }
 0x42e   : > { %v3139_v17 = vpop.permute.xlu0 %3138  ;;  %3069 = vst.msk [vmem:[#allocation5 + $0x168] sm:$0xff] %vm2090_vm13, %v3033_v54 }
 0x42f   : > { %3186 = vst.msk [vmem:[#allocation5 + $0x8] sm:$0xff] %vm2219_vm14, %v3139_v17  ;;  %3532 = vrot.lane.b32.xlu1 %v14252_v42, %s9831_s12  ;;  %v11746_v17 = vpack.c.bf16 %v3589_v47, %v3588_v4  ;;  %9584 = vmatpush3.bf16.msra.mxu1 %v9772_v19  ;;  %v9775_v4 = vld [vmem:[%s14088_s3 + $0x70] sm:$0xff]  }
 0x430   : > { %3542 = vrot.lane.b32.xlu0 %v14253_v39, %s9831_s12  ;;  %v9776_v47 = vld [vmem:[%s14088_s3 + $0x30] sm:$0xff]  }
 0x431   : > { %v3037_v20 = vpop.permute.xlu1 %3036 }
 0x432   : > { %v3143_v0 = vpop.permute.xlu0 %3142  ;;  %3071 = vst.msk [vmem:[#allocation5 + $0x1a8] sm:$0xff] %vm2090_vm13, %v3037_v20  ;;  %v11748_v20 = vpack.c.bf16 %v3599_v61, %v3598_v1 }
 0x433   : > { %3188 = vst.msk [vmem:[#allocation5 + $0x48] sm:$0xff] %vm2219_vm14, %v3143_v0  ;;  %3536 = vrot.lane.b32.xlu1 %v14254_v23, %s9831_s12  ;;  %v3592_v0 = vld [vmem:[#allocation2 + $0x7c] sm:$0xff] }
 0x434   : > { %3546 = vrot.lane.b32.xlu0 %v14255_v18, %s9831_s12 }
 0x435   : > { %v3041_v29 = vpop.permute.xlu1 %3040 }
 0x436   : > { %v3147_v27 = vpop.permute.xlu0 %3146  ;;  %3073 = vst.msk [vmem:[#allocation5 + $0x1e8] sm:$0xff] %vm2090_vm13, %v3041_v29  ;;  %v3593_v29 = vld [vmem:[#allocation2 + $0x84] sm:$0xff] }
 0x437   : > { %3190 = vst.msk [vmem:[#allocation5 + $0x88] sm:$0xff] %vm2219_vm14, %v3147_v27  ;;  %3540 = vrot.lane.b32.xlu1 %v14256_v55, %s9831_s12  ;;  %v3602_v27 = vld [vmem:[#allocation2 + $0xf4] sm:$0xff] }
 0x438   : > { %3550 = vrot.lane.b32.xlu0 %v14257_v15, %s9831_s12 }
 0x439   : > { %v3141_v9 = vpop.permute.xlu1 %3140 }
 0x43a   : > { %v3151_v62 = vpop.permute.xlu0 %3150  ;;  %3187 = vst.msk [vmem:[#allocation5 + $0x28] sm:$0xff] %vm2219_vm14, %v3141_v9 }
 0x43b   : > { %3192 = vst.msk [vmem:[#allocation5 + $0xc8] sm:$0xff] %vm2219_vm14, %v3151_v62  ;;  %3544 = vrot.lane.b32.xlu1 %v14258_v26, %s9831_s12  ;;  %v11762_v62 = vpack.c.bf16 %v3593_v29, %v3592_v0  ;;  %v3614_v0 = vld [vmem:[#allocation2 + $0x184] sm:$0xff]  ;;  %v3615_v29 = vld [vmem:[#allocation2 + $0x18c] sm:$0xff] }
 0x43c   : > { %3650 = vrot.lane.b32.xlu0 %v3618_v49, %s9832_s13  ;;  %v11764_v49 = vpack.c.bf16 %v3603_v57, %v3602_v27  ;;  %v9777_v27 = vld [vmem:[%s14088_s3 + $0x78] sm:$0xff]  }
 0x43d   : > { %v3145_v30 = vpop.permute.xlu1 %3144  ;;  %v9778_v57 = vld [vmem:[%s14088_s3 + $0x38] sm:$0xff]  }
 0x43e   : > { %v3155_v16 = vpop.permute.xlu0 %3154  ;;  %3189 = vst.msk [vmem:[#allocation5 + $0x68] sm:$0xff] %vm2219_vm14, %v3145_v30  ;;  %v9773_v30 = vld [vmem:[%s14088_s3 + $0x68] sm:$0xff]  }
 0x43f   : > { %3194 = vst.msk [vmem:[#allocation5 + $0x108] sm:$0xff] %vm2219_vm14, %v3155_v16  ;;  %3548 = vrot.lane.b32.xlu1 %v14259_v44, %s9831_s12  ;;  %v9774_v16 = vld [vmem:[%s14088_s3 + $0x28] sm:$0xff]   ;;  %9585 = vmatprep.subr.bf16.mxu1 %v9773_v30 }
 0x440   : > { %3654 = vrot.lane.b32.xlu0 %v11716_v37, %s9832_s13  ;;  %9586 = vmatpush3.bf16.msra.mxu1 %v9774_v16 }
 0x441   : > { %v3149_v31 = vpop.permute.xlu1 %3148  ;;  %9587 = vmatprep.subr.bf16.mxu1 %v9775_v4 }
 0x442   : > { %v3159_v24 = vpop.permute.xlu0 %3158  ;;  %3191 = vst.msk [vmem:[#allocation5 + $0xa8] sm:$0xff] %vm2219_vm14, %v3149_v31  ;;  %v3610_v31 = vld [vmem:[#allocation2 + $0x154] sm:$0xff] }
 0x443   : > { %3196 = vst.msk [vmem:[#allocation5 + $0x148] sm:$0xff] %vm2219_vm14, %v3159_v24  ;;  %3552 = vrot.lane.b32.xlu1 %v11730_v41, %s9831_s12  ;;  %v3611_v24 = vld [vmem:[#allocation2 + $0x15c] sm:$0xff] }
 0x444   : > { %3658 = vrot.lane.b32.xlu0 %v11732_v22, %s9832_s13  ;;  %v11796_v58 = vpack.c.bf16 %v3611_v24, %v3610_v31  ;;  %9588 = vmatpush3.bf16.msra.mxu1 %v9776_v47  ;;  %v3720_v31 = vld [vmem:[#allocation2 + $0x80] sm:$0xff]  ;;  %v3719_v24 = vld [vmem:[#allocation2 + $0x78] sm:$0xff] }
 0x445   : > { %v3153_v11 = vpop.permute.xlu1 %3152  ;;  %9589 = vmatprep.subr.bf16.mxu1 %v9777_v27 }
 0x446   : > { %v3163_v54 = vpop.permute.xlu0 %3162  ;;  %3193 = vst.msk [vmem:[#allocation5 + $0xe8] sm:$0xff] %vm2219_vm14, %v3153_v11  ;;  %v3604_v11 = vld [vmem:[#allocation2 + $0x10c] sm:$0xff] }
 0x447   : > { %3198 = vst.msk [vmem:[#allocation5 + $0x188] sm:$0xff] %vm2219_vm14, %v3163_v54  ;;  %3652 = vrot.lane.b32.xlu1 %v11746_v17, %s9832_s13  ;;  %v3605_v54 = vld [vmem:[#allocation2 + $0x114] sm:$0xff] }
 0x448   : > { %3662 = vrot.lane.b32.xlu0 %v11748_v20, %s9832_s13  ;;  %9590 = vmatpush3.bf16.msra.mxu1 %v9778_v57 }
 0x449   : > { %v3157_v8 = vpop.permute.xlu1 %3156 }
 0x44a   : > { %v3167_v9 = vpop.permute.xlu0 %3166  ;;  %3195 = vst.msk [vmem:[#allocation5 + $0x128] sm:$0xff] %vm2219_vm14, %v3157_v8  ;;  %v11810_v8 = vpack.c.bf16 %v3605_v54, %v3604_v11  ;;  %v3616_v11 = vld [vmem:[#allocation2 + $0x19c] sm:$0xff]  ;;  %v3617_v54 = vld [vmem:[#allocation2 + $0x1a4] sm:$0xff] }
 0x44b   : > { %3200 = vst.msk [vmem:[#allocation5 + $0x1c8] sm:$0xff] %vm2219_vm14, %v3167_v9  ;;  %3656 = vrot.lane.b32.xlu1 %v11762_v62, %s9832_s13  ;;  %v11812_v9 = vpack.c.bf16 %v3615_v29, %v3614_v0  ;;  %v3724_v0 = vld [vmem:[#allocation2 + $0xb0] sm:$0xff]  ;;  %v3723_v29 = vld [vmem:[#allocation2 + $0xa8] sm:$0xff] }
 0x44c   : > { %3666 = vrot.lane.b32.xlu0 %v11764_v49, %s9832_s13 }
 0x44d   : > { %v3161_v34 = vpop.permute.xlu1 %3160 }
 0x44e   : > { %v3267_v35 = vpop.permute.xlu0 %3266  ;;  %3197 = vst.msk [vmem:[#allocation5 + $0x168] sm:$0xff] %vm2219_vm14, %v3161_v34  ;;  %v11820_v34 = vpack.c.bf16 %v3609_v50, %v3608_v6  ;;  %v3718_v6 = vld [vmem:[#allocation2 + $0x68] sm:$0xff]  ;;  %v3728_v50 = vld [vmem:[#allocation2 + $0xe0] sm:$0xff] }
 0x44f   : > { %3314 = vst.msk [vmem:[#allocation5 + $0x8] sm:$0xff] %vm2348_vm15, %v3267_v35  ;;  %3660 = vrot.lane.b32.xlu1 %v11778_v25, %s9832_s13  ;;  %v3747_v35 = vpack.c.bf16 %v3716_v5, %v3715_v53  ;;  %v3717_v5 = vld [vmem:[#allocation2 + $0x60] sm:$0xff]  ;;  %v3727_v53 = vld [vmem:[#allocation2 + $0xd8] sm:$0xff] }
 0x450   : > { %3670 = vrot.lane.b32.xlu0 %v11780_v13, %s9832_s13 }
 0x451   : > { %v3165_v1 = vpop.permute.xlu1 %3164 }
 0x452   : > { %v3271_v61 = vpop.permute.xlu0 %3270  ;;  %3199 = vst.msk [vmem:[#allocation5 + $0x1a8] sm:$0xff] %vm2219_vm14, %v3165_v1  ;;  %v11827_v1 = vpack.c.bf16 %v3613_v7, %v3612_v48  ;;  %v11849_v48 = vpack.c.bf16 %v3728_v50, %v3727_v53  ;;  %v3722_v7 = vld [vmem:[#allocation2 + $0x98] sm:$0xff] }
 0x453   : > { %3316 = vst.msk [vmem:[#allocation5 + $0x48] sm:$0xff] %vm2348_vm15, %v3271_v61  ;;  %3664 = vrot.lane.b32.xlu1 %v11794_v40, %s9832_s13  ;;  %v11829_v61 = vpack.c.bf16 %v3720_v31, %v3719_v24  ;;  %v3732_v31 = vld [vmem:[#allocation2 + $0x110] sm:$0xff] }
 0x454   : > { %3674 = vrot.lane.b32.xlu0 %v11796_v58, %s9832_s13  ;;  %v3721_v24 = vld [vmem:[#allocation2 + $0x90] sm:$0xff] }
 0x455   : > { %v3169_v14 = vpop.permute.xlu1 %3168 }
 0x456   : > { %v3275_v19 = vpop.permute.xlu0 %3274  ;;  %3201 = vst.msk [vmem:[#allocation5 + $0x1e8] sm:$0xff] %vm2219_vm14, %v3169_v14  ;;  %v11837_v14 = vpack.c.bf16 %v3617_v54, %v3616_v11  ;;  %v11857_v54 = vpack.c.bf16 %v3722_v7, %v3721_v24  ;;  %v3739_v7 = vld [vmem:[#allocation2 + $0x168] sm:$0xff]  ;;  %v3729_v24 = vld [vmem:[#allocation2 + $0xf0] sm:$0xff] }
 0x457   : > { %3318 = vst.msk [vmem:[#allocation5 + $0x88] sm:$0xff] %vm2348_vm15, %v3275_v19  ;;  %3668 = vrot.lane.b32.xlu1 %v11810_v8, %s9832_s13  ;;  %v11839_v19 = vpack.c.bf16 %v3724_v0, %v3723_v29  ;;  %v3726_v29 = vld [vmem:[#allocation2 + $0xc8] sm:$0xff] }
 0x458   : > { %3678 = vrot.lane.b32.xlu0 %v11812_v9, %s9832_s13 }
 0x459   : > { %v3269_v30 = vpop.permute.xlu1 %3268 }
 0x45a   : > { %v3279_v16 = vpop.permute.xlu0 %3278  ;;  %3315 = vst.msk [vmem:[#allocation5 + $0x28] sm:$0xff] %vm2348_vm15, %v3269_v30 }
 0x45b   : > { %3320 = vst.msk [vmem:[#allocation5 + $0xc8] sm:$0xff] %vm2348_vm15, %v3279_v16  ;;  %3672 = vrot.lane.b32.xlu1 %v11820_v34, %s9832_s13 }
 0x45c   : > { %3779 = vrot.lane.b32.xlu0 %v3747_v35, %s9833_s14  ;;  %v11847_v35 = vpack.c.bf16 %v3718_v6, %v3717_v5  ;;  %v3735_v6 = vld [vmem:[#allocation2 + $0x138] sm:$0xff] }
 0x45d   : > { %v3273_v4 = vpop.permute.xlu1 %3272 }
 0x45e   : > { %v3283_v47 = vpop.permute.xlu0 %3282  ;;  %3317 = vst.msk [vmem:[#allocation5 + $0x68] sm:$0xff] %vm2348_vm15, %v3273_v4  ;;  %v3731_v4 = vld [vmem:[#allocation2 + $0x108] sm:$0xff] }
 0x45f   : > { %3322 = vst.msk [vmem:[#allocation5 + $0x108] sm:$0xff] %vm2348_vm15, %v3283_v47  ;;  %3676 = vrot.lane.b32.xlu1 %v11827_v1, %s9832_s13  ;;  %v11859_v0 = vpack.c.bf16 %v3732_v31, %v3731_v4  ;;  %v3740_v31 = vld [vmem:[#allocation2 + $0x170] sm:$0xff] }
 0x460   : > { %3783 = vrot.lane.b32.xlu0 %v11829_v61, %s9833_s14 }
 0x461   : > { %v3277_v27 = vpop.permute.xlu1 %3276 }
 0x462   : > { %v3287_v57 = vpop.permute.xlu0 %3286  ;;  %3319 = vst.msk [vmem:[#allocation5 + $0xa8] sm:$0xff] %vm2348_vm15, %v3277_v27  ;;  %v3736_v27 = vld [vmem:[#allocation2 + $0x140] sm:$0xff] }
 0x463   : > { %3324 = vst.msk [vmem:[#allocation5 + $0x148] sm:$0xff] %vm2348_vm15, %v3287_v57  ;;  %3680 = vrot.lane.b32.xlu1 %v11837_v14, %s9832_s13  ;;  %v3725_v57 = vld [vmem:[#allocation2 + $0xc0] sm:$0xff] }
 0x464   : > { %3787 = vrot.lane.b32.xlu0 %v11839_v19, %s9833_s14  ;;  %v11867_v53 = vpack.c.bf16 %v3726_v29, %v3725_v57  ;;  %v11879_v29 = vpack.c.bf16 %v3740_v31, %v3739_v7  ;;  %v3743_v57 = vld [vmem:[#allocation2 + $0x198] sm:$0xff]  ;;  %v3737_v31 = vld [vmem:[#allocation2 + $0x150] sm:$0xff] }
 0x465   : > { %v3281_v30 = vpop.permute.xlu1 %3280 }
 0x466   : > { %v3291_v16 = vpop.permute.xlu0 %3290  ;;  %3321 = vst.msk [vmem:[#allocation5 + $0xe8] sm:$0xff] %vm2348_vm15, %v3281_v30  ;;  %v11869_v30 = vpack.c.bf16 %v3736_v27, %v3735_v6  ;;  %14261 = vst [vmem:[#allocation38_spill] sm:$0xff] %v11879_v29  ;;  %v3734_v27 = vld [vmem:[#allocation2 + $0x128] sm:$0xff]  ;;  %v3744_v6 = vld [vmem:[#allocation2 + $0x1a0] sm:$0xff] }
 0x467   : > { %3326 = vst.msk [vmem:[#allocation5 + $0x188] sm:$0xff] %vm2348_vm15, %v3291_v16  ;;  %3781 = vrot.lane.b32.xlu1 %v11847_v35, %s9833_s14  ;;  %v3730_v16 = vld [vmem:[#allocation2 + $0xf8] sm:$0xff]  ;;  %v11889_v7 = vpack.c.bf16 %v3744_v6, %v3743_v57  ;;  %v3742_v57 = vld [vmem:[#allocation2 + $0x188] sm:$0xff] }
 0x468   : > { %3791 = vrot.lane.b32.xlu0 %v11849_v48, %s9833_s14  ;;  %14260 = vst [vmem:[#allocation42_spill] sm:$0xff] %v11869_v30  ;;  %v3746_v6 = vld [vmem:[#allocation2 + $0x1b8] sm:$0xff] }
 0x469   : > { %v3285_v47 = vpop.permute.xlu1 %3284  ;;  %14262 = vst [vmem:[#allocation44_spill] sm:$0xff] %v11889_v7 }
 0x46a   : > { %v3295_v11 = vpop.permute.xlu0 %3294  ;;  %3323 = vst.msk [vmem:[#allocation5 + $0x128] sm:$0xff] %vm2348_vm15, %v3285_v47 }
 0x46b   : > { %3328 = vst.msk [vmem:[#allocation5 + $0x1c8] sm:$0xff] %vm2348_vm15, %v3295_v11  ;;  %3785 = vrot.lane.b32.xlu1 %v11857_v54, %s9833_s14  ;;  %v11877_v11 = vpack.c.bf16 %v3730_v16, %v3729_v24  ;;  %v3738_v24 = vld [vmem:[#allocation2 + $0x158] sm:$0xff] }
 0x46c   : > { %3795 = vrot.lane.b32.xlu0 %v11859_v0, %s9833_s14 }
 0x46d   : > { %v3289_v50 = vpop.permute.xlu1 %3288 }
 0x46e   : > { %v3395_v5 = vpop.permute.xlu0 %3394  ;;  %3325 = vst.msk [vmem:[#allocation5 + $0x168] sm:$0xff] %vm2348_vm15, %v3289_v50  ;;  %v3733_v50 = vld [vmem:[#allocation2 + $0x120] sm:$0xff] }
 0x46f   : > { %3442 = vst.msk [vmem:[#allocation5 + $0x8] sm:$0xff] %vm2477_vm0, %v3395_v5  ;;  %3789 = vrot.lane.b32.xlu1 %v11867_v53, %s9833_s14  ;;  %v11887_v16 = vpack.c.bf16 %v3734_v27, %v3733_v50  ;;  %v3741_v27 = vld [vmem:[#allocation2 + $0x180] sm:$0xff] }
 0x470   : > { %3799 = vrot.lane.b32.xlu0 %v11869_v30, %s9833_s14 }
 0x471   : > { %v3293_v4 = vpop.permute.xlu1 %3292 }
 0x472   : > { %v3399_v47 = vpop.permute.xlu0 %3398  ;;  %3327 = vst.msk [vmem:[#allocation5 + $0x1a8] sm:$0xff] %vm2348_vm15, %v3293_v4 }
 0x473   : > { %3444 = vst.msk [vmem:[#allocation5 + $0x48] sm:$0xff] %vm2477_vm0, %v3399_v47  ;;  %3793 = vrot.lane.b32.xlu1 %v11877_v11, %s9833_s14 }
 0x474   : > { %3803 = vrot.lane.b32.xlu0 %v11879_v29, %s9833_s14  ;;  %v11897_v29 = vpack.c.bf16 %v3738_v24, %v3737_v31 }
 0x475   : > { %v3297_v5 = vpop.permute.xlu1 %3296 }
 0x476   : > { %v3403_v30 = vpop.permute.xlu0 %3402  ;;  %3329 = vst.msk [vmem:[#allocation5 + $0x1e8] sm:$0xff] %vm2348_vm15, %v3297_v5 }
 0x477   : > { %3446 = vst.msk [vmem:[#allocation5 + $0x88] sm:$0xff] %vm2477_vm0, %v3403_v30  ;;  %3797 = vrot.lane.b32.xlu1 %v11887_v16, %s9833_s14  ;;  %v3745_v30 = vld [vmem:[#allocation2 + $0x1b0] sm:$0xff] }
 0x478   : > { %3807 = vrot.lane.b32.xlu0 %v11889_v7, %s9833_s14  ;;  %v11905_v7 = vpack.c.bf16 %v3742_v57, %v3741_v27  ;;  %v11913_v31 = vpack.c.bf16 %v3746_v6, %v3745_v30 }
 0x479   : > { %v3397_v4 = vpop.permute.xlu1 %3396 }
 0x47a   : > { %v3407_v47 = vpop.permute.xlu0 %3406  ;;  %3443 = vst.msk [vmem:[#allocation5 + $0x28] sm:$0xff] %vm2477_vm0, %v3397_v4 }
 0x47b   : > { %3448 = vst.msk [vmem:[#allocation5 + $0xc8] sm:$0xff] %vm2477_vm0, %v3407_v47  ;;  %3801 = vrot.lane.b32.xlu1 %v11897_v29, %s9833_s14 }
 0x47c   : > { %3971 = vrot.lane.b32.xlu0 %v11599_v33, %s9823_s18 }
 0x47d   : > { %v3401_v50 = vpop.permute.xlu1 %3400 }
 0x47e   : > { %v3411_v5 = vpop.permute.xlu0 %3410  ;;  %3445 = vst.msk [vmem:[#allocation5 + $0x68] sm:$0xff] %vm2477_vm0, %v3401_v50 }
 0x47f   : > { %3450 = vst.msk [vmem:[#allocation5 + $0x108] sm:$0xff] %vm2477_vm0, %v3411_v5  ;;  %3805 = vrot.lane.b32.xlu1 %v11905_v7, %s9833_s14  ;;  %v3873_v5 = vld [vmem:[#allocation2 + $0x1b1] sm:$0xff] }
 0x480   : > { %3975 = vrot.lane.b32.xlu0 %v11609_v32, %s9823_s18 }
 0x481   : > { %v3405_v24 = vpop.permute.xlu1 %3404 }
 0x482   : > { %v3415_v33 = vpop.permute.xlu0 %3414  ;;  %3447 = vst.msk [vmem:[#allocation5 + $0xa8] sm:$0xff] %vm2477_vm0, %v3405_v24 }
 0x483   : > { %3452 = vst.msk [vmem:[#allocation5 + $0x148] sm:$0xff] %vm2477_vm0, %v3415_v33  ;;  %3809 = vrot.lane.b32.xlu1 %v11913_v31, %s9833_s14 }
 0x484   : > { %3979 = vrot.lane.b32.xlu0 %v11617_v3, %s9823_s18 }
 0x485   : > { %v3409_v4 = vpop.permute.xlu1 %3408 }
 0x486   : > { %v3419_v47 = vpop.permute.xlu0 %3418  ;;  %3449 = vst.msk [vmem:[#allocation5 + $0xe8] sm:$0xff] %vm2477_vm0, %v3409_v4  ;;  %v3934_v4 = vld [vmem:[#allocation2 + $0x18a] sm:$0xff] }
 0x487   : > { %3454 = vst.msk [vmem:[#allocation5 + $0x188] sm:$0xff] %vm2477_vm0, %v3419_v47  ;;  %3973 = vrot.lane.b32.xlu1 %v11585_v51, %s9823_s18  ;;  %v3922_v51 = vld [vmem:[#allocation2 + $0xfa] sm:$0xff] }
 0x488   : > { %3983 = vrot.lane.b32.xlu0 %v11627_v59, %s9823_s18  ;;  %v3921_v59 = vld [vmem:[#allocation2 + $0xf2] sm:$0xff]  ;;  %v3938_v47 = vld [vmem:[#allocation2 + $0x1ba] sm:$0xff] }
 0x489   : > { %v3413_v32 = vpop.permute.xlu1 %3412 }
 0x48a   : > { %v3423_v27 = vpop.permute.xlu0 %3422  ;;  %3451 = vst.msk [vmem:[#allocation5 + $0x128] sm:$0xff] %vm2477_vm0, %v3413_v32 }
 0x48b   : > { %3456 = vst.msk [vmem:[#allocation5 + $0x1c8] sm:$0xff] %vm2477_vm0, %v3423_v27  ;;  %3977 = vrot.lane.b32.xlu1 %v11592_v2, %s9823_s18  ;;  %v3946_v2 = vpack.c.bf16 %v3922_v51, %v3921_v59 }
 0x48c   : > { %3987 = vrot.lane.b32.xlu0 %v11637_v63, %s9823_s18 }
 0x48d   : > { %v3417_v3 = vpop.permute.xlu1 %3416 }
 0x48e   : > { %v3523_v57 = vpop.permute.xlu0 %3522  ;;  %3453 = vst.msk [vmem:[#allocation5 + $0x168] sm:$0xff] %vm2477_vm0, %v3417_v3 }
 0x48f   : > { %3570 = vst.msk [vmem:[#allocation5 + $0x8] sm:$0xff] %vm2607_vm1, %v3523_v57  ;;  %3981 = vrot.lane.b32.xlu1 %v11601_v38, %s9823_s18  ;;  %v3874_v38 = vld [vmem:[#allocation2 + $0x1b9] sm:$0xff] }
 0x490   : > { %3991 = vrot.lane.b32.xlu0 %v11645_v60, %s9823_s18  ;;  %v3890_v60 = vpack.c.bf16 %v3874_v38, %v3873_v5 }
 0x491   : > { %v3421_v30 = vpop.permute.xlu1 %3420 }
 0x492   : > { %v3527_v6 = vpop.permute.xlu0 %3526  ;;  %3455 = vst.msk [vmem:[#allocation5 + $0x1a8] sm:$0xff] %vm2477_vm0, %v3421_v30 }
 0x493   : > { %3572 = vst.msk [vmem:[#allocation5 + $0x48] sm:$0xff] %vm2607_vm1, %v3527_v6  ;;  %3985 = vrot.lane.b32.xlu1 %v3946_v2, %s9823_s18 }
 0x494   : > { %3995 = vrot.lane.b32.xlu0 %v11653_v36, %s9823_s18  ;;  %3906 = vst.msk [vmem:[#allocation5 + $0x1f0] sm:$0xff] %vm1691_vm7, %v3890_v60  ;;  %v3933_v36 = vld [vmem:[#allocation2 + $0x182] sm:$0xff] }
 0x495   : > { %v3425_v63 = vpop.permute.xlu1 %3424  ;;  %v3952_v27 = vpack.c.bf16 %v3934_v4, %v3933_v36  ;;  %v4194_v60 = vld [vmem:[#allocation2 + $0x1bc] sm:$0xff] }
 0x496   : > { %v3531_v50 = vpop.permute.xlu0 %3530  ;;  %3457 = vst.msk [vmem:[#allocation5 + $0x1e8] sm:$0xff] %vm2477_vm0, %v3425_v63 }
 0x497   : > { %3574 = vst.msk [vmem:[#allocation5 + $0x88] sm:$0xff] %vm2607_vm1, %v3531_v50  ;;  %3989 = vrot.lane.b32.xlu1 %v11619_v10, %s9823_s18  ;;  %v3937_v10 = vld [vmem:[#allocation2 + $0x1b2] sm:$0xff] }
 0x498   : > { %3999 = vrot.lane.b32.xlu0 %v11661_v56, %s9823_s18  ;;  %v3954_v3 = vpack.c.bf16 %v3938_v47, %v3937_v10 }
 0x499   : > { %v3525_v24 = vpop.permute.xlu1 %3524 }
 0x49a   : > { %v3535_v33 = vpop.permute.xlu0 %3534  ;;  %3571 = vst.msk [vmem:[#allocation5 + $0x28] sm:$0xff] %vm2607_vm1, %v3525_v24 }
 0x49b   : > { %3576 = vst.msk [vmem:[#allocation5 + $0xc8] sm:$0xff] %vm2607_vm1, %v3535_v33  ;;  %3993 = vrot.lane.b32.xlu1 %v11629_v45, %s9823_s18 }
 0x49c   : > { %4099 = vrot.lane.b32.xlu0 %v10951_v43, %s9827_s28 }
 0x49d   : > { %v3529_v32 = vpop.permute.xlu1 %3528 }
 0x49e   : > { %v3539_v56 = vpop.permute.xlu0 %3538  ;;  %3573 = vst.msk [vmem:[#allocation5 + $0x68] sm:$0xff] %vm2607_vm1, %v3529_v32 }
 0x49f   : > { %3578 = vst.msk [vmem:[#allocation5 + $0x108] sm:$0xff] %vm2607_vm1, %v3539_v56  ;;  %3997 = vrot.lane.b32.xlu1 %v3952_v27, %s9823_s18 }
 0x4a0   : > { %4103 = vrot.lane.b32.xlu0 %v11119_v46, %s9827_s28 }
 0x4a1   : > { %v3533_v57 = vpop.permute.xlu1 %3532 }
 0x4a2   : > { %v3543_v45 = vpop.permute.xlu0 %3542  ;;  %3575 = vst.msk [vmem:[#allocation5 + $0xa8] sm:$0xff] %vm2607_vm1, %v3533_v57  ;;  %v14265_v57 = vld [vmem:[#allocation10_spill] sm:$0xff] }
 0x4a3   : > { %3580 = vst.msk [vmem:[#allocation5 + $0x148] sm:$0xff] %vm2607_vm1, %v3543_v45  ;;  %4001 = vrot.lane.b32.xlu1 %v3954_v3, %s9823_s18 }
 0x4a4   : > { %4107 = vrot.lane.b32.xlu0 %v14252_v42, %s9827_s28 }
 0x4a5   : > { %v3537_v43 = vpop.permute.xlu1 %3536 }
 0x4a6   : > { %v3547_v51 = vpop.permute.xlu0 %3546  ;;  %3577 = vst.msk [vmem:[#allocation5 + $0xe8] sm:$0xff] %vm2607_vm1, %v3537_v43 }
 0x4a7   : > { %3582 = vst.msk [vmem:[#allocation5 + $0x188] sm:$0xff] %vm2607_vm1, %v3547_v51  ;;  %4101 = vrot.lane.b32.xlu1 %v11134_v28, %s9827_s28 }
 0x4a8   : > { %4111 = vrot.lane.b32.xlu0 %v14254_v23, %s9827_s28 }
 0x4a9   : > { %v3541_v46 = vpop.permute.xlu1 %3540 }
 0x4aa   : > { %v3551_v59 = vpop.permute.xlu0 %3550  ;;  %3579 = vst.msk [vmem:[#allocation5 + $0x128] sm:$0xff] %vm2607_vm1, %v3541_v46  ;;  %v14266_v46 = vld [vmem:[#allocation38_spill] sm:$0xff] }
 0x4ab   : > { %3584 = vst.msk [vmem:[#allocation5 + $0x1c8] sm:$0xff] %vm2607_vm1, %v3551_v59  ;;  %4105 = vrot.lane.b32.xlu1 %v11148_v12, %s9827_s28  ;;  %v14267_v59 = vld [vmem:[#allocation6_spill] sm:$0xff] }
 0x4ac   : > { %4115 = vrot.lane.b32.xlu0 %v14256_v55, %s9827_s28 }
 0x4ad   : > { %v3545_v42 = vpop.permute.xlu1 %3544 }
 0x4ae   : > { %v3651_v30 = vpop.permute.xlu0 %3650  ;;  %3581 = vst.msk [vmem:[#allocation5 + $0x168] sm:$0xff] %vm2607_vm1, %v3545_v42  ;;  %v4884_v42 = vld [vmem:[#allocation5 + $0x80] sm:$0xff] }
 0x4af   : > { %3698 = vst.msk [vmem:[#allocation5 + $0x8] sm:$0xff] %vm2736_vm2, %v3651_v30  ;;  %4109 = vrot.lane.b32.xlu1 %v11160_v52, %s9827_s28 }
 0x4b0   : > { %4119 = vrot.lane.b32.xlu0 %v14258_v26, %s9827_s28 }
 0x4b1   : > { %v3549_v28 = vpop.permute.xlu1 %3548 }
 0x4b2   : > { %v3655_v23 = vpop.permute.xlu0 %3654  ;;  %3583 = vst.msk [vmem:[#allocation5 + $0x1a8] sm:$0xff] %vm2607_vm1, %v3549_v28 }
 0x4b3   : > { %3700 = vst.msk [vmem:[#allocation5 + $0x48] sm:$0xff] %vm2736_vm2, %v3655_v23  ;;  %4113 = vrot.lane.b32.xlu1 %v14251_v21, %s9827_s28  ;;  %v4065_v21 = vld [vmem:[#allocation2 + $0x1b3] sm:$0xff] }
 0x4b4   : > { %4123 = vrot.lane.b32.xlu0 %v14259_v44, %s9827_s28  ;;  %v4066_v44 = vld [vmem:[#allocation2 + $0x1bb] sm:$0xff] }
 0x4b5   : > { %v3553_v12 = vpop.permute.xlu1 %3552 }
 0x4b6   : > { %v3659_v55 = vpop.permute.xlu0 %3658  ;;  %3585 = vst.msk [vmem:[#allocation5 + $0x1e8] sm:$0xff] %vm2607_vm1, %v3553_v12 }
 0x4b7   : > { %3702 = vst.msk [vmem:[#allocation5 + $0x88] sm:$0xff] %vm2736_vm2, %v3659_v55  ;;  %4117 = vrot.lane.b32.xlu1 %v14253_v39, %s9827_s28  ;;  %v4082_v39 = vpack.c.bf16 %v4066_v44, %v4065_v21  ;;  %v14268_v55 = vld [vmem:[#allocation44_spill] sm:$0xff]  ;;  %v14269_v21 = vld [vmem:[#allocation13_spill] sm:$0xff]  ;;  %v14270_v44 = vld [vmem:[#allocation27_spill] sm:$0xff] }
 0x4b8   : > { %4127 = vrot.lane.b32.xlu0 %v11730_v41, %s9827_s28 }
 0x4b9   : > { %v3653_v52 = vpop.permute.xlu1 %3652 }
 0x4ba   : > { %v3663_v26 = vpop.permute.xlu0 %3662  ;;  %3699 = vst.msk [vmem:[#allocation5 + $0x28] sm:$0xff] %vm2736_vm2, %v3653_v52 }
 0x4bb   : > { %3704 = vst.msk [vmem:[#allocation5 + $0xc8] sm:$0xff] %vm2736_vm2, %v3663_v26  ;;  %4121 = vrot.lane.b32.xlu1 %v14255_v18, %s9827_s28 }
 0x4bc   : > { %4227 = vrot.lane.b32.xlu0 %v11746_v17, %s9829_s29  ;;  %v14263_v17 = vmov 0.0  }
 0x4bd   : > { %v3657_v6 = vpop.permute.xlu1 %3656  ;;  %5512 = vst.msk [vmem:[#allocation3 + $0x10] sm:$0x3] %vm5511_vm4, %v14263_v17  ;;  %5515 = vst.msk [vmem:[#allocation3 + $0x28] sm:$0x3] %vm5511_vm4, %v14263_v17 }
 0x4be   : > { %v3667_v2 = vpop.permute.xlu0 %3666  ;;  %3701 = vst.msk [vmem:[#allocation5 + $0x68] sm:$0xff] %vm2736_vm2, %v3657_v6  ;;  %v4888_v6 = vld [vmem:[#allocation5 + $0xa0] sm:$0xff] }
 0x4bf   : > { %3706 = vst.msk [vmem:[#allocation5 + $0x108] sm:$0xff] %vm2736_vm2, %v3667_v2  ;;  %4125 = vrot.lane.b32.xlu1 %v14257_v15, %s9827_s28 }
 0x4c0   : > { %4231 = vrot.lane.b32.xlu0 %v11762_v62, %s9829_s29  ;;  %5518 = vst.msk [vmem:[#allocation3 + $0x40] sm:$0x3] %vm5511_vm4, %v14263_v17  ;;  %5521 = vst.msk [vmem:[#allocation3 + $0x58] sm:$0x3] %vm5511_vm4, %v14263_v17 }
 0x4c1   : > { %v3661_v41 = vpop.permute.xlu1 %3660  ;;  %5524 = vst.msk [vmem:[#allocation3 + $0x70] sm:$0x3] %vm5511_vm4, %v14263_v17  ;;  %5527 = vst.msk [vmem:[#allocation3 + $0x88] sm:$0x3] %vm5511_vm4, %v14263_v17 }
 0x4c2   : > { %v3671_v18 = vpop.permute.xlu0 %3670  ;;  %3703 = vst.msk [vmem:[#allocation5 + $0xa8] sm:$0xff] %vm2736_vm2, %v3661_v41 }
 0x4c3   : > { %3708 = vst.msk [vmem:[#allocation5 + $0x148] sm:$0xff] %vm2736_vm2, %v3671_v18  ;;  %4129 = vrot.lane.b32.xlu1 %v4082_v39, %s9827_s28  ;;  %v14272_v18 = vld [vmem:[#allocation49_spill] sm:$0xff] }
 0x4c4   : > { %4235 = vrot.lane.b32.xlu0 %v11778_v25, %s9829_s29  ;;  %5530 = vst.msk [vmem:[#allocation3 + $0xa0] sm:$0x3] %vm5511_vm4, %v14263_v17  ;;  %5533 = vst.msk [vmem:[#allocation3 + $0xb8] sm:$0x3] %vm5511_vm4, %v14263_v17 }
 0x4c5   : > { %5536 = vst.msk [vmem:[#allocation3 + $0xd0] sm:$0x3] %vm5511_vm4, %v14263_v17  ;;  %5539 = vst.msk [vmem:[#allocation3 + $0xe8] sm:$0x3] %vm5511_vm4, %v14263_v17  ;;  %v3665_v15 = vpop.permute.xlu1 %3664 }
 0x4c6   : > { %5542 = vst.msk [vmem:[#allocation3 + $0x100] sm:$0x3] %vm5511_vm4, %v14263_v17  ;;  %5545 = vst.msk [vmem:[#allocation3 + $0x118] sm:$0x3] %vm5511_vm4, %v14263_v17  ;;  %v3675_v62 = vpop.permute.xlu0 %3674 }
 0x4c7   : > { %5548 = vst.msk [vmem:[#allocation3 + $0x130] sm:$0x3] %vm5511_vm4, %v14263_v17  ;;  %5551 = vst.msk [vmem:[#allocation3 + $0x148] sm:$0x3] %vm5511_vm4, %v14263_v17  ;;  %4229 = vrot.lane.b32.xlu1 %v11716_v37, %s9829_s29 }
 0x4c8   : > { %5554 = vst.msk [vmem:[#allocation3 + $0x160] sm:$0x3] %vm5511_vm4, %v14263_v17  ;;  %5557 = vst.msk [vmem:[#allocation3 + $0x178] sm:$0x3] %vm5511_vm4, %v14263_v17  ;;  %4239 = vrot.lane.b32.xlu0 %v11794_v40, %s9829_s29 }
 0x4c9   : > { %5560 = vst.msk [vmem:[#allocation3 + $0x190] sm:$0x3] %vm5511_vm4, %v14263_v17  ;;  %5563 = vst.msk [vmem:[#allocation3 + $0x1a8] sm:$0x3] %vm5511_vm4, %v14263_v17  ;;  %v3669_v25 = vpop.permute.xlu1 %3668 }
 0x4ca   : > { %3705 = vst.msk [vmem:[#allocation5 + $0xe8] sm:$0xff] %vm2736_vm2, %v3665_v15  ;;  %3710 = vst.msk [vmem:[#allocation5 + $0x188] sm:$0xff] %vm2736_vm2, %v3675_v62  ;;  %v3679_v63 = vpop.permute.xlu0 %3678  ;;  %v4322_v15 = vld [vmem:[#allocation2 + $0x1c8] sm:$0xff]  ;;  %v4323_v62 = vld [vmem:[#allocation2 + $0x1d0] sm:$0xff] }
 0x4cb   : > { %3707 = vst.msk [vmem:[#allocation5 + $0x128] sm:$0xff] %vm2736_vm2, %v3669_v25  ;;  %3712 = vst.msk [vmem:[#allocation5 + $0x1c8] sm:$0xff] %vm2736_vm2, %v3679_v63  ;;  %4233 = vrot.lane.b32.xlu1 %v11732_v22, %s9829_s29 }
 0x4cc   : > { %4243 = vrot.lane.b32.xlu0 %v11810_v8, %s9829_s29  ;;  %7043 = vst.msk [vmem:[#allocation4 + $0x18] sm:$0xff] %vm7038_vm5, %v14263_v17  ;;  %7044 = vst.msk [vmem:[#allocation4 + $0x20] sm:$0xff] %vm7038_vm5, %v14263_v17 }
 0x4cd   : > { %v3673_v50 = vpop.permute.xlu1 %3672  ;;  %7039 = vst.msk [vmem:[#allocation4] sm:$0xff] %vm7038_vm5, %v14263_v17  ;;  %7040 = vst.msk [vmem:[#allocation4 + $0x8] sm:$0xff] %vm7038_vm5, %v14263_v17 }
 0x4ce   : > { %v3780_v5 = vpop.permute.xlu0 %3779  ;;  %3709 = vst.msk [vmem:[#allocation5 + $0x168] sm:$0xff] %vm2736_vm2, %v3673_v50  ;;  %v14273_v50 = vld [vmem:[#allocation26_spill] sm:$0xff] }
 0x4cf   : > { %3827 = vst.msk [vmem:[#allocation5 + $0x8] sm:$0xff] %vm2865_vm3, %v3780_v5  ;;  %4237 = vrot.lane.b32.xlu1 %v11748_v20, %s9829_s29  ;;  %v4868_v20 = vld [vmem:[#allocation5] sm:$0xff]  ;;  %v14274_v5 = vld [vmem:[#allocation21_spill] sm:$0xff] }
 0x4d0   : > { %4247 = vrot.lane.b32.xlu0 %v11820_v34, %s9829_s29  ;;  %v6685_v45 = vld [vmem:[#allocation3 + $0x1a2] sm:$0xff]  ;;  %7046 = vst.msk [vmem:[#allocation4 + $0x30] sm:$0xff] %vm7038_vm5, %v14263_v17  ;;  %7047 = vst.msk [vmem:[#allocation4 + $0x38] sm:$0xff] %vm7038_vm5, %v14263_v17 }
 0x4d1   : > { %v3677_v37 = vpop.permute.xlu1 %3676  ;;  %7049 = vst.msk [vmem:[#allocation4 + $0x48] sm:$0xff] %vm7038_vm5, %v14263_v17  ;;  %7050 = vst.msk [vmem:[#allocation4 + $0x50] sm:$0xff] %vm7038_vm5, %v14263_v17 }
 0x4d2   : > { %v3784_v40 = vpop.permute.xlu0 %3783  ;;  %3711 = vst.msk [vmem:[#allocation5 + $0x1a8] sm:$0xff] %vm2736_vm2, %v3677_v37  ;;  %v4892_v37 = vld [vmem:[#allocation5 + $0xc0] sm:$0xff] }
 0x4d3   : > { %3829 = vst.msk [vmem:[#allocation5 + $0x48] sm:$0xff] %vm2865_vm3, %v3784_v40  ;;  %4241 = vrot.lane.b32.xlu1 %v11764_v49, %s9829_s29  ;;  %v4339_v40 = vpack.c.bf16 %v4323_v62, %v4322_v15  ;;  %v14292_v15 = vld [vmem:[#allocation11_spill] sm:$0xff]  ;;  %v4912_v62 = vld [vmem:[#allocation5 + $0x160] sm:$0xff] }
 0x4d4   : > { %4251 = vrot.lane.b32.xlu0 %v11827_v1, %s9829_s29  ;;  %v4193_v1 = vld [vmem:[#allocation2 + $0x1b4] sm:$0xff]  ;;  %7052 = vst.msk [vmem:[#allocation4 + $0x60] sm:$0xff] %vm7038_vm5, %v14263_v17  ;;  %7053 = vst.msk [vmem:[#allocation4 + $0x68] sm:$0xff] %vm7038_vm5, %v14263_v17 }
 0x4d5   : > { %v3681_v22 = vpop.permute.xlu1 %3680  ;;  %7055 = vst.msk [vmem:[#allocation4 + $0x78] sm:$0xff] %vm7038_vm5, %v14263_v17  ;;  %7056 = vst.msk [vmem:[#allocation4 + $0x80] sm:$0xff] %vm7038_vm5, %v14263_v17 }
 0x4d6   : > { %v3788_v8 = vpop.permute.xlu0 %3787  ;;  %v4869_v38 = vld [vmem:[#allocation5 + $0x8] sm:$0xff]  ;;  %3713 = vst.msk [vmem:[#allocation5 + $0x1e8] sm:$0xff] %vm2736_vm2, %v3681_v22 }
 0x4d7   : > { %3831 = vst.msk [vmem:[#allocation5 + $0x88] sm:$0xff] %vm2865_vm3, %v3788_v8  ;;  %5219 = vmatprep.mubr.bf16.mxu1 %v4869_v38  ;;  %4245 = vrot.lane.b32.xlu1 %v11780_v13, %s9829_s29 }
 0x4d8   : > { %4255 = vrot.lane.b32.xlu0 %v11837_v14, %s9829_s29  ;;  %5220 = vmatmul.mubr.bf16.vlgmr.msra.gmra.mrb[12].mxu1 %v4868_v20  ;;  %v4210_v14 = vpack.c.bf16 %v4194_v60, %v4193_v1  ;;  %v14275_v20 = vld [vmem:[#allocation51_spill] sm:$0xff]  ;;  %v14276_v1 = vld [vmem:[#allocation18_spill] sm:$0xff]  ;;  %7058 = vst.msk [vmem:[#allocation4 + $0x90] sm:$0xff] %vm7038_vm5, %v14263_v17  ;;  %7059 = vst.msk [vmem:[#allocation4 + $0x98] sm:$0xff] %vm7038_vm5, %v14263_v17 }
 0x4d9   : > { %v3782_v49 = vpop.permute.xlu1 %3781  ;;  %v14277_v60 = vld [vmem:[#allocation35_spill] sm:$0xff]  ;;  %7061 = vst.msk [vmem:[#allocation4 + $0xa8] sm:$0xff] %vm7038_vm5, %v14263_v17  ;;  %7062 = vst.msk [vmem:[#allocation4 + $0xb0] sm:$0xff] %vm7038_vm5, %v14263_v17 }
 0x4da   : > { %v3792_v34 = vpop.permute.xlu0 %3791  ;;  %3828 = vst.msk [vmem:[#allocation5 + $0x28] sm:$0xff] %vm2865_vm3, %v3782_v49 }
 0x4db   : > { %3833 = vst.msk [vmem:[#allocation5 + $0xc8] sm:$0xff] %vm2865_vm3, %v3792_v34  ;;  %4249 = vrot.lane.b32.xlu1 %v11796_v58, %s9829_s29 }
 0x4dc   : > { %4356 = vrot.lane.b32.xlu0 %v11847_v35, %s9830_s11  ;;  %v4872_v35 = vld [vmem:[#allocation5 + $0x20] sm:$0xff]  ;;  %7064 = vst.msk [vmem:[#allocation4 + $0xc0] sm:$0xff] %vm7038_vm5, %v14263_v17  ;;  %7065 = vst.msk [vmem:[#allocation4 + $0xc8] sm:$0xff] %vm7038_vm5, %v14263_v17 }
 0x4dd   : > { %v3786_v13 = vpop.permute.xlu1 %3785  ;;  %7067 = vst.msk [vmem:[#allocation4 + $0xd8] sm:$0xff] %vm7038_vm5, %v14263_v17  ;;  %7068 = vst.msk [vmem:[#allocation4 + $0xe0] sm:$0xff] %vm7038_vm5, %v14263_v17 }
 0x4de   : > { %v3796_v24 = vpop.permute.xlu0 %3795  ;;  %3830 = vst.msk [vmem:[#allocation5 + $0x68] sm:$0xff] %vm2865_vm3, %v3786_v13  ;;  %v4885_v27 = vld [vmem:[#allocation5 + $0x88] sm:$0xff]  ;;  %v4896_v13 = vld [vmem:[#allocation5 + $0xe0] sm:$0xff] }
 0x4df   : > { %3835 = vst.msk [vmem:[#allocation5 + $0x108] sm:$0xff] %vm2865_vm3, %v3796_v24  ;;  %4253 = vrot.lane.b32.xlu1 %v11812_v9, %s9829_s29  ;;  %v4877_v9 = vld [vmem:[#allocation5 + $0x48] sm:$0xff] }
 0x4e0   : > { %4360 = vrot.lane.b32.xlu0 %v11857_v54, %s9830_s11  ;;  %7070 = vst.msk [vmem:[#allocation4 + $0xf0] sm:$0xff] %vm7038_vm5, %v14263_v17  ;;  %7071 = vst.msk [vmem:[#allocation4 + $0xf8] sm:$0xff] %vm7038_vm5, %v14263_v17 }
 0x4e1   : > { %v3790_v33 = vpop.permute.xlu1 %3789  ;;  %v4873_v36 = vld [vmem:[#allocation5 + $0x28] sm:$0xff]  ;;  %7073 = vst.msk [vmem:[#allocation4 + $0x108] sm:$0xff] %vm7038_vm5, %v14263_v17  ;;  %7074 = vst.msk [vmem:[#allocation4 + $0x110] sm:$0xff] %vm7038_vm5, %v14263_v17 }
 0x4e2   : > { %v3800_v58 = vpop.permute.xlu0 %3799  ;;  %3832 = vst.msk [vmem:[#allocation5 + $0xa8] sm:$0xff] %vm2865_vm3, %v3790_v33  ;;  %5227 = vmatprep.mubr.bf16.mxu1 %v4873_v36  ;;  %v4893_v2 = vld [vmem:[#allocation5 + $0xc8] sm:$0xff]  ;;  %v14279_v36 = vld [vmem:[#allocation53_spill] sm:$0xff] }
 0x4e3   : > { %3837 = vst.msk [vmem:[#allocation5 + $0x148] sm:$0xff] %vm2865_vm3, %v3800_v58  ;;  %4257 = vrot.lane.b32.xlu1 %v4210_v14, %s9829_s29  ;;  %5228 = vmatmul.mubr.bf16.gmra.mrb[16].mxu1 %v4872_v35  ;;  %v14278_v58 = vld [vmem:[#allocation47_spill] sm:$0xff] }
 0x4e4   : > { %4364 = vrot.lane.b32.xlu0 %v11867_v53, %s9830_s11  ;;  %5235 = vmatprep.mubr.bf16.mxu1 %v4877_v9  ;;  %v4876_v53 = vld [vmem:[#allocation5 + $0x40] sm:$0xff]  ;;  %7076 = vst.msk [vmem:[#allocation4 + $0x120] sm:$0xff] %vm7038_vm5, %v14263_v17  ;;  %7077 = vst.msk [vmem:[#allocation4 + $0x128] sm:$0xff] %vm7038_vm5, %v14263_v17 }
 0x4e5   : > { %v3794_v4 = vpop.permute.xlu1 %3793  ;;  %v4881_v32 = vld [vmem:[#allocation5 + $0x68] sm:$0xff]  ;;  %7079 = vst.msk [vmem:[#allocation4 + $0x138] sm:$0xff] %vm7038_vm5, %v14263_v17  ;;  %7080 = vst.msk [vmem:[#allocation4 + $0x140] sm:$0xff] %vm7038_vm5, %v14263_v17 }
 0x4e6   : > { %v3804_v54 = vpop.permute.xlu0 %3803  ;;  %3834 = vst.msk [vmem:[#allocation5 + $0xe8] sm:$0xff] %vm2865_vm3, %v3794_v4  ;;  %v4901_v24 = vld [vmem:[#allocation5 + $0x108] sm:$0xff]  ;;  %v14280_v4 = vld [vmem:[#allocation34_spill] sm:$0xff] }
 0x4e7   : > { %3839 = vst.msk [vmem:[#allocation5 + $0x188] sm:$0xff] %vm2865_vm3, %v3804_v54  ;;  %4358 = vrot.lane.b32.xlu1 %v11829_v61, %s9830_s11  ;;  %v14281_v54 = vld [vmem:[#allocation31_spill] sm:$0xff] }
 0x4e8   : > { %4368 = vrot.lane.b32.xlu0 %v11877_v11, %s9830_s11  ;;  %7082 = vst.msk [vmem:[#allocation4 + $0x150] sm:$0xff] %vm7038_vm5, %v14263_v17  ;;  %7083 = vst.msk [vmem:[#allocation4 + $0x158] sm:$0xff] %vm7038_vm5, %v14263_v17 }
 0x4e9   : > { %v3798_v10 = vpop.permute.xlu1 %3797  ;;  %v4889_v30 = vld [vmem:[#allocation5 + $0xa8] sm:$0xff]  ;;  %7085 = vst.msk [vmem:[#allocation4 + $0x168] sm:$0xff] %vm7038_vm5, %v14263_v17  ;;  %7086 = vst.msk [vmem:[#allocation4 + $0x170] sm:$0xff] %vm7038_vm5, %v14263_v17 }
 0x4ea   : > { %v3808_v47 = vpop.permute.xlu0 %3807  ;;  %3836 = vst.msk [vmem:[#allocation5 + $0x128] sm:$0xff] %vm2865_vm3, %v3798_v10  ;;  %v4900_v10 = vld [vmem:[#allocation5 + $0x100] sm:$0xff] }
 0x4eb   : > { %3841 = vst.msk [vmem:[#allocation5 + $0x1c8] sm:$0xff] %vm2865_vm3, %v3808_v47  ;;  %4362 = vrot.lane.b32.xlu1 %v11839_v19, %s9830_s11  ;;  %5236 = vmatmul.mubr.bf16.gmra.mrb[20].mxu1 %v4876_v53 }
 0x4ec   : > { %4372 = vrot.lane.b32.xlu0 %v11887_v16, %s9830_s11  ;;  %5243 = vmatprep.mubr.bf16.mxu1 %v4881_v32  ;;  %v4880_v16 = vld [vmem:[#allocation5 + $0x60] sm:$0xff]  ;;  %7088 = vst.msk [vmem:[#allocation4 + $0x180] sm:$0xff] %vm7038_vm5, %v14263_v17  ;;  %7089 = vst.msk [vmem:[#allocation4 + $0x188] sm:$0xff] %vm7038_vm5, %v14263_v17 }
 0x4ed   : > { %v3802_v61 = vpop.permute.xlu1 %3801  ;;  %v4897_v22 = vld [vmem:[#allocation5 + $0xe8] sm:$0xff]  ;;  %7091 = vst.msk [vmem:[#allocation4 + $0x198] sm:$0xff] %vm7038_vm5, %v14263_v17  ;;  %7092 = vst.msk [vmem:[#allocation4 + $0x1a0] sm:$0xff] %vm7038_vm5, %v14263_v17 }
 0x4ee   : > { %v3972_v56 = vpop.permute.xlu0 %3971  ;;  %3838 = vst.msk [vmem:[#allocation5 + $0x168] sm:$0xff] %vm2865_vm3, %v3802_v61  ;;  %v14282_v61 = vld [vmem:[#allocation48_spill] sm:$0xff] }
 0x4ef   : > { %4019 = vst.msk [vmem:[#allocation5 + $0x10] sm:$0xff] %vm2090_vm13, %v3972_v56  ;;  %4366 = vrot.lane.b32.xlu1 %v11849_v48, %s9830_s11  ;;  %v14283_v56 = vld [vmem:[#allocation55_spill] sm:$0xff] }
 0x4f0   : > { %4376 = vrot.lane.b32.xlu0 %v11897_v29, %s9830_s11  ;;  %v14264_v29 = vld [vmem:[#allocation42_spill] sm:$0xff]  ;;  %7045 = vst.msk [vmem:[#allocation4 + $0x28] sm:$0x3] %vm7041_vm6, %v14263_v17  ;;  %7042 = vst.msk [vmem:[#allocation4 + $0x10] sm:$0x3] %vm7041_vm6, %v14263_v17 }
 0x4f1   : > { %v3806_v19 = vpop.permute.xlu1 %3805  ;;  %v4905_v47 = vld [vmem:[#allocation5 + $0x128] sm:$0xff]  ;;  %7048 = vst.msk [vmem:[#allocation4 + $0x40] sm:$0x3] %vm7041_vm6, %v14263_v17  ;;  %7051 = vst.msk [vmem:[#allocation4 + $0x58] sm:$0x3] %vm7041_vm6, %v14263_v17 }
 0x4f2   : > { %v3976_v11 = vpop.permute.xlu0 %3975  ;;  %3840 = vst.msk [vmem:[#allocation5 + $0x1a8] sm:$0xff] %vm2865_vm3, %v3806_v19  ;;  %v9779_v19 = vld [vmem:[%s14090_s5] sm:$0xff]  }
 0x4f3   : > { %4021 = vst.msk [vmem:[#allocation5 + $0x50] sm:$0xff] %vm2090_vm13, %v3976_v11  ;;  %4370 = vrot.lane.b32.xlu1 %v11859_v0, %s9830_s11  ;;  %5244 = vmatmul.mubr.bf16.gmra.mrb[24].mxu1 %v4880_v16  ;;  %v6684_v0 = vld [vmem:[#allocation3 + $0x19a] sm:$0xff] }
 0x4f4   : > { %4380 = vrot.lane.b32.xlu0 %v11905_v7, %s9830_s11  ;;  %5251 = vmatprep.mubr.bf16.mxu1 %v4885_v27  ;;  %v6701_v51 = vpack.c.bf16 %v6685_v45, %v6684_v0  ;;  %v14195_v27 = vmov 0   ;;  %v4909_v0 = vld [vmem:[#allocation5 + $0x148] sm:$0xff]  ;;  %7054 = vst.msk [vmem:[#allocation4 + $0x70] sm:$0x3] %vm7041_vm6, %v14263_v17  ;;  %7057 = vst.msk [vmem:[#allocation4 + $0x88] sm:$0x3] %vm7041_vm6, %v14263_v17 }
 0x4f5   : > { %v3810_v48 = vpop.permute.xlu1 %3809  ;;  %6877 = vmatprep.subr.bf16.mxu1 %v14195_v27  ;;  %5348 = vmatprep.subr.bf16.mxu0 %v14195_v27  ;;  %7060 = vst.msk [vmem:[#allocation4 + $0xa0] sm:$0x3] %vm7041_vm6, %v14263_v17  ;;  %7063 = vst.msk [vmem:[#allocation4 + $0xb8] sm:$0x3] %vm7041_vm6, %v14263_v17 }
 0x4f6   : > { %v3980_v3 = vpop.permute.xlu0 %3979  ;;  %3842 = vst.msk [vmem:[#allocation5 + $0x1e8] sm:$0xff] %vm2865_vm3, %v3810_v48  ;;  %6878 = vmatpush1.bf16.msra.mxu1 %v9779_v19  ;;  %v14284_v48 = vld [vmem:[#allocation30_spill] sm:$0xff] }
 0x4f7   : > { %4023 = vst.msk [vmem:[#allocation5 + $0x90] sm:$0xff] %vm2090_vm13, %v3980_v3  ;;  %4374 = vrot.lane.b32.xlu1 %v14264_v29, %s9830_s11  ;;  %v14285_v3 = vld [vmem:[#allocation15_spill] sm:$0xff]  ;;  %v4904_v29 = vld [vmem:[#allocation5 + $0x120] sm:$0xff]  ;;  %6879 = vmatprep.subr.bf16.mxu1 %v14195_v27 }
 0x4f8   : > { %5564 = vrot.lane.b32.xlu0 %v14265_v57, %s9832_s13  ;;  %7066 = vst.msk [vmem:[#allocation4 + $0xd0] sm:$0x3] %vm7041_vm6, %v14263_v17  ;;  %7069 = vst.msk [vmem:[#allocation4 + $0xe8] sm:$0x3] %vm7041_vm6, %v14263_v17 }
 0x4f9   : > { %v3974_v43 = vpop.permute.xlu1 %3973  ;;  %7072 = vst.msk [vmem:[#allocation4 + $0x100] sm:$0x3] %vm7041_vm6, %v14263_v17  ;;  %7075 = vst.msk [vmem:[#allocation4 + $0x118] sm:$0x3] %vm7041_vm6, %v14263_v17 }
 0x4fa   : > { %v3984_v7 = vpop.permute.xlu0 %3983  ;;  %4020 = vst.msk [vmem:[#allocation5 + $0x30] sm:$0xff] %vm2090_vm13, %v3974_v43 }
 0x4fb   : > { %4025 = vst.msk [vmem:[#allocation5 + $0xd0] sm:$0xff] %vm2090_vm13, %v3984_v7  ;;  %4378 = vrot.lane.b32.xlu1 %v14266_v46, %s9830_s11  ;;  %5252 = vmatmul.mubr.bf16.gmra.mrb[28].mxu1 %v4884_v42  ;;  %v14286_v7 = vld [vmem:[#allocation50_spill] sm:$0xff] }
 0x4fc   : > { %5568 = vrot.lane.b32.xlu0 %v14267_v59, %s9832_s13  ;;  %5259 = vmatprep.mubr.bf16.mxu1 %v4889_v30  ;;  %v14288_v30 = vld [vmem:[#allocation12_spill] sm:$0xff]  ;;  %7078 = vst.msk [vmem:[#allocation4 + $0x130] sm:$0x3] %vm7041_vm6, %v14263_v17  ;;  %7081 = vst.msk [vmem:[#allocation4 + $0x148] sm:$0x3] %vm7041_vm6, %v14263_v17 }
 0x4fd   : > { %v3978_v28 = vpop.permute.xlu1 %3977  ;;  %v12133_v12 = vld [vmem:[#allocation5 + $0x1e8] sm:$0xff]  ;;  %7084 = vst.msk [vmem:[#allocation4 + $0x160] sm:$0x3] %vm7041_vm6, %v14263_v17  ;;  %7087 = vst.msk [vmem:[#allocation4 + $0x178] sm:$0x3] %vm7041_vm6, %v14263_v17 }
 0x4fe   : > { %v3988_v23 = vpop.permute.xlu0 %3987  ;;  %4022 = vst.msk [vmem:[#allocation5 + $0x70] sm:$0xff] %vm2090_vm13, %v3978_v28  ;;  %v14289_v28 = vld [vmem:[#allocation14_spill] sm:$0xff] }
 0x4ff   : > { %4027 = vst.msk [vmem:[#allocation5 + $0x110] sm:$0xff] %vm2090_vm13, %v3988_v23  ;;  %4382 = vrot.lane.b32.xlu1 %v14268_v55, %s9830_s11  ;;  %v4908_v23 = vld [vmem:[#allocation5 + $0x140] sm:$0xff]  ;;  %v4913_v55 = vld [vmem:[#allocation5 + $0x168] sm:$0xff] }
 0x500   : > { %6717 = vst.msk [vmem:[#allocation5 + $0x1e8] sm:$0xff] %vm1691_vm7, %v6701_v51  ;;  %4384 = vrot.lane.b32.xlu0 %v11913_v31, %s9830_s11  ;;  %v14271_v31 = vld [vmem:[#allocation7_spill] sm:$0xff]  ;;  %v14287_v51 = vld [vmem:[#allocation57_spill] sm:$0xff] }
 0x501   : > { %v3982_v52 = vpop.permute.xlu1 %3981  ;;  %7090 = vst.msk [vmem:[#allocation4 + $0x190] sm:$0x3] %vm7041_vm6, %v14263_v17  ;;  %7093 = vst.msk [vmem:[#allocation4 + $0x1a8] sm:$0x3] %vm7041_vm6, %v14263_v17  ;;  %v9791_v17 = vld [vmem:[%s14088_s3 + $0x98] sm:$0xff]  }
 0x502   : > { %v3992_v26 = vpop.permute.xlu0 %3991  ;;  %4024 = vst.msk [vmem:[#allocation5 + $0xb0] sm:$0xff] %vm2090_vm13, %v3982_v52 }
 0x503   : > { %4029 = vst.msk [vmem:[#allocation5 + $0x150] sm:$0xff] %vm2090_vm13, %v3992_v26  ;;  %5566 = vrot.lane.b32.xlu1 %v14269_v21, %s9832_s13  ;;  %5260 = vmatmul.mubr.bf16.gmra.mrb[32].mxu1 %v4888_v6  ;;  %v14290_v6 = vld [vmem:[#allocation52_spill] sm:$0xff] }
 0x504   : > { %5574 = vrot.lane.b32.xlu0 %v14270_v44, %s9832_s13  ;;  %5267 = vmatprep.mubr.bf16.mxu1 %v4893_v2  ;;  %v14291_v2 = vld [vmem:[#allocation58_spill] sm:$0xff] }
 0x505   : > { %v3986_v39 = vpop.permute.xlu1 %3985 }
 0x506   : > { %v3996_v41 = vpop.permute.xlu0 %3995  ;;  %4026 = vst.msk [vmem:[#allocation5 + $0xf0] sm:$0xff] %vm2090_vm13, %v3986_v39  ;;  %v9780_v39 = vld [vmem:[%s14090_s5 + $0x8] sm:$0xff]  }
 0x507   : > { %4031 = vst.msk [vmem:[#allocation5 + $0x190] sm:$0xff] %vm2090_vm13, %v3996_v41  ;;  %5570 = vrot.lane.b32.xlu1 %v14271_v31, %s9832_s13  ;;  %6880 = vmatpush1.bf16.msra.mxu1 %v9780_v39  ;;  %v4928_v39 = vld [vmem:[#allocation5 + $0x1e0] sm:$0xff] }
 0x508   : > { %4484 = vrot.lane.b32.xlu0 %v14272_v18, %s9831_s12  ;;  %6881 = vmatprep.subr.bf16.mxu1 %v14195_v27 }
 0x509   : > { %v3990_v25 = vpop.permute.xlu1 %3989 }
 0x50a   : > { %v4000_v63 = vpop.permute.xlu0 %3999  ;;  %4028 = vst.msk [vmem:[#allocation5 + $0x130] sm:$0xff] %vm2090_vm13, %v3990_v25  ;;  %v14293_v25 = vld [vmem:[#allocation24_spill] sm:$0xff] }
 0x50b   : > { %4033 = vst.msk [vmem:[#allocation5 + $0x1d0] sm:$0xff] %vm2090_vm13, %v4000_v63  ;;  %5572 = vrot.lane.b32.xlu1 %v14273_v50, %s9832_s13  ;;  %5268 = vmatmul.mubr.bf16.gmra.mrb[36].mxu1 %v4892_v37  ;;  %v4917_v63 = vld [vmem:[#allocation5 + $0x188] sm:$0xff] }
 0x50c   : > { %5578 = vrot.lane.b32.xlu0 %v14274_v5, %s9832_s13  ;;  %5275 = vmatprep.mubr.bf16.mxu1 %v4897_v22  ;;  %v14294_v22 = vld [vmem:[#allocation54_spill] sm:$0xff] }
 0x50d   : > { %v3994_v8 = vpop.permute.xlu1 %3993 }
 0x50e   : > { %v4100_v38 = vpop.permute.xlu0 %4099  ;;  %4030 = vst.msk [vmem:[#allocation5 + $0x170] sm:$0xff] %vm2090_vm13, %v3994_v8  ;;  %v14295_v8 = vld [vmem:[#allocation59_spill] sm:$0xff] }
 0x50f   : > { %4147 = vst.msk [vmem:[#allocation5 + $0x10] sm:$0xff] %vm2219_vm14, %v4100_v38  ;;  %4386 = vrot.lane.b32.xlu1 %v4339_v40, %s9830_s11  ;;  %v5885_v38 = vld [vmem:[#allocation3 + $0x2] sm:$0xff] }
 0x510   : > { %4488 = vrot.lane.b32.xlu0 %v14275_v20, %s9831_s12  ;;  %v5886_v20 = vld [vmem:[#allocation3 + $0xa] sm:$0xff] }
 0x511   : > { %v3998_v49 = vpop.permute.xlu1 %3997 }
 0x512   : > { %v4104_v34 = vpop.permute.xlu0 %4103  ;;  %4032 = vst.msk [vmem:[#allocation5 + $0x1b0] sm:$0xff] %vm2090_vm13, %v3998_v49  ;;  %v9781_v49 = vld [vmem:[%s14090_s5 + $0x10] sm:$0xff]  }
 0x513   : > { %4149 = vst.msk [vmem:[#allocation5 + $0x50] sm:$0xff] %vm2219_vm14, %v4104_v34  ;;  %5576 = vrot.lane.b32.xlu1 %v14276_v1, %s9832_s13  ;;  %5276 = vmatmul.mubr.bf16.gmra.mrb[40].mxu1 %v4896_v13  ;;  %v5693_v34 = vld [vmem:[#allocation3] sm:$0xff]  ;;  %v5694_v13 = vld [vmem:[#allocation3 + $0x8] sm:$0xff] }
 0x514   : > { %5582 = vrot.lane.b32.xlu0 %v14277_v60, %s9832_s13  ;;  %5283 = vmatprep.mubr.bf16.mxu1 %v4901_v24 }
 0x515   : > { %v4002_v14 = vpop.permute.xlu1 %4001  ;;  %6882 = vmatpush1.bf16.msra.mxu1 %v9781_v49 }
 0x516   : > { %v4108_v33 = vpop.permute.xlu0 %4107  ;;  %4034 = vst.msk [vmem:[#allocation5 + $0x1f0] sm:$0xff] %vm2090_vm13, %v4002_v14  ;;  %6883 = vmatprep.subr.bf16.mxu1 %v14195_v27 }
 0x517   : > { %4151 = vst.msk [vmem:[#allocation5 + $0x90] sm:$0xff] %vm2219_vm14, %v4108_v33  ;;  %4486 = vrot.lane.b32.xlu1 %v14278_v58, %s9831_s12  ;;  %v5725_v33 = vpack.c.bf16 %v5694_v13, %v5693_v34  ;;  %v14296_v58 = vld [vmem:[#allocation20_spill] sm:$0xff] }
 0x518   : > { %4492 = vrot.lane.b32.xlu0 %v14279_v36, %s9831_s12  ;;  %v4916_v36 = vld [vmem:[#allocation5 + $0x180] sm:$0xff] }
 0x519   : > { %v4102_v35 = vpop.permute.xlu1 %4101  ;;  %5741 = vst.msk [vmem:[#allocation5] sm:$0xff] %vm1691_vm7, %v5725_v33 }
 0x51a   : > { %v4112_v9 = vpop.permute.xlu0 %4111  ;;  %4148 = vst.msk [vmem:[#allocation5 + $0x30] sm:$0xff] %vm2219_vm14, %v4102_v35  ;;  %v14297_v35 = vld [vmem:[#allocation19_spill] sm:$0xff] }
 0x51b   : > { %4153 = vst.msk [vmem:[#allocation5 + $0xd0] sm:$0xff] %vm2219_vm14, %v4112_v9  ;;  %5580 = vrot.lane.b32.xlu1 %v14280_v4, %s9832_s13  ;;  %5284 = vmatmul.mubr.bf16.gmra.mrb[44].mxu1 %v4900_v10  ;;  %v5917_v9 = vpack.c.bf16 %v5886_v20, %v5885_v38  ;;  %v4921_v10 = vld [vmem:[#allocation5 + $0x1a8] sm:$0xff] }
 0x51c   : > { %5586 = vrot.lane.b32.xlu0 %v14281_v54, %s9832_s13  ;;  %5291 = vmatprep.mubr.bf16.mxu1 %v4905_v47  ;;  %v5757_v47 = vld [vmem:[#allocation3 + $0x1] sm:$0xff] }
 0x51d   : > { %v4106_v53 = vpop.permute.xlu1 %4105 }
 0x51e   : > { %v4116_v32 = vpop.permute.xlu0 %4115  ;;  %4150 = vst.msk [vmem:[#allocation5 + $0x70] sm:$0xff] %vm2219_vm14, %v4106_v53  ;;  %v5758_v53 = vld [vmem:[#allocation3 + $0x9] sm:$0xff] }
 0x51f   : > { %4155 = vst.msk [vmem:[#allocation5 + $0x110] sm:$0xff] %vm2219_vm14, %v4116_v32  ;;  %4490 = vrot.lane.b32.xlu1 %v14282_v61, %s9831_s12  ;;  %v5789_v19 = vpack.c.bf16 %v5758_v53, %v5757_v47 }
 0x520   : > { %4496 = vrot.lane.b32.xlu0 %v14283_v56, %s9831_s12  ;;  %v14298_v56 = vld [vmem:[#allocation56_spill] sm:$0xff] }
 0x521   : > { %v4110_v11 = vpop.permute.xlu1 %4109 }
 0x522   : > { %v4120_v16 = vpop.permute.xlu0 %4119  ;;  %4152 = vst.msk [vmem:[#allocation5 + $0xb0] sm:$0xff] %vm2219_vm14, %v4110_v11 }
 0x523   : > { %4157 = vst.msk [vmem:[#allocation5 + $0x150] sm:$0xff] %vm2219_vm14, %v4120_v16  ;;  %5584 = vrot.lane.b32.xlu1 %v14284_v48, %s9832_s13  ;;  %5292 = vmatmul.mubr.bf16.gmra.mrb[48].mxu1 %v4904_v29  ;;  %v4920_v29 = vld [vmem:[#allocation5 + $0x1a0] sm:$0xff] }
 0x524   : > { %5590 = vrot.lane.b32.xlu0 %v14285_v3, %s9832_s13  ;;  %5299 = vmatprep.mubr.bf16.mxu1 %v4909_v0  ;;  %v4925_v0 = vld [vmem:[#allocation5 + $0x1c8] sm:$0xff] }
 0x525   : > { %v4114_v45 = vpop.permute.xlu1 %4113 }
 0x526   : > { %v4124_v43 = vpop.permute.xlu0 %4123  ;;  %4154 = vst.msk [vmem:[#allocation5 + $0xf0] sm:$0xff] %vm2219_vm14, %v4114_v45  ;;  %v9782_v45 = vld [vmem:[%s14090_s5 + $0x18] sm:$0xff]  }
 0x527   : > { %4159 = vst.msk [vmem:[#allocation5 + $0x190] sm:$0xff] %vm2219_vm14, %v4124_v43  ;;  %4494 = vrot.lane.b32.xlu1 %v14286_v7, %s9831_s12  ;;  %6884 = vmatpush1.bf16.msra.mxu1 %v9782_v45 }
 0x528   : > { %4500 = vrot.lane.b32.xlu0 %v14287_v51, %s9831_s12  ;;  %v14299_v51 = vld [vmem:[#allocation22_spill] sm:$0xff]  ;;  %6885 = vmatprep.subr.bf16.mxu1 %v14195_v27 }
 0x529   : > { %v4118_v46 = vpop.permute.xlu1 %4117 }
 0x52a   : > { %v4128_v42 = vpop.permute.xlu0 %4127  ;;  %4156 = vst.msk [vmem:[#allocation5 + $0x130] sm:$0xff] %vm2219_vm14, %v4118_v46 }
 0x52b   : > { %4161 = vst.msk [vmem:[#allocation5 + $0x1d0] sm:$0xff] %vm2219_vm14, %v4128_v42  ;;  %5588 = vrot.lane.b32.xlu1 %v14288_v30, %s9832_s13  ;;  %5300 = vmatmul.mubr.bf16.gmra.mrb[52].mxu1 %v4908_v23  ;;  %v4924_v23 = vld [vmem:[#allocation5 + $0x1c0] sm:$0xff] }
 0x52c   : > { %5594 = vrot.lane.b32.xlu0 %v14289_v28, %s9832_s13  ;;  %5307 = vmatprep.mubr.bf16.mxu1 %v4913_v55  ;;  %v4705_v30 = vld [vmem:[#allocation2 + $0x1bb] sm:$0xff] }
 0x52d   : > { %v4122_v52 = vpop.permute.xlu1 %4121 }
 0x52e   : > { %v4228_v26 = vpop.permute.xlu0 %4227  ;;  %4158 = vst.msk [vmem:[#allocation5 + $0x170] sm:$0xff] %vm2219_vm14, %v4122_v52 }
 0x52f   : > { %4275 = vst.msk [vmem:[#allocation5 + $0x10] sm:$0xff] %vm2348_vm15, %v4228_v26  ;;  %4498 = vrot.lane.b32.xlu1 %v14290_v6, %s9831_s12 }
 0x530   : > { %4504 = vrot.lane.b32.xlu0 %v14291_v2, %s9831_s12  ;;  %v9783_v2 = vld [vmem:[%s14090_s5 + $0x20] sm:$0xff]  }
 0x531   : > { %v4126_v41 = vpop.permute.xlu1 %4125  ;;  %6886 = vmatpush1.bf16.msra.mxu1 %v9783_v2 }
 0x532   : > { %v4232_v18 = vpop.permute.xlu0 %4231  ;;  %4160 = vst.msk [vmem:[#allocation5 + $0x1b0] sm:$0xff] %vm2219_vm14, %v4126_v41  ;;  %6887 = vmatprep.subr.bf16.mxu1 %v14195_v27 }
 0x533   : > { %4277 = vst.msk [vmem:[#allocation5 + $0x50] sm:$0xff] %vm2348_vm15, %v4232_v18  ;;  %5592 = vrot.lane.b32.xlu1 %v14292_v15, %s9832_s13  ;;  %5308 = vmatmul.mubr.bf16.gmra.mrb[56].mxu1 %v4912_v62 }
 0x534   : > { %5598 = vrot.lane.b32.xlu0 %v14293_v25, %s9832_s13  ;;  %5315 = vmatprep.mubr.bf16.mxu1 %v4917_v63 }
 0x535   : > { %v4130_v37 = vpop.permute.xlu1 %4129 }
 0x536   : > { %v4236_v40 = vpop.permute.xlu0 %4235  ;;  %4162 = vst.msk [vmem:[#allocation5 + $0x1f0] sm:$0xff] %vm2219_vm14, %v4130_v37 }
 0x537   : > { %4279 = vst.msk [vmem:[#allocation5 + $0x90] sm:$0xff] %vm2348_vm15, %v4236_v40  ;;  %4502 = vrot.lane.b32.xlu1 %v14294_v22, %s9831_s12 }
 0x538   : > { %4508 = vrot.lane.b32.xlu0 %v14295_v8, %s9831_s12  ;;  %v9784_v8 = vld [vmem:[%s14090_s5 + $0x28] sm:$0xff]  }
 0x539   : > { %v4230_v24 = vpop.permute.xlu1 %4229  ;;  %6888 = vmatpush1.bf16.msra.mxu1 %v9784_v8 }
 0x53a   : > { %v4240_v14 = vpop.permute.xlu0 %4239  ;;  %4276 = vst.msk [vmem:[#allocation5 + $0x30] sm:$0xff] %vm2348_vm15, %v4230_v24  ;;  %6889 = vmatprep.subr.bf16.mxu1 %v14195_v27 }
 0x53b   : > { %4281 = vst.msk [vmem:[#allocation5 + $0xd0] sm:$0xff] %vm2348_vm15, %v4240_v14  ;;  %5596 = vrot.lane.b32.xlu1 %v14296_v58, %s9832_s13  ;;  %5316 = vmatmul.mubr.bf16.gmra.mrb[60].mxu1 %v4916_v36  ;;  %v9785_v14 = vld [vmem:[%s14090_s5 + $0x30] sm:$0xff]  }
 0x53c   : > { %5600 = vrot.lane.b32.xlu0 %v14297_v35, %s9832_s13  ;;  %5323 = vmatprep.mubr.bf16.mxu1 %v4921_v10 }
 0x53d   : > { %v4234_v32 = vpop.permute.xlu1 %4233  ;;  %6890 = vmatpush1.bf16.msra.mxu1 %v9785_v14  ;;  %v14300_v14 = vld [vmem:[#allocation16_spill] sm:$0xff] }
 0x53e   : > { %v4244_v61 = vpop.permute.xlu0 %4243  ;;  %4278 = vst.msk [vmem:[#allocation5 + $0x70] sm:$0xff] %vm2348_vm15, %v4234_v32  ;;  %6891 = vmatprep.subr.bf16.mxu1 %v14195_v27 }
 0x53f   : > { %4283 = vst.msk [vmem:[#allocation5 + $0x110] sm:$0xff] %vm2348_vm15, %v4244_v61  ;;  %4506 = vrot.lane.b32.xlu1 %v14298_v56, %s9831_s12  ;;  %v9786_v61 = vld [vmem:[%s14090_s5 + $0x38] sm:$0xff]  }
 0x540   : > { %5949 = vrot.lane.b32.xlu0 %v5917_v9, %s9827_s28 }
 0x541   : > { %v4238_v11 = vpop.permute.xlu1 %4237  ;;  %6892 = vmatpush1.bf16.msra.mxu1 %v9786_v61 }
 0x542   : > { %v4248_v16 = vpop.permute.xlu0 %4247  ;;  %4280 = vst.msk [vmem:[#allocation5 + $0xb0] sm:$0xff] %vm2348_vm15, %v4238_v11  ;;  %6893 = vmatprep.subr.bf16.mxu1 %v14195_v27  ;;  %v14310_v27 = vld [vmem:[#allocation32_spill] sm:$0xff] }
 0x543   : > { %4285 = vst.msk [vmem:[#allocation5 + $0x150] sm:$0xff] %vm2348_vm15, %v4248_v16  ;;  %5821 = vrot.lane.b32.xlu1 %v5789_v19, %s9823_s18  ;;  %5324 = vmatmul.mubr.bf16.gmra.mrb[64].mxu1 %v4920_v29 }
 0x544   : > { %5331 = vmatprep.mubr.bf16.mxu1 %v4925_v0 }
 0x545   : > { %v4242_v43 = vpop.permute.xlu1 %4241 }
 0x546   : > { %v4252_v7 = vpop.permute.xlu0 %4251  ;;  %4282 = vst.msk [vmem:[#allocation5 + $0xf0] sm:$0xff] %vm2348_vm15, %v4242_v43 }
 0x547   : > { %4287 = vst.msk [vmem:[#allocation5 + $0x190] sm:$0xff] %vm2348_vm15, %v4252_v7  ;;  %5602 = vrot.lane.b32.xlu1 %v14299_v51, %s9832_s13 }
 0x549   : > { %v4246_v46 = vpop.permute.xlu1 %4245 }
 0x54a   : > { %v4256_v42 = vpop.permute.xlu0 %4255  ;;  %4284 = vst.msk [vmem:[#allocation5 + $0x130] sm:$0xff] %vm2348_vm15, %v4246_v46 }
 0x54b   : > { %4289 = vst.msk [vmem:[#allocation5 + $0x1d0] sm:$0xff] %vm2348_vm15, %v4256_v42  ;;  %5332 = vmatmul.mubr.bf16.gmra.mrb[68].mxu1 %v4924_v23 }
 0x54c   : > { %5339 = vmatprep.mubr.bf16.mxu1 %v12133_v12 }
 0x54d   : > { %v4250_v55 = vpop.permute.xlu1 %4249 }
 0x54e   : > { %v4357_v52 = vpop.permute.xlu0 %4356  ;;  %4286 = vst.msk [vmem:[#allocation5 + $0x170] sm:$0xff] %vm2348_vm15, %v4250_v55 }
 0x54f   : > { %4404 = vst.msk [vmem:[#allocation5 + $0x10] sm:$0xff] %vm2477_vm0, %v4357_v52 }
 0x551   : > { %v4254_v26 = vpop.permute.xlu1 %4253 }
 0x552   : > { %v4361_v6 = vpop.permute.xlu0 %4360  ;;  %4288 = vst.msk [vmem:[#allocation5 + $0x1b0] sm:$0xff] %vm2348_vm15, %v4254_v26 }
 0x553   : > { %4406 = vst.msk [vmem:[#allocation5 + $0x50] sm:$0xff] %vm2477_vm0, %v4361_v6  ;;  %5340 = vmatmul.mubr.bf16.gmra.mrb[72].mxu1 %v4928_v39 }
 0x555   : > { %v4258_v12 = vpop.permute.xlu1 %4257 }
 0x556   : > { %v4365_v41 = vpop.permute.xlu0 %4364  ;;  %4290 = vst.msk [vmem:[#allocation5 + $0x1f0] sm:$0xff] %vm2348_vm15, %v4258_v12 }
 0x557   : > { %4408 = vst.msk [vmem:[#allocation5 + $0x90] sm:$0xff] %vm2477_vm0, %v4365_v41 }
 0x559   : > { %v4359_v18 = vpop.permute.xlu1 %4358 }
 0x55a   : > { %v4369_v62 = vpop.permute.xlu0 %4368  ;;  %4405 = vst.msk [vmem:[#allocation5 + $0x30] sm:$0xff] %vm2477_vm0, %v4359_v18 }
 0x55b   : > { %4410 = vst.msk [vmem:[#allocation5 + $0xd0] sm:$0xff] %vm2477_vm0, %v4369_v62 }
 0x55d   : > { %v4363_v63 = vpop.permute.xlu1 %4362 }
 0x55e   : > { %v4373_v37 = vpop.permute.xlu0 %4372  ;;  %4407 = vst.msk [vmem:[#allocation5 + $0x70] sm:$0xff] %vm2477_vm0, %v4363_v63 }
 0x55f   : > { %4412 = vst.msk [vmem:[#allocation5 + $0x110] sm:$0xff] %vm2477_vm0, %v4373_v37 }
 0x561   : > { %v4367_v40 = vpop.permute.xlu1 %4366 }
 0x562   : > { %v4377_v22 = vpop.permute.xlu0 %4376  ;;  %4409 = vst.msk [vmem:[#allocation5 + $0xb0] sm:$0xff] %vm2477_vm0, %v4367_v40 }
 0x563   : > { %4414 = vst.msk [vmem:[#allocation5 + $0x150] sm:$0xff] %vm2477_vm0, %v4377_v22 }
 0x565   : > { %v4371_v38 = vpop.permute.xlu1 %4370 }
 0x566   : > { %v4381_v20 = vpop.permute.xlu0 %4380  ;;  %4411 = vst.msk [vmem:[#allocation5 + $0xf0] sm:$0xff] %vm2477_vm0, %v4371_v38 }
 0x567   : > { %4416 = vst.msk [vmem:[#allocation5 + $0x190] sm:$0xff] %vm2477_vm0, %v4381_v20 }
 0x569   : > { %v4375_v49 = vpop.permute.xlu1 %4374 }
 0x56a   : > { %v5565_v34 = vpop.permute.xlu0 %5564  ;;  %4413 = vst.msk [vmem:[#allocation5 + $0x130] sm:$0xff] %vm2477_vm0, %v4375_v49 }
 0x56b   : > { %5661 = vst.msk [vmem:[#allocation3 + $0x19] sm:$0xff] %vm1691_vm7, %v5565_v34 }
 0x56d   : > { %v4379_v13 = vpop.permute.xlu1 %4378 }
 0x56e   : > { %v5569_v24 = vpop.permute.xlu0 %5568  ;;  %4415 = vst.msk [vmem:[#allocation5 + $0x170] sm:$0xff] %vm2477_vm0, %v4379_v13  ;;  %v9787_v13 = vld [vmem:[%s14090_s5 + $0x40] sm:$0xff]  }
 0x56f   : > { %5663 = vst.msk [vmem:[#allocation3 + $0x31] sm:$0xff] %vm1691_vm7, %v5569_v24  ;;  %6894 = vmatpush1.bf16.msra.mxu1 %v9787_v13 }
 0x571   : > { %v4383_v33 = vpop.permute.xlu1 %4382 }
 0x572   : > { %v4385_v36 = vpop.permute.xlu0 %4384  ;;  %4417 = vst.msk [vmem:[#allocation5 + $0x1b0] sm:$0xff] %vm2477_vm0, %v4383_v33  ;;  %v6141_v32 = vld [vmem:[#allocation3 + $0x19] sm:$0xff] }
 0x573   : > { %4418 = vst.msk [vmem:[#allocation5 + $0x1d0] sm:$0xff] %vm2477_vm0, %v4385_v36  ;;  %v6013_v16 = vld [vmem:[#allocation3 + $0x18] sm:$0xff] }
 0x575   : > { %v5567_v9 = vpop.permute.xlu1 %5566 }
 0x576   : > { %v5575_v10 = vpop.permute.xlu0 %5574  ;;  %5662 = vst.msk [vmem:[#allocation3 + $0x21] sm:$0xff] %vm1691_vm7, %v5567_v9  ;;  %v6398_v46 = vld [vmem:[#allocation3 + $0x30] sm:$0xff]  ;;  %v14301_v9 = vld [vmem:[#allocation17_spill] sm:$0xff] }
 0x577   : > { %5666 = vst.msk [vmem:[#allocation3 + $0x51] sm:$0xff] %vm1691_vm7, %v5575_v10  ;;  %v6526_v37 = vld [vmem:[#allocation3 + $0x31] sm:$0xff] }
 0x579   : > { %v5571_v47 = vpop.permute.xlu1 %5570 }
 0x57a   : > { %v4485_v53 = vpop.permute.xlu0 %4484  ;;  %5664 = vst.msk [vmem:[#allocation3 + $0x39] sm:$0xff] %vm1691_vm7, %v5571_v47 }
 0x57b   : > { %4532 = vst.msk [vmem:[#allocation5 + $0x10] sm:$0xff] %vm2607_vm1, %v4485_v53 }
 0x57d   : > { %v5573_v56 = vpop.permute.xlu1 %5572  ;;  %v6142_v11 = vld [vmem:[#allocation3 + $0x21] sm:$0xff] }
 0x57e   : > { %v5579_v19 = vpop.permute.xlu0 %5578  ;;  %v6014_v29 = vld [vmem:[#allocation3 + $0x20] sm:$0xff]  ;;  %5665 = vst.msk [vmem:[#allocation3 + $0x49] sm:$0xff] %vm1691_vm7, %v5573_v56  ;;  %v6173_v0 = vpack.c.bf16 %v6142_v11, %v6141_v32  ;;  %v6657_v41 = vld [vmem:[#allocation3 + $0x52] sm:$0xff] }
 0x57f   : > { %5668 = vst.msk [vmem:[#allocation3 + $0x69] sm:$0xff] %vm1691_vm7, %v5579_v19  ;;  %v6045_v45 = vpack.c.bf16 %v6014_v29, %v6013_v16  ;;  %v6269_v43 = vld [vmem:[#allocation3 + $0x1a] sm:$0xff]  ;;  %v6270_v7 = vld [vmem:[#allocation3 + $0x22] sm:$0xff] }
 0x580   : > { %6205 = vrot.lane.b32.xlu0 %v6173_v0, %s9830_s11  ;;  %v6301_v2 = vpack.c.bf16 %v6270_v7, %v6269_v43 }
 0x581   : > { %6077 = vrot.lane.b32.xlu1 %v6045_v45, %s9829_s29  ;;  %5742 = vst.msk [vmem:[#allocation5 + $0x20] sm:$0xff] %vm1691_vm7, %v6045_v45  ;;  %v6654_v42 = vld [vmem:[#allocation3 + $0x32] sm:$0xff]  ;;  %v6655_v23 = vld [vmem:[#allocation3 + $0x3a] sm:$0xff]  ;;  %v4387_v55 = vpop.permute.xlu1 %4386 }
 0x582   : > { %v4489_v52 = vpop.permute.xlu0 %4488  ;;  %v6399_v26 = vld [vmem:[#allocation3 + $0x38] sm:$0xff]  ;;  %v12310_v6 = vpack.c.bf16 %v6655_v23, %v6654_v42  ;;  %4419 = vst.msk [vmem:[#allocation5 + $0x1f0] sm:$0xff] %vm2477_vm0, %v4387_v55 }
 0x583   : > { %4534 = vst.msk [vmem:[#allocation5 + $0x50] sm:$0xff] %vm2607_vm1, %v4489_v52  ;;  %v6430_v39 = vpack.c.bf16 %v6399_v26, %v6398_v46  ;;  %v6527_v12 = vld [vmem:[#allocation3 + $0x39] sm:$0xff]  ;;  %v6529_v46 = vld [vmem:[#allocation3 + $0x51] sm:$0xff] }
 0x584   : > { %6702 = vst.msk [vmem:[#allocation5 + $0x8] sm:$0xff] %vm1691_vm7, %v12310_v6  ;;  %v6558_v22 = vpack.c.bf16 %v6527_v12, %v6526_v37 }
 0x585   : > { %6333 = vrot.lane.b32.xlu1 %v6301_v2, %s9831_s12  ;;  %6462 = vrot.lane.b32.xlu0 %v6430_v39, %s9832_s13  ;;  %5743 = vst.msk [vmem:[#allocation5 + $0x40] sm:$0xff] %vm1691_vm7, %v6430_v39  ;;  %v6656_v18 = vld [vmem:[#allocation3 + $0x4a] sm:$0xff]  ;;  %v5577_v62 = vpop.permute.xlu1 %5576 }
 0x586   : > { %v5583_v63 = vpop.permute.xlu0 %5582  ;;  %v12319_v40 = vpack.c.bf16 %v6657_v41, %v6656_v18  ;;  %5667 = vst.msk [vmem:[#allocation3 + $0x61] sm:$0xff] %vm1691_vm7, %v5577_v62  ;;  %v6400_v8 = vld [vmem:[#allocation3 + $0x48] sm:$0xff]  ;;  %v6401_v38 = vld [vmem:[#allocation3 + $0x50] sm:$0xff] }
 0x587   : > { %5670 = vst.msk [vmem:[#allocation3 + $0x81] sm:$0xff] %vm1691_vm7, %v5583_v63  ;;  %v12323_v20 = vpack.c.bf16 %v6401_v38, %v6400_v8  ;;  %v6659_v33 = vld [vmem:[#allocation3 + $0x6a] sm:$0xff] }
 0x588   : > { %6703 = vst.msk [vmem:[#allocation5 + $0x28] sm:$0xff] %vm1691_vm7, %v12319_v40  ;;  %v6528_v16 = vld [vmem:[#allocation3 + $0x49] sm:$0xff] }
 0x589   : > { %6590 = vrot.lane.b32.xlu1 %v6558_v22, %s9833_s14  ;;  %5823 = vrot.lane.b32.xlu0 %v6173_v0, %s9823_s18  ;;  %v4487_v49 = vpop.permute.xlu1 %4486  ;;  %5744 = vst.msk [vmem:[#allocation5 + $0x60] sm:$0xff] %vm1691_vm7, %v12323_v20  ;;  %v6559_v55 = vpack.c.bf16 %v6529_v46, %v6528_v16  ;;  %v14302_v41 = vld [vmem:[#allocation8_spill] sm:$0xff] }
 0x58a   : > { %v4493_v34 = vpop.permute.xlu0 %4492  ;;  %4533 = vst.msk [vmem:[#allocation5 + $0x30] sm:$0xff] %vm2607_vm1, %v4487_v49 }
 0x58b   : > { %4536 = vst.msk [vmem:[#allocation5 + $0x90] sm:$0xff] %vm2607_vm1, %v4493_v34  ;;  %v6719_v24 = vld [vmem:[#allocation5 + $0x8] sm:$0xff] }
 0x58c   : > { %9506 = vmatprep.mubr.msk.bf16.mxu1 %vm1691_vm7, %v6719_v24 }
 0x58d   : > { %5604 = vrot.lane.b32.xlu1 %v14300_v14, %s9832_s13  ;;  %v6658_v36 = vld [vmem:[#allocation3 + $0x62] sm:$0xff]  ;;  %5606 = vrot.lane.b32.xlu0 %v14301_v9, %s9832_s13  ;;  %v5581_v10 = vpop.permute.xlu1 %5580 }
 0x58e   : > { %v5587_v47 = vpop.permute.xlu0 %5586  ;;  %v6402_v53 = vld [vmem:[#allocation3 + $0x60] sm:$0xff]  ;;  %v12341_v32 = vpack.c.bf16 %v6659_v33, %v6658_v36  ;;  %5669 = vst.msk [vmem:[#allocation3 + $0x79] sm:$0xff] %vm1691_vm7, %v5581_v10  ;;  %v6403_v61 = vld [vmem:[#allocation3 + $0x68] sm:$0xff] }
 0x58f   : > { %5672 = vst.msk [vmem:[#allocation3 + $0x99] sm:$0xff] %vm1691_vm7, %v5587_v47  ;;  %v12345_v56 = vpack.c.bf16 %v6403_v61, %v6402_v53  ;;  %v6661_v29 = vld [vmem:[#allocation3 + $0x82] sm:$0xff] }
 0x590   : > { %6704 = vst.msk [vmem:[#allocation5 + $0x48] sm:$0xff] %vm1691_vm7, %v12341_v32 }
 0x591   : > { %5951 = vrot.lane.b32.xlu1 %v6301_v2, %s9827_s28  ;;  %6079 = vrot.lane.b32.xlu0 %v6430_v39, %s9829_s29  ;;  %v4491_v19 = vpop.permute.xlu1 %4490  ;;  %5745 = vst.msk [vmem:[#allocation5 + $0x80] sm:$0xff] %vm1691_vm7, %v12345_v56 }
 0x592   : > { %v4497_v11 = vpop.permute.xlu0 %4496  ;;  %4535 = vst.msk [vmem:[#allocation5 + $0x70] sm:$0xff] %vm2607_vm1, %v4491_v19 }
 0x593   : > { %4538 = vst.msk [vmem:[#allocation5 + $0xd0] sm:$0xff] %vm2607_vm1, %v4497_v11  ;;  %v6531_v11 = vld [vmem:[#allocation3 + $0x69] sm:$0xff] }
 0x595   : > { %6207 = vrot.lane.b32.xlu1 %v6558_v22, %s9830_s11  ;;  %v6660_v0 = vld [vmem:[#allocation3 + $0x7a] sm:$0xff]  ;;  %6335 = vrot.lane.b32.xlu0 %v12310_v6, %s9831_s12  ;;  %v5585_v45 = vpop.permute.xlu1 %5584 }
 0x596   : > { %v5591_v43 = vpop.permute.xlu0 %5590  ;;  %v12358_v7 = vpack.c.bf16 %v6661_v29, %v6660_v0  ;;  %5671 = vst.msk [vmem:[#allocation3 + $0x91] sm:$0xff] %vm1691_vm7, %v5585_v45  ;;  %v6404_v42 = vld [vmem:[#allocation3 + $0x78] sm:$0xff]  ;;  %v6405_v23 = vld [vmem:[#allocation3 + $0x80] sm:$0xff] }
 0x597   : > { %5674 = vst.msk [vmem:[#allocation3 + $0xb1] sm:$0xff] %vm1691_vm7, %v5591_v43  ;;  %v12362_v52 = vpack.c.bf16 %v6405_v23, %v6404_v42  ;;  %v6663_v39 = vld [vmem:[#allocation3 + $0x9a] sm:$0xff] }
 0x598   : > { %6705 = vst.msk [vmem:[#allocation5 + $0x68] sm:$0xff] %vm1691_vm7, %v12358_v7 }
 0x599   : > { %6464 = vrot.lane.b32.xlu1 %v12323_v20, %s9832_s13  ;;  %6592 = vrot.lane.b32.xlu0 %v6559_v55, %s9833_s14  ;;  %v4495_v26 = vpop.permute.xlu1 %4494  ;;  %5746 = vst.msk [vmem:[#allocation5 + $0xa0] sm:$0xff] %vm1691_vm7, %v12362_v52 }
 0x59a   : > { %v4501_v2 = vpop.permute.xlu0 %4500  ;;  %4537 = vst.msk [vmem:[#allocation5 + $0xb0] sm:$0xff] %vm2607_vm1, %v4495_v26 }
 0x59b   : > { %4540 = vst.msk [vmem:[#allocation5 + $0x110] sm:$0xff] %vm2607_vm1, %v4501_v2 }
 0x59d   : > { %5825 = vrot.lane.b32.xlu1 %v6558_v22, %s9823_s18  ;;  %v6662_v12 = vld [vmem:[#allocation3 + $0x92] sm:$0xff]  ;;  %5608 = vrot.lane.b32.xlu0 %v14302_v41, %s9832_s13  ;;  %v5589_v18 = vpop.permute.xlu1 %5588 }
 0x59e   : > { %v5595_v62 = vpop.permute.xlu0 %5594  ;;  %v12376_v63 = vpack.c.bf16 %v6663_v39, %v6662_v12  ;;  %5673 = vst.msk [vmem:[#allocation3 + $0xa9] sm:$0xff] %vm1691_vm7, %v5589_v18  ;;  %v5705_v37 = vld [vmem:[#allocation3 + $0x90] sm:$0xff]  ;;  %v5706_v8 = vld [vmem:[#allocation3 + $0x98] sm:$0xff] }
 0x59f   : > { %5676 = vst.msk [vmem:[#allocation3 + $0xc9] sm:$0xff] %vm1691_vm7, %v5595_v62  ;;  %v14303_v22 = vld [vmem:[#allocation9_spill] sm:$0xff]  ;;  %v5731_v38 = vpack.c.bf16 %v5706_v8, %v5705_v37  ;;  %v14304_v37 = vld [vmem:[#allocation28_spill] sm:$0xff] }
 0x5a0   : > { %6706 = vst.msk [vmem:[#allocation5 + $0x88] sm:$0xff] %vm1691_vm7, %v12376_v63  ;;  %v6665_v13 = vld [vmem:[#allocation3 + $0xb2] sm:$0xff] }
 0x5a1   : > { %5610 = vrot.lane.b32.xlu1 %v14303_v22, %s9832_s13  ;;  %5953 = vrot.lane.b32.xlu0 %v12310_v6, %s9827_s28  ;;  %v4499_v49 = vpop.permute.xlu1 %4498  ;;  %5747 = vst.msk [vmem:[#allocation5 + $0xc0] sm:$0xff] %vm1691_vm7, %v5731_v38  ;;  %v6530_v6 = vld [vmem:[#allocation3 + $0x61] sm:$0xff]  ;;  %v14305_v8 = vld [vmem:[#allocation29_spill] sm:$0xff] }
 0x5a2   : > { %v4505_v34 = vpop.permute.xlu0 %4504  ;;  %4539 = vst.msk [vmem:[#allocation5 + $0xf0] sm:$0xff] %vm2607_vm1, %v4499_v49  ;;  %v6560_v16 = vpack.c.bf16 %v6531_v11, %v6530_v6 }
 0x5a3   : > { %4542 = vst.msk [vmem:[#allocation5 + $0x150] sm:$0xff] %vm2607_vm1, %v4505_v34 }
 0x5a5   : > { %6081 = vrot.lane.b32.xlu1 %v12323_v20, %s9829_s29  ;;  %v6664_v24 = vld [vmem:[#allocation3 + $0xaa] sm:$0xff]  ;;  %6209 = vrot.lane.b32.xlu0 %v6559_v55, %s9830_s11  ;;  %v5593_v33 = vpop.permute.xlu1 %5592 }
 0x5a6   : > { %v5599_v36 = vpop.permute.xlu0 %5598  ;;  %v12392_v10 = vpack.c.bf16 %v6665_v13, %v6664_v24  ;;  %5675 = vst.msk [vmem:[#allocation3 + $0xc1] sm:$0xff] %vm1691_vm7, %v5593_v33  ;;  %v5707_v47 = vld [vmem:[#allocation3 + $0xa8] sm:$0xff]  ;;  %v5708_v53 = vld [vmem:[#allocation3 + $0xb0] sm:$0xff] }
 0x5a7   : > { %5678 = vst.msk [vmem:[#allocation3 + $0xe1] sm:$0xff] %vm1691_vm7, %v5599_v36  ;;  %v5732_v20 = vpack.c.bf16 %v5708_v53, %v5707_v47  ;;  %v6667_v45 = vld [vmem:[#allocation3 + $0xca] sm:$0xff] }
 0x5a8   : > { %6707 = vst.msk [vmem:[#allocation5 + $0xa8] sm:$0xff] %vm1691_vm7, %v12392_v10 }
 0x5a9   : > { %6337 = vrot.lane.b32.xlu1 %v12319_v40, %s9831_s12  ;;  %6466 = vrot.lane.b32.xlu0 %v12345_v56, %s9832_s13  ;;  %v4503_v61 = vpop.permute.xlu1 %4502  ;;  %5748 = vst.msk [vmem:[#allocation5 + $0xe0] sm:$0xff] %vm1691_vm7, %v5732_v20 }
 0x5aa   : > { %v4509_v19 = vpop.permute.xlu0 %4508  ;;  %4541 = vst.msk [vmem:[#allocation5 + $0x130] sm:$0xff] %vm2607_vm1, %v4503_v61 }
 0x5ab   : > { %4544 = vst.msk [vmem:[#allocation5 + $0x190] sm:$0xff] %vm2607_vm1, %v4509_v19  ;;  %v9591_v29 = vpop.f32.mrb[12].mxu1 }
 0x5ac   : > { %v9592_v0 = vpop.f32.mrb[13].mxu1 }
 0x5ad   : > { %6594 = vrot.lane.b32.xlu1 %v6560_v16, %s9833_s14  ;;  %v6666_v43 = vld [vmem:[#allocation3 + $0xc2] sm:$0xff]  ;;  %v12406_v46 = vadd.f32 %v9592_v0, %v9591_v29  ;;  %v9594_v42 = vpop.f32.mrb[14].mxu1  ;;  %5827 = vrot.lane.b32.xlu0 %v6559_v55, %s9823_s18  ;;  %v5597_v23 = vpop.permute.xlu1 %5596 }
 0x5ae   : > { %v12409_v26 = vpack.c.bf16 %v6667_v45, %v6666_v43  ;;  %5677 = vst.msk [vmem:[#allocation3 + $0xd9] sm:$0xff] %vm1691_vm7, %v5597_v23  ;;  %v9595_v2 = vpop.f32.mrb[15].mxu1  ;;  %v5601_v39 = vpop.permute.xlu0 %5600  ;;  %v5709_v18 = vld [vmem:[#allocation3 + $0xc0] sm:$0xff]  ;;  %v5710_v62 = vld [vmem:[#allocation3 + $0xc8] sm:$0xff] }
 0x5af   : > { %v12412_v12 = vadd.f32 %v9595_v2, %v9594_v42  ;;  %5679 = vst.msk [vmem:[#allocation3 + $0xf1] sm:$0xff] %vm1691_vm7, %v5601_v39  ;;  %v5733_v55 = vpack.c.bf16 %v5710_v62, %v5709_v18  ;;  %v6669_v49 = vld [vmem:[#allocation3 + $0xe2] sm:$0xff] }
 0x5b0   : > { %6708 = vst.msk [vmem:[#allocation5 + $0xc8] sm:$0xff] %vm1691_vm7, %v12409_v26  ;;  %v6533_v29 = vld [vmem:[#allocation3 + $0x81] sm:$0xff] }
 0x5b1   : > { %5612 = vrot.lane.b32.xlu1 %v14304_v37, %s9832_s13  ;;  %5614 = vrot.lane.b32.xlu0 %v14305_v8, %s9832_s13  ;;  %v4507_v38 = vpop.permute.xlu1 %4506  ;;  %5749 = vst.msk [vmem:[#allocation5 + $0x100] sm:$0xff] %vm1691_vm7, %v5733_v55  ;;  %v14306_v55 = vld [vmem:[#allocation23_spill] sm:$0xff] }
 0x5b2   : > { %4543 = vst.msk [vmem:[#allocation5 + $0x170] sm:$0xff] %vm2607_vm1, %v4507_v38  ;;  %v5950_v36 = vpop.permute.xlu0 %5949 }
 0x5b5   : > { %5955 = vrot.lane.b32.xlu1 %v12319_v40, %s9827_s28  ;;  %v6668_v34 = vld [vmem:[#allocation3 + $0xda] sm:$0xff]  ;;  %6083 = vrot.lane.b32.xlu0 %v12345_v56, %s9829_s29  ;;  %v5822_v13 = vpop.permute.xlu1 %5821 }
 0x5b6   : > { %v6412_v24 = vld [vmem:[#allocation3 + $0xd8] sm:$0xff]  ;;  %v12427_v33 = vpack.c.bf16 %v6669_v49, %v6668_v34  ;;  %5869 = vst.msk [vmem:[#allocation5] sm:$0xff] %vm2090_vm13, %v5822_v13  ;;  %v6413_v6 = vld [vmem:[#allocation3 + $0xe0] sm:$0xff]  ;;  %v9597_v47 = vpop.f32.mrb[16].mxu1  ;;  %v6414_v23 = vld [vmem:[#allocation3 + $0xf0] sm:$0xff] }
 0x5b7   : > { %5997 = vst.msk [vmem:[#allocation5] sm:$0xff] %vm2219_vm14, %v5950_v36  ;;  %v12431_v53 = vpack.c.bf16 %v6413_v6, %v6412_v24  ;;  %v9598_v40 = vpop.f32.mrb[17].mxu1  ;;  %v6532_v56 = vld [vmem:[#allocation3 + $0x79] sm:$0xff] }
 0x5b8   : > { %6709 = vst.msk [vmem:[#allocation5 + $0xe8] sm:$0xff] %vm1691_vm7, %v12427_v33  ;;  %v12436_v20 = vadd.f32 %v9598_v40, %v9597_v47  ;;  %v9600_v61 = vpop.f32.mrb[18].mxu1  ;;  %v6561_v45 = vpack.c.bf16 %v6533_v29, %v6532_v56  ;;  %v6406_v47 = vld [vmem:[#allocation3 + $0x90] sm:$0xff]  ;;  %v6407_v40 = vld [vmem:[#allocation3 + $0x98] sm:$0xff] }
 0x5b9   : > { %6211 = vrot.lane.b32.xlu1 %v6560_v16, %s9830_s11  ;;  %6339 = vrot.lane.b32.xlu0 %v12341_v32, %s9831_s12  ;;  %v5603_v19 = vpop.permute.xlu1 %5602  ;;  %5750 = vst.msk [vmem:[#allocation5 + $0x120] sm:$0xff] %vm1691_vm7, %v12431_v53  ;;  %v9601_v11 = vpop.f32.mrb[19].mxu1  ;;  %v6434_v29 = vpack.c.bf16 %v6407_v40, %v6406_v47 }
 0x5ba   : > { %5680 = vst.msk [vmem:[#allocation3 + $0xf9] sm:$0xff] %vm1691_vm7, %v5603_v19  ;;  %v12443_v0 = vadd.f32 %v9601_v11, %v9600_v61 }
 0x5bd   : > { %6468 = vrot.lane.b32.xlu1 %v12362_v52, %s9832_s13  ;;  %6596 = vrot.lane.b32.xlu0 %v6561_v45, %s9833_s14 }
 0x5be   : > { %v9603_v43 = vpop.f32.mrb[20].mxu1 }
 0x5bf   : > { %v9604_v42 = vpop.f32.mrb[21].mxu1 }
 0x5c0   : > { %v12449_v18 = vadd.f32 %v9604_v42, %v9603_v43  ;;  %v9606_v62 = vpop.f32.mrb[22].mxu1  ;;  %v6534_v43 = vld [vmem:[#allocation3 + $0x91] sm:$0xff] }
 0x5c1   : > { %5829 = vrot.lane.b32.xlu1 %v6560_v16, %s9823_s18  ;;  %v6670_v2 = vld [vmem:[#allocation3 + $0xf2] sm:$0xff]  ;;  %v6671_v39 = vld [vmem:[#allocation3 + $0xfa] sm:$0xff]  ;;  %5616 = vrot.lane.b32.xlu0 %v14306_v55, %s9832_s13  ;;  %v9607_v34 = vpop.f32.mrb[23].mxu1 }
 0x5c2   : > { %v6415_v38 = vld [vmem:[#allocation3 + $0xf8] sm:$0xff]  ;;  %v12453_v49 = vpack.c.bf16 %v6671_v39, %v6670_v2  ;;  %v12457_v24 = vadd.f32 %v9607_v34, %v9606_v62  ;;  %v14308_v34 = vld [vmem:[#allocation36_spill] sm:$0xff] }
 0x5c3   : > { %v12455_v13 = vpack.c.bf16 %v6415_v38, %v6414_v23  ;;  %v14307_v16 = vld [vmem:[#allocation25_spill] sm:$0xff] }
 0x5c4   : > { %6710 = vst.msk [vmem:[#allocation5 + $0x108] sm:$0xff] %vm1691_vm7, %v12453_v49  ;;  %v6543_v22 = vld [vmem:[#allocation3 + $0xf9] sm:$0xff] }
 0x5c5   : > { %5618 = vrot.lane.b32.xlu1 %v14307_v16, %s9832_s13  ;;  %5751 = vst.msk [vmem:[#allocation5 + $0x140] sm:$0xff] %vm1691_vm7, %v12455_v13  ;;  %5957 = vrot.lane.b32.xlu0 %v12341_v32, %s9827_s28  ;;  %v6535_v32 = vld [vmem:[#allocation3 + $0x99] sm:$0xff] }
 0x5c6   : > { %v9609_v36 = vpop.f32.mrb[24].mxu1  ;;  %v6562_v42 = vpack.c.bf16 %v6535_v32, %v6534_v43  ;;  %v6408_v43 = vld [vmem:[#allocation3 + $0xa8] sm:$0xff]  ;;  %v6409_v32 = vld [vmem:[#allocation3 + $0xb0] sm:$0xff] }
 0x5c7   : > { %v9610_v6 = vpop.f32.mrb[25].mxu1 }
 0x5c8   : > { %v12469_v56 = vadd.f32 %v9610_v6, %v9609_v36  ;;  %v9612_v61 = vpop.f32.mrb[26].mxu1  ;;  %v14309_v36 = vld [vmem:[#allocation37_spill] sm:$0xff] }
 0x5c9   : > { %6085 = vrot.lane.b32.xlu1 %v12362_v52, %s9829_s29  ;;  %6213 = vrot.lane.b32.xlu0 %v6561_v45, %s9830_s11  ;;  %v9613_v19 = vpop.f32.mrb[27].mxu1 }
 0x5ca   : > { %v12472_v11 = vadd.f32 %v9613_v19, %v9612_v61 }
 0x5cd   : > { %6341 = vrot.lane.b32.xlu1 %v12358_v7, %s9831_s12  ;;  %6470 = vrot.lane.b32.xlu0 %v6434_v29, %s9832_s13 }
 0x5ce   : > { %v9615_v52 = vpop.f32.mrb[28].mxu1 }
 0x5cf   : > { %v9616_v23 = vpop.f32.mrb[29].mxu1 }
 0x5d0   : > { %v12478_v2 = vadd.f32 %v9616_v23, %v9615_v52  ;;  %v9618_v39 = vpop.f32.mrb[30].mxu1  ;;  %v6536_v52 = vld [vmem:[#allocation3 + $0xa9] sm:$0xff]  ;;  %v6537_v23 = vld [vmem:[#allocation3 + $0xb1] sm:$0xff] }
 0x5d1   : > { %6598 = vrot.lane.b32.xlu1 %v6562_v42, %s9833_s14  ;;  %5831 = vrot.lane.b32.xlu0 %v6561_v45, %s9823_s18  ;;  %v9619_v62 = vpop.f32.mrb[31].mxu1 }
 0x5d2   : > { %v12481_v38 = vadd.f32 %v9619_v62, %v9618_v39  ;;  %v6435_v39 = vpack.c.bf16 %v6409_v32, %v6408_v43  ;;  %v14311_v32 = vld [vmem:[#allocation33_spill] sm:$0xff] }
 0x5d5   : > { %5620 = vrot.lane.b32.xlu1 %v14308_v34, %s9832_s13  ;;  %5622 = vrot.lane.b32.xlu0 %v14309_v36, %s9832_s13  ;;  %v6538_v34 = vld [vmem:[#allocation3 + $0xc1] sm:$0xff] }
 0x5d6   : > { %v9621_v6 = vpop.f32.mrb[32].mxu1 }
 0x5d7   : > { %v9622_v47 = vpop.f32.mrb[33].mxu1 }
 0x5d8   : > { %v12489_v40 = vadd.f32 %v9622_v47, %v9621_v6  ;;  %v9624_v61 = vpop.f32.mrb[34].mxu1 }
 0x5d9   : > { %5959 = vrot.lane.b32.xlu1 %v12358_v7, %s9827_s28  ;;  %6087 = vrot.lane.b32.xlu0 %v6434_v29, %s9829_s29  ;;  %v9625_v45 = vpop.f32.mrb[35].mxu1  ;;  %v6563_v7 = vpack.c.bf16 %v6537_v23, %v6536_v52 }
 0x5da   : > { %v12492_v19 = vadd.f32 %v9625_v45, %v9624_v61 }
 0x5dd   : > { %6215 = vrot.lane.b32.xlu1 %v6562_v42, %s9830_s11  ;;  %6343 = vrot.lane.b32.xlu0 %v12376_v63, %s9831_s12 }
 0x5de   : > { %v9627_v62 = vpop.f32.mrb[36].mxu1 }
 0x5df   : > { %v9628_v6 = vpop.f32.mrb[37].mxu1 }
 0x5e0   : > { %v12498_v47 = vadd.f32 %v9628_v6, %v9627_v62  ;;  %v9630_v29 = vpop.f32.mrb[38].mxu1 }
 0x5e1   : > { %6472 = vrot.lane.b32.xlu1 %v6435_v39, %s9832_s13  ;;  %6600 = vrot.lane.b32.xlu0 %v6563_v7, %s9833_s14  ;;  %v9631_v61 = vpop.f32.mrb[39].mxu1 }
 0x5e2   : > { %v12501_v45 = vadd.f32 %v9631_v61, %v9630_v29  ;;  %v6411_v29 = vld [vmem:[#allocation3 + $0xc8] sm:$0xff] }
 0x5e5   : > { %5833 = vrot.lane.b32.xlu1 %v6562_v42, %s9823_s18  ;;  %5624 = vrot.lane.b32.xlu0 %v14310_v27, %s9832_s13  ;;  %v6410_v42 = vld [vmem:[#allocation3 + $0xc0] sm:$0xff] }
 0x5e6   : > { %v9633_v36 = vpop.f32.mrb[40].mxu1  ;;  %v6436_v27 = vpack.c.bf16 %v6411_v29, %v6410_v42 }
 0x5e7   : > { %v9634_v43 = vpop.f32.mrb[41].mxu1 }
 0x5e8   : > { %v12508_v52 = vadd.f32 %v9634_v43, %v9633_v36  ;;  %v9636_v23 = vpop.f32.mrb[42].mxu1 }
 0x5e9   : > { %5626 = vrot.lane.b32.xlu1 %v14311_v32, %s9832_s13  ;;  %5961 = vrot.lane.b32.xlu0 %v12376_v63, %s9827_s28  ;;  %v9637_v62 = vpop.f32.mrb[43].mxu1  ;;  %v6539_v63 = vld [vmem:[#allocation3 + $0xc9] sm:$0xff] }
 0x5ea   : > { %v12512_v6 = vadd.f32 %v9637_v62, %v9636_v23 }
 0x5ed   : > { %6089 = vrot.lane.b32.xlu1 %v6435_v39, %s9829_s29  ;;  %6217 = vrot.lane.b32.xlu0 %v6563_v7, %s9830_s11  ;;  %v6564_v39 = vpack.c.bf16 %v6539_v63, %v6538_v34 }
 0x5ee   : > { %v9639_v61 = vpop.f32.mrb[44].mxu1 }
 0x5ef   : > { %v9640_v16 = vpop.f32.mrb[45].mxu1 }
 0x5f0   : > { %v12518_v36 = vadd.f32 %v9640_v16, %v9639_v61  ;;  %v9642_v43 = vpop.f32.mrb[46].mxu1 }
 0x5f1   : > { %6345 = vrot.lane.b32.xlu1 %v12392_v10, %s9831_s12  ;;  %6474 = vrot.lane.b32.xlu0 %v6436_v27, %s9832_s13  ;;  %v9643_v23 = vpop.f32.mrb[47].mxu1 }
 0x5f2   : > { %v12521_v32 = vadd.f32 %v9643_v23, %v9642_v43  ;;  %v6206_v55 = vpop.permute.xlu0 %6205 }
 0x5f3   : > { %v6078_v62 = vpop.permute.xlu1 %6077 }
 0x5f4   : > { %6125 = vst.msk [vmem:[#allocation5] sm:$0xff] %vm2348_vm15, %v6078_v62  ;;  %v6540_v62 = vld [vmem:[#allocation3 + $0xd9] sm:$0xff] }
 0x5f5   : > { %6253 = vst.msk [vmem:[#allocation5] sm:$0xff] %vm2477_vm0, %v6206_v55  ;;  %6602 = vrot.lane.b32.xlu1 %v6564_v39, %s9833_s14  ;;  %5835 = vrot.lane.b32.xlu0 %v6563_v7, %s9823_s18 }
 0x5f6   : > { %v9645_v42 = vpop.f32.mrb[48].mxu1 }
 0x5f7   : > { %v6334_v16 = vpop.permute.xlu1 %6333  ;;  %v6463_v29 = vpop.permute.xlu0 %6462 }
 0x5f8   : > { %6381 = vst.msk [vmem:[#allocation5] sm:$0xff] %vm2607_vm1, %v6334_v16  ;;  %v9646_v61 = vpop.f32.mrb[49].mxu1  ;;  %v6541_v16 = vld [vmem:[#allocation3 + $0xe1] sm:$0xff] }
 0x5f9   : > { %6510 = vst.msk [vmem:[#allocation5] sm:$0xff] %vm2736_vm2, %v6463_v29  ;;  %5963 = vrot.lane.b32.xlu1 %v12392_v10, %s9827_s28  ;;  %v12531_v34 = vadd.f32 %v9646_v61, %v9645_v42  ;;  %v9648_v43 = vpop.f32.mrb[50].mxu1  ;;  %6091 = vrot.lane.b32.xlu0 %v6436_v27, %s9829_s29  ;;  %v6565_v29 = vpack.c.bf16 %v6541_v16, %v6540_v62  ;;  %v6721_v62 = vld [vmem:[#allocation5 + $0x28] sm:$0xff] }
 0x5fa   : > { %v9649_v55 = vpop.f32.mrb[51].mxu1 }
 0x5fb   : > { %v6591_v63 = vpop.permute.xlu1 %6590  ;;  %v12534_v23 = vadd.f32 %v9649_v55, %v9648_v43  ;;  %v5824_v7 = vpop.permute.xlu0 %5823 }
 0x5fc   : > { %6638 = vst.msk [vmem:[#allocation5] sm:$0xff] %vm2865_vm3, %v6591_v63 }
 0x5fd   : > { %5870 = vst.msk [vmem:[#allocation5 + $0x20] sm:$0xff] %vm2090_vm13, %v5824_v7  ;;  %6219 = vrot.lane.b32.xlu1 %v6564_v39, %s9830_s11  ;;  %6347 = vrot.lane.b32.xlu0 %v12409_v26, %s9831_s12 }
 0x5fe   : > { %v9651_v42 = vpop.f32.mrb[52].mxu1 }
 0x5ff   : > { %v5605_v10 = vpop.permute.xlu1 %5604  ;;  %v5607_v27 = vpop.permute.xlu0 %5606 }
 0x600   : > { %5681 = vst.msk [vmem:[#allocation3 + $0x109] sm:$0xff] %vm1691_vm7, %v5605_v10  ;;  %5682 = vst.msk [vmem:[#allocation3 + $0x111] sm:$0xff] %vm1691_vm7, %v5607_v27  ;;  %v9652_v61 = vpop.f32.mrb[53].mxu1 }
 0x601   : > { %6476 = vrot.lane.b32.xlu1 %v12431_v53, %s9832_s13  ;;  %v12545_v43 = vadd.f32 %v9652_v61, %v9651_v42  ;;  %v9654_v55 = vpop.f32.mrb[54].mxu1  ;;  %6604 = vrot.lane.b32.xlu0 %v6565_v29, %s9833_s14 }
 0x602   : > { %v9655_v63 = vpop.f32.mrb[55].mxu1 }
 0x603   : > { %v5952_v7 = vpop.permute.xlu1 %5951  ;;  %v6718_v8 = vld [vmem:[#allocation5] sm:$0xff]  ;;  %v12548_v37 = vadd.f32 %v9655_v63, %v9654_v55  ;;  %v6080_v10 = vpop.permute.xlu0 %6079 }
 0x604   : > { %5998 = vst.msk [vmem:[#allocation5 + $0x20] sm:$0xff] %vm2219_vm14, %v5952_v7  ;;  %6910 = vmatmul.mubr.bf16.vlgmr.msra.gmra.mrb[76].mxu1 %v6718_v8 }
 0x605   : > { %6126 = vst.msk [vmem:[#allocation5 + $0x20] sm:$0xff] %vm2348_vm15, %v6080_v10  ;;  %5837 = vrot.lane.b32.xlu1 %v6564_v39, %s9823_s18  ;;  %9507 = vmatprep.mubr.msk.bf16.mxu1 %vm1691_vm7, %v6721_v62 }
 0x606   : > { %5965 = vrot.lane.b32.xlu0 %v12409_v26, %s9827_s28  ;;  %v9657_v55 = vpop.f32.mrb[56].mxu1 }
 0x607   : > { %v6208_v16 = vpop.permute.xlu1 %6207  ;;  %v6416_v42 = vld [vmem:[#allocation3 + $0x108] sm:$0xff]  ;;  %v6673_v61 = vld [vmem:[#allocation3 + $0x112] sm:$0xff]  ;;  %v6336_v63 = vpop.permute.xlu0 %6335 }
 0x608   : > { %v6672_v27 = vld [vmem:[#allocation3 + $0x10a] sm:$0xff]  ;;  %6254 = vst.msk [vmem:[#allocation5 + $0x20] sm:$0xff] %vm2477_vm0, %v6208_v16  ;;  %v9658_v8 = vpop.f32.mrb[57].mxu1 }
 0x609   : > { %v12557_v7 = vpack.c.bf16 %v6673_v61, %v6672_v27  ;;  %6382 = vst.msk [vmem:[#allocation5 + $0x20] sm:$0xff] %vm2607_vm1, %v6336_v63  ;;  %6093 = vrot.lane.b32.xlu1 %v12431_v53, %s9829_s29  ;;  %v6417_v39 = vld [vmem:[#allocation3 + $0x110] sm:$0xff]  ;;  %v12562_v10 = vadd.f32 %v9658_v8, %v9657_v55  ;;  %v9660_v26 = vpop.f32.mrb[58].mxu1 }
 0x60a   : > { %6221 = vrot.lane.b32.xlu0 %v6565_v29, %s9830_s11  ;;  %v12565_v62 = vpack.c.bf16 %v6417_v39, %v6416_v42  ;;  %v9661_v16 = vpop.f32.mrb[59].mxu1  ;;  %v6542_v53 = vld [vmem:[#allocation3 + $0xf1] sm:$0xff] }
 0x60b   : > { %6711 = vst.msk [vmem:[#allocation5 + $0x128] sm:$0xff] %vm1691_vm7, %v12557_v7  ;;  %v6465_v27 = vpop.permute.xlu1 %6464  ;;  %v12569_v61 = vadd.f32 %v9661_v16, %v9660_v26  ;;  %v6593_v63 = vpop.permute.xlu0 %6592  ;;  %v6566_v55 = vpack.c.bf16 %v6543_v22, %v6542_v53 }
 0x60c   : > { %6511 = vst.msk [vmem:[#allocation5 + $0x20] sm:$0xff] %vm2736_vm2, %v6465_v27 }
 0x60d   : > { %5752 = vst.msk [vmem:[#allocation5 + $0x160] sm:$0xff] %vm1691_vm7, %v12565_v62  ;;  %6349 = vrot.lane.b32.xlu1 %v12427_v33, %s9831_s12 }
 0x60e   : > { %6639 = vst.msk [vmem:[#allocation5 + $0x20] sm:$0xff] %vm2865_vm3, %v6593_v63  ;;  %6478 = vrot.lane.b32.xlu0 %v12455_v13, %s9832_s13  ;;  %v9663_v8 = vpop.f32.mrb[60].mxu1 }
 0x60f   : > { %v5826_v42 = vpop.permute.xlu1 %5825  ;;  %v5609_v39 = vpop.permute.xlu0 %5608 }
 0x610   : > { %5871 = vst.msk [vmem:[#allocation5 + $0x40] sm:$0xff] %vm2090_vm13, %v5826_v42  ;;  %v9664_v26 = vpop.f32.mrb[61].mxu1  ;;  %v6723_v42 = vld [vmem:[#allocation5 + $0x48] sm:$0xff] }
 0x611   : > { %5683 = vst.msk [vmem:[#allocation3 + $0x121] sm:$0xff] %vm1691_vm7, %v5609_v39  ;;  %6606 = vrot.lane.b32.xlu1 %v6566_v55, %s9833_s14  ;;  %v12582_v16 = vadd.f32 %v9664_v26, %v9663_v8  ;;  %v9666_v27 = vpop.f32.mrb[62].mxu1  ;;  %v6544_v26 = vld [vmem:[#allocation3 + $0x109] sm:$0xff] }
 0x612   : > { %5839 = vrot.lane.b32.xlu0 %v6565_v29, %s9823_s18  ;;  %v9667_v63 = vpop.f32.mrb[63].mxu1 }
 0x613   : > { %v5611_v41 = vpop.permute.xlu1 %5610  ;;  %v12585_v9 = vadd.f32 %v9667_v63, %v9666_v27  ;;  %v5954_v22 = vpop.permute.xlu0 %5953  ;;  %v6545_v27 = vld [vmem:[#allocation3 + $0x111] sm:$0xff] }
 0x614   : > { %5684 = vst.msk [vmem:[#allocation3 + $0x129] sm:$0xff] %vm1691_vm7, %v5611_v41  ;;  %v6567_v25 = vpack.c.bf16 %v6545_v27, %v6544_v26 }
 0x615   : > { %v6720_v53 = vld [vmem:[#allocation5 + $0x20] sm:$0xff]  ;;  %5999 = vst.msk [vmem:[#allocation5 + $0x40] sm:$0xff] %vm2219_vm14, %v5954_v22  ;;  %5967 = vrot.lane.b32.xlu1 %v12427_v33, %s9827_s28 }
 0x616   : > { %6918 = vmatmul.mubr.bf16.gmra.mrb[80].mxu1 %v6720_v53  ;;  %6095 = vrot.lane.b32.xlu0 %v12455_v13, %s9829_s29  ;;  %v9669_v8 = vpop.f32.mrb[64].mxu1 }
 0x617   : > { %9508 = vmatprep.mubr.msk.bf16.mxu1 %vm1691_vm7, %v6723_v42  ;;  %v6082_v29 = vpop.permute.xlu1 %6081  ;;  %v6210_v39 = vpop.permute.xlu0 %6209 }
 0x618   : > { %6127 = vst.msk [vmem:[#allocation5 + $0x40] sm:$0xff] %vm2348_vm15, %v6082_v29  ;;  %v9670_v41 = vpop.f32.mrb[65].mxu1  ;;  %v6418_v13 = vld [vmem:[#allocation3 + $0x120] sm:$0xff] }
 0x619   : > { %6255 = vst.msk [vmem:[#allocation5 + $0x40] sm:$0xff] %vm2477_vm0, %v6210_v39  ;;  %6223 = vrot.lane.b32.xlu1 %v6566_v55, %s9830_s11  ;;  %v12597_v33 = vadd.f32 %v9670_v41, %v9669_v8  ;;  %v9672_v63 = vpop.f32.mrb[66].mxu1 }
 0x61a   : > { %6351 = vrot.lane.b32.xlu0 %v12453_v49, %s9831_s12  ;;  %v9673_v42 = vpop.f32.mrb[67].mxu1 }
 0x61b   : > { %v6674_v22 = vld [vmem:[#allocation3 + $0x122] sm:$0xff]  ;;  %v6675_v53 = vld [vmem:[#allocation3 + $0x12a] sm:$0xff]  ;;  %v6338_v14 = vpop.permute.xlu1 %6337  ;;  %v12603_v39 = vadd.f32 %v9673_v42, %v9672_v63  ;;  %v6467_v35 = vpop.permute.xlu0 %6466 }
 0x61c   : > { %v6419_v29 = vld [vmem:[#allocation3 + $0x128] sm:$0xff]  ;;  %v12601_v51 = vpack.c.bf16 %v6675_v53, %v6674_v22  ;;  %6383 = vst.msk [vmem:[#allocation5 + $0x40] sm:$0xff] %vm2607_vm1, %v6338_v14 }
 0x61d   : > { %v6440_v8 = vpack.c.bf16 %v6419_v29, %v6418_v13  ;;  %6512 = vst.msk [vmem:[#allocation5 + $0x40] sm:$0xff] %vm2736_vm2, %v6467_v35  ;;  %6480 = vrot.lane.b32.xlu1 %v12565_v62, %s9832_s13 }
 0x61e   : > { %6712 = vst.msk [vmem:[#allocation5 + $0x148] sm:$0xff] %vm1691_vm7, %v12601_v51  ;;  %6608 = vrot.lane.b32.xlu0 %v6567_v25, %s9833_s14  ;;  %v9675_v63 = vpop.f32.mrb[68].mxu1 }
 0x61f   : > { %5753 = vst.msk [vmem:[#allocation5 + $0x180] sm:$0xff] %vm1691_vm7, %v6440_v8  ;;  %v6595_v41 = vpop.permute.xlu1 %6594  ;;  %v5828_v14 = vpop.permute.xlu0 %5827 }
 0x620   : > { %6640 = vst.msk [vmem:[#allocation5 + $0x40] sm:$0xff] %vm2865_vm3, %v6595_v41  ;;  %v9676_v26 = vpop.f32.mrb[69].mxu1 }
 0x621   : > { %5872 = vst.msk [vmem:[#allocation5 + $0x60] sm:$0xff] %vm2090_vm13, %v5828_v14  ;;  %5841 = vrot.lane.b32.xlu1 %v6566_v55, %s9823_s18  ;;  %v12616_v35 = vadd.f32 %v9676_v26, %v9675_v63  ;;  %v9678_v27 = vpop.f32.mrb[70].mxu1  ;;  %v6725_v63 = vld [vmem:[#allocation5 + $0x68] sm:$0xff] }
 0x622   : > { %5969 = vrot.lane.b32.xlu0 %v12453_v49, %s9827_s28  ;;  %v9679_v13 = vpop.f32.mrb[71].mxu1  ;;  %v6547_v14 = vld [vmem:[#allocation3 + $0x129] sm:$0xff] }
 0x623   : > { %v5613_v22 = vpop.permute.xlu1 %5612  ;;  %v12620_v53 = vadd.f32 %v9679_v13, %v9678_v27  ;;  %v5615_v42 = vpop.permute.xlu0 %5614  ;;  %v6546_v13 = vld [vmem:[#allocation3 + $0x121] sm:$0xff] }
 0x624   : > { %5685 = vst.msk [vmem:[#allocation3 + $0x139] sm:$0xff] %vm1691_vm7, %v5613_v22  ;;  %5686 = vst.msk [vmem:[#allocation3 + $0x141] sm:$0xff] %vm1691_vm7, %v5615_v42 }
 0x625   : > { %6097 = vrot.lane.b32.xlu1 %v12565_v62, %s9829_s29 }
 0x626   : > { %6225 = vrot.lane.b32.xlu0 %v6567_v25, %s9830_s11  ;;  %v9681_v41 = vpop.f32.mrb[72].mxu1 }
 0x627   : > { %v5956_v55 = vpop.permute.xlu1 %5955  ;;  %v6722_v29 = vld [vmem:[#allocation5 + $0x40] sm:$0xff]  ;;  %v6084_v49 = vpop.permute.xlu0 %6083 }
 0x628   : > { %6000 = vst.msk [vmem:[#allocation5 + $0x60] sm:$0xff] %vm2219_vm14, %v5956_v55  ;;  %6926 = vmatmul.mubr.bf16.gmra.mrb[84].mxu1 %v6722_v29  ;;  %v9682_v26 = vpop.f32.mrb[73].mxu1  ;;  %v6568_v55 = vpack.c.bf16 %v6547_v14, %v6546_v13 }
 0x629   : > { %6128 = vst.msk [vmem:[#allocation5 + $0x60] sm:$0xff] %vm2348_vm15, %v6084_v49  ;;  %6353 = vrot.lane.b32.xlu1 %v12557_v7, %s9831_s12  ;;  %9509 = vmatprep.mubr.msk.bf16.mxu1 %vm1691_vm7, %v6725_v63  ;;  %v12632_v62 = vadd.f32 %v9682_v26, %v9681_v41  ;;  %v9684_v27 = vpop.f32.mrb[74].mxu1 }
 0x62a   : > { %6482 = vrot.lane.b32.xlu0 %v6440_v8, %s9832_s13  ;;  %v9685_v22 = vpop.f32.mrb[75].mxu1 }
 0x62b   : > { %v6212_v42 = vpop.permute.xlu1 %6211  ;;  %v6420_v29 = vld [vmem:[#allocation3 + $0x138] sm:$0xff]  ;;  %v6677_v28 = vld [vmem:[#allocation3 + $0x142] sm:$0xff]  ;;  %v12635_v15 = vadd.f32 %v9685_v22, %v9684_v27  ;;  %v6340_v49 = vpop.permute.xlu0 %6339 }
 0x62c   : > { %v6676_v58 = vld [vmem:[#allocation3 + $0x13a] sm:$0xff]  ;;  %6256 = vst.msk [vmem:[#allocation5 + $0x60] sm:$0xff] %vm2477_vm0, %v6212_v42 }
 0x62d   : > { %v12638_v3 = vpack.c.bf16 %v6677_v28, %v6676_v58  ;;  %6384 = vst.msk [vmem:[#allocation5 + $0x60] sm:$0xff] %vm2607_vm1, %v6340_v49  ;;  %6610 = vrot.lane.b32.xlu1 %v6568_v55, %s9833_s14  ;;  %v6421_v41 = vld [vmem:[#allocation3 + $0x140] sm:$0xff] }
 0x62e   : > { %5843 = vrot.lane.b32.xlu0 %v6567_v25, %s9823_s18  ;;  %v6441_v63 = vpack.c.bf16 %v6421_v41, %v6420_v29  ;;  %v6548_v58 = vld [vmem:[#allocation3 + $0x139] sm:$0xff]  ;;  %v6549_v27 = vld [vmem:[#allocation3 + $0x141] sm:$0xff] }
 0x62f   : > { %6713 = vst.msk [vmem:[#allocation5 + $0x168] sm:$0xff] %vm1691_vm7, %v12638_v3  ;;  %v6469_v14 = vpop.permute.xlu1 %6468  ;;  %v6597_v26 = vpop.permute.xlu0 %6596 }
 0x630   : > { %6513 = vst.msk [vmem:[#allocation5 + $0x60] sm:$0xff] %vm2736_vm2, %v6469_v14 }
 0x631   : > { %5754 = vst.msk [vmem:[#allocation5 + $0x1a0] sm:$0xff] %vm1691_vm7, %v6441_v63  ;;  %5971 = vrot.lane.b32.xlu1 %v12557_v7, %s9827_s28  ;;  %v6569_v7 = vpack.c.bf16 %v6549_v27, %v6548_v58 }
 0x632   : > { %6641 = vst.msk [vmem:[#allocation5 + $0x60] sm:$0xff] %vm2865_vm3, %v6597_v26  ;;  %6099 = vrot.lane.b32.xlu0 %v6440_v8, %s9829_s29  ;;  %v6727_v8 = vld [vmem:[#allocation5 + $0x88] sm:$0xff] }
 0x633   : > { %v5830_v28 = vpop.permute.xlu1 %5829  ;;  %v5617_v25 = vpop.permute.xlu0 %5616 }
 0x634   : > { %5873 = vst.msk [vmem:[#allocation5 + $0x80] sm:$0xff] %vm2090_vm13, %v5830_v28 }
 0x635   : > { %5687 = vst.msk [vmem:[#allocation3 + $0x151] sm:$0xff] %vm1691_vm7, %v5617_v25  ;;  %6227 = vrot.lane.b32.xlu1 %v6568_v55, %s9830_s11 }
 0x636   : > { %6355 = vrot.lane.b32.xlu0 %v12601_v51, %s9831_s12 }
 0x637   : > { %v5619_v13 = vpop.permute.xlu1 %5618  ;;  %v5958_v22 = vpop.permute.xlu0 %5957 }
 0x638   : > { %5688 = vst.msk [vmem:[#allocation3 + $0x159] sm:$0xff] %vm1691_vm7, %v5619_v13 }
 0x639   : > { %v6724_v42 = vld [vmem:[#allocation5 + $0x60] sm:$0xff]  ;;  %6001 = vst.msk [vmem:[#allocation5 + $0x80] sm:$0xff] %vm2219_vm14, %v5958_v22  ;;  %6484 = vrot.lane.b32.xlu1 %v6441_v63, %s9832_s13 }
 0x63a   : > { %6934 = vmatmul.mubr.bf16.gmra.mrb[88].mxu1 %v6724_v42  ;;  %6612 = vrot.lane.b32.xlu0 %v6569_v7, %s9833_s14 }
 0x63b   : > { %9510 = vmatprep.mubr.msk.bf16.mxu1 %vm1691_vm7, %v6727_v8  ;;  %v6086_v29 = vpop.permute.xlu1 %6085  ;;  %v6214_v49 = vpop.permute.xlu0 %6213 }
 0x63c   : > { %6129 = vst.msk [vmem:[#allocation5 + $0x80] sm:$0xff] %vm2348_vm15, %v6086_v29  ;;  %v6422_v41 = vld [vmem:[#allocation3 + $0x150] sm:$0xff] }
 0x63d   : > { %6257 = vst.msk [vmem:[#allocation5 + $0x80] sm:$0xff] %vm2477_vm0, %v6214_v49  ;;  %5845 = vrot.lane.b32.xlu1 %v6568_v55, %s9823_s18 }
 0x63e   : > { %5973 = vrot.lane.b32.xlu0 %v12601_v51, %s9827_s28 }
 0x63f   : > { %v6678_v14 = vld [vmem:[#allocation3 + $0x152] sm:$0xff]  ;;  %v6679_v26 = vld [vmem:[#allocation3 + $0x15a] sm:$0xff]  ;;  %v6342_v28 = vpop.permute.xlu1 %6341  ;;  %v6471_v27 = vpop.permute.xlu0 %6470 }
 0x640   : > { %v6423_v25 = vld [vmem:[#allocation3 + $0x158] sm:$0xff]  ;;  %v12666_v58 = vpack.c.bf16 %v6679_v26, %v6678_v14  ;;  %6385 = vst.msk [vmem:[#allocation5 + $0x80] sm:$0xff] %vm2607_vm1, %v6342_v28  ;;  %v6729_v26 = vld [vmem:[#allocation5 + $0xa8] sm:$0xff] }
 0x641   : > { %v6442_v13 = vpack.c.bf16 %v6423_v25, %v6422_v41  ;;  %6514 = vst.msk [vmem:[#allocation5 + $0x80] sm:$0xff] %vm2736_vm2, %v6471_v27  ;;  %6101 = vrot.lane.b32.xlu1 %v6441_v63, %s9829_s29  ;;  %v6551_v22 = vld [vmem:[#allocation3 + $0x159] sm:$0xff]  ;;  %v6550_v63 = vld [vmem:[#allocation3 + $0x151] sm:$0xff] }
 0x642   : > { %6714 = vst.msk [vmem:[#allocation5 + $0x188] sm:$0xff] %vm1691_vm7, %v12666_v58  ;;  %6229 = vrot.lane.b32.xlu0 %v6569_v7, %s9830_s11  ;;  %v6570_v8 = vpack.c.bf16 %v6551_v22, %v6550_v63 }
 0x643   : > { %5755 = vst.msk [vmem:[#allocation5 + $0x1c0] sm:$0xff] %vm1691_vm7, %v6442_v13  ;;  %v6599_v51 = vpop.permute.xlu1 %6598  ;;  %v5832_v55 = vpop.permute.xlu0 %5831 }
 0x644   : > { %6642 = vst.msk [vmem:[#allocation5 + $0x80] sm:$0xff] %vm2865_vm3, %v6599_v51 }
 0x645   : > { %5874 = vst.msk [vmem:[#allocation5 + $0xa0] sm:$0xff] %vm2090_vm13, %v5832_v55  ;;  %6357 = vrot.lane.b32.xlu1 %v12638_v3, %s9831_s12 }
 0x646   : > { %6486 = vrot.lane.b32.xlu0 %v6442_v13, %s9832_s13 }
 0x647   : > { %v5621_v42 = vpop.permute.xlu1 %5620  ;;  %v5623_v29 = vpop.permute.xlu0 %5622 }
 0x648   : > { %5689 = vst.msk [vmem:[#allocation3 + $0x169] sm:$0xff] %vm1691_vm7, %v5621_v42  ;;  %5690 = vst.msk [vmem:[#allocation3 + $0x171] sm:$0xff] %vm1691_vm7, %v5623_v29 }
 0x649   : > { %6614 = vrot.lane.b32.xlu1 %v6570_v8, %s9833_s14 }
 0x64a   : > { %5847 = vrot.lane.b32.xlu0 %v6569_v7, %s9823_s18 }
 0x64b   : > { %v5960_v49 = vpop.permute.xlu1 %5959  ;;  %v6726_v41 = vld [vmem:[#allocation5 + $0x80] sm:$0xff]  ;;  %v6088_v14 = vpop.permute.xlu0 %6087 }
 0x64c   : > { %6002 = vst.msk [vmem:[#allocation5 + $0xa0] sm:$0xff] %vm2219_vm14, %v5960_v49  ;;  %6942 = vmatmul.mubr.bf16.gmra.mrb[92].mxu1 %v6726_v41 }
 0x64d   : > { %6130 = vst.msk [vmem:[#allocation5 + $0xa0] sm:$0xff] %vm2348_vm15, %v6088_v14  ;;  %5975 = vrot.lane.b32.xlu1 %v12638_v3, %s9827_s28  ;;  %9511 = vmatprep.mubr.msk.bf16.mxu1 %vm1691_vm7, %v6729_v26  ;;  %v14312_v14 = vmov 0   ;;  %v9789_v26 = vld [vmem:[%s14088_s3 + $0x88] sm:$0xff]  }
 0x64e   : > { %6103 = vrot.lane.b32.xlu0 %v6442_v13, %s9829_s29  ;;  %v9788_v13 = vld [vmem:[%s14088_s3 + $0x80] sm:$0xff]  }
 0x64f   : > { %v6216_v28 = vpop.permute.xlu1 %6215  ;;  %v6424_v25 = vld [vmem:[#allocation3 + $0x168] sm:$0xff]  ;;  %v6681_v7 = vld [vmem:[#allocation3 + $0x172] sm:$0xff]  ;;  %v6344_v51 = vpop.permute.xlu0 %6343  ;;  %5349 = vmatpush1.bf16.msra.mxu0 %v9788_v13 }
 0x650   : > { %v6680_v27 = vld [vmem:[#allocation3 + $0x16a] sm:$0xff]  ;;  %6258 = vst.msk [vmem:[#allocation5 + $0xa0] sm:$0xff] %vm2477_vm0, %v6216_v28  ;;  %5350 = vmatprep.subr.bf16.mxu0 %v14312_v14 }
 0x651   : > { %v6552_v55 = vld [vmem:[#allocation3 + $0x169] sm:$0xff]  ;;  %v12691_v22 = vpack.c.bf16 %v6681_v7, %v6680_v27  ;;  %6386 = vst.msk [vmem:[#allocation5 + $0xa0] sm:$0xff] %vm2607_vm1, %v6344_v51  ;;  %6231 = vrot.lane.b32.xlu1 %v6570_v8, %s9830_s11  ;;  %v6553_v63 = vld [vmem:[#allocation3 + $0x171] sm:$0xff] }
 0x652   : > { %v6425_v3 = vld [vmem:[#allocation3 + $0x170] sm:$0xff]  ;;  %6359 = vrot.lane.b32.xlu0 %v12666_v58, %s9831_s12  ;;  %v12705_v41 = vpack.c.bf16 %v6553_v63, %v6552_v55  ;;  %v6731_v51 = vld [vmem:[#allocation5 + $0xc8] sm:$0xff] }
 0x653   : > { %v12700_v42 = vpack.c.bf16 %v6425_v3, %v6424_v25  ;;  %6715 = vst.msk [vmem:[#allocation5 + $0x1a8] sm:$0xff] %vm1691_vm7, %v12691_v22  ;;  %v6473_v29 = vpop.permute.xlu1 %6472  ;;  %v6601_v49 = vpop.permute.xlu0 %6600  ;;  %5351 = vmatpush1.bf16.msra.mxu0 %v9789_v26 }
 0x654   : > { %6515 = vst.msk [vmem:[#allocation5 + $0xa0] sm:$0xff] %vm2736_vm2, %v6473_v29  ;;  %5352 = vmatprep.subr.bf16.mxu0 %v14312_v14 }
 0x655   : > { %5756 = vst.msk [vmem:[#allocation5 + $0x1e0] sm:$0xff] %vm1691_vm7, %v12700_v42  ;;  %6488 = vrot.lane.b32.xlu1 %v12700_v42, %s9832_s13 }
 0x656   : > { %6643 = vst.msk [vmem:[#allocation5 + $0xa0] sm:$0xff] %vm2865_vm3, %v6601_v49  ;;  %6616 = vrot.lane.b32.xlu0 %v12705_v41, %s9833_s14 }
 0x657   : > { %v5834_v28 = vpop.permute.xlu1 %5833  ;;  %v5625_v25 = vpop.permute.xlu0 %5624 }
 0x658   : > { %5875 = vst.msk [vmem:[#allocation5 + $0xc0] sm:$0xff] %vm2090_vm13, %v5834_v28 }
 0x659   : > { %5691 = vst.msk [vmem:[#allocation3 + $0x181] sm:$0xff] %vm1691_vm7, %v5625_v25  ;;  %5849 = vrot.lane.b32.xlu1 %v6570_v8, %s9823_s18 }
 0x65a   : > { %5977 = vrot.lane.b32.xlu0 %v12666_v58, %s9827_s28  ;;  %v9790_v58 = vld [vmem:[%s14088_s3 + $0x90] sm:$0xff]  }
 0x65b   : > { %v5627_v8 = vpop.permute.xlu1 %5626  ;;  %v5962_v27 = vpop.permute.xlu0 %5961  ;;  %5353 = vmatpush1.bf16.msra.mxu0 %v9790_v58 }
 0x65c   : > { %5692 = vst.msk [vmem:[#allocation3 + $0x189] sm:$0xff] %vm1691_vm7, %v5627_v8  ;;  %5354 = vmatprep.subr.bf16.mxu0 %v14312_v14 }
 0x65d   : > { %v6728_v7 = vld [vmem:[#allocation5 + $0xa0] sm:$0xff]  ;;  %6003 = vst.msk [vmem:[#allocation5 + $0xc0] sm:$0xff] %vm2219_vm14, %v5962_v27  ;;  %6105 = vrot.lane.b32.xlu1 %v12700_v42, %s9829_s29 }
 0x65e   : > { %6950 = vmatmul.mubr.bf16.gmra.mrb[96].mxu1 %v6728_v7  ;;  %6233 = vrot.lane.b32.xlu0 %v12705_v41, %s9830_s11  ;;  %v9792_v7 = vld [vmem:[%s14088_s3 + $0xa0] sm:$0xff]  }
 0x65f   : > { %9512 = vmatprep.mubr.msk.bf16.mxu1 %vm1691_vm7, %v6731_v51  ;;  %v6090_v55 = vpop.permute.xlu1 %6089  ;;  %v6218_v63 = vpop.permute.xlu0 %6217  ;;  %5355 = vmatpush1.bf16.msra.mxu0 %v9791_v17 }
 0x660   : > { %6131 = vst.msk [vmem:[#allocation5 + $0xc0] sm:$0xff] %vm2348_vm15, %v6090_v55  ;;  %v6554_v3 = vld [vmem:[#allocation3 + $0x181] sm:$0xff]  ;;  %5356 = vmatprep.subr.bf16.mxu0 %v14312_v14 }
 0x661   : > { %6259 = vst.msk [vmem:[#allocation5 + $0xc0] sm:$0xff] %vm2477_vm0, %v6218_v63  ;;  %6361 = vrot.lane.b32.xlu1 %v12691_v22, %s9831_s12  ;;  %v6426_v8 = vld [vmem:[#allocation3 + $0x180] sm:$0xff]  ;;  %v9793_v55 = vld [vmem:[%s14088_s3 + $0xa8] sm:$0xff]  }
 0x663   : > { %v6682_v13 = vld [vmem:[#allocation3 + $0x182] sm:$0xff]  ;;  %v6683_v42 = vld [vmem:[#allocation3 + $0x18a] sm:$0xff]  ;;  %v6346_v29 = vpop.permute.xlu1 %6345  ;;  %v6475_v28 = vpop.permute.xlu0 %6474  ;;  %5357 = vmatpush1.bf16.msra.mxu0 %v9792_v7  ;;  %v6556_v7 = vld [vmem:[#allocation3 + $0x199] sm:$0xff] }
 0x664   : > { %v6555_v49 = vld [vmem:[#allocation3 + $0x189] sm:$0xff]  ;;  %v6700_v26 = vpack.c.bf16 %v6683_v42, %v6682_v13  ;;  %6387 = vst.msk [vmem:[#allocation5 + $0xc0] sm:$0xff] %vm2607_vm1, %v6346_v29  ;;  %5358 = vmatprep.subr.bf16.mxu0 %v14312_v14  ;;  %v6429_v13 = vld [vmem:[#allocation3 + $0x1a0] sm:$0xff] }
 0x665   : > { %v6572_v25 = vpack.c.bf16 %v6555_v49, %v6554_v3  ;;  %v6427_v27 = vld [vmem:[#allocation3 + $0x188] sm:$0xff]  ;;  %6516 = vst.msk [vmem:[#allocation5 + $0xc0] sm:$0xff] %vm2736_vm2, %v6475_v28  ;;  %v6428_v3 = vld [vmem:[#allocation3 + $0x198] sm:$0xff]  ;;  %v9794_v42 = vld [vmem:[%s14088_s3 + $0xb0] sm:$0xff]  }
 0x666   : > { %v6444_v58 = vpack.c.bf16 %v6427_v27, %v6426_v8  ;;  %6716 = vst.msk [vmem:[#allocation5 + $0x1c8] sm:$0xff] %vm1691_vm7, %v6700_v26  ;;  %v9795_v28 = vld [vmem:[%s14088_s3 + $0xb8] sm:$0xff]   ;;  %v6733_v27 = vld [vmem:[#allocation5 + $0xe8] sm:$0xff] }
 0x667   : > { %6618 = vrot.lane.b32.xlu1 %v6572_v25, %s9833_s14  ;;  %v6603_v51 = vpop.permute.xlu1 %6602  ;;  %v5836_v17 = vpop.permute.xlu0 %5835  ;;  %5359 = vmatpush1.bf16.msra.mxu0 %v9793_v55  ;;  %v4548_v55 = vld [vmem:[#allocation2 + $0x62] sm:$0xff] }
 0x668   : > { %6490 = vrot.lane.b32.xlu0 %v6444_v58, %s9832_s13  ;;  %6644 = vst.msk [vmem:[#allocation5 + $0xc0] sm:$0xff] %vm2865_vm3, %v6603_v51  ;;  %5360 = vmatprep.subr.bf16.mxu0 %v14312_v14  ;;  %v6557_v51 = vld [vmem:[#allocation3 + $0x1a1] sm:$0xff] }
 0x669   : > { %5876 = vst.msk [vmem:[#allocation5 + $0xe0] sm:$0xff] %vm2090_vm13, %v5836_v17  ;;  %v6573_v17 = vpack.c.bf16 %v6557_v51, %v6556_v7  ;;  %v4678_v7 = vld [vmem:[#allocation2 + $0x7b] sm:$0xff]  ;;  %v4679_v51 = vld [vmem:[#allocation2 + $0x83] sm:$0xff] }
 0x66b   : > { %5979 = vrot.lane.b32.xlu1 %v12691_v22, %s9827_s28  ;;  %v5964_v63 = vpop.permute.xlu1 %5963  ;;  %v6092_v29 = vpop.permute.xlu0 %6091  ;;  %v6445_v22 = vpack.c.bf16 %v6429_v13, %v6428_v3  ;;  %5361 = vmatpush1.bf16.msra.mxu0 %v9794_v42  ;;  %v4551_v42 = vld [vmem:[#allocation2 + $0x82] sm:$0xff] }
 0x66c   : > { %5851 = vrot.lane.b32.xlu0 %v12705_v41, %s9823_s18  ;;  %6004 = vst.msk [vmem:[#allocation5 + $0xe0] sm:$0xff] %vm2219_vm14, %v5964_v63  ;;  %5362 = vmatprep.subr.bf16.mxu0 %v14312_v14  ;;  %v9796_v63 = vld [vmem:[%s14088_s3 + $0xc0] sm:$0xff]  }
 0x66d   : > { %6132 = vst.msk [vmem:[#allocation5 + $0xe0] sm:$0xff] %vm2348_vm15, %v6092_v29  ;;  %v4677_v29 = vld [vmem:[#allocation2 + $0x6b] sm:$0xff] }
 0x66f   : > { %6235 = vrot.lane.b32.xlu1 %v6572_v25, %s9830_s11  ;;  %v6220_v41 = vpop.permute.xlu1 %6219  ;;  %v6730_v49 = vld [vmem:[#allocation5 + $0xc0] sm:$0xff]  ;;  %v6348_v8 = vpop.permute.xlu0 %6347  ;;  %v4549_v25 = vld [vmem:[#allocation2 + $0x6a] sm:$0xff]  ;;  %5363 = vmatpush1.bf16.msra.mxu0 %v9795_v28 }
 0x670   : > { %6107 = vrot.lane.b32.xlu0 %v6444_v58, %s9829_s29  ;;  %6260 = vst.msk [vmem:[#allocation5 + $0xe0] sm:$0xff] %vm2477_vm0, %v6220_v41  ;;  %6958 = vmatmul.mubr.bf16.gmra.mrb[100].mxu1 %v6730_v49  ;;  %v4580_v13 = vpack.c.bf16 %v4549_v25, %v4548_v55  ;;  %v4550_v41 = vld [vmem:[#allocation2 + $0x7a] sm:$0xff] }
 0x671   : > { %6388 = vst.msk [vmem:[#allocation5 + $0xe0] sm:$0xff] %vm2607_vm1, %v6348_v8  ;;  %9513 = vmatprep.mubr.msk.bf16.mxu1 %vm1691_vm7, %v6733_v27  ;;  %5364 = vmatprep.subr.bf16.mxu0 %v14312_v14  ;;  %v4581_v28 = vpack.c.bf16 %v4551_v42, %v4550_v41  ;;  %v4553_v27 = vld [vmem:[#allocation2 + $0x9a] sm:$0xff]  ;;  %v4555_v42 = vld [vmem:[#allocation2 + $0xb2] sm:$0xff]  ;;  %v4554_v41 = vld [vmem:[#allocation2 + $0xaa] sm:$0xff] }
 0x673   : > { %6492 = vrot.lane.b32.xlu1 %v6445_v22, %s9832_s13  ;;  %v6477_v58 = vpop.permute.xlu1 %6476  ;;  %v6605_v3 = vpop.permute.xlu0 %6604  ;;  %5365 = vmatpush1.bf16.msra.mxu0 %v9796_v63 }
 0x674   : > { %6363 = vrot.lane.b32.xlu0 %v6700_v26, %s9831_s12  ;;  %6517 = vst.msk [vmem:[#allocation5 + $0xe0] sm:$0xff] %vm2736_vm2, %v6477_v58  ;;  %v4676_v26 = vld [vmem:[#allocation2 + $0x63] sm:$0xff]  ;;  %8440 = vmatprep.subr.bf16.mxu0 %v14312_v14  ;;  %v4552_v58 = vld [vmem:[#allocation2 + $0x92] sm:$0xff] }
 0x675   : > { %6645 = vst.msk [vmem:[#allocation5 + $0xe0] sm:$0xff] %vm2865_vm3, %v6605_v3  ;;  %v4708_v8 = vpack.c.bf16 %v4677_v29, %v4676_v26  ;;  %v4582_v63 = vpack.c.bf16 %v4553_v27, %v4552_v58  ;;  %v4709_v3 = vpack.c.bf16 %v4679_v51, %v4678_v7  ;;  %v4680_v26 = vld [vmem:[#allocation2 + $0x93] sm:$0xff]  ;;  %v4681_v29 = vld [vmem:[#allocation2 + $0x9b] sm:$0xff]  ;;  %v4557_v27 = vld [vmem:[#allocation2 + $0xca] sm:$0xff] }
 0x676   : > { %v4682_v7 = vld [vmem:[#allocation2 + $0xab] sm:$0xff]  ;;  %v4683_v51 = vld [vmem:[#allocation2 + $0xb3] sm:$0xff]  ;;  %v4556_v58 = vld [vmem:[#allocation2 + $0xc2] sm:$0xff] }
 0x677   : > { %4612 = vrot.lane.b32.xlu1 %v4580_v13, %s9832_s13  ;;  %v5838_v22 = vpop.permute.xlu1 %5837  ;;  %v6735_v13 = vld [vmem:[#allocation5 + $0x108] sm:$0xff] }
 0x678   : > { %6620 = vrot.lane.b32.xlu0 %v6573_v17, %s9833_s14  ;;  %5877 = vst.msk [vmem:[#allocation5 + $0x100] sm:$0xff] %vm2090_vm13, %v5838_v22  ;;  %v5966_v49 = vpop.permute.xlu0 %5965 }
 0x679   : > { %6005 = vst.msk [vmem:[#allocation5 + $0x100] sm:$0xff] %vm2219_vm14, %v5966_v49 }
 0x67b   : > { %4614 = vrot.lane.b32.xlu1 %v4581_v28, %s9832_s13  ;;  %v6094_v25 = vpop.permute.xlu1 %6093  ;;  %v4583_v28 = vpack.c.bf16 %v4555_v42, %v4554_v41  ;;  %v4685_v42 = vld [vmem:[#allocation2 + $0xcb] sm:$0xff] }
 0x67c   : > { %4740 = vrot.lane.b32.xlu0 %v4708_v8, %s9833_s14  ;;  %6133 = vst.msk [vmem:[#allocation5 + $0x100] sm:$0xff] %vm2348_vm15, %v6094_v25  ;;  %v6222_v55 = vpop.permute.xlu0 %6221  ;;  %v6732_v17 = vld [vmem:[#allocation5 + $0xe0] sm:$0xff]  ;;  %v4710_v8 = vpack.c.bf16 %v4681_v29, %v4680_v26 }
 0x67d   : > { %6261 = vst.msk [vmem:[#allocation5 + $0x100] sm:$0xff] %vm2477_vm0, %v6222_v55  ;;  %6966 = vmatmul.mubr.bf16.gmra.mrb[104].mxu1 %v6732_v17  ;;  %v4584_v17 = vpack.c.bf16 %v4557_v27, %v4556_v58  ;;  %v4558_v29 = vld [vmem:[#allocation2 + $0xda] sm:$0xff]  ;;  %v4687_v27 = vld [vmem:[#allocation2 + $0xe3] sm:$0xff] }
 0x67e   : > { %9514 = vmatprep.mubr.msk.bf16.mxu1 %vm1691_vm7, %v6735_v13  ;;  %v4684_v13 = vld [vmem:[#allocation2 + $0xc3] sm:$0xff] }
 0x67f   : > { %4616 = vrot.lane.b32.xlu1 %v4582_v63, %s9832_s13  ;;  %v6350_v22 = vpop.permute.xlu1 %6349  ;;  %v4711_v63 = vpack.c.bf16 %v4683_v51, %v4682_v7 }
 0x680   : > { %4742 = vrot.lane.b32.xlu0 %v4709_v3, %s9833_s14  ;;  %6389 = vst.msk [vmem:[#allocation5 + $0x100] sm:$0xff] %vm2607_vm1, %v6350_v22  ;;  %v6479_v49 = vpop.permute.xlu0 %6478  ;;  %v4559_v3 = vld [vmem:[#allocation2 + $0xe2] sm:$0xff] }
 0x681   : > { %6518 = vst.msk [vmem:[#allocation5 + $0x100] sm:$0xff] %vm2736_vm2, %v6479_v49  ;;  %v4585_v41 = vpack.c.bf16 %v4559_v3, %v4558_v29  ;;  %v4712_v49 = vpack.c.bf16 %v4685_v42, %v4684_v13  ;;  %v4563_v3 = vld [vmem:[#allocation2 + $0x112] sm:$0xff]  ;;  %v4689_v42 = vld [vmem:[#allocation2 + $0xfb] sm:$0xff]  ;;  %v4562_v29 = vld [vmem:[#allocation2 + $0x10a] sm:$0xff] }
 0x682   : > { %v4688_v13 = vld [vmem:[#allocation2 + $0xf3] sm:$0xff] }
 0x683   : > { %4618 = vrot.lane.b32.xlu1 %v4583_v28, %s9832_s13  ;;  %v6607_v25 = vpop.permute.xlu1 %6606  ;;  %v4561_v28 = vld [vmem:[#allocation2 + $0xfa] sm:$0xff] }
 0x684   : > { %4744 = vrot.lane.b32.xlu0 %v4710_v8, %s9833_s14  ;;  %6646 = vst.msk [vmem:[#allocation5 + $0x100] sm:$0xff] %vm2865_vm3, %v6607_v25  ;;  %v5840_v55 = vpop.permute.xlu0 %5839  ;;  %v4686_v8 = vld [vmem:[#allocation2 + $0xdb] sm:$0xff]  ;;  %v4560_v25 = vld [vmem:[#allocation2 + $0xf2] sm:$0xff] }
 0x685   : > { %5878 = vst.msk [vmem:[#allocation5 + $0x120] sm:$0xff] %vm2090_vm13, %v5840_v55  ;;  %v6737_v55 = vld [vmem:[#allocation5 + $0x128] sm:$0xff] }
 0x687   : > { %4620 = vrot.lane.b32.xlu1 %v4584_v17, %s9832_s13  ;;  %v5968_v26 = vpop.permute.xlu1 %5967  ;;  %v4586_v17 = vpack.c.bf16 %v4561_v28, %v4560_v25  ;;  %v4565_v28 = vld [vmem:[#allocation2 + $0x12a] sm:$0xff] }
 0x688   : > { %4746 = vrot.lane.b32.xlu0 %v4711_v63, %s9833_s14  ;;  %6006 = vst.msk [vmem:[#allocation5 + $0x120] sm:$0xff] %vm2219_vm14, %v5968_v26  ;;  %v6096_v22 = vpop.permute.xlu0 %6095  ;;  %v4713_v63 = vpack.c.bf16 %v4687_v27, %v4686_v8  ;;  %v4690_v8 = vld [vmem:[#allocation2 + $0x10b] sm:$0xff]  ;;  %v4691_v27 = vld [vmem:[#allocation2 + $0x113] sm:$0xff] }
 0x689   : > { %6134 = vst.msk [vmem:[#allocation5 + $0x120] sm:$0xff] %vm2348_vm15, %v6096_v22 }
 0x68b   : > { %4622 = vrot.lane.b32.xlu1 %v4585_v41, %s9832_s13  ;;  %v6224_v7 = vpop.permute.xlu1 %6223  ;;  %v6734_v51 = vld [vmem:[#allocation5 + $0x100] sm:$0xff]  ;;  %v4587_v41 = vpack.c.bf16 %v4563_v3, %v4562_v29  ;;  %v4693_v3 = vld [vmem:[#allocation2 + $0x12b] sm:$0xff] }
 0x68c   : > { %4748 = vrot.lane.b32.xlu0 %v4712_v49, %s9833_s14  ;;  %6262 = vst.msk [vmem:[#allocation5 + $0x120] sm:$0xff] %vm2477_vm0, %v6224_v7  ;;  %v6352_v58 = vpop.permute.xlu0 %6351  ;;  %6974 = vmatmul.mubr.bf16.gmra.mrb[108].mxu1 %v6734_v51  ;;  %v4714_v49 = vpack.c.bf16 %v4689_v42, %v4688_v13  ;;  %v4564_v51 = vld [vmem:[#allocation2 + $0x122] sm:$0xff]  ;;  %v4566_v42 = vld [vmem:[#allocation2 + $0x13a] sm:$0xff] }
 0x68d   : > { %6390 = vst.msk [vmem:[#allocation5 + $0x120] sm:$0xff] %vm2607_vm1, %v6352_v58  ;;  %9515 = vmatprep.mubr.msk.bf16.mxu1 %vm1691_vm7, %v6737_v55  ;;  %v4588_v58 = vpack.c.bf16 %v4565_v28, %v4564_v51  ;;  %v4715_v55 = vpack.c.bf16 %v4691_v27, %v4690_v8  ;;  %v4568_v28 = vld [vmem:[#allocation2 + $0x152] sm:$0xff]  ;;  %v4569_v8 = vld [vmem:[#allocation2 + $0x15a] sm:$0xff] }
 0x68e   : > { %v4694_v27 = vld [vmem:[#allocation2 + $0x13b] sm:$0xff] }
 0x68f   : > { %4624 = vrot.lane.b32.xlu1 %v4586_v17, %s9832_s13  ;;  %v6481_v26 = vpop.permute.xlu1 %6480  ;;  %v4567_v17 = vld [vmem:[#allocation2 + $0x142] sm:$0xff] }
 0x690   : > { %4750 = vrot.lane.b32.xlu0 %v4713_v63, %s9833_s14  ;;  %6519 = vst.msk [vmem:[#allocation5 + $0x120] sm:$0xff] %vm2736_vm2, %v6481_v26  ;;  %v6609_v22 = vpop.permute.xlu0 %6608  ;;  %v4692_v63 = vld [vmem:[#allocation2 + $0x123] sm:$0xff] }
 0x691   : > { %6647 = vst.msk [vmem:[#allocation5 + $0x120] sm:$0xff] %vm2865_vm3, %v6609_v22  ;;  %v4589_v22 = vpack.c.bf16 %v4567_v17, %v4566_v42  ;;  %v4570_v17 = vld [vmem:[#allocation2 + $0x16a] sm:$0xff] }
 0x693   : > { %4626 = vrot.lane.b32.xlu1 %v4587_v41, %s9832_s13  ;;  %v5842_v7 = vpop.permute.xlu1 %5841  ;;  %v4716_v41 = vpack.c.bf16 %v4693_v3, %v4692_v63  ;;  %v4571_v63 = vld [vmem:[#allocation2 + $0x172] sm:$0xff] }
 0x694   : > { %4752 = vrot.lane.b32.xlu0 %v4714_v49, %s9833_s14  ;;  %5879 = vst.msk [vmem:[#allocation5 + $0x140] sm:$0xff] %vm2090_vm13, %v5842_v7  ;;  %v5970_v25 = vpop.permute.xlu0 %5969  ;;  %v6739_v49 = vld [vmem:[#allocation5 + $0x148] sm:$0xff]  ;;  %v4696_v3 = vld [vmem:[#allocation2 + $0x153] sm:$0xff] }
 0x695   : > { %6007 = vst.msk [vmem:[#allocation5 + $0x140] sm:$0xff] %vm2219_vm14, %v5970_v25  ;;  %v4695_v7 = vld [vmem:[#allocation2 + $0x143] sm:$0xff] }
 0x697   : > { %4628 = vrot.lane.b32.xlu1 %v4588_v58, %s9832_s13  ;;  %v6098_v13 = vpop.permute.xlu1 %6097  ;;  %v4590_v58 = vpack.c.bf16 %v4569_v8, %v4568_v28  ;;  %v4698_v28 = vld [vmem:[#allocation2 + $0x16b] sm:$0xff]  ;;  %v4699_v8 = vld [vmem:[#allocation2 + $0x173] sm:$0xff] }
 0x698   : > { %4754 = vrot.lane.b32.xlu0 %v4715_v55, %s9833_s14  ;;  %6135 = vst.msk [vmem:[#allocation5 + $0x140] sm:$0xff] %vm2348_vm15, %v6098_v13  ;;  %v6226_v26 = vpop.permute.xlu0 %6225  ;;  %v6736_v29 = vld [vmem:[#allocation5 + $0x120] sm:$0xff]  ;;  %v4717_v55 = vpack.c.bf16 %v4695_v7, %v4694_v27 }
 0x699   : > { %6263 = vst.msk [vmem:[#allocation5 + $0x140] sm:$0xff] %vm2477_vm0, %v6226_v26  ;;  %6982 = vmatmul.mubr.bf16.gmra.mrb[112].mxu1 %v6736_v29  ;;  %v4697_v13 = vld [vmem:[#allocation2 + $0x15b] sm:$0xff]  ;;  %v4591_v29 = vpack.c.bf16 %v4571_v63, %v4570_v17  ;;  %v4700_v17 = vld [vmem:[#allocation2 + $0x183] sm:$0xff]  ;;  %v4701_v63 = vld [vmem:[#allocation2 + $0x18b] sm:$0xff] }
 0x69a   : > { %9516 = vmatprep.mubr.msk.bf16.mxu1 %vm1691_vm7, %v6739_v49  ;;  %v4573_v49 = vld [vmem:[#allocation2 + $0x18a] sm:$0xff] }
 0x69b   : > { %4630 = vrot.lane.b32.xlu1 %v4589_v22, %s9832_s13  ;;  %v6354_v51 = vpop.permute.xlu1 %6353  ;;  %v4718_v22 = vpack.c.bf16 %v4697_v13, %v4696_v3 }
 0x69c   : > { %4756 = vrot.lane.b32.xlu0 %v4716_v41, %s9833_s14  ;;  %6391 = vst.msk [vmem:[#allocation5 + $0x140] sm:$0xff] %vm2607_vm1, %v6354_v51  ;;  %v6483_v25 = vpop.permute.xlu0 %6482  ;;  %v4572_v41 = vld [vmem:[#allocation2 + $0x182] sm:$0xff] }
 0x69d   : > { %6520 = vst.msk [vmem:[#allocation5 + $0x140] sm:$0xff] %vm2736_vm2, %v6483_v25  ;;  %v4592_v51 = vpack.c.bf16 %v4573_v49, %v4572_v41  ;;  %v4719_v25 = vpack.c.bf16 %v4699_v8, %v4698_v28  ;;  %v4702_v41 = vld [vmem:[#allocation2 + $0x19b] sm:$0xff]  ;;  %v4703_v49 = vld [vmem:[#allocation2 + $0x1a3] sm:$0xff] }
 0x69e   : > { %v4574_v28 = vld [vmem:[#allocation2 + $0x19a] sm:$0xff]  ;;  %v4575_v8 = vld [vmem:[#allocation2 + $0x1a2] sm:$0xff] }
 0x69f   : > { %4632 = vrot.lane.b32.xlu1 %v4590_v58, %s9832_s13  ;;  %v6611_v42 = vpop.permute.xlu1 %6610  ;;  %v4446_v58 = vld [vmem:[#allocation2 + $0x199] sm:$0xff] }
 0x6a0   : > { %4758 = vrot.lane.b32.xlu0 %v4717_v55, %s9833_s14  ;;  %6648 = vst.msk [vmem:[#allocation5 + $0x140] sm:$0xff] %vm2865_vm3, %v6611_v42  ;;  %v5844_v26 = vpop.permute.xlu0 %5843  ;;  %v4447_v55 = vld [vmem:[#allocation2 + $0x1a1] sm:$0xff] }
 0x6a1   : > { %5880 = vst.msk [vmem:[#allocation5 + $0x160] sm:$0xff] %vm2090_vm13, %v5844_v26  ;;  %v6741_v26 = vld [vmem:[#allocation5 + $0x168] sm:$0xff] }
 0x6a3   : > { %4634 = vrot.lane.b32.xlu1 %v4591_v29, %s9832_s13  ;;  %v5972_v27 = vpop.permute.xlu1 %5971  ;;  %v4465_v29 = vpack.c.bf16 %v4447_v55, %v4446_v58  ;;  %v4721_v58 = vpack.c.bf16 %v4703_v49, %v4702_v41  ;;  %v4448_v55 = vld [vmem:[#allocation2 + $0x1b1] sm:$0xff] }
 0x6a4   : > { %4760 = vrot.lane.b32.xlu0 %v4718_v22, %s9833_s14  ;;  %6008 = vst.msk [vmem:[#allocation5 + $0x160] sm:$0xff] %vm2219_vm14, %v5972_v27  ;;  %v6100_v7 = vpop.permute.xlu0 %6099  ;;  %v4720_v22 = vpack.c.bf16 %v4701_v63, %v4700_v17  ;;  %v4593_v17 = vpack.c.bf16 %v4575_v8, %v4574_v28  ;;  %v4706_v8 = vld [vmem:[#allocation2 + $0x1cb] sm:$0xff] }
 0x6a5   : > { %6136 = vst.msk [vmem:[#allocation5 + $0x160] sm:$0xff] %vm2348_vm15, %v6100_v7  ;;  %v4576_v7 = vld [vmem:[#allocation2 + $0x1b2] sm:$0xff] }
 0x6a7   : > { %4636 = vrot.lane.b32.xlu1 %v4592_v51, %s9832_s13  ;;  %v6228_v3 = vpop.permute.xlu1 %6227  ;;  %v6738_v13 = vld [vmem:[#allocation5 + $0x140] sm:$0xff] }
 0x6a8   : > { %4762 = vrot.lane.b32.xlu0 %v4719_v25, %s9833_s14  ;;  %6264 = vst.msk [vmem:[#allocation5 + $0x160] sm:$0xff] %vm2477_vm0, %v6228_v3  ;;  %v6356_v42 = vpop.permute.xlu0 %6355  ;;  %6990 = vmatmul.mubr.bf16.gmra.mrb[116].mxu1 %v6738_v13  ;;  %v4577_v51 = vld [vmem:[#allocation2 + $0x1ba] sm:$0xff] }
 0x6a9   : > { %6392 = vst.msk [vmem:[#allocation5 + $0x160] sm:$0xff] %vm2607_vm1, %v6356_v42  ;;  %9517 = vmatprep.mubr.msk.bf16.mxu1 %vm1691_vm7, %v6741_v26  ;;  %v4449_v3 = vld [vmem:[#allocation2 + $0x1b9] sm:$0xff]  ;;  %v4594_v63 = vpack.c.bf16 %v4577_v51, %v4576_v7  ;;  %v4450_v26 = vld [vmem:[#allocation2 + $0x1c9] sm:$0xff] }
 0x6aa   : > { %v4466_v42 = vpack.c.bf16 %v4449_v3, %v4448_v55  ;;  %v4707_v7 = vld [vmem:[#allocation2 + $0x1d3] sm:$0xff]  ;;  %v6743_v3 = vld [vmem:[#allocation5 + $0x188] sm:$0xff] }
 0x6ab   : > { %4510 = vrot.lane.b32.xlu1 %v4465_v29, %s9831_s12  ;;  %v6485_v27 = vpop.permute.xlu1 %6484  ;;  %v4451_v29 = vld [vmem:[#allocation2 + $0x1d1] sm:$0xff] }
 0x6ac   : > { %4764 = vrot.lane.b32.xlu0 %v4720_v22, %s9833_s14  ;;  %6521 = vst.msk [vmem:[#allocation5 + $0x160] sm:$0xff] %vm2736_vm2, %v6485_v27  ;;  %v6613_v25 = vpop.permute.xlu0 %6612  ;;  %v4704_v27 = vld [vmem:[#allocation2 + $0x1b3] sm:$0xff]  ;;  %v4467_v41 = vpack.c.bf16 %v4451_v29, %v4450_v26 }
 0x6ad   : > { %6649 = vst.msk [vmem:[#allocation5 + $0x160] sm:$0xff] %vm2865_vm3, %v6613_v25  ;;  %v4722_v28 = vpack.c.bf16 %v4705_v30, %v4704_v27  ;;  %v4579_v55 = vld [vmem:[#allocation2 + $0x1d2] sm:$0xff] }
 0x6ae   : > { %v7192_v26 = vld [vmem:[#allocation4 + $0x9] sm:$0xff] }
 0x6af   : > { %4766 = vrot.lane.b32.xlu1 %v4721_v58, %s9833_s14  ;;  %v5846_v13 = vpop.permute.xlu1 %5845  ;;  %v4578_v58 = vld [vmem:[#allocation2 + $0x1ca] sm:$0xff] }
 0x6b0   : > { %4638 = vrot.lane.b32.xlu0 %v4593_v17, %s9832_s13  ;;  %5881 = vst.msk [vmem:[#allocation5 + $0x180] sm:$0xff] %vm2090_vm13, %v5846_v13  ;;  %v5974_v22 = vpop.permute.xlu0 %5973  ;;  %v4723_v17 = vpack.c.bf16 %v4707_v7, %v4706_v8  ;;  %v4595_v30 = vpack.c.bf16 %v4579_v55, %v4578_v58  ;;  %v6745_v55 = vld [vmem:[#allocation5 + $0x1a8] sm:$0xff] }
 0x6b1   : > { %6009 = vst.msk [vmem:[#allocation5 + $0x180] sm:$0xff] %vm2219_vm14, %v5974_v22 }
 0x6b3   : > { %4640 = vrot.lane.b32.xlu1 %v4594_v63, %s9832_s13  ;;  %v6102_v49 = vpop.permute.xlu1 %6101 }
 0x6b4   : > { %4512 = vrot.lane.b32.xlu0 %v4466_v42, %s9831_s12  ;;  %6137 = vst.msk [vmem:[#allocation5 + $0x180] sm:$0xff] %vm2348_vm15, %v6102_v49  ;;  %v6230_v51 = vpop.permute.xlu0 %6229  ;;  %v6740_v25 = vld [vmem:[#allocation5 + $0x160] sm:$0xff]  ;;  %v7191_v42 = vld [vmem:[#allocation4 + $0x1] sm:$0xff] }
 0x6b5   : > { %6265 = vst.msk [vmem:[#allocation5 + $0x180] sm:$0xff] %vm2477_vm0, %v6230_v51  ;;  %6998 = vmatmul.mubr.bf16.gmra.mrb[120].mxu1 %v6740_v25  ;;  %v7223_v22 = vpack.c.bf16 %v7192_v26, %v7191_v42  ;;  %v7321_v49 = vld [vmem:[#allocation4 + $0xa] sm:$0xff] }
 0x6b6   : > { %9518 = vmatprep.mubr.msk.bf16.mxu1 %vm1691_vm7, %v6743_v3 }
 0x6b7   : > { %4514 = vrot.lane.b32.xlu1 %v4467_v41, %s9831_s12  ;;  %v6358_v63 = vpop.permute.xlu1 %6357  ;;  %v7320_v41 = vld [vmem:[#allocation4 + $0x2] sm:$0xff] }
 0x6b8   : > { %4768 = vrot.lane.b32.xlu0 %v4722_v28, %s9833_s14  ;;  %6393 = vst.msk [vmem:[#allocation5 + $0x180] sm:$0xff] %vm2607_vm1, %v6358_v63  ;;  %v6487_v13 = vpop.permute.xlu0 %6486  ;;  %v7352_v8 = vpack.c.bf16 %v7321_v49, %v7320_v41  ;;  %v7128_v41 = vld [vmem:[#allocation4 + $0x8] sm:$0xff] }
 0x6b9   : > { %6522 = vst.msk [vmem:[#allocation5 + $0x180] sm:$0xff] %vm2736_vm2, %v6487_v13 }
 0x6bb   : > { %4770 = vrot.lane.b32.xlu1 %v4723_v17, %s9833_s14  ;;  %v6615_v29 = vpop.permute.xlu1 %6614 }
 0x6bc   : > { %4642 = vrot.lane.b32.xlu0 %v4595_v30, %s9832_s13  ;;  %6650 = vst.msk [vmem:[#allocation5 + $0x180] sm:$0xff] %vm2865_vm3, %v6615_v29  ;;  %v5848_v27 = vpop.permute.xlu0 %5847  ;;  %v6747_v29 = vld [vmem:[#allocation5 + $0x1c8] sm:$0xff] }
 0x6bd   : > { %5882 = vst.msk [vmem:[#allocation5 + $0x1a0] sm:$0xff] %vm2090_vm13, %v5848_v27  ;;  %v7127_v27 = vld [vmem:[#allocation4] sm:$0xff] }
 0x6be   : > { %v7159_v49 = vpack.c.bf16 %v7128_v41, %v7127_v27 }
 0x6bf   : > { %v5976_v28 = vpop.permute.xlu1 %5975 }
 0x6c0   : > { %7255 = vrot.lane.b32.xlu0 %v7223_v22, %s9825_s20  ;;  %6010 = vst.msk [vmem:[#allocation5 + $0x1a0] sm:$0xff] %vm2219_vm14, %v5976_v28  ;;  %v6104_v7 = vpop.permute.xlu0 %6103  ;;  %v12988_v28 = vld [vmem:[%s14091_s6] ss:$0 sm:$0xff] }
 0x6c1   : > { %6138 = vst.msk [vmem:[#allocation5 + $0x1a0] sm:$0xff] %vm2348_vm15, %v6104_v7 }
 0x6c2   : > { %7175 = vst.msk [vmem:[#allocation5] sm:$0xff] %vm7038_vm5, %v7159_v49 }
 0x6c3   : > { %v6232_v51 = vpop.permute.xlu1 %6231  ;;  %v6742_v25 = vld [vmem:[#allocation5 + $0x180] sm:$0xff] }
 0x6c4   : > { %7384 = vrot.lane.b32.xlu0 %v7352_v8, %s9829_s29  ;;  %6266 = vst.msk [vmem:[#allocation5 + $0x1a0] sm:$0xff] %vm2477_vm0, %v6232_v51  ;;  %v6360_v58 = vpop.permute.xlu0 %6359  ;;  %7006 = vmatmul.mubr.bf16.gmra.mrb[124].mxu1 %v6742_v25 }
 0x6c5   : > { %6394 = vst.msk [vmem:[#allocation5 + $0x1a0] sm:$0xff] %vm2607_vm1, %v6360_v58  ;;  %9519 = vmatprep.mubr.msk.bf16.mxu1 %vm1691_vm7, %v6745_v55 }
 0x6c7   : > { %v6489_v3 = vpop.permute.xlu1 %6488 }
 0x6c8   : > { %6523 = vst.msk [vmem:[#allocation5 + $0x1a0] sm:$0xff] %vm2736_vm2, %v6489_v3  ;;  %v6617_v17 = vpop.permute.xlu0 %6616 }
 0x6c9   : > { %6651 = vst.msk [vmem:[#allocation5 + $0x1a0] sm:$0xff] %vm2865_vm3, %v6617_v17 }
 0x6cb   : > { %v5850_v63 = vpop.permute.xlu1 %5849 }
 0x6cc   : > { %5883 = vst.msk [vmem:[#allocation5 + $0x1c0] sm:$0xff] %vm2090_vm13, %v5850_v63  ;;  %v5978_v30 = vpop.permute.xlu0 %5977 }
 0x6cd   : > { %6011 = vst.msk [vmem:[#allocation5 + $0x1c0] sm:$0xff] %vm2219_vm14, %v5978_v30 }
 0x6cf   : > { %v6106_v13 = vpop.permute.xlu1 %6105 }
 0x6d0   : > { %6139 = vst.msk [vmem:[#allocation5 + $0x1c0] sm:$0xff] %vm2348_vm15, %v6106_v13  ;;  %v6234_v42 = vpop.permute.xlu0 %6233  ;;  %v6744_v26 = vld [vmem:[#allocation5 + $0x1a0] sm:$0xff] }
 0x6d1   : > { %6267 = vst.msk [vmem:[#allocation5 + $0x1c0] sm:$0xff] %vm2477_vm0, %v6234_v42  ;;  %7014 = vmatmul.mubr.bf16.gmra.mrb[128].mxu1 %v6744_v26  ;;  %v6749_v26 = vld [vmem:[#allocation5 + $0x1e8] sm:$0xff] }
 0x6d2   : > { %9520 = vmatprep.mubr.msk.bf16.mxu1 %vm1691_vm7, %v6747_v29 }
 0x6d3   : > { %v6362_v22 = vpop.permute.xlu1 %6361 }
 0x6d4   : > { %6395 = vst.msk [vmem:[#allocation5 + $0x1c0] sm:$0xff] %vm2607_vm1, %v6362_v22 }
 0x6d7   : > { %v6911_v8 = vpop.f32.mrb[76].mxu1 }
 0x6d8   : > { %v6912_v7 = vadd.f32 %v12988_v28, %v6911_v8  ;;  %v6913_v51 = vpop.f32.mrb[77].mxu1 }
 0x6d9   : > { %v6619_v25 = vpop.permute.xlu1 %6618  ;;  %v6914_v55 = vpop.f32.mrb[78].mxu1 }
 0x6da   : > { %v6491_v58 = vpop.permute.xlu0 %6490  ;;  %7095 = vst.msk [vmem:[#allocation4 + $0x19] sm:$0xff] %vm7038_vm5, %v6912_v7  ;;  %v6915_v3 = vadd.f32 %v12988_v28, %v6914_v55  ;;  %v6916_v17 = vpop.f32.mrb[79].mxu1  ;;  %v4832_v55 = vld [vmem:[#allocation2 + $0x1b4] sm:$0xff] }
 0x6db   : > { %6524 = vst.msk [vmem:[#allocation5 + $0x1c0] sm:$0xff] %vm2736_vm2, %v6491_v58 }
 0x6dc   : > { %6652 = vst.msk [vmem:[#allocation5 + $0x1c0] sm:$0xff] %vm2865_vm3, %v6619_v25 }
 0x6dd   : > { %7096 = vst.msk [vmem:[#allocation4 + $0x21] sm:$0xff] %vm7038_vm5, %v6915_v3  ;;  %v5980_v63 = vpop.permute.xlu1 %5979 }
 0x6de   : > { %v5852_v30 = vpop.permute.xlu0 %5851 }
 0x6df   : > { %5884 = vst.msk [vmem:[#allocation5 + $0x1e0] sm:$0xff] %vm2090_vm13, %v5852_v30  ;;  %v4833_v30 = vld [vmem:[#allocation2 + $0x1bc] sm:$0xff]  ;;  %vm7819_vm13 = vcmask 1048512  }
 0x6e0   : > { %6012 = vst.msk [vmem:[#allocation5 + $0x1e0] sm:$0xff] %vm2219_vm14, %v5980_v63  ;;  %vm7965_vm14 = vcmask 326784  }
 0x6e1   : > { %v6236_v13 = vpop.permute.xlu1 %6235  ;;  %v7449_v22 = vld [vmem:[#allocation4 + $0x18] sm:$0xff] }
 0x6e2   : > { %v6108_v42 = vpop.permute.xlu0 %6107  ;;  %v7129_v25 = vld [vmem:[#allocation4 + $0x18] sm:$0xff] }
 0x6e3   : > { %6140 = vst.msk [vmem:[#allocation5 + $0x1e0] sm:$0xff] %vm2348_vm15, %v6108_v42  ;;  %v6746_v29 = vld [vmem:[#allocation5 + $0x1c0] sm:$0xff]  ;;  %v7578_v42 = vld [vmem:[#allocation4 + $0x19] sm:$0xff]  ;;  %vm8094_vm15 = vcmask 523584  }
 0x6e4   : > { %6268 = vst.msk [vmem:[#allocation5 + $0x1e0] sm:$0xff] %vm2477_vm0, %v6236_v13  ;;  %7022 = vmatmul.mubr.bf16.gmra.mrb[132].mxu1 %v6746_v29  ;;  %v7707_v27 = vld [vmem:[#allocation4 + $0x1a] sm:$0xff]  ;;  %v7708_v41 = vld [vmem:[#allocation4 + $0x22] sm:$0xff]  ;;  %v4850_v13 = vpack.c.bf16 %v4833_v30, %v4832_v55  ;;  %vm8223_vm0 = vcmask 720384  }
 0x6e5   : > { %v7450_v49 = vld [vmem:[#allocation4 + $0x20] sm:$0xff]  ;;  %v6493_v8 = vpop.permute.xlu1 %6492  ;;  %v7739_v7 = vpack.c.bf16 %v7708_v41, %v7707_v27  ;;  %9521 = vmatprep.mubr.msk.bf16.mxu1 %vm1691_vm7, %v6749_v26 }
 0x6e6   : > { %v7481_v51 = vpack.c.bf16 %v7450_v49, %v7449_v22  ;;  %v7130_v58 = vld [vmem:[#allocation4 + $0x20] sm:$0xff]  ;;  %v6364_v3 = vpop.permute.xlu0 %6363  ;;  %4866 = vst.msk [vmem:[#allocation5 + $0x1d8] sm:$0xff] %vm1691_vm7, %v4850_v13 }
 0x6e7   : > { %v7579_v17 = vld [vmem:[#allocation4 + $0x21] sm:$0xff]  ;;  %v7160_v63 = vpack.c.bf16 %v7130_v58, %v7129_v25  ;;  %6396 = vst.msk [vmem:[#allocation5 + $0x1e0] sm:$0xff] %vm2607_vm1, %v6364_v3  ;;  %7771 = vrot.lane.b32.xlu1 %v7739_v7, %s9835_s19 }
 0x6e8   : > { %7513 = vrot.lane.b32.xlu0 %v7481_v51, %s9836_s21  ;;  %6525 = vst.msk [vmem:[#allocation5 + $0x1e0] sm:$0xff] %vm2736_vm2, %v6493_v8  ;;  %v7610_v22 = vpack.c.bf16 %v7579_v17, %v7578_v42  ;;  %v4834_v58 = vld [vmem:[#allocation2 + $0x1cc] sm:$0xff]  ;;  %v4835_v55 = vld [vmem:[#allocation2 + $0x1d4] sm:$0xff] }
 0x6e9   : > { %7176 = vst.msk [vmem:[#allocation5 + $0x20] sm:$0xff] %vm7038_vm5, %v7160_v63  ;;  %v6919_v26 = vpop.f32.mrb[80].mxu1  ;;  %v4613_v29 = vpop.permute.xlu1 %4612  ;;  %v4851_v17 = vpack.c.bf16 %v4835_v55, %v4834_v58 }
 0x6ea   : > { %v6920_v27 = vadd.f32 %v12988_v28, %v6919_v26  ;;  %4660 = vst.msk [vmem:[#allocation5 + $0x10] sm:$0xff] %vm2736_vm2, %v4613_v29  ;;  %v6621_v41 = vpop.permute.xlu0 %6620  ;;  %v6921_v49 = vpop.f32.mrb[81].mxu1 }
 0x6eb   : > { %6653 = vst.msk [vmem:[#allocation5 + $0x1e0] sm:$0xff] %vm2865_vm3, %v6621_v41  ;;  %v6922_v51 = vpop.f32.mrb[82].mxu1  ;;  %v9797_v41 = vld [vmem:[%s14092_s7] sm:$0xff]  }
 0x6ec   : > { %7642 = vrot.lane.b32.xlu0 %v7610_v22, %s9832_s13  ;;  %7097 = vst.msk [vmem:[#allocation4 + $0x31] sm:$0xff] %vm7038_vm5, %v6920_v27  ;;  %v6923_v8 = vadd.f32 %v12988_v28, %v6922_v51  ;;  %v6924_v25 = vpop.f32.mrb[83].mxu1  ;;  %v4875_v51 = vld [vmem:[#allocation5 + $0x38] sm:$0xff] }
 0x6ed   : > { %v4615_v3 = vpop.permute.xlu1 %4614  ;;  %4867 = vst.msk [vmem:[#allocation5 + $0x1f8] sm:$0xff] %vm1691_vm7, %v4851_v17 }
 0x6ee   : > { %7098 = vst.msk [vmem:[#allocation4 + $0x39] sm:$0xff] %vm7038_vm5, %v6923_v8  ;;  %v4741_v63 = vpop.permute.xlu0 %4740 }
 0x6ef   : > { %4661 = vst.msk [vmem:[#allocation5 + $0x30] sm:$0xff] %vm2736_vm2, %v4615_v3 }
 0x6f0   : > { %4788 = vst.msk [vmem:[#allocation5 + $0x10] sm:$0xff] %vm2865_vm3, %v4741_v63  ;;  %7257 = vrot.lane.b32.xlu0 %v7610_v22, %s9825_s20  ;;  %v9798_v63 = vld [vmem:[%s14092_s7 + $0x8] sm:$0xff]  }
 0x6f1   : > { %v4617_v30 = vpop.permute.xlu1 %4616 }
 0x6f2   : > { %4662 = vst.msk [vmem:[#allocation5 + $0x50] sm:$0xff] %vm2736_vm2, %v4617_v30  ;;  %v4743_v13 = vpop.permute.xlu0 %4742  ;;  %v6748_v42 = vld [vmem:[#allocation5 + $0x1e0] sm:$0xff] }
 0x6f3   : > { %4789 = vst.msk [vmem:[#allocation5 + $0x30] sm:$0xff] %vm2865_vm3, %v4743_v13  ;;  %7030 = vmatmul.mubr.bf16.gmra.mrb[136].mxu1 %v6748_v42  ;;  %v7853_v29 = vld [vmem:[#allocation4 + $0x30] sm:$0xff] }
 0x6f4   : > { %7386 = vrot.lane.b32.xlu0 %v7739_v7, %s9829_s29  ;;  %v7131_v58 = vld [vmem:[#allocation4 + $0x30] sm:$0xff] }
 0x6f5   : > { %v4619_v26 = vpop.permute.xlu1 %4618  ;;  %v7854_v27 = vld [vmem:[#allocation4 + $0x38] sm:$0xff] }
 0x6f6   : > { %4663 = vst.msk [vmem:[#allocation5 + $0x70] sm:$0xff] %vm2736_vm2, %v4619_v26  ;;  %v4745_v22 = vpop.permute.xlu0 %4744  ;;  %v7885_v8 = vpack.c.bf16 %v7854_v27, %v7853_v29  ;;  %v7983_v25 = vld [vmem:[#allocation4 + $0x39] sm:$0xff]  ;;  %v7982_v17 = vld [vmem:[#allocation4 + $0x31] sm:$0xff] }
 0x6f7   : > { %v4870_v49 = vld [vmem:[#allocation5 + $0x10] sm:$0xff]  ;;  %4790 = vst.msk [vmem:[#allocation5 + $0x50] sm:$0xff] %vm2865_vm3, %v4745_v22  ;;  %v7132_v7 = vld [vmem:[#allocation4 + $0x38] sm:$0xff]  ;;  %v8014_v13 = vpack.c.bf16 %v7983_v25, %v7982_v17 }
 0x6f8   : > { %5381 = vmatmul.mubr.bf16.vlgmr.msra.gmra.mrb[20].mxu0 %v4870_v49  ;;  %7917 = vrot.lane.b32.xlu1 %v7885_v8, %s9823_s18  ;;  %v7161_v55 = vpack.c.bf16 %v7132_v7, %v7131_v58  ;;  %v8111_v42 = vld [vmem:[#allocation4 + $0x32] sm:$0xff]  ;;  %v8112_v26 = vld [vmem:[#allocation4 + $0x3a] sm:$0xff] }
 0x6f9   : > { %9481 = vmatprep.mubr.msk.bf16.mxu0 %vm1691_vm7, %v4875_v51  ;;  %7515 = vrot.lane.b32.xlu0 %v7885_v8, %s9836_s21  ;;  %v4621_v3 = vpop.permute.xlu1 %4620  ;;  %v9799_v49 = vld [vmem:[%s14092_s7 + $0x10] sm:$0xff]   ;;  %v8143_v58 = vpack.c.bf16 %v8112_v26, %v8111_v42 }
 0x6fa   : > { %8441 = vmatpush1.bf16.msra.mxu0 %v9797_v41  ;;  %4664 = vst.msk [vmem:[#allocation5 + $0x90] sm:$0xff] %vm2736_vm2, %v4621_v3  ;;  %v4747_v30 = vpop.permute.xlu0 %4746  ;;  %v4874_v8 = vld [vmem:[#allocation5 + $0x30] sm:$0xff] }
 0x6fb   : > { %8442 = vmatprep.subr.bf16.mxu0 %v14312_v14  ;;  %7177 = vst.msk [vmem:[#allocation5 + $0x40] sm:$0xff] %vm7038_vm5, %v7161_v55  ;;  %v6927_v29 = vpop.f32.mrb[84].mxu1  ;;  %v4879_v55 = vld [vmem:[#allocation5 + $0x58] sm:$0xff] }
 0x6fc   : > { %4791 = vst.msk [vmem:[#allocation5 + $0x70] sm:$0xff] %vm2865_vm3, %v4747_v30  ;;  %8046 = vrot.lane.b32.xlu1 %v8014_v13, %s9837_s26  ;;  %v6928_v27 = vadd.f32 %v12988_v28, %v6927_v29  ;;  %v6929_v41 = vpop.f32.mrb[85].mxu1 }
 0x6fd   : > { %7644 = vrot.lane.b32.xlu0 %v8014_v13, %s9832_s13  ;;  %v4623_v22 = vpop.permute.xlu1 %4622  ;;  %v6930_v25 = vpop.f32.mrb[86].mxu1 }
 0x6fe   : > { %8443 = vmatpush1.bf16.msra.mxu0 %v9798_v63  ;;  %4665 = vst.msk [vmem:[#allocation5 + $0xb0] sm:$0xff] %vm2736_vm2, %v4623_v22  ;;  %v4749_v51 = vpop.permute.xlu0 %4748  ;;  %v6931_v7 = vadd.f32 %v12988_v28, %v6930_v25  ;;  %v6932_v3 = vpop.f32.mrb[87].mxu1  ;;  %v9800_v63 = vld [vmem:[%s14092_s7 + $0x18] sm:$0xff]   ;;  %v4878_v29 = vld [vmem:[#allocation5 + $0x50] sm:$0xff] }
 0x6ff   : > { %8444 = vmatprep.subr.bf16.mxu0 %v14312_v14  ;;  %7099 = vst.msk [vmem:[#allocation4 + $0x49] sm:$0xff] %vm7038_vm5, %v6928_v27  ;;  %v4883_v27 = vld [vmem:[#allocation5 + $0x78] sm:$0xff] }
 0x700   : > { %4792 = vst.msk [vmem:[#allocation5 + $0x90] sm:$0xff] %vm2865_vm3, %v4749_v51  ;;  %5389 = vmatmul.mubr.bf16.gmra.mrb[24].mxu0 %v4874_v8  ;;  %8175 = vrot.lane.b32.xlu1 %v8143_v58, %s9830_s11  ;;  %v9802_v8 = vld [vmem:[%s14092_s7 + $0x28] sm:$0xff]  }
 0x701   : > { %9482 = vmatprep.mubr.msk.bf16.mxu0 %vm1691_vm7, %v4879_v55  ;;  %7100 = vst.msk [vmem:[#allocation4 + $0x51] sm:$0xff] %vm7038_vm5, %v6931_v7  ;;  %7259 = vrot.lane.b32.xlu0 %v8014_v13, %s9825_s20  ;;  %v4625_v17 = vpop.permute.xlu1 %4624  ;;  %v9801_v13 = vld [vmem:[%s14092_s7 + $0x20] sm:$0xff]  }
 0x702   : > { %8445 = vmatpush1.bf16.msra.mxu0 %v9799_v49  ;;  %4666 = vst.msk [vmem:[#allocation5 + $0xd0] sm:$0xff] %vm2736_vm2, %v4625_v17  ;;  %v4751_v30 = vpop.permute.xlu0 %4750 }
 0x703   : > { %8446 = vmatprep.subr.bf16.mxu0 %v14312_v14  ;;  %4793 = vst.msk [vmem:[#allocation5 + $0xb0] sm:$0xff] %vm2865_vm3, %v4751_v30 }
 0x704   : > { %7773 = vrot.lane.b32.xlu1 %v8143_v58, %s9835_s19 }
 0x705   : > { %7388 = vrot.lane.b32.xlu0 %v8143_v58, %s9829_s29  ;;  %v4627_v42 = vpop.permute.xlu1 %4626 }
 0x706   : > { %8447 = vmatpush1.bf16.msra.mxu0 %v9800_v63  ;;  %4667 = vst.msk [vmem:[#allocation5 + $0xf0] sm:$0xff] %vm2736_vm2, %v4627_v42  ;;  %v4753_v26 = vpop.permute.xlu0 %4752  ;;  %v7855_v41 = vld [vmem:[#allocation4 + $0x48] sm:$0xff] }
 0x707   : > { %8448 = vmatprep.subr.bf16.mxu0 %v14312_v14  ;;  %4794 = vst.msk [vmem:[#allocation5 + $0xd0] sm:$0xff] %vm2865_vm3, %v4753_v26  ;;  %v7133_v25 = vld [vmem:[#allocation4 + $0x48] sm:$0xff] }
 0x708   : > { %5397 = vmatmul.mubr.bf16.gmra.mrb[28].mxu0 %v4878_v29  ;;  %v7856_v22 = vld [vmem:[#allocation4 + $0x50] sm:$0xff] }
 0x709   : > { %9483 = vmatprep.mubr.msk.bf16.mxu0 %vm1691_vm7, %v4883_v27  ;;  %v4629_v49 = vpop.permute.xlu1 %4628  ;;  %v7886_v51 = vpack.c.bf16 %v7856_v22, %v7855_v41  ;;  %v7134_v58 = vld [vmem:[#allocation4 + $0x50] sm:$0xff]  ;;  %v4882_v27 = vld [vmem:[#allocation5 + $0x70] sm:$0xff] }
 0x70a   : > { %8449 = vmatpush1.bf16.msra.mxu0 %v9801_v13  ;;  %4668 = vst.msk [vmem:[#allocation5 + $0x110] sm:$0xff] %vm2736_vm2, %v4629_v49  ;;  %v4755_v7 = vpop.permute.xlu0 %4754  ;;  %v7985_v55 = vld [vmem:[#allocation4 + $0x51] sm:$0xff]  ;;  %v7162_v3 = vpack.c.bf16 %v7134_v58, %v7133_v25  ;;  %v7984_v17 = vld [vmem:[#allocation4 + $0x49] sm:$0xff]  ;;  %v9803_v13 = vld [vmem:[%s14092_s7 + $0x30] sm:$0xff]  }
 0x70b   : > { %8450 = vmatprep.subr.bf16.mxu0 %v14312_v14  ;;  %4795 = vst.msk [vmem:[#allocation5 + $0xf0] sm:$0xff] %vm2865_vm3, %v4755_v7  ;;  %7919 = vrot.lane.b32.xlu1 %v7886_v51, %s9823_s18  ;;  %v8015_v42 = vpack.c.bf16 %v7985_v55, %v7984_v17  ;;  %v8113_v22 = vld [vmem:[#allocation4 + $0x4a] sm:$0xff]  ;;  %v8114_v49 = vld [vmem:[#allocation4 + $0x52] sm:$0xff] }
 0x70c   : > { %7517 = vrot.lane.b32.xlu0 %v7886_v51, %s9836_s21  ;;  %7178 = vst.msk [vmem:[#allocation5 + $0x60] sm:$0xff] %vm7038_vm5, %v7162_v3  ;;  %v8144_v55 = vpack.c.bf16 %v8114_v49, %v8113_v22  ;;  %v9804_v3 = vld [vmem:[%s14092_s7 + $0x38] sm:$0xff]   ;;  %v9806_v22 = vld [vmem:[%s14092_s7 + $0x48] sm:$0xff]  }
 0x70d   : > { %v6935_v63 = vpop.f32.mrb[88].mxu1  ;;  %v4631_v30 = vpop.permute.xlu1 %4630 }
 0x70e   : > { %8451 = vmatpush1.bf16.msra.mxu0 %v9802_v8  ;;  %v6936_v26 = vadd.f32 %v12988_v28, %v6935_v63  ;;  %4669 = vst.msk [vmem:[#allocation5 + $0x130] sm:$0xff] %vm2736_vm2, %v4631_v30  ;;  %v4757_v29 = vpop.permute.xlu0 %4756  ;;  %v6937_v41 = vpop.f32.mrb[89].mxu1  ;;  %v4887_v8 = vld [vmem:[#allocation5 + $0x98] sm:$0xff]  ;;  %v9805_v30 = vld [vmem:[%s14092_s7 + $0x40] sm:$0xff]  }
 0x70f   : > { %8452 = vmatprep.subr.bf16.mxu0 %v14312_v14  ;;  %4796 = vst.msk [vmem:[#allocation5 + $0x110] sm:$0xff] %vm2865_vm3, %v4757_v29  ;;  %v6938_v51 = vpop.f32.mrb[90].mxu1  ;;  %8048 = vrot.lane.b32.xlu1 %v8015_v42, %s9837_s26  ;;  %v4891_v29 = vld [vmem:[#allocation5 + $0xb8] sm:$0xff] }
 0x710   : > { %5405 = vmatmul.mubr.bf16.gmra.mrb[32].mxu0 %v4882_v27  ;;  %7101 = vst.msk [vmem:[#allocation4 + $0x61] sm:$0xff] %vm7038_vm5, %v6936_v26  ;;  %v6939_v25 = vadd.f32 %v12988_v28, %v6938_v51  ;;  %7646 = vrot.lane.b32.xlu0 %v8015_v42, %s9832_s13  ;;  %v6940_v58 = vpop.f32.mrb[91].mxu1  ;;  %v4886_v26 = vld [vmem:[#allocation5 + $0x90] sm:$0xff] }
 0x711   : > { %9484 = vmatprep.mubr.msk.bf16.mxu0 %vm1691_vm7, %v4887_v8  ;;  %v4633_v7 = vpop.permute.xlu1 %4632 }
 0x712   : > { %8453 = vmatpush1.bf16.msra.mxu0 %v9803_v13  ;;  %7102 = vst.msk [vmem:[#allocation4 + $0x69] sm:$0xff] %vm7038_vm5, %v6939_v25  ;;  %v4759_v17 = vpop.permute.xlu0 %4758 }
 0x713   : > { %4670 = vst.msk [vmem:[#allocation5 + $0x150] sm:$0xff] %vm2736_vm2, %v4633_v7  ;;  %8454 = vmatprep.subr.bf16.mxu0 %v14312_v14  ;;  %8177 = vrot.lane.b32.xlu1 %v8144_v55, %s9830_s11 }
 0x714   : > { %4797 = vst.msk [vmem:[#allocation5 + $0x130] sm:$0xff] %vm2865_vm3, %v4759_v17  ;;  %7261 = vrot.lane.b32.xlu0 %v8015_v42, %s9825_s20  ;;  %v9807_v17 = vld [vmem:[%s14092_s7 + $0x50] sm:$0xff]  }
 0x715   : > { %v4635_v63 = vpop.permute.xlu1 %4634 }
 0x716   : > { %8455 = vmatpush1.bf16.msra.mxu0 %v9804_v3  ;;  %4671 = vst.msk [vmem:[#allocation5 + $0x170] sm:$0xff] %vm2736_vm2, %v4635_v63  ;;  %v4761_v13 = vpop.permute.xlu0 %4760 }
 0x717   : > { %8456 = vmatprep.subr.bf16.mxu0 %v14312_v14  ;;  %4798 = vst.msk [vmem:[#allocation5 + $0x150] sm:$0xff] %vm2865_vm3, %v4761_v13  ;;  %7775 = vrot.lane.b32.xlu1 %v8144_v55, %s9835_s19  ;;  %v7857_v27 = vld [vmem:[#allocation4 + $0x60] sm:$0xff] }
 0x718   : > { %5413 = vmatmul.mubr.bf16.gmra.mrb[36].mxu0 %v4886_v26  ;;  %7390 = vrot.lane.b32.xlu0 %v8144_v55, %s9829_s29  ;;  %v7135_v8 = vld [vmem:[#allocation4 + $0x60] sm:$0xff]  ;;  %v4895_v26 = vld [vmem:[#allocation5 + $0xd8] sm:$0xff] }
 0x719   : > { %9485 = vmatprep.mubr.msk.bf16.mxu0 %vm1691_vm7, %v4891_v29  ;;  %v4637_v42 = vpop.permute.xlu1 %4636  ;;  %v7858_v41 = vld [vmem:[#allocation4 + $0x68] sm:$0xff] }
 0x71a   : > { %8457 = vmatpush1.bf16.msra.mxu0 %v9805_v30  ;;  %4672 = vst.msk [vmem:[#allocation5 + $0x190] sm:$0xff] %vm2736_vm2, %v4637_v42  ;;  %v4763_v49 = vpop.permute.xlu0 %4762  ;;  %v7887_v51 = vpack.c.bf16 %v7858_v41, %v7857_v27  ;;  %v7136_v25 = vld [vmem:[#allocation4 + $0x68] sm:$0xff]  ;;  %v4890_v30 = vld [vmem:[#allocation5 + $0xb0] sm:$0xff] }
 0x71b   : > { %8458 = vmatprep.subr.bf16.mxu0 %v14312_v14  ;;  %4799 = vst.msk [vmem:[#allocation5 + $0x170] sm:$0xff] %vm2865_vm3, %v4763_v49  ;;  %v7987_v58 = vld [vmem:[#allocation4 + $0x69] sm:$0xff]  ;;  %v7163_v7 = vpack.c.bf16 %v7136_v25, %v7135_v8  ;;  %v7986_v3 = vld [vmem:[#allocation4 + $0x61] sm:$0xff] }
 0x71c   : > { %7921 = vrot.lane.b32.xlu1 %v7887_v51, %s9823_s18  ;;  %7519 = vrot.lane.b32.xlu0 %v7887_v51, %s9836_s21  ;;  %v8016_v13 = vpack.c.bf16 %v7987_v58, %v7986_v3  ;;  %v8115_v29 = vld [vmem:[#allocation4 + $0x62] sm:$0xff]  ;;  %v8116_v42 = vld [vmem:[#allocation4 + $0x6a] sm:$0xff] }
 0x71d   : > { %v4511_v55 = vpop.permute.xlu1 %4510  ;;  %7179 = vst.msk [vmem:[#allocation5 + $0x80] sm:$0xff] %vm7038_vm5, %v7163_v7  ;;  %v9808_v51 = vld [vmem:[%s14092_s7 + $0x58] sm:$0xff]   ;;  %v8145_v58 = vpack.c.bf16 %v8116_v42, %v8115_v29 }
 0x71e   : > { %8459 = vmatpush1.bf16.msra.mxu0 %v9806_v22  ;;  %4545 = vst.msk [vmem:[#allocation5 + $0x1b0] sm:$0xff] %vm2607_vm1, %v4511_v55  ;;  %v4765_v63 = vpop.permute.xlu0 %4764  ;;  %v4899_v29 = vld [vmem:[#allocation5 + $0xf8] sm:$0xff] }
 0x71f   : > { %8460 = vmatprep.subr.bf16.mxu0 %v14312_v14  ;;  %4800 = vst.msk [vmem:[#allocation5 + $0x190] sm:$0xff] %vm2865_vm3, %v4765_v63  ;;  %v6943_v27 = vpop.f32.mrb[92].mxu1  ;;  %v4894_v63 = vld [vmem:[#allocation5 + $0xd0] sm:$0xff] }
 0x720   : > { %5421 = vmatmul.mubr.bf16.gmra.mrb[40].mxu0 %v4890_v30  ;;  %8050 = vrot.lane.b32.xlu1 %v8016_v13, %s9837_s26  ;;  %v6944_v41 = vadd.f32 %v12988_v28, %v6943_v27  ;;  %v6945_v22 = vpop.f32.mrb[93].mxu1 }
 0x721   : > { %9486 = vmatprep.mubr.msk.bf16.mxu0 %vm1691_vm7, %v4895_v26  ;;  %7648 = vrot.lane.b32.xlu0 %v8016_v13, %s9832_s13  ;;  %v4767_v49 = vpop.permute.xlu1 %4766  ;;  %v6946_v25 = vpop.f32.mrb[94].mxu1  ;;  %v9810_v26 = vld [vmem:[%s14092_s7 + $0x68] ss:$0 sps:$4 sm:$0xff]  }
 0x722   : > { %8461 = vmatpush1.bf16.msra.mxu0 %v9807_v17  ;;  %v4639_v8 = vpop.permute.xlu0 %4638  ;;  %7103 = vst.msk [vmem:[#allocation4 + $0x79] sm:$0xff] %vm7038_vm5, %v6944_v41  ;;  %v6947_v7 = vadd.f32 %v12988_v28, %v6946_v25  ;;  %v6948_v55 = vpop.f32.mrb[95].mxu1  ;;  %v9809_v17 = vld [vmem:[%s14092_s7 + $0x60] sm:$0xff]   ;;  %v8438_v27 = vsel %vm8436_vm8, %v9810_v26, 0  ;;  %v4898_v25 = vld [vmem:[#allocation5 + $0xf0] sm:$0xff] }
 0x723   : > { %8462 = vmatprep.subr.bf16.mxu0 %v14312_v14  ;;  %4673 = vst.msk [vmem:[#allocation5 + $0x1b0] sm:$0xff] %vm2736_vm2, %v4639_v8 }
 0x724   : > { %4801 = vst.msk [vmem:[#allocation5 + $0x1b0] sm:$0xff] %vm2865_vm3, %v4767_v49  ;;  %8179 = vrot.lane.b32.xlu1 %v8145_v58, %s9830_s11 }
 0x725   : > { %7104 = vst.msk [vmem:[#allocation4 + $0x81] sm:$0xff] %vm7038_vm5, %v6947_v7  ;;  %7263 = vrot.lane.b32.xlu0 %v8016_v13, %s9825_s20  ;;  %v4641_v3 = vpop.permute.xlu1 %4640 }
 0x726   : > { %8463 = vmatpush1.bf16.msra.mxu0 %v9808_v51  ;;  %v4513_v30 = vpop.permute.xlu0 %4512 }
 0x727   : > { %8464 = vmatprep.subr.bf16.mxu0 %v14312_v14  ;;  %4546 = vst.msk [vmem:[#allocation5 + $0x1d0] sm:$0xff] %vm2607_vm1, %v4513_v30 }
 0x728   : > { %5429 = vmatmul.mubr.bf16.gmra.mrb[44].mxu0 %v4894_v63  ;;  %7777 = vrot.lane.b32.xlu1 %v8145_v58, %s9835_s19  ;;  %4674 = vst.msk [vmem:[#allocation5 + $0x1d0] sm:$0xff] %vm2736_vm2, %v4641_v3  ;;  %v4903_v3 = vld [vmem:[#allocation5 + $0x118] sm:$0xff] }
 0x729   : > { %9487 = vmatprep.mubr.msk.bf16.mxu0 %vm1691_vm7, %v4899_v29  ;;  %7392 = vrot.lane.b32.xlu0 %v8145_v58, %s9829_s29  ;;  %v4515_v13 = vpop.permute.xlu1 %4514  ;;  %v7859_v41 = vld [vmem:[#allocation4 + $0x78] sm:$0xff] }
 0x72a   : > { %8465 = vmatpush1.bf16.msra.mxu0 %v9809_v17  ;;  %v4769_v42 = vpop.permute.xlu0 %4768  ;;  %4547 = vst.msk [vmem:[#allocation5 + $0x1f0] sm:$0xff] %vm2607_vm1, %v4515_v13  ;;  %v7137_v51 = vld [vmem:[#allocation4 + $0x78] sm:$0xff]  ;;  %vm8387_vm1 = vcmask 719872  }
 0x72b   : > { %8466 = vmatprep.subr.bf16.mxu0 %v14312_v14  ;;  %4802 = vst.msk [vmem:[#allocation5 + $0x1d0] sm:$0xff] %vm2865_vm3, %v4769_v42  ;;  %v7988_v17 = vld [vmem:[#allocation4 + $0x79] sm:$0xff] }
 0x72c   : > { %v7860_v22 = vld [vmem:[#allocation4 + $0x80] sm:$0xff] }
 0x72d   : > { %v7888_v49 = vpack.c.bf16 %v7860_v22, %v7859_v41  ;;  %v7138_v8 = vld [vmem:[#allocation4 + $0x80] sm:$0xff]  ;;  %v4771_v14 = vpop.permute.xlu1 %4770 }
 0x72e   : > { %8467 = vmatpush1.bf16.msra.mxu0 %v8438_v27  ;;  %v7989_v7 = vld [vmem:[#allocation4 + $0x81] sm:$0xff]  ;;  %v4643_v55 = vpop.permute.xlu0 %4642  ;;  %v7164_v58 = vpack.c.bf16 %v7138_v8, %v7137_v51 }
 0x72f   : > { %7923 = vrot.lane.b32.xlu1 %v7888_v49, %s9823_s18  ;;  %4675 = vst.msk [vmem:[#allocation5 + $0x1f0] sm:$0xff] %vm2736_vm2, %v4643_v55  ;;  %7521 = vrot.lane.b32.xlu0 %v7888_v49, %s9836_s21  ;;  %v8017_v30 = vpack.c.bf16 %v7989_v7, %v7988_v17  ;;  %v8117_v13 = vld [vmem:[#allocation4 + $0x7a] sm:$0xff]  ;;  %v8118_v42 = vld [vmem:[#allocation4 + $0x82] sm:$0xff]  ;;  %vm8985_vm2 = vcmask 326656  }
 0x730   : > { %5437 = vmatmul.mubr.bf16.gmra.mrb[48].mxu0 %v4898_v25  ;;  %4803 = vst.msk [vmem:[#allocation5 + $0x1f0] sm:$0xff] %vm2865_vm3, %v4771_v14  ;;  %v8146_v51 = vpack.c.bf16 %v8118_v42, %v8117_v13  ;;  %v4902_v8 = vld [vmem:[#allocation5 + $0x110] sm:$0xff]  ;;  %v4907_v7 = vld [vmem:[#allocation5 + $0x138] sm:$0xff]  ;;  %vm9018_vm3 = vcmask 523264  }
 0x731   : > { %9488 = vmatprep.mubr.msk.bf16.mxu0 %vm1691_vm7, %v4903_v3  ;;  %7180 = vst.msk [vmem:[#allocation5 + $0xa0] sm:$0xff] %vm7038_vm5, %v7164_v58  ;;  %v6951_v63 = vpop.f32.mrb[96].mxu1  ;;  %v4906_v3 = vld [vmem:[#allocation5 + $0x130] sm:$0xff] }
 0x732   : > { %v6952_v26 = vadd.f32 %v12988_v28, %v6951_v63  ;;  %v6953_v29 = vpop.f32.mrb[97].mxu1  ;;  %v7256_v27 = vpop.permute.xlu0 %7255 }
 0x733   : > { %v6954_v41 = vpop.f32.mrb[98].mxu1  ;;  %8052 = vrot.lane.b32.xlu1 %v8017_v30, %s9837_s26  ;;  %7304 = vst.msk [vmem:[#allocation5] sm:$0xff] %vm7303_vm9, %v7256_v27  ;;  %7650 = vrot.lane.b32.xlu0 %v8017_v30, %s9832_s13 }
 0x734   : > { %7105 = vst.msk [vmem:[#allocation4 + $0x91] sm:$0xff] %vm7038_vm5, %v6952_v26  ;;  %v6955_v22 = vadd.f32 %v12988_v28, %v6954_v41  ;;  %v6956_v49 = vpop.f32.mrb[99].mxu1  ;;  %v4911_v26 = vld [vmem:[#allocation5 + $0x158] sm:$0xff] }
 0x736   : > { %7106 = vst.msk [vmem:[#allocation4 + $0x99] sm:$0xff] %vm7038_vm5, %v6955_v22  ;;  %v7385_v25 = vpop.permute.xlu0 %7384 }
 0x737   : > { %8181 = vrot.lane.b32.xlu1 %v8146_v51, %s9830_s11  ;;  %7433 = vst.msk [vmem:[#allocation5] sm:$0xff] %vm7432_vm10, %v7385_v25  ;;  %7265 = vrot.lane.b32.xlu0 %v8017_v30, %s9825_s20 }
 0x738   : > { %5445 = vmatmul.mubr.bf16.gmra.mrb[52].mxu0 %v4902_v8  ;;  %v4910_v8 = vld [vmem:[#allocation5 + $0x150] sm:$0xff] }
 0x739   : > { %9489 = vmatprep.mubr.msk.bf16.mxu0 %vm1691_vm7, %v4907_v7 }
 0x73b   : > { %7779 = vrot.lane.b32.xlu1 %v8146_v51, %s9835_s19  ;;  %7394 = vrot.lane.b32.xlu0 %v8146_v51, %s9829_s29  ;;  %v7861_v55 = vld [vmem:[#allocation4 + $0x90] sm:$0xff] }
 0x73c   : > { %v7139_v17 = vld [vmem:[#allocation4 + $0x90] sm:$0xff] }
 0x73d   : > { %v7862_v58 = vld [vmem:[#allocation4 + $0x98] sm:$0xff] }
 0x73e   : > { %v7889_v14 = vpack.c.bf16 %v7862_v58, %v7861_v55  ;;  %v7140_v63 = vld [vmem:[#allocation4 + $0x98] sm:$0xff]  ;;  %v4915_v58 = vld [vmem:[#allocation5 + $0x178] sm:$0xff] }
 0x73f   : > { %v7991_v29 = vld [vmem:[#allocation4 + $0x99] sm:$0xff]  ;;  %v7165_v13 = vpack.c.bf16 %v7140_v63, %v7139_v17  ;;  %v7990_v30 = vld [vmem:[#allocation4 + $0x91] sm:$0xff]  ;;  %v4919_v17 = vld [vmem:[#allocation5 + $0x198] sm:$0xff] }
 0x740   : > { %5453 = vmatmul.mubr.bf16.gmra.mrb[56].mxu0 %v4906_v3  ;;  %7925 = vrot.lane.b32.xlu1 %v7889_v14, %s9823_s18  ;;  %v8018_v42 = vpack.c.bf16 %v7991_v29, %v7990_v30  ;;  %v8119_v27 = vld [vmem:[#allocation4 + $0x92] sm:$0xff]  ;;  %v8120_v41 = vld [vmem:[#allocation4 + $0x9a] sm:$0xff] }
 0x741   : > { %9490 = vmatprep.mubr.msk.bf16.mxu0 %vm1691_vm7, %v4911_v26  ;;  %7523 = vrot.lane.b32.xlu0 %v7889_v14, %s9836_s21  ;;  %7181 = vst.msk [vmem:[#allocation5 + $0xc0] sm:$0xff] %vm7038_vm5, %v7165_v13  ;;  %v8147_v7 = vpack.c.bf16 %v8120_v41, %v8119_v27  ;;  %v4914_v14 = vld [vmem:[#allocation5 + $0x170] sm:$0xff] }
 0x743   : > { %v6959_v22 = vpop.f32.mrb[100].mxu1 }
 0x744   : > { %8054 = vrot.lane.b32.xlu1 %v8018_v42, %s9837_s26  ;;  %v6960_v49 = vadd.f32 %v12988_v28, %v6959_v22  ;;  %v6961_v51 = vpop.f32.mrb[101].mxu1 }
 0x745   : > { %7652 = vrot.lane.b32.xlu0 %v8018_v42, %s9832_s13  ;;  %v6962_v25 = vpop.f32.mrb[102].mxu1 }
 0x746   : > { %7107 = vst.msk [vmem:[#allocation4 + $0xa9] sm:$0xff] %vm7038_vm5, %v6960_v49  ;;  %v6963_v55 = vadd.f32 %v12988_v28, %v6962_v25  ;;  %v6964_v3 = vpop.f32.mrb[103].mxu1 }
 0x748   : > { %5461 = vmatmul.mubr.bf16.gmra.mrb[60].mxu0 %v4910_v8  ;;  %8183 = vrot.lane.b32.xlu1 %v8147_v7, %s9830_s11  ;;  %7108 = vst.msk [vmem:[#allocation4 + $0xb1] sm:$0xff] %vm7038_vm5, %v6963_v55 }
 0x749   : > { %9491 = vmatprep.mubr.msk.bf16.mxu0 %vm1691_vm7, %v4915_v58  ;;  %7267 = vrot.lane.b32.xlu0 %v8018_v42, %s9825_s20  ;;  %v4918_v58 = vld [vmem:[#allocation5 + $0x190] sm:$0xff] }
 0x74c   : > { %7781 = vrot.lane.b32.xlu1 %v8147_v7, %s9835_s19 }
 0x74d   : > { %7396 = vrot.lane.b32.xlu0 %v8147_v7, %s9829_s29  ;;  %v7863_v63 = vld [vmem:[#allocation4 + $0xa8] sm:$0xff] }
 0x74e   : > { %v7141_v30 = vld [vmem:[#allocation4 + $0xa8] sm:$0xff] }
 0x74f   : > { %v7864_v26 = vld [vmem:[#allocation4 + $0xb0] sm:$0xff] }
 0x750   : > { %5469 = vmatmul.mubr.bf16.gmra.mrb[64].mxu0 %v4914_v14  ;;  %v6967_v29 = vpop.f32.mrb[104].mxu1  ;;  %v7890_v13 = vpack.c.bf16 %v7864_v26, %v7863_v63  ;;  %v7142_v27 = vld [vmem:[#allocation4 + $0xb0] sm:$0xff] }
 0x751   : > { %9492 = vmatprep.mubr.msk.bf16.mxu0 %vm1691_vm7, %v4919_v17  ;;  %v6968_v41 = vadd.f32 %v12988_v28, %v6967_v29  ;;  %v6969_v22 = vpop.f32.mrb[105].mxu1  ;;  %v7993_v49 = vld [vmem:[#allocation4 + $0xb1] sm:$0xff]  ;;  %v7166_v42 = vpack.c.bf16 %v7142_v27, %v7141_v30  ;;  %v7992_v7 = vld [vmem:[#allocation4 + $0xa9] sm:$0xff]  ;;  %v4922_v30 = vld [vmem:[#allocation5 + $0x1b0] sm:$0xff] }
 0x752   : > { %7927 = vrot.lane.b32.xlu1 %v7890_v13, %s9823_s18  ;;  %v6970_v51 = vpop.f32.mrb[106].mxu1  ;;  %7525 = vrot.lane.b32.xlu0 %v7890_v13, %s9836_s21  ;;  %v8019_v55 = vpack.c.bf16 %v7993_v49, %v7992_v7  ;;  %v8121_v3 = vld [vmem:[#allocation4 + $0xaa] sm:$0xff]  ;;  %v8122_v14 = vld [vmem:[#allocation4 + $0xb2] sm:$0xff] }
 0x753   : > { %7109 = vst.msk [vmem:[#allocation4 + $0xc1] sm:$0xff] %vm7038_vm5, %v6968_v41  ;;  %v6971_v8 = vadd.f32 %v12988_v28, %v6970_v51  ;;  %v6972_v25 = vpop.f32.mrb[107].mxu1  ;;  %7182 = vst.msk [vmem:[#allocation5 + $0xe0] sm:$0xff] %vm7038_vm5, %v7166_v42  ;;  %v4923_v17 = vld [vmem:[#allocation5 + $0x1b8] sm:$0xff]  ;;  %v8148_v29 = vpack.c.bf16 %v8122_v14, %v8121_v3 }
 0x754   : > { %v4927_v27 = vld [vmem:[#allocation5 + $0x1d8] sm:$0xff] }
 0x755   : > { %7110 = vst.msk [vmem:[#allocation4 + $0xc9] sm:$0xff] %vm7038_vm5, %v6971_v8 }
 0x756   : > { %8056 = vrot.lane.b32.xlu1 %v8019_v55, %s9837_s26  ;;  %7654 = vrot.lane.b32.xlu0 %v8019_v55, %s9832_s13 }
 0x758   : > { %5477 = vmatmul.mubr.bf16.gmra.mrb[68].mxu0 %v4918_v58 }
 0x759   : > { %9493 = vmatprep.mubr.msk.bf16.mxu0 %vm1691_vm7, %v4923_v17  ;;  %v7772_v63 = vpop.permute.xlu1 %7771 }
 0x75a   : > { %v7514_v26 = vpop.permute.xlu0 %7513  ;;  %7821 = vst.msk [vmem:[#allocation5 + $0x8] sm:$0xff] %vm1691_vm7, %v7772_v63  ;;  %8185 = vrot.lane.b32.xlu1 %v8148_v29, %s9830_s11  ;;  %7269 = vrot.lane.b32.xlu0 %v8019_v55, %s9825_s20  ;;  %v7143_v22 = vld [vmem:[#allocation4 + $0xc0] sm:$0xff] }
 0x75b   : > { %7562 = vst.msk [vmem:[#allocation5] sm:$0xff] %vm7561_vm11, %v7514_v26  ;;  %v7865_v8 = vld [vmem:[#allocation4 + $0xc0] sm:$0xff] }
 0x75c   : > { %v7866_v41 = vld [vmem:[#allocation4 + $0xc8] sm:$0xff]  ;;  %v4926_v26 = vld [vmem:[#allocation5 + $0x1d0] sm:$0xff] }
 0x75d   : > { %v7144_v49 = vld [vmem:[#allocation4 + $0xc8] sm:$0xff]  ;;  %v7891_v58 = vpack.c.bf16 %v7866_v41, %v7865_v8  ;;  %v4930_v8 = vld [vmem:[#allocation5 + $0x1f0] sm:$0xff] }
 0x75e   : > { %v7643_v13 = vpop.permute.xlu0 %7642  ;;  %7783 = vrot.lane.b32.xlu1 %v8148_v29, %s9835_s19  ;;  %v7167_v42 = vpack.c.bf16 %v7144_v49, %v7143_v22  ;;  %7398 = vrot.lane.b32.xlu0 %v8148_v29, %s9829_s29  ;;  %v7995_v14 = vld [vmem:[#allocation4 + $0xc9] sm:$0xff]  ;;  %v7994_v29 = vld [vmem:[#allocation4 + $0xc1] sm:$0xff] }
 0x75f   : > { %7691 = vst.msk [vmem:[#allocation5] sm:$0xff] %vm7690_vm12, %v7643_v13  ;;  %v6975_v51 = vpop.f32.mrb[108].mxu1  ;;  %v8123_v41 = vld [vmem:[#allocation4 + $0xc2] sm:$0xff]  ;;  %v8124_v22 = vld [vmem:[#allocation4 + $0xca] sm:$0xff] }
 0x760   : > { %7820 = vst.msk [vmem:[#allocation5] sm:$0xff] %vm7819_vm13, %v7772_v63  ;;  %5485 = vmatmul.mubr.bf16.gmra.mrb[72].mxu0 %v4922_v30  ;;  %v6976_v25 = vadd.f32 %v12988_v28, %v6975_v51  ;;  %v6977_v7 = vpop.f32.mrb[109].mxu1  ;;  %v8020_v30 = vpack.c.bf16 %v7995_v14, %v7994_v29  ;;  %v8149_v49 = vpack.c.bf16 %v8124_v22, %v8123_v41 }
 0x761   : > { %9494 = vmatprep.mubr.msk.bf16.mxu0 %vm1691_vm7, %v4927_v27  ;;  %7183 = vst.msk [vmem:[#allocation5 + $0x100] sm:$0xff] %vm7038_vm5, %v7167_v42  ;;  %v6978_v3 = vpop.f32.mrb[110].mxu1  ;;  %v4931_v27 = vld [vmem:[#allocation5 + $0x1f8] sm:$0xff] }
 0x762   : > { %v7258_v55 = vpop.permute.xlu0 %7257  ;;  %7111 = vst.msk [vmem:[#allocation4 + $0xd9] sm:$0xff] %vm7038_vm5, %v6976_v25  ;;  %v6979_v17 = vadd.f32 %v12988_v28, %v6978_v3  ;;  %7929 = vrot.lane.b32.xlu1 %v7891_v58, %s9823_s18  ;;  %v6980_v63 = vpop.f32.mrb[111].mxu1  ;;  %7527 = vrot.lane.b32.xlu0 %v7891_v58, %s9836_s21 }
 0x763   : > { %7305 = vst.msk [vmem:[#allocation5 + $0x20] sm:$0xff] %vm7303_vm9, %v7258_v55 }
 0x764   : > { %7112 = vst.msk [vmem:[#allocation4 + $0xe1] sm:$0xff] %vm7038_vm5, %v6979_v17 }
 0x766   : > { %v7387_v13 = vpop.permute.xlu0 %7386  ;;  %8058 = vrot.lane.b32.xlu1 %v8020_v30, %s9837_s26  ;;  %7656 = vrot.lane.b32.xlu0 %v8020_v30, %s9832_s13 }
 0x767   : > { %7434 = vst.msk [vmem:[#allocation5 + $0x20] sm:$0xff] %vm7432_vm10, %v7387_v13 }
 0x768   : > { %5493 = vmatmul.mubr.bf16.gmra.mrb[76].mxu0 %v4926_v26 }
 0x769   : > { %9495 = vmatprep.mubr.msk.bf16.mxu0 %vm1691_vm7, %v4931_v27  ;;  %v7145_v14 = vld [vmem:[#allocation4 + $0xd8] sm:$0xff] }
 0x76a   : > { %v7918_v42 = vpop.permute.xlu1 %7917  ;;  %8187 = vrot.lane.b32.xlu1 %v8149_v49, %s9830_s11  ;;  %7271 = vrot.lane.b32.xlu0 %v8020_v30, %s9825_s20  ;;  %v7867_v27 = vld [vmem:[#allocation4 + $0xd8] sm:$0xff] }
 0x76b   : > { %7966 = vst.msk [vmem:[#allocation5 + $0x8] sm:$0xff] %vm7965_vm14, %v7918_v42  ;;  %v7516_v51 = vpop.permute.xlu0 %7515  ;;  %v7868_v3 = vld [vmem:[#allocation4 + $0xe0] sm:$0xff] }
 0x76c   : > { %7563 = vst.msk [vmem:[#allocation5 + $0x20] sm:$0xff] %vm7561_vm11, %v7516_v51  ;;  %v6983_v25 = vpop.f32.mrb[112].mxu1  ;;  %v7146_v17 = vld [vmem:[#allocation4 + $0xe0] sm:$0xff]  ;;  %v7892_v41 = vpack.c.bf16 %v7868_v3, %v7867_v27 }
 0x76d   : > { %v6984_v7 = vadd.f32 %v12988_v28, %v6983_v25  ;;  %v6985_v58 = vpop.f32.mrb[113].mxu1  ;;  %v7168_v29 = vpack.c.bf16 %v7146_v17, %v7145_v14  ;;  %v7997_v42 = vld [vmem:[#allocation4 + $0xe1] sm:$0xff] }
 0x76e   : > { %v8047_v55 = vpop.permute.xlu1 %8046  ;;  %7785 = vrot.lane.b32.xlu1 %v8149_v49, %s9835_s19  ;;  %v6986_v26 = vpop.f32.mrb[114].mxu1  ;;  %7400 = vrot.lane.b32.xlu0 %v8149_v49, %s9829_s29  ;;  %v8125_v25 = vld [vmem:[#allocation4 + $0xda] sm:$0xff] }
 0x76f   : > { %8095 = vst.msk [vmem:[#allocation5 + $0x8] sm:$0xff] %vm8094_vm15, %v8047_v55  ;;  %v7645_v63 = vpop.permute.xlu0 %7644  ;;  %v6987_v13 = vadd.f32 %v12988_v28, %v6986_v26  ;;  %v6988_v30 = vpop.f32.mrb[115].mxu1  ;;  %v7996_v28 = vld [vmem:[#allocation4 + $0xd9] sm:$0xff]  ;;  %v8240_v26 = vld [vmem:[#allocation5] sm:$0xff] }
 0x770   : > { %5501 = vmatmul.mubr.bf16.gmra.mrb[80].mxu0 %v4930_v8  ;;  %7113 = vst.msk [vmem:[#allocation4 + $0xf1] sm:$0xff] %vm7038_vm5, %v6984_v7  ;;  %7184 = vst.msk [vmem:[#allocation5 + $0x120] sm:$0xff] %vm7038_vm5, %v7168_v29  ;;  %v8021_v49 = vpack.c.bf16 %v7997_v42, %v7996_v28  ;;  %v8126_v7 = vld [vmem:[#allocation4 + $0xe2] sm:$0xff] }
 0x771   : > { %7692 = vst.msk [vmem:[#allocation5 + $0x20] sm:$0xff] %vm7690_vm12, %v7645_v63  ;;  %v8150_v58 = vpack.c.bf16 %v8126_v7, %v8125_v25 }
 0x772   : > { %7114 = vst.msk [vmem:[#allocation4 + $0xf9] sm:$0xff] %vm7038_vm5, %v6987_v13  ;;  %v8176_v22 = vpop.permute.xlu1 %8175  ;;  %7931 = vrot.lane.b32.xlu1 %v7892_v41, %s9823_s18  ;;  %7529 = vrot.lane.b32.xlu0 %v7892_v41, %s9836_s21  ;;  %v13246_v13 = vld [vmem:[%s14091_s6] ss:$0 sm:$0xff] }
 0x773   : > { %8224 = vst.msk [vmem:[#allocation5 + $0x8] sm:$0xff] %vm8223_vm0, %v8176_v22  ;;  %v7260_v51 = vpop.permute.xlu0 %7259 }
 0x774   : > { %7306 = vst.msk [vmem:[#allocation5 + $0x40] sm:$0xff] %vm7303_vm9, %v7260_v51 }
 0x776   : > { %v7774_v8 = vpop.permute.xlu1 %7773  ;;  %8060 = vrot.lane.b32.xlu1 %v8021_v49, %s9837_s26  ;;  %7658 = vrot.lane.b32.xlu0 %v8021_v49, %s9832_s13 }
 0x777   : > { %7822 = vst.msk [vmem:[#allocation5 + $0x20] sm:$0xff] %vm7819_vm13, %v7774_v8  ;;  %v7389_v55 = vpop.permute.xlu0 %7388  ;;  %v7869_v3 = vld [vmem:[#allocation4 + $0xf0] sm:$0xff] }
 0x778   : > { %7823 = vst.msk [vmem:[#allocation5 + $0x28] sm:$0xff] %vm1691_vm7, %v7774_v8  ;;  %v7998_v7 = vld [vmem:[#allocation4 + $0xf1] sm:$0xff] }
 0x779   : > { %7435 = vst.msk [vmem:[#allocation5 + $0x40] sm:$0xff] %vm7432_vm10, %v7389_v55  ;;  %v7870_v14 = vld [vmem:[#allocation4 + $0xf8] sm:$0xff] }
 0x77a   : > { %v8241_v17 = vld [vmem:[#allocation5 + $0x8] sm:$0xff]  ;;  %v7893_v63 = vpack.c.bf16 %v7870_v14, %v7869_v3  ;;  %8189 = vrot.lane.b32.xlu1 %v8150_v58, %s9830_s11  ;;  %7273 = vrot.lane.b32.xlu0 %v8021_v49, %s9825_s20 }
 0x77b   : > { %9537 = vmatprep.mubr.msk.bf16.mxu0 %vm8387_vm1, %v8241_v17  ;;  %v6991_v29 = vpop.f32.mrb[116].mxu1  ;;  %v7999_v25 = vld [vmem:[#allocation4 + $0xf9] sm:$0xff] }
 0x77c   : > { %8473 = vmatmul.mubr.bf16.vlgmr.msra.gmra.mrb[84].mxu0 %v8240_v26  ;;  %7185 = vst.msk [vmem:[#allocation5 + $0x140] sm:$0xff] %vm7038_vm5, %v7893_v63  ;;  %v6992_v30 = vadd.f32 %v13246_v13, %v6991_v29  ;;  %v6993_v41 = vpop.f32.mrb[117].mxu1  ;;  %v8022_v3 = vpack.c.bf16 %v7999_v25, %v7998_v7  ;;  %v8128_v17 = vld [vmem:[#allocation4 + $0xfa] sm:$0xff] }
 0x77d   : > { %v7920_v27 = vpop.permute.xlu1 %7919  ;;  %v6994_v42 = vpop.f32.mrb[118].mxu1 }
 0x77e   : > { %7967 = vst.msk [vmem:[#allocation5 + $0x28] sm:$0xff] %vm7965_vm14, %v7920_v27  ;;  %v7518_v22 = vpop.permute.xlu0 %7517  ;;  %v6995_v51 = vadd.f32 %v13246_v13, %v6994_v42  ;;  %7787 = vrot.lane.b32.xlu1 %v8150_v58, %s9835_s19  ;;  %v6996_v28 = vpop.f32.mrb[119].mxu1  ;;  %7402 = vrot.lane.b32.xlu0 %v8150_v58, %s9829_s29  ;;  %v8127_v58 = vld [vmem:[#allocation4 + $0xf2] sm:$0xff] }
 0x77f   : > { %7115 = vst.msk [vmem:[#allocation4 + $0x109] sm:$0xff] %vm7038_vm5, %v6992_v30  ;;  %v8151_v41 = vpack.c.bf16 %v8128_v17, %v8127_v58 }
 0x780   : > { %7564 = vst.msk [vmem:[#allocation5 + $0x40] sm:$0xff] %vm7561_vm11, %v7518_v22 }
 0x781   : > { %7116 = vst.msk [vmem:[#allocation4 + $0x111] sm:$0xff] %vm7038_vm5, %v6995_v51  ;;  %v8049_v49 = vpop.permute.xlu1 %8048 }
 0x782   : > { %8096 = vst.msk [vmem:[#allocation5 + $0x28] sm:$0xff] %vm8094_vm15, %v8049_v49  ;;  %v7647_v8 = vpop.permute.xlu0 %7646  ;;  %7933 = vrot.lane.b32.xlu1 %v7893_v63, %s9823_s18  ;;  %7531 = vrot.lane.b32.xlu0 %v7893_v63, %s9836_s21 }
 0x783   : > { %7693 = vst.msk [vmem:[#allocation5 + $0x40] sm:$0xff] %vm7690_vm12, %v7647_v8 }
 0x785   : > { %v8178_v55 = vpop.permute.xlu1 %8177 }
 0x786   : > { %8225 = vst.msk [vmem:[#allocation5 + $0x28] sm:$0xff] %vm8223_vm0, %v8178_v55  ;;  %v7262_v14 = vpop.permute.xlu0 %7261  ;;  %8062 = vrot.lane.b32.xlu1 %v8022_v3, %s9837_s26  ;;  %7660 = vrot.lane.b32.xlu0 %v8022_v3, %s9832_s13  ;;  %v7871_v26 = vld [vmem:[#allocation4 + $0x108] sm:$0xff] }
 0x787   : > { %7307 = vst.msk [vmem:[#allocation5 + $0x60] sm:$0xff] %vm7303_vm9, %v7262_v14  ;;  %v8242_v14 = vld [vmem:[#allocation5 + $0x20] sm:$0xff] }
 0x788   : > { %v7872_v29 = vld [vmem:[#allocation4 + $0x110] sm:$0xff]  ;;  %v6999_v27 = vpop.f32.mrb[120].mxu1 }
 0x789   : > { %v7776_v30 = vpop.permute.xlu1 %7775  ;;  %v7894_v63 = vpack.c.bf16 %v7872_v29, %v7871_v26  ;;  %v7000_v22 = vadd.f32 %v13246_v13, %v6999_v27  ;;  %v7001_v51 = vpop.f32.mrb[121].mxu1  ;;  %v8000_v26 = vld [vmem:[#allocation4 + $0x109] sm:$0xff] }
 0x78a   : > { %7824 = vst.msk [vmem:[#allocation5 + $0x40] sm:$0xff] %vm7819_vm13, %v7776_v30  ;;  %v7391_v42 = vpop.permute.xlu0 %7390  ;;  %8191 = vrot.lane.b32.xlu1 %v8151_v41, %s9830_s11  ;;  %v7002_v28 = vpop.f32.mrb[122].mxu1  ;;  %7275 = vrot.lane.b32.xlu0 %v8022_v3, %s9825_s20  ;;  %v8001_v3 = vld [vmem:[#allocation4 + $0x111] sm:$0xff] }
 0x78b   : > { %7825 = vst.msk [vmem:[#allocation5 + $0x48] sm:$0xff] %vm1691_vm7, %v7776_v30  ;;  %v7003_v49 = vadd.f32 %v13246_v13, %v7002_v28  ;;  %v7004_v8 = vpop.f32.mrb[123].mxu1  ;;  %v8023_v29 = vpack.c.bf16 %v8001_v3, %v8000_v26  ;;  %v8130_v51 = vld [vmem:[#allocation4 + $0x112] sm:$0xff] }
 0x78c   : > { %7436 = vst.msk [vmem:[#allocation5 + $0x60] sm:$0xff] %vm7432_vm10, %v7391_v42  ;;  %v8129_v42 = vld [vmem:[#allocation4 + $0x10a] sm:$0xff] }
 0x78d   : > { %7186 = vst.msk [vmem:[#allocation5 + $0x160] sm:$0xff] %vm7038_vm5, %v7894_v63  ;;  %7117 = vst.msk [vmem:[#allocation4 + $0x121] sm:$0xff] %vm7038_vm5, %v7000_v22  ;;  %v8243_v25 = vld [vmem:[#allocation5 + $0x28] sm:$0xff] }
 0x78e   : > { %7118 = vst.msk [vmem:[#allocation4 + $0x129] sm:$0xff] %vm7038_vm5, %v7003_v49  ;;  %v7922_v7 = vpop.permute.xlu1 %7921  ;;  %9538 = vmatprep.mubr.msk.bf16.mxu0 %vm8387_vm1, %v8243_v25  ;;  %v7520_v55 = vpop.permute.xlu0 %7519  ;;  %7789 = vrot.lane.b32.xlu1 %v8151_v41, %s9835_s19  ;;  %v8152_v25 = vpack.c.bf16 %v8130_v51, %v8129_v42 }
 0x78f   : > { %7968 = vst.msk [vmem:[#allocation5 + $0x48] sm:$0xff] %vm7965_vm14, %v7922_v7  ;;  %8481 = vmatmul.mubr.bf16.gmra.mrb[88].mxu0 %v8242_v14  ;;  %7404 = vrot.lane.b32.xlu0 %v8151_v41, %s9829_s29 }
 0x790   : > { %7565 = vst.msk [vmem:[#allocation5 + $0x60] sm:$0xff] %vm7561_vm11, %v7520_v55 }
 0x791   : > { %v8244_v26 = vld [vmem:[#allocation5 + $0x40] sm:$0xff] }
 0x792   : > { %v8051_v58 = vpop.permute.xlu1 %8050  ;;  %7935 = vrot.lane.b32.xlu1 %v7894_v63, %s9823_s18 }
 0x793   : > { %8097 = vst.msk [vmem:[#allocation5 + $0x48] sm:$0xff] %vm8094_vm15, %v8051_v58  ;;  %v7649_v17 = vpop.permute.xlu0 %7648  ;;  %7533 = vrot.lane.b32.xlu0 %v7894_v63, %s9836_s21 }
 0x794   : > { %7694 = vst.msk [vmem:[#allocation5 + $0x60] sm:$0xff] %vm7690_vm12, %v7649_v17  ;;  %v7873_v30 = vld [vmem:[#allocation4 + $0x120] sm:$0xff] }
 0x795   : > { %v7874_v27 = vld [vmem:[#allocation4 + $0x128] sm:$0xff] }
 0x796   : > { %v8180_v22 = vpop.permute.xlu1 %8179  ;;  %v7895_v28 = vpack.c.bf16 %v7874_v27, %v7873_v30  ;;  %8064 = vrot.lane.b32.xlu1 %v8023_v29, %s9837_s26 }
 0x797   : > { %8226 = vst.msk [vmem:[#allocation5 + $0x48] sm:$0xff] %vm8223_vm0, %v8180_v22  ;;  %v7264_v41 = vpop.permute.xlu0 %7263  ;;  %7662 = vrot.lane.b32.xlu0 %v8023_v29, %s9832_s13  ;;  %v7007_v49 = vpop.f32.mrb[124].mxu1  ;;  %v8003_v22 = vld [vmem:[#allocation4 + $0x129] sm:$0xff] }
 0x798   : > { %7308 = vst.msk [vmem:[#allocation5 + $0x80] sm:$0xff] %vm7303_vm9, %v7264_v41  ;;  %v7008_v63 = vadd.f32 %v13246_v13, %v7007_v49  ;;  %v7009_v8 = vpop.f32.mrb[125].mxu1 }
 0x799   : > { %7187 = vst.msk [vmem:[#allocation5 + $0x180] sm:$0xff] %vm7038_vm5, %v7895_v28  ;;  %v7010_v55 = vpop.f32.mrb[126].mxu1 }
 0x79a   : > { %v7778_v7 = vpop.permute.xlu1 %7777  ;;  %7119 = vst.msk [vmem:[#allocation4 + $0x139] sm:$0xff] %vm7038_vm5, %v7008_v63  ;;  %v7011_v14 = vadd.f32 %v13246_v13, %v7010_v55  ;;  %8193 = vrot.lane.b32.xlu1 %v8152_v25, %s9830_s11  ;;  %v7012_v3 = vpop.f32.mrb[127].mxu1 }
 0x79b   : > { %7826 = vst.msk [vmem:[#allocation5 + $0x60] sm:$0xff] %vm7819_vm13, %v7778_v7  ;;  %v7393_v58 = vpop.permute.xlu0 %7392  ;;  %7277 = vrot.lane.b32.xlu0 %v8023_v29, %s9825_s20  ;;  %v8002_v29 = vld [vmem:[#allocation4 + $0x121] sm:$0xff] }
 0x79c   : > { %7827 = vst.msk [vmem:[#allocation5 + $0x68] sm:$0xff] %vm1691_vm7, %v7778_v7  ;;  %v8024_v63 = vpack.c.bf16 %v8003_v22, %v8002_v29 }
 0x79d   : > { %7437 = vst.msk [vmem:[#allocation5 + $0x80] sm:$0xff] %vm7432_vm10, %v7393_v58  ;;  %v8132_v58 = vld [vmem:[#allocation4 + $0x12a] sm:$0xff] }
 0x79e   : > { %7120 = vst.msk [vmem:[#allocation4 + $0x141] sm:$0xff] %vm7038_vm5, %v7011_v14  ;;  %v8245_v17 = vld [vmem:[#allocation5 + $0x48] sm:$0xff]  ;;  %7791 = vrot.lane.b32.xlu1 %v8152_v25, %s9835_s19  ;;  %v8131_v14 = vld [vmem:[#allocation4 + $0x122] sm:$0xff] }
 0x79f   : > { %9539 = vmatprep.mubr.msk.bf16.mxu0 %vm8387_vm1, %v8245_v17  ;;  %7406 = vrot.lane.b32.xlu0 %v8152_v25, %s9829_s29 }
 0x7a0   : > { %8489 = vmatmul.mubr.bf16.gmra.mrb[92].mxu0 %v8244_v26 }
 0x7a1   : > { %v7924_v30 = vpop.permute.xlu1 %7923  ;;  %v7522_v27 = vpop.permute.xlu0 %7521  ;;  %v7875_v42 = vld [vmem:[#allocation4 + $0x138] sm:$0xff] }
 0x7a2   : > { %7969 = vst.msk [vmem:[#allocation5 + $0x68] sm:$0xff] %vm7965_vm14, %v7924_v30  ;;  %7937 = vrot.lane.b32.xlu1 %v7895_v28, %s9823_s18  ;;  %v8153_v30 = vpack.c.bf16 %v8132_v58, %v8131_v14  ;;  %v8004_v14 = vld [vmem:[#allocation4 + $0x139] sm:$0xff] }
 0x7a3   : > { %7566 = vst.msk [vmem:[#allocation5 + $0x80] sm:$0xff] %vm7561_vm11, %v7522_v27  ;;  %7535 = vrot.lane.b32.xlu0 %v7895_v28, %s9836_s21 }
 0x7a4   : > { %v7015_v49 = vpop.f32.mrb[128].mxu1 }
 0x7a5   : > { %v7876_v51 = vld [vmem:[#allocation4 + $0x140] sm:$0xff]  ;;  %v8053_v41 = vpop.permute.xlu1 %8052  ;;  %v7016_v25 = vadd.f32 %v13246_v13, %v7015_v49  ;;  %v7651_v7 = vpop.permute.xlu0 %7650 }
 0x7a6   : > { %v7896_v8 = vpack.c.bf16 %v7876_v51, %v7875_v42  ;;  %8098 = vst.msk [vmem:[#allocation5 + $0x68] sm:$0xff] %vm8094_vm15, %v8053_v41  ;;  %v7017_v55 = vpop.f32.mrb[129].mxu1  ;;  %8066 = vrot.lane.b32.xlu1 %v8024_v63, %s9837_s26 }
 0x7a7   : > { %7695 = vst.msk [vmem:[#allocation5 + $0x80] sm:$0xff] %vm7690_vm12, %v7651_v7  ;;  %v7018_v28 = vpop.f32.mrb[130].mxu1  ;;  %7664 = vrot.lane.b32.xlu0 %v8024_v63, %s9832_s13 }
 0x7a8   : > { %7188 = vst.msk [vmem:[#allocation5 + $0x1a0] sm:$0xff] %vm7038_vm5, %v7896_v8  ;;  %7121 = vst.msk [vmem:[#allocation4 + $0x151] sm:$0xff] %vm7038_vm5, %v7016_v25  ;;  %v7019_v3 = vadd.f32 %v13246_v13, %v7018_v28  ;;  %v7020_v17 = vpop.f32.mrb[131].mxu1  ;;  %v8246_v25 = vld [vmem:[#allocation5 + $0x60] sm:$0xff] }
 0x7a9   : > { %v8182_v26 = vpop.permute.xlu1 %8181  ;;  %v7266_v27 = vpop.permute.xlu0 %7265  ;;  %v8134_v17 = vld [vmem:[#allocation4 + $0x142] sm:$0xff] }
 0x7aa   : > { %7122 = vst.msk [vmem:[#allocation4 + $0x159] sm:$0xff] %vm7038_vm5, %v7019_v3  ;;  %8195 = vrot.lane.b32.xlu1 %v8153_v30, %s9830_s11  ;;  %v8133_v3 = vld [vmem:[#allocation4 + $0x13a] sm:$0xff] }
 0x7ab   : > { %8227 = vst.msk [vmem:[#allocation5 + $0x68] sm:$0xff] %vm8223_vm0, %v8182_v26  ;;  %7279 = vrot.lane.b32.xlu0 %v8024_v63, %s9825_s20  ;;  %v8005_v63 = vld [vmem:[#allocation4 + $0x141] sm:$0xff] }
 0x7ac   : > { %7309 = vst.msk [vmem:[#allocation5 + $0xa0] sm:$0xff] %vm7303_vm9, %v7266_v27  ;;  %v8025_v58 = vpack.c.bf16 %v8005_v63, %v8004_v14 }
 0x7ad   : > { %v7780_v22 = vpop.permute.xlu1 %7779  ;;  %v7395_v29 = vpop.permute.xlu0 %7394 }
 0x7ae   : > { %7828 = vst.msk [vmem:[#allocation5 + $0x80] sm:$0xff] %vm7819_vm13, %v7780_v22  ;;  %7793 = vrot.lane.b32.xlu1 %v8153_v30, %s9835_s19 }
 0x7af   : > { %7829 = vst.msk [vmem:[#allocation5 + $0x88] sm:$0xff] %vm1691_vm7, %v7780_v22  ;;  %7408 = vrot.lane.b32.xlu0 %v8153_v30, %s9829_s29  ;;  %v7877_v51 = vld [vmem:[#allocation4 + $0x150] sm:$0xff] }
 0x7b0   : > { %7438 = vst.msk [vmem:[#allocation5 + $0xa0] sm:$0xff] %vm7432_vm10, %v7395_v29  ;;  %v8154_v29 = vpack.c.bf16 %v8134_v17, %v8133_v3  ;;  %v8006_v17 = vld [vmem:[#allocation4 + $0x151] sm:$0xff] }
 0x7b1   : > { %v7878_v41 = vld [vmem:[#allocation4 + $0x158] sm:$0xff] }
 0x7b2   : > { %v8247_v42 = vld [vmem:[#allocation5 + $0x68] sm:$0xff]  ;;  %v7926_v49 = vpop.permute.xlu1 %7925  ;;  %v7897_v7 = vpack.c.bf16 %v7878_v41, %v7877_v51  ;;  %7939 = vrot.lane.b32.xlu1 %v7896_v8, %s9823_s18 }
 0x7b3   : > { %9540 = vmatprep.mubr.msk.bf16.mxu0 %vm8387_vm1, %v8247_v42  ;;  %7970 = vst.msk [vmem:[#allocation5 + $0x88] sm:$0xff] %vm7965_vm14, %v7926_v49  ;;  %v7524_v55 = vpop.permute.xlu0 %7523  ;;  %7537 = vrot.lane.b32.xlu0 %v7896_v8, %s9836_s21  ;;  %v8007_v14 = vld [vmem:[#allocation4 + $0x159] sm:$0xff] }
 0x7b4   : > { %8497 = vmatmul.mubr.bf16.gmra.mrb[96].mxu0 %v8246_v25  ;;  %7567 = vst.msk [vmem:[#allocation5 + $0xa0] sm:$0xff] %vm7561_vm11, %v7524_v55 }
 0x7b5   : > { %7189 = vst.msk [vmem:[#allocation5 + $0x1c0] sm:$0xff] %vm7038_vm5, %v7897_v7 }
 0x7b6   : > { %v8055_v28 = vpop.permute.xlu1 %8054  ;;  %8068 = vrot.lane.b32.xlu1 %v8025_v58, %s9837_s26 }
 0x7b7   : > { %8099 = vst.msk [vmem:[#allocation5 + $0x88] sm:$0xff] %vm8094_vm15, %v8055_v28  ;;  %v7023_v26 = vpop.f32.mrb[132].mxu1  ;;  %v7653_v30 = vpop.permute.xlu0 %7652  ;;  %7666 = vrot.lane.b32.xlu0 %v8025_v58, %s9832_s13  ;;  %v8248_v28 = vld [vmem:[#allocation5 + $0x80] sm:$0xff] }
 0x7b8   : > { %v7024_v27 = vadd.f32 %v13246_v13, %v7023_v26  ;;  %7696 = vst.msk [vmem:[#allocation5 + $0xa0] sm:$0xff] %vm7690_vm12, %v7653_v30  ;;  %v7025_v22 = vpop.f32.mrb[133].mxu1 }
 0x7b9   : > { %v7026_v8 = vpop.f32.mrb[134].mxu1  ;;  %v8026_v22 = vpack.c.bf16 %v8007_v14, %v8006_v17 }
 0x7ba   : > { %7123 = vst.msk [vmem:[#allocation4 + $0x169] sm:$0xff] %vm7038_vm5, %v7024_v27  ;;  %v7027_v42 = vadd.f32 %v13246_v13, %v7026_v8  ;;  %v7028_v51 = vpop.f32.mrb[135].mxu1  ;;  %v8184_v41 = vpop.permute.xlu1 %8183  ;;  %8197 = vrot.lane.b32.xlu1 %v8154_v29, %s9830_s11  ;;  %v13353_v8 = vld [vmem:[%s14089_s4] ss:$0 sm:$0xff] }
 0x7bb   : > { %8228 = vst.msk [vmem:[#allocation5 + $0x88] sm:$0xff] %vm8223_vm0, %v8184_v41  ;;  %v7268_v49 = vpop.permute.xlu0 %7267  ;;  %7281 = vrot.lane.b32.xlu0 %v8025_v58, %s9825_s20 }
 0x7bc   : > { %7124 = vst.msk [vmem:[#allocation4 + $0x171] sm:$0xff] %vm7038_vm5, %v7027_v42  ;;  %v8136_v42 = vld [vmem:[#allocation4 + $0x15a] sm:$0xff] }
 0x7bd   : > { %7310 = vst.msk [vmem:[#allocation5 + $0xc0] sm:$0xff] %vm7303_vm9, %v7268_v49 }
 0x7be   : > { %v7782_v25 = vpop.permute.xlu1 %7781  ;;  %7795 = vrot.lane.b32.xlu1 %v8154_v29, %s9835_s19 }
 0x7bf   : > { %7830 = vst.msk [vmem:[#allocation5 + $0xa0] sm:$0xff] %vm7819_vm13, %v7782_v25  ;;  %v7397_v63 = vpop.permute.xlu0 %7396  ;;  %7410 = vrot.lane.b32.xlu0 %v8154_v29, %s9829_s29  ;;  %v8135_v29 = vld [vmem:[#allocation4 + $0x152] sm:$0xff] }
 0x7c0   : > { %7831 = vst.msk [vmem:[#allocation5 + $0xa8] sm:$0xff] %vm1691_vm7, %v7782_v25 }
 0x7c1   : > { %7439 = vst.msk [vmem:[#allocation5 + $0xc0] sm:$0xff] %vm7432_vm10, %v7397_v63  ;;  %v7879_v58 = vld [vmem:[#allocation4 + $0x168] sm:$0xff]  ;;  %v5222_v63 = vadd.f32 %v12406_v46, %v13353_v8  ;;  %v5225_v46 = vadd.f32 %v12412_v12, %v13353_v8  ;;  %v5230_v12 = vadd.f32 %v12436_v20, %v13353_v8 }
 0x7c2   : > { %v8249_v55 = vld [vmem:[#allocation5 + $0x88] sm:$0xff]  ;;  %7941 = vrot.lane.b32.xlu1 %v7897_v7, %s9823_s18  ;;  %v8008_v20 = vld [vmem:[#allocation4 + $0x169] sm:$0xff] }
 0x7c3   : > { %9541 = vmatprep.mubr.msk.bf16.mxu0 %vm8387_vm1, %v8249_v55  ;;  %v7880_v3 = vld [vmem:[#allocation4 + $0x170] sm:$0xff]  ;;  %7539 = vrot.lane.b32.xlu0 %v7897_v7, %s9836_s21  ;;  %v8155_v55 = vpack.c.bf16 %v8136_v42, %v8135_v29 }
 0x7c4   : > { %8505 = vmatmul.mubr.bf16.gmra.mrb[100].mxu0 %v8248_v28  ;;  %v7898_v26 = vpack.c.bf16 %v7880_v3, %v7879_v58  ;;  %v7928_v30 = vpop.permute.xlu1 %7927  ;;  %v7526_v27 = vpop.permute.xlu0 %7525 }
 0x7c5   : > { %7971 = vst.msk [vmem:[#allocation5 + $0xa8] sm:$0xff] %vm7965_vm14, %v7928_v30 }
 0x7c6   : > { %7568 = vst.msk [vmem:[#allocation5 + $0xc0] sm:$0xff] %vm7561_vm11, %v7526_v27  ;;  %v7031_v51 = vpop.f32.mrb[136].mxu1  ;;  %8070 = vrot.lane.b32.xlu1 %v8026_v22, %s9837_s26 }
 0x7c7   : > { %7190 = vst.msk [vmem:[#allocation5 + $0x1e0] sm:$0xff] %vm7038_vm5, %v7898_v26  ;;  %v7032_v7 = vadd.f32 %v13246_v13, %v7031_v51  ;;  %v7033_v41 = vpop.f32.mrb[137].mxu1  ;;  %7668 = vrot.lane.b32.xlu0 %v8026_v22, %s9832_s13 }
 0x7c8   : > { %v7034_v49 = vpop.f32.mrb[138].mxu1  ;;  %v8057_v25 = vpop.permute.xlu1 %8056 }
 0x7c9   : > { %7125 = vst.msk [vmem:[#allocation4 + $0x181] sm:$0xff] %vm7038_vm5, %v7032_v7  ;;  %v7035_v14 = vadd.f32 %v13246_v13, %v7034_v49  ;;  %v7036_v28 = vpop.f32.mrb[139].mxu1  ;;  %v7655_v3 = vpop.permute.xlu0 %7654  ;;  %v8009_v49 = vld [vmem:[#allocation4 + $0x171] sm:$0xff] }
 0x7ca   : > { %8100 = vst.msk [vmem:[#allocation5 + $0xa8] sm:$0xff] %vm8094_vm15, %v8057_v25  ;;  %8199 = vrot.lane.b32.xlu1 %v8155_v55, %s9830_s11 }
 0x7cb   : > { %v5382_v58 = vpop.f32.mrb[20].mxu0  ;;  %7697 = vst.msk [vmem:[#allocation5 + $0xc0] sm:$0xff] %vm7690_vm12, %v7655_v3  ;;  %7283 = vrot.lane.b32.xlu0 %v8026_v22, %s9825_s20 }
 0x7cc   : > { %v13364_v17 = vadd.f32 %v5382_v58, %v5222_v63  ;;  %v5384_v30 = vpop.f32.mrb[21].mxu0  ;;  %7126 = vst.msk [vmem:[#allocation4 + $0x189] sm:$0xff] %vm7038_vm5, %v7035_v14  ;;  %v8186_v42 = vpop.permute.xlu1 %8185 }
 0x7cd   : > { %v5385_v27 = vpop.f32.mrb[22].mxu0  ;;  %8229 = vst.msk [vmem:[#allocation5 + $0xa8] sm:$0xff] %vm8223_vm0, %v8186_v42  ;;  %v7270_v51 = vpop.permute.xlu0 %7269  ;;  %v8137_v42 = vld [vmem:[#allocation4 + $0x16a] sm:$0xff] }
 0x7ce   : > { %v13372_v13 = vadd.f32 %v5385_v27, %v5225_v46  ;;  %v5387_v29 = vpop.f32.mrb[23].mxu0  ;;  %7311 = vst.msk [vmem:[#allocation5 + $0xe0] sm:$0xff] %vm7303_vm9, %v7270_v51  ;;  %7797 = vrot.lane.b32.xlu1 %v8155_v55, %s9835_s19  ;;  %v8027_v46 = vpack.c.bf16 %v8009_v49, %v8008_v20  ;;  %v8138_v51 = vld [vmem:[#allocation4 + $0x172] sm:$0xff] }
 0x7cf   : > { %7412 = vrot.lane.b32.xlu0 %v8155_v55, %s9829_s29  ;;  %v5233_v55 = vadd.f32 %v12443_v0, %v13353_v8  ;;  %v8250_v29 = vld [vmem:[#allocation5 + $0xa0] sm:$0xff] }
 0x7d0   : > { %v7784_v7 = vpop.permute.xlu1 %7783 }
 0x7d1   : > { %7832 = vst.msk [vmem:[#allocation5 + $0xc0] sm:$0xff] %vm7819_vm13, %v7784_v7  ;;  %v7399_v41 = vpop.permute.xlu0 %7398 }
 0x7d2   : > { %7833 = vst.msk [vmem:[#allocation5 + $0xc8] sm:$0xff] %vm1691_vm7, %v7784_v7  ;;  %7943 = vrot.lane.b32.xlu1 %v7898_v26, %s9823_s18  ;;  %v8156_v7 = vpack.c.bf16 %v8138_v51, %v8137_v42  ;;  %v8010_v51 = vld [vmem:[#allocation4 + $0x181] sm:$0xff] }
 0x7d3   : > { %v5390_v22 = vpop.f32.mrb[24].mxu0  ;;  %7440 = vst.msk [vmem:[#allocation5 + $0xe0] sm:$0xff] %vm7432_vm10, %v7399_v41  ;;  %7541 = vrot.lane.b32.xlu0 %v7898_v26, %s9836_s21  ;;  %v5238_v26 = vadd.f32 %v12449_v18, %v13353_v8 }
 0x7d4   : > { %v13382_v25 = vadd.f32 %v5390_v22, %v5230_v12  ;;  %v5392_v63 = vpop.f32.mrb[25].mxu0  ;;  %v7930_v3 = vpop.permute.xlu1 %7929  ;;  %v8251_v30 = vld [vmem:[#allocation5 + $0xa8] sm:$0xff] }
 0x7d5   : > { %v5393_v14 = vpop.f32.mrb[26].mxu0  ;;  %7972 = vst.msk [vmem:[#allocation5 + $0xc8] sm:$0xff] %vm7965_vm14, %v7930_v3  ;;  %v7528_v27 = vpop.permute.xlu0 %7527  ;;  %9542 = vmatprep.mubr.msk.bf16.mxu0 %vm8387_vm1, %v8251_v30  ;;  %v5241_v63 = vadd.f32 %v12457_v24, %v13353_v8  ;;  %v7881_v3 = vld [vmem:[#allocation4 + $0x180] sm:$0xff]  ;;  %v7882_v30 = vld [vmem:[#allocation4 + $0x188] sm:$0xff]  ;;  %v5246_v24 = vadd.f32 %v12469_v56, %v13353_v8 }
 0x7d6   : > { %v13389_v28 = vadd.f32 %v5393_v14, %v5233_v55  ;;  %v5395_v58 = vpop.f32.mrb[27].mxu0  ;;  %7569 = vst.msk [vmem:[#allocation5 + $0xe0] sm:$0xff] %vm7561_vm11, %v7528_v27  ;;  %8072 = vrot.lane.b32.xlu1 %v8027_v46, %s9837_s26  ;;  %8513 = vmatmul.mubr.bf16.gmra.mrb[104].mxu0 %v8250_v29 }
 0x7d7   : > { %7670 = vrot.lane.b32.xlu0 %v8027_v46, %s9832_s13 }
 0x7d8   : > { %v8059_v0 = vpop.permute.xlu1 %8058 }
 0x7d9   : > { %8101 = vst.msk [vmem:[#allocation5 + $0xc8] sm:$0xff] %vm8094_vm15, %v8059_v0  ;;  %v7657_v22 = vpop.permute.xlu0 %7656  ;;  %v8011_v0 = vld [vmem:[#allocation4 + $0x189] sm:$0xff] }
 0x7da   : > { %7698 = vst.msk [vmem:[#allocation5 + $0xe0] sm:$0xff] %vm7690_vm12, %v7657_v22  ;;  %8201 = vrot.lane.b32.xlu1 %v8156_v7, %s9830_s11 }
 0x7db   : > { %v5398_v12 = vpop.f32.mrb[28].mxu0  ;;  %7285 = vrot.lane.b32.xlu0 %v8027_v46, %s9825_s20  ;;  %v7899_v46 = vpack.c.bf16 %v7882_v30, %v7881_v3  ;;  %v8139_v3 = vld [vmem:[#allocation4 + $0x182] sm:$0xff]  ;;  %v8140_v30 = vld [vmem:[#allocation4 + $0x18a] sm:$0xff] }
 0x7dc   : > { %v13399_v41 = vadd.f32 %v5398_v12, %v5238_v26  ;;  %v5400_v49 = vpop.f32.mrb[29].mxu0  ;;  %v8188_v20 = vpop.permute.xlu1 %8187 }
 0x7dd   : > { %v5401_v55 = vpop.f32.mrb[30].mxu0  ;;  %8230 = vst.msk [vmem:[#allocation5 + $0xc8] sm:$0xff] %vm8223_vm0, %v8188_v20  ;;  %v7272_v58 = vpop.permute.xlu0 %7271 }
 0x7de   : > { %v13406_v14 = vadd.f32 %v5401_v55, %v5241_v63  ;;  %v5403_v18 = vpop.f32.mrb[31].mxu0  ;;  %7312 = vst.msk [vmem:[#allocation5 + $0x100] sm:$0xff] %vm7303_vm9, %v7272_v58  ;;  %7799 = vrot.lane.b32.xlu1 %v8156_v7, %s9835_s19  ;;  %v8252_v58 = vld [vmem:[#allocation5 + $0xc0] sm:$0xff] }
 0x7df   : > { %7414 = vrot.lane.b32.xlu0 %v8156_v7, %s9829_s29  ;;  %v5249_v7 = vadd.f32 %v12472_v11, %v13353_v8  ;;  %v8028_v18 = vpack.c.bf16 %v8011_v0, %v8010_v51  ;;  %v5257_v0 = vadd.f32 %v12481_v38, %v13353_v8  ;;  %v8012_v38 = vld [vmem:[#allocation4 + $0x199] sm:$0xff] }
 0x7e0   : > { %v7786_v27 = vpop.permute.xlu1 %7785 }
 0x7e1   : > { %7834 = vst.msk [vmem:[#allocation5 + $0xe0] sm:$0xff] %vm7819_vm13, %v7786_v27  ;;  %v7401_v42 = vpop.permute.xlu0 %7400 }
 0x7e2   : > { %7835 = vst.msk [vmem:[#allocation5 + $0xe8] sm:$0xff] %vm1691_vm7, %v7786_v27  ;;  %7945 = vrot.lane.b32.xlu1 %v7899_v46, %s9823_s18  ;;  %v5254_v27 = vadd.f32 %v12478_v2, %v13353_v8  ;;  %v7884_v2 = vld [vmem:[#allocation4 + $0x1a0] sm:$0xff] }
 0x7e3   : > { %v5406_v29 = vpop.f32.mrb[32].mxu0  ;;  %7441 = vst.msk [vmem:[#allocation5 + $0x100] sm:$0xff] %vm7432_vm10, %v7401_v42  ;;  %7543 = vrot.lane.b32.xlu0 %v7899_v46, %s9836_s21 }
 0x7e4   : > { %v13416_v26 = vadd.f32 %v5406_v29, %v5246_v24  ;;  %v5408_v12 = vpop.f32.mrb[33].mxu0  ;;  %v7932_v63 = vpop.permute.xlu1 %7931  ;;  %v8253_v55 = vld [vmem:[#allocation5 + $0xc8] sm:$0xff]  ;;  %v8157_v24 = vpack.c.bf16 %v8140_v30, %v8139_v3 }
 0x7e5   : > { %v5409_v56 = vpop.f32.mrb[34].mxu0  ;;  %7973 = vst.msk [vmem:[#allocation5 + $0xe8] sm:$0xff] %vm7965_vm14, %v7932_v63  ;;  %v7530_v20 = vpop.permute.xlu0 %7529  ;;  %9543 = vmatprep.mubr.msk.bf16.mxu0 %vm8387_vm1, %v8253_v55 }
 0x7e6   : > { %v13423_v22 = vadd.f32 %v5409_v56, %v5249_v7  ;;  %v5411_v49 = vpop.f32.mrb[35].mxu0  ;;  %7570 = vst.msk [vmem:[#allocation5 + $0x100] sm:$0xff] %vm7561_vm11, %v7530_v20  ;;  %8074 = vrot.lane.b32.xlu1 %v8028_v18, %s9837_s26  ;;  %8521 = vmatmul.mubr.bf16.gmra.mrb[108].mxu0 %v8252_v58  ;;  %v7883_v7 = vld [vmem:[#allocation4 + $0x198] sm:$0xff]  ;;  %v8013_v20 = vld [vmem:[#allocation4 + $0x1a1] sm:$0xff]  ;;  %v5262_v58 = vadd.f32 %v12489_v40, %v13353_v8 }
 0x7e7   : > { %7672 = vrot.lane.b32.xlu0 %v8028_v18, %s9832_s13  ;;  %v7900_v18 = vpack.c.bf16 %v7884_v2, %v7883_v7  ;;  %v8141_v40 = vld [vmem:[#allocation4 + $0x19a] sm:$0xff] }
 0x7e8   : > { %v8061_v11 = vpop.permute.xlu1 %8060 }
 0x7e9   : > { %8102 = vst.msk [vmem:[#allocation5 + $0xe8] sm:$0xff] %vm8094_vm15, %v8061_v11  ;;  %v7659_v29 = vpop.permute.xlu0 %7658 }
 0x7ea   : > { %7699 = vst.msk [vmem:[#allocation5 + $0x100] sm:$0xff] %vm7690_vm12, %v7659_v29  ;;  %8203 = vrot.lane.b32.xlu1 %v8157_v24, %s9830_s11  ;;  %v8142_v29 = vld [vmem:[#allocation4 + $0x1a2] sm:$0xff] }
 0x7eb   : > { %v5414_v46 = vpop.f32.mrb[36].mxu0  ;;  %8633 = vrot.lane.b32.xlu0 %v13364_v17, %s9823_s18 }
 0x7ec   : > { %v5415_v42 = vadd.f32 %v5414_v46, %v5254_v27  ;;  %v5416_v51 = vpop.f32.mrb[37].mxu0  ;;  %v8190_v63 = vpop.permute.xlu1 %8189 }
 0x7ed   : > { %v5417_v12 = vpop.f32.mrb[38].mxu0  ;;  %8231 = vst.msk [vmem:[#allocation5 + $0xe8] sm:$0xff] %vm8223_vm0, %v8190_v63  ;;  %v7274_v55 = vpop.permute.xlu0 %7273  ;;  %v5270_v63 = vadd.f32 %v12498_v47, %v13353_v8 }
 0x7ee   : > { %v13439_v56 = vadd.f32 %v5417_v12, %v5257_v0  ;;  %v5419_v49 = vpop.f32.mrb[39].mxu0  ;;  %7313 = vst.msk [vmem:[#allocation5 + $0x120] sm:$0xff] %vm7303_vm9, %v7274_v55  ;;  %7801 = vrot.lane.b32.xlu1 %v8157_v24, %s9835_s19  ;;  %v8029_v24 = vpack.c.bf16 %v8013_v20, %v8012_v38 }
 0x7ef   : > { %8637 = vrot.lane.b32.xlu0 %v13382_v25, %s9823_s18  ;;  %v5265_v25 = vadd.f32 %v12492_v19, %v13353_v8  ;;  %v8254_v49 = vld [vmem:[#allocation5 + $0xe0] sm:$0xff]  ;;  %v8158_v19 = vpack.c.bf16 %v8142_v29, %v8141_v40 }
 0x7f0   : > { %v7788_v17 = vpop.permute.xlu1 %7787 }
 0x7f1   : > { %7836 = vst.msk [vmem:[#allocation5 + $0x100] sm:$0xff] %vm7819_vm13, %v7788_v17  ;;  %v7403_v30 = vpop.permute.xlu0 %7402 }
 0x7f2   : > { %7837 = vst.msk [vmem:[#allocation5 + $0x108] sm:$0xff] %vm1691_vm7, %v7788_v17  ;;  %7947 = vrot.lane.b32.xlu1 %v7900_v18, %s9823_s18  ;;  %v5273_v17 = vadd.f32 %v12501_v45, %v13353_v8  ;;  %v5278_v45 = vadd.f32 %v12508_v52, %v13353_v8 }
 0x7f3   : > { %v5422_v3 = vpop.f32.mrb[40].mxu0  ;;  %7442 = vst.msk [vmem:[#allocation5 + $0x120] sm:$0xff] %vm7432_vm10, %v7403_v30  ;;  %8641 = vrot.lane.b32.xlu0 %v13399_v41, %s9823_s18 }
 0x7f4   : > { %v5423_v11 = vadd.f32 %v5422_v3, %v5262_v58  ;;  %v5424_v27 = vpop.f32.mrb[41].mxu0  ;;  %v7934_v12 = vpop.permute.xlu1 %7933  ;;  %v8255_v7 = vld [vmem:[#allocation5 + $0xe8] sm:$0xff] }
 0x7f5   : > { %v5425_v46 = vpop.f32.mrb[42].mxu0  ;;  %7974 = vst.msk [vmem:[#allocation5 + $0x108] sm:$0xff] %vm7965_vm14, %v7934_v12  ;;  %v7532_v2 = vpop.permute.xlu0 %7531  ;;  %9544 = vmatprep.mubr.msk.bf16.mxu0 %vm8387_vm1, %v8255_v7 }
 0x7f6   : > { %v13456_v51 = vadd.f32 %v5425_v46, %v5265_v25  ;;  %v5427_v0 = vpop.f32.mrb[43].mxu0  ;;  %7571 = vst.msk [vmem:[#allocation5 + $0x120] sm:$0xff] %vm7561_vm11, %v7532_v2  ;;  %8076 = vrot.lane.b32.xlu1 %v8029_v24, %s9837_s26  ;;  %8529 = vmatmul.mubr.bf16.gmra.mrb[112].mxu0 %v8254_v49 }
 0x7f7   : > { %8645 = vrot.lane.b32.xlu0 %v13416_v26, %s9823_s18 }
 0x7f8   : > { %v8063_v41 = vpop.permute.xlu1 %8062  ;;  %v8256_v7 = vld [vmem:[#allocation5 + $0x100] sm:$0xff] }
 0x7f9   : > { %8103 = vst.msk [vmem:[#allocation5 + $0x108] sm:$0xff] %vm8094_vm15, %v8063_v41  ;;  %v7661_v18 = vpop.permute.xlu0 %7660 }
 0x7fa   : > { %7700 = vst.msk [vmem:[#allocation5 + $0x120] sm:$0xff] %vm7690_vm12, %v7661_v18  ;;  %8205 = vrot.lane.b32.xlu1 %v8158_v19, %s9830_s11 }
 0x7fb   : > { %v5430_v55 = vpop.f32.mrb[44].mxu0  ;;  %8649 = vrot.lane.b32.xlu0 %v5415_v42, %s9823_s18 }
 0x7fc   : > { %v5431_v38 = vadd.f32 %v5430_v55, %v5270_v63  ;;  %v5432_v20 = vpop.f32.mrb[45].mxu0  ;;  %v8192_v47 = vpop.permute.xlu1 %8191 }
 0x7fd   : > { %v5433_v58 = vpop.f32.mrb[46].mxu0  ;;  %8232 = vst.msk [vmem:[#allocation5 + $0x108] sm:$0xff] %vm8223_vm0, %v8192_v47  ;;  %v7276_v30 = vpop.permute.xlu0 %7275 }
 0x7fe   : > { %v13472_v26 = vadd.f32 %v5433_v58, %v5273_v17  ;;  %v5435_v3 = vpop.f32.mrb[47].mxu0  ;;  %7314 = vst.msk [vmem:[#allocation5 + $0x140] sm:$0xff] %vm7303_vm9, %v7276_v30  ;;  %8635 = vrot.lane.b32.xlu1 %v13372_v13, %s9823_s18  ;;  %v5281_v13 = vadd.f32 %v12512_v6, %v13353_v8 }
 0x7ff   : > { %8653 = vrot.lane.b32.xlu0 %v5423_v11, %s9823_s18 }
 0x800   : > { %v7790_v27 = vpop.permute.xlu1 %7789 }
 0x801   : > { %7838 = vst.msk [vmem:[#allocation5 + $0x120] sm:$0xff] %vm7819_vm13, %v7790_v27  ;;  %v7405_v25 = vpop.permute.xlu0 %7404 }
 0x802   : > { %7839 = vst.msk [vmem:[#allocation5 + $0x128] sm:$0xff] %vm1691_vm7, %v7790_v27  ;;  %8639 = vrot.lane.b32.xlu1 %v13389_v28, %s9823_s18  ;;  %v5286_v28 = vadd.f32 %v12518_v36, %v13353_v8 }
 0x803   : > { %v5438_v42 = vpop.f32.mrb[48].mxu0  ;;  %7443 = vst.msk [vmem:[#allocation5 + $0x140] sm:$0xff] %vm7432_vm10, %v7405_v25  ;;  %8657 = vrot.lane.b32.xlu0 %v5431_v38, %s9823_s18 }
 0x804   : > { %v5439_v24 = vadd.f32 %v5438_v42, %v5278_v45  ;;  %v5440_v46 = vpop.f32.mrb[49].mxu0  ;;  %v7936_v29 = vpop.permute.xlu1 %7935  ;;  %v8257_v0 = vld [vmem:[#allocation5 + $0x108] sm:$0xff] }
 0x805   : > { %v5441_v11 = vpop.f32.mrb[50].mxu0  ;;  %7975 = vst.msk [vmem:[#allocation5 + $0x128] sm:$0xff] %vm7965_vm14, %v7936_v29  ;;  %v7534_v12 = vpop.permute.xlu0 %7533  ;;  %9545 = vmatprep.mubr.msk.bf16.mxu0 %vm8387_vm1, %v8257_v0 }
 0x806   : > { %v5442_v52 = vadd.f32 %v5441_v11, %v5281_v13  ;;  %v5443_v40 = vpop.f32.mrb[51].mxu0  ;;  %7572 = vst.msk [vmem:[#allocation5 + $0x140] sm:$0xff] %vm7561_vm11, %v7534_v12  ;;  %8643 = vrot.lane.b32.xlu1 %v13406_v14, %s9823_s18  ;;  %8537 = vmatmul.mubr.bf16.gmra.mrb[116].mxu0 %v8256_v7  ;;  %v5289_v14 = vadd.f32 %v12521_v32, %v13353_v8 }
 0x807   : > { %8661 = vrot.lane.b32.xlu0 %v5439_v24, %s9823_s18  ;;  %v5305_v40 = vadd.f32 %v12548_v37, %v13353_v8 }
 0x808   : > { %v8065_v6 = vpop.permute.xlu1 %8064  ;;  %v8258_v25 = vld [vmem:[#allocation5 + $0x120] sm:$0xff] }
 0x809   : > { %8104 = vst.msk [vmem:[#allocation5 + $0x128] sm:$0xff] %vm8094_vm15, %v8065_v6  ;;  %v7663_v49 = vpop.permute.xlu0 %7662 }
 0x80a   : > { %7701 = vst.msk [vmem:[#allocation5 + $0x140] sm:$0xff] %vm7690_vm12, %v7663_v49  ;;  %8647 = vrot.lane.b32.xlu1 %v13423_v22, %s9823_s18  ;;  %v5294_v22 = vadd.f32 %v12531_v34, %v13353_v8  ;;  %v5313_v49 = vadd.f32 %v12569_v61, %v13353_v8  ;;  %v5318_v61 = vadd.f32 %v12582_v16, %v13353_v8 }
 0x80b   : > { %v5446_v2 = vpop.f32.mrb[52].mxu0 }
 0x80c   : > { %v5447_v19 = vadd.f32 %v5446_v2, %v5286_v28  ;;  %v5448_v41 = vpop.f32.mrb[53].mxu0  ;;  %v8194_v36 = vpop.permute.xlu1 %8193 }
 0x80d   : > { %v5449_v63 = vpop.f32.mrb[54].mxu0  ;;  %8233 = vst.msk [vmem:[#allocation5 + $0x128] sm:$0xff] %vm8223_vm0, %v8194_v36  ;;  %v7278_v38 = vpop.permute.xlu0 %7277 }
 0x80e   : > { %v5450_v55 = vadd.f32 %v5449_v63, %v5289_v14  ;;  %v5451_v18 = vpop.f32.mrb[55].mxu0  ;;  %8665 = vrot.lane.b32.xlu0 %v5447_v19, %s9823_s18  ;;  %7315 = vst.msk [vmem:[#allocation5 + $0x160] sm:$0xff] %vm7303_vm9, %v7278_v38  ;;  %8651 = vrot.lane.b32.xlu1 %v13439_v56, %s9823_s18  ;;  %v5297_v56 = vadd.f32 %v12534_v23, %v13353_v8 }
 0x810   : > { %v7792_v20 = vpop.permute.xlu1 %7791 }
 0x811   : > { %7840 = vst.msk [vmem:[#allocation5 + $0x140] sm:$0xff] %vm7819_vm13, %v7792_v20  ;;  %v7407_v17 = vpop.permute.xlu0 %7406 }
 0x812   : > { %7841 = vst.msk [vmem:[#allocation5 + $0x148] sm:$0xff] %vm1691_vm7, %v7792_v20  ;;  %8655 = vrot.lane.b32.xlu1 %v13456_v51, %s9823_s18  ;;  %v5302_v51 = vadd.f32 %v12545_v43, %v13353_v8 }
 0x813   : > { %v5454_v32 = vpop.f32.mrb[56].mxu0  ;;  %7444 = vst.msk [vmem:[#allocation5 + $0x160] sm:$0xff] %vm7432_vm10, %v7407_v17  ;;  %v5321_v17 = vadd.f32 %v12585_v9, %v13353_v8 }
 0x814   : > { %v5455_v58 = vadd.f32 %v5454_v32, %v5294_v22  ;;  %v5456_v3 = vpop.f32.mrb[57].mxu0  ;;  %v7938_v34 = vpop.permute.xlu1 %7937  ;;  %v8259_v45 = vld [vmem:[#allocation5 + $0x128] sm:$0xff] }
 0x815   : > { %v5457_v47 = vpop.f32.mrb[58].mxu0  ;;  %7976 = vst.msk [vmem:[#allocation5 + $0x148] sm:$0xff] %vm7965_vm14, %v7938_v34  ;;  %v7536_v42 = vpop.permute.xlu0 %7535  ;;  %9546 = vmatprep.mubr.msk.bf16.mxu0 %vm8387_vm1, %v8259_v45 }
 0x816   : > { %v5458_v30 = vadd.f32 %v5457_v47, %v5297_v56  ;;  %v5459_v27 = vpop.f32.mrb[59].mxu0  ;;  %8669 = vrot.lane.b32.xlu0 %v5455_v58, %s9823_s18  ;;  %7573 = vst.msk [vmem:[#allocation5 + $0x160] sm:$0xff] %vm7561_vm11, %v7536_v42  ;;  %8659 = vrot.lane.b32.xlu1 %v13472_v26, %s9823_s18 }
 0x817   : > { %8545 = vmatmul.mubr.bf16.gmra.mrb[120].mxu0 %v8258_v25  ;;  %v5326_v27 = vadd.f32 %v12597_v33, %v13353_v8  ;;  %v5329_v25 = vadd.f32 %v12603_v39, %v13353_v8  ;;  %v5334_v39 = vadd.f32 %v12616_v35, %v13353_v8 }
 0x818   : > { %v8067_v23 = vpop.permute.xlu1 %8066  ;;  %v8260_v18 = vld [vmem:[#allocation5 + $0x140] sm:$0xff] }
 0x819   : > { %8105 = vst.msk [vmem:[#allocation5 + $0x148] sm:$0xff] %vm8094_vm15, %v8067_v23  ;;  %v7665_v46 = vpop.permute.xlu0 %7664 }
 0x81a   : > { %7702 = vst.msk [vmem:[#allocation5 + $0x160] sm:$0xff] %vm7690_vm12, %v7665_v46  ;;  %8663 = vrot.lane.b32.xlu1 %v5442_v52, %s9823_s18  ;;  %v5310_v52 = vadd.f32 %v12562_v10, %v13353_v8 }
 0x81b   : > { %v5462_v24 = vpop.f32.mrb[60].mxu0 }
 0x81c   : > { %v5463_v13 = vadd.f32 %v5462_v24, %v5302_v51  ;;  %v5464_v11 = vpop.f32.mrb[61].mxu0  ;;  %v8196_v12 = vpop.permute.xlu1 %8195 }
 0x81d   : > { %v5465_v29 = vpop.f32.mrb[62].mxu0  ;;  %8234 = vst.msk [vmem:[#allocation5 + $0x148] sm:$0xff] %vm8223_vm0, %v8196_v12  ;;  %v7280_v43 = vpop.permute.xlu0 %7279 }
 0x81e   : > { %v5466_v26 = vadd.f32 %v5465_v29, %v5305_v40  ;;  %v5467_v0 = vpop.f32.mrb[63].mxu0  ;;  %8673 = vrot.lane.b32.xlu0 %v5463_v13, %s9823_s18  ;;  %7316 = vst.msk [vmem:[#allocation5 + $0x180] sm:$0xff] %vm7303_vm9, %v7280_v43  ;;  %8667 = vrot.lane.b32.xlu1 %v5450_v55, %s9823_s18  ;;  %v5337_v43 = vadd.f32 %v12620_v53, %v13353_v8 }
 0x820   : > { %v7794_v7 = vpop.permute.xlu1 %7793 }
 0x821   : > { %7842 = vst.msk [vmem:[#allocation5 + $0x160] sm:$0xff] %vm7819_vm13, %v7794_v7  ;;  %v7409_v6 = vpop.permute.xlu0 %7408 }
 0x822   : > { %7843 = vst.msk [vmem:[#allocation5 + $0x168] sm:$0xff] %vm1691_vm7, %v7794_v7  ;;  %8671 = vrot.lane.b32.xlu1 %v5458_v30, %s9823_s18 }
 0x823   : > { %v5470_v37 = vpop.f32.mrb[64].mxu0  ;;  %7445 = vst.msk [vmem:[#allocation5 + $0x180] sm:$0xff] %vm7432_vm10, %v7409_v6 }
 0x824   : > { %v5471_v28 = vadd.f32 %v5470_v37, %v5310_v52  ;;  %v5472_v2 = vpop.f32.mrb[65].mxu0  ;;  %v7940_v10 = vpop.permute.xlu1 %7939  ;;  %v8261_v63 = vld [vmem:[#allocation5 + $0x148] sm:$0xff] }
 0x825   : > { %v5473_v19 = vpop.f32.mrb[66].mxu0  ;;  %7977 = vst.msk [vmem:[#allocation5 + $0x168] sm:$0xff] %vm7965_vm14, %v7940_v10  ;;  %v7538_v55 = vpop.permute.xlu0 %7537  ;;  %9547 = vmatprep.mubr.msk.bf16.mxu0 %vm8387_vm1, %v8261_v63  ;;  %v5342_v2 = vadd.f32 %v12632_v62, %v13353_v8 }
 0x826   : > { %v5474_v41 = vadd.f32 %v5473_v19, %v5313_v49  ;;  %v5475_v14 = vpop.f32.mrb[67].mxu0  ;;  %8677 = vrot.lane.b32.xlu0 %v5471_v28, %s9823_s18  ;;  %7574 = vst.msk [vmem:[#allocation5 + $0x180] sm:$0xff] %vm7561_vm11, %v7538_v55  ;;  %8675 = vrot.lane.b32.xlu1 %v5466_v26, %s9823_s18 }
 0x827   : > { %8553 = vmatmul.mubr.bf16.gmra.mrb[124].mxu0 %v8260_v18  ;;  %v5345_v14 = vadd.f32 %v12635_v15, %v13353_v8 }
 0x828   : > { %v8069_v36 = vpop.permute.xlu1 %8068  ;;  %v8262_v11 = vld [vmem:[#allocation5 + $0x160] sm:$0xff] }
 0x829   : > { %8106 = vst.msk [vmem:[#allocation5 + $0x168] sm:$0xff] %vm8094_vm15, %v8069_v36  ;;  %v7667_v20 = vpop.permute.xlu0 %7666 }
 0x82a   : > { %7703 = vst.msk [vmem:[#allocation5 + $0x180] sm:$0xff] %vm7690_vm12, %v7667_v20  ;;  %8679 = vrot.lane.b32.xlu1 %v5474_v41, %s9823_s18  ;;  %v13597_v20 = vld [vmem:[%s14093_s8] ss:$0 sm:$0xff] }
 0x82b   : > { %v5478_v38 = vpop.f32.mrb[68].mxu0 }
 0x82c   : > { %v5479_v22 = vadd.f32 %v5478_v38, %v5318_v61  ;;  %v5480_v32 = vpop.f32.mrb[69].mxu0  ;;  %v8198_v47 = vpop.permute.xlu1 %8197 }
 0x82d   : > { %v5481_v58 = vpop.f32.mrb[70].mxu0  ;;  %8235 = vst.msk [vmem:[#allocation5 + $0x168] sm:$0xff] %vm8223_vm0, %v8198_v47  ;;  %v7282_v16 = vpop.permute.xlu0 %7281 }
 0x82e   : > { %v5482_v3 = vadd.f32 %v5481_v58, %v5321_v17  ;;  %v5483_v56 = vpop.f32.mrb[71].mxu0  ;;  %8681 = vrot.lane.b32.xlu0 %v5479_v22, %s9823_s18  ;;  %7317 = vst.msk [vmem:[#allocation5 + $0x1a0] sm:$0xff] %vm7303_vm9, %v7282_v16 }
 0x830   : > { %8683 = vrot.lane.b32.xlu1 %v5482_v3, %s9823_s18  ;;  %v7796_v30 = vpop.permute.xlu1 %7795 }
 0x831   : > { %7844 = vst.msk [vmem:[#allocation5 + $0x180] sm:$0xff] %vm7819_vm13, %v7796_v30  ;;  %v7411_v34 = vpop.permute.xlu0 %7410 }
 0x832   : > { %7845 = vst.msk [vmem:[#allocation5 + $0x188] sm:$0xff] %vm1691_vm7, %v7796_v30 }
 0x833   : > { %v5486_v9 = vpop.f32.mrb[72].mxu0  ;;  %7446 = vst.msk [vmem:[#allocation5 + $0x1a0] sm:$0xff] %vm7432_vm10, %v7411_v34 }
 0x834   : > { %v5487_v45 = vadd.f32 %v5486_v9, %v5326_v27  ;;  %v5488_v42 = vpop.f32.mrb[73].mxu0  ;;  %v7942_v46 = vpop.permute.xlu1 %7941  ;;  %v8263_v33 = vld [vmem:[#allocation5 + $0x168] sm:$0xff] }
 0x835   : > { %v5489_v23 = vpop.f32.mrb[74].mxu0  ;;  %7978 = vst.msk [vmem:[#allocation5 + $0x188] sm:$0xff] %vm7965_vm14, %v7942_v46  ;;  %v7540_v13 = vpop.permute.xlu0 %7539  ;;  %9548 = vmatprep.mubr.msk.bf16.mxu0 %vm8387_vm1, %v8263_v33 }
 0x836   : > { %v5490_v51 = vadd.f32 %v5489_v23, %v5329_v25  ;;  %v5491_v24 = vpop.f32.mrb[75].mxu0  ;;  %8685 = vrot.lane.b32.xlu0 %v5487_v45, %s9823_s18  ;;  %7575 = vst.msk [vmem:[#allocation5 + $0x1a0] sm:$0xff] %vm7561_vm11, %v7540_v13  ;;  %8561 = vmatmul.mubr.bf16.gmra.mrb[128].mxu0 %v8262_v11 }
 0x838   : > { %8687 = vrot.lane.b32.xlu1 %v5490_v51, %s9823_s18  ;;  %v8071_v40 = vpop.permute.xlu1 %8070  ;;  %v8264_v61 = vld [vmem:[#allocation5 + $0x180] sm:$0xff] }
 0x839   : > { %8107 = vst.msk [vmem:[#allocation5 + $0x188] sm:$0xff] %vm8094_vm15, %v8071_v40  ;;  %v7669_v26 = vpop.permute.xlu0 %7668 }
 0x83a   : > { %7704 = vst.msk [vmem:[#allocation5 + $0x1a0] sm:$0xff] %vm7690_vm12, %v7669_v26 }
 0x83b   : > { %v5494_v29 = vpop.f32.mrb[76].mxu0 }
 0x83c   : > { %v5495_v0 = vadd.f32 %v5494_v29, %v5334_v39  ;;  %v5496_v12 = vpop.f32.mrb[77].mxu0  ;;  %v8200_v37 = vpop.permute.xlu1 %8199 }
 0x83d   : > { %v5497_v7 = vpop.f32.mrb[78].mxu0  ;;  %8236 = vst.msk [vmem:[#allocation5 + $0x188] sm:$0xff] %vm8223_vm0, %v8200_v37  ;;  %v7284_v35 = vpop.permute.xlu0 %7283 }
 0x83e   : > { %v5498_v52 = vadd.f32 %v5497_v7, %v5337_v43  ;;  %8689 = vrot.lane.b32.xlu0 %v5495_v0, %s9823_s18  ;;  %v5499_v6 = vpop.f32.mrb[79].mxu0  ;;  %7318 = vst.msk [vmem:[#allocation5 + $0x1c0] sm:$0xff] %vm7303_vm9, %v7284_v35 }
 0x840   : > { %8691 = vrot.lane.b32.xlu1 %v5498_v52, %s9823_s18  ;;  %v7798_v28 = vpop.permute.xlu1 %7797 }
 0x841   : > { %7846 = vst.msk [vmem:[#allocation5 + $0x1a0] sm:$0xff] %vm7819_vm13, %v7798_v28  ;;  %v7413_v49 = vpop.permute.xlu0 %7412 }
 0x842   : > { %7847 = vst.msk [vmem:[#allocation5 + $0x1a8] sm:$0xff] %vm1691_vm7, %v7798_v28 }
 0x843   : > { %v5502_v53 = vpop.f32.mrb[80].mxu0  ;;  %7447 = vst.msk [vmem:[#allocation5 + $0x1c0] sm:$0xff] %vm7432_vm10, %v7413_v49 }
 0x844   : > { %v5503_v19 = vadd.f32 %v5502_v53, %v5342_v2  ;;  %v5504_v41 = vpop.f32.mrb[81].mxu0  ;;  %v7944_v55 = vpop.permute.xlu1 %7943  ;;  %v8265_v18 = vld [vmem:[#allocation5 + $0x188] sm:$0xff] }
 0x845   : > { %v5505_v10 = vpop.f32.mrb[82].mxu0  ;;  %7979 = vst.msk [vmem:[#allocation5 + $0x1a8] sm:$0xff] %vm7965_vm14, %v7944_v55  ;;  %v7542_v36 = vpop.permute.xlu0 %7541  ;;  %9549 = vmatprep.mubr.msk.bf16.mxu0 %vm8387_vm1, %v8265_v18 }
 0x846   : > { %v5506_v63 = vadd.f32 %v5505_v10, %v5345_v14  ;;  %8693 = vrot.lane.b32.xlu0 %v5503_v19, %s9823_s18  ;;  %v5507_v62 = vpop.f32.mrb[83].mxu0  ;;  %7576 = vst.msk [vmem:[#allocation5 + $0x1c0] sm:$0xff] %vm7561_vm11, %v7542_v36  ;;  %8569 = vmatmul.mubr.bf16.gmra.mrb[132].mxu0 %v8264_v61 }
 0x848   : > { %8695 = vrot.lane.b32.xlu1 %v5506_v63, %s9823_s18  ;;  %v8073_v38 = vpop.permute.xlu1 %8072  ;;  %v8266_v45 = vld [vmem:[#allocation5 + $0x1a0] sm:$0xff] }
 0x849   : > { %8108 = vst.msk [vmem:[#allocation5 + $0x1a8] sm:$0xff] %vm8094_vm15, %v8073_v38  ;;  %v7671_v15 = vpop.permute.xlu0 %7670 }
 0x84a   : > { %7705 = vst.msk [vmem:[#allocation5 + $0x1c0] sm:$0xff] %vm7690_vm12, %v7671_v15 }
 0x84c   : > { %v8202_v8 = vpop.permute.xlu1 %8201 }
 0x84d   : > { %8237 = vst.msk [vmem:[#allocation5 + $0x1a8] sm:$0xff] %vm8223_vm0, %v8202_v8  ;;  %v7286_v22 = vpop.permute.xlu0 %7285 }
 0x84e   : > { %7319 = vst.msk [vmem:[#allocation5 + $0x1e0] sm:$0xff] %vm7303_vm9, %v7286_v22 }
 0x84f   : > { %v8474_v32 = vpop.f32.mrb[84].mxu0 }
 0x850   : > { %v8475_v17 = vadd.f32 %v13597_v20, %v8474_v32  ;;  %v8476_v58 = vpop.f32.mrb[85].mxu0  ;;  %v7800_v3 = vpop.permute.xlu1 %7799 }
 0x851   : > { %v8477_v56 = vpop.f32.mrb[86].mxu0  ;;  %7848 = vst.msk [vmem:[#allocation5 + $0x1c0] sm:$0xff] %vm7819_vm13, %v7800_v3  ;;  %v7415_v16 = vpop.permute.xlu0 %7414 }
 0x852   : > { %7849 = vst.msk [vmem:[#allocation5 + $0x1c8] sm:$0xff] %vm1691_vm7, %v7800_v3  ;;  %v8478_v47 = vadd.f32 %v13597_v20, %v8477_v56  ;;  %v8479_v30 = vpop.f32.mrb[87].mxu0  ;;  %8761 = vrot.lane.b32.xlu0 %v8475_v17, %s9837_s26 }
 0x853   : > { %7448 = vst.msk [vmem:[#allocation5 + $0x1e0] sm:$0xff] %vm7432_vm10, %v7415_v16 }
 0x854   : > { %8763 = vrot.lane.b32.xlu1 %v8478_v47, %s9837_s26  ;;  %v7946_v27 = vpop.permute.xlu1 %7945  ;;  %v8267_v9 = vld [vmem:[#allocation5 + $0x1a8] sm:$0xff] }
 0x855   : > { %7980 = vst.msk [vmem:[#allocation5 + $0x1c8] sm:$0xff] %vm7965_vm14, %v7946_v27  ;;  %v7544_v34 = vpop.permute.xlu0 %7543  ;;  %9550 = vmatprep.mubr.msk.bf16.mxu0 %vm8387_vm1, %v8267_v9 }
 0x856   : > { %7577 = vst.msk [vmem:[#allocation5 + $0x1e0] sm:$0xff] %vm7561_vm11, %v7544_v34  ;;  %8577 = vmatmul.mubr.bf16.gmra.mrb[136].mxu0 %v8266_v45 }
 0x858   : > { %v8075_v42 = vpop.permute.xlu1 %8074  ;;  %v8268_v26 = vld [vmem:[#allocation5 + $0x1c0] sm:$0xff] }
 0x859   : > { %8109 = vst.msk [vmem:[#allocation5 + $0x1c8] sm:$0xff] %vm8094_vm15, %v8075_v42  ;;  %v7673_v25 = vpop.permute.xlu0 %7672 }
 0x85a   : > { %7706 = vst.msk [vmem:[#allocation5 + $0x1e0] sm:$0xff] %vm7690_vm12, %v7673_v25 }
 0x85c   : > { %v8204_v23 = vpop.permute.xlu1 %8203 }
 0x85d   : > { %8238 = vst.msk [vmem:[#allocation5 + $0x1c8] sm:$0xff] %vm8223_vm0, %v8204_v23 }
 0x860   : > { %v7802_v51 = vpop.permute.xlu1 %7801 }
 0x861   : > { %7850 = vst.msk [vmem:[#allocation5 + $0x1e0] sm:$0xff] %vm7819_vm13, %v7802_v51 }
 0x862   : > { %7851 = vst.msk [vmem:[#allocation5 + $0x1e8] sm:$0xff] %vm1691_vm7, %v7802_v51  ;;  %v8482_v24 = vpop.f32.mrb[88].mxu0 }
 0x863   : > { %v8483_v46 = vadd.f32 %v13597_v20, %v8482_v24  ;;  %v8484_v33 = vpop.f32.mrb[89].mxu0 }
 0x864   : > { %v8485_v13 = vpop.f32.mrb[90].mxu0  ;;  %v7948_v40 = vpop.permute.xlu1 %7947  ;;  %v8269_v29 = vld [vmem:[#allocation5 + $0x1c8] sm:$0xff] }
 0x865   : > { %v8486_v11 = vadd.f32 %v13597_v20, %v8485_v13  ;;  %v8487_v39 = vpop.f32.mrb[91].mxu0  ;;  %8765 = vrot.lane.b32.xlu0 %v8483_v46, %s9837_s26  ;;  %7981 = vst.msk [vmem:[#allocation5 + $0x1e8] sm:$0xff] %vm7965_vm14, %v7948_v40  ;;  %9551 = vmatprep.mubr.msk.bf16.mxu0 %vm8387_vm1, %v8269_v29 }
 0x866   : > { %8585 = vmatmul.mubr.bf16.gmra.mrb[140].mxu0 %v8268_v26 }
 0x867   : > { %8767 = vrot.lane.b32.xlu1 %v8486_v11, %s9837_s26 }
 0x868   : > { %v8077_v0 = vpop.permute.xlu1 %8076  ;;  %v8270_v2 = vld [vmem:[#allocation5 + $0x1e0] sm:$0xff] }
 0x869   : > { %8110 = vst.msk [vmem:[#allocation5 + $0x1e8] sm:$0xff] %vm8094_vm15, %v8077_v0 }
 0x86c   : > { %v8206_v12 = vpop.permute.xlu1 %8205 }
 0x86d   : > { %8239 = vst.msk [vmem:[#allocation5 + $0x1e8] sm:$0xff] %vm8223_vm0, %v8206_v12 }
 0x873   : > { %v8490_v43 = vpop.f32.mrb[92].mxu0 }
 0x874   : > { %v8491_v7 = vadd.f32 %v13597_v20, %v8490_v43  ;;  %v8492_v52 = vpop.f32.mrb[93].mxu0  ;;  %v8271_v6 = vld [vmem:[#allocation5 + $0x1e8] sm:$0xff] }
 0x875   : > { %v8493_v37 = vpop.f32.mrb[94].mxu0  ;;  %9552 = vmatprep.mubr.msk.bf16.mxu0 %vm8387_vm1, %v8271_v6 }
 0x876   : > { %v8494_v35 = vadd.f32 %v13597_v20, %v8493_v37  ;;  %v8495_v28 = vpop.f32.mrb[95].mxu0  ;;  %8769 = vrot.lane.b32.xlu0 %v8491_v7, %s9837_s26  ;;  %8593 = vmatmul.mubr.bf16.gmra.mrb[144].mxu0 %v8270_v2 }
 0x878   : > { %8771 = vrot.lane.b32.xlu1 %v8494_v35, %s9837_s26 }
 0x887   : > { %v8498_v53 = vpop.f32.mrb[96].mxu0 }
 0x888   : > { %v8499_v49 = vadd.f32 %v13597_v20, %v8498_v53  ;;  %v8500_v19 = vpop.f32.mrb[97].mxu0 }
 0x889   : > { %v8501_v41 = vpop.f32.mrb[98].mxu0 }
 0x88a   : > { %v8502_v14 = vadd.f32 %v13597_v20, %v8501_v41  ;;  %v8503_v10 = vpop.f32.mrb[99].mxu0  ;;  %8773 = vrot.lane.b32.xlu0 %v8499_v49, %s9837_s26 }
 0x88c   : > { %8775 = vrot.lane.b32.xlu1 %v8502_v14, %s9837_s26 }
 0x897   : > { %v8506_v63 = vpop.f32.mrb[100].mxu0 }
 0x898   : > { %v8507_v55 = vadd.f32 %v13597_v20, %v8506_v63  ;;  %v8508_v18 = vpop.f32.mrb[101].mxu0 }
 0x899   : > { %v8509_v62 = vpop.f32.mrb[102].mxu0 }
 0x89a   : > { %v8510_v36 = vadd.f32 %v13597_v20, %v8509_v62  ;;  %v8511_v61 = vpop.f32.mrb[103].mxu0  ;;  %8777 = vrot.lane.b32.xlu0 %v8507_v55, %s9837_s26 }
 0x89c   : > { %8779 = vrot.lane.b32.xlu1 %v8510_v36, %s9837_s26 }
 0x8a9   : > { %v8514_v38 = vpop.f32.mrb[104].mxu0 }
 0x8aa   : > { %v8515_v15 = vadd.f32 %v13597_v20, %v8514_v38  ;;  %v8516_v8 = vpop.f32.mrb[105].mxu0 }
 0x8ab   : > { %v8517_v22 = vpop.f32.mrb[106].mxu0 }
 0x8ac   : > { %v8518_v32 = vadd.f32 %v13597_v20, %v8517_v22  ;;  %v8519_v17 = vpop.f32.mrb[107].mxu0  ;;  %8781 = vrot.lane.b32.xlu0 %v8515_v15, %s9837_s26  ;;  %v13670_v15 = vpop.permute.xlu1 %8635 }
 0x8ae   : > { %8783 = vrot.lane.b32.xlu1 %v8518_v32, %s9837_s26  ;;  %v13675_v32 = vpop.permute.xlu0 %8633 }
 0x8b0   : > { %v13677_v17 = vpop.permute.xlu1 %8639 }
 0x8b9   : > { %v8522_v58 = vpop.f32.mrb[108].mxu0 }
 0x8ba   : > { %v8523_v3 = vadd.f32 %v13597_v20, %v8522_v58  ;;  %v8524_v56 = vpop.f32.mrb[109].mxu0  ;;  %v13679_v58 = vpop.permute.xlu0 %8637 }
 0x8bb   : > { %v8525_v47 = vpop.f32.mrb[110].mxu0 }
 0x8bc   : > { %v8526_v16 = vadd.f32 %v13597_v20, %v8525_v47  ;;  %v8527_v30 = vpop.f32.mrb[111].mxu0  ;;  %8785 = vrot.lane.b32.xlu0 %v8523_v3, %s9837_s26  ;;  %v13681_v3 = vpop.permute.xlu1 %8643 }
 0x8be   : > { %8787 = vrot.lane.b32.xlu1 %v8526_v16, %s9837_s26 }
 0x8c9   : > { %v8530_v27 = vpop.f32.mrb[112].mxu0 }
 0x8ca   : > { %v8531_v9 = vadd.f32 %v13597_v20, %v8530_v27  ;;  %v8532_v34 = vpop.f32.mrb[113].mxu0 }
 0x8cb   : > { %v8533_v45 = vpop.f32.mrb[114].mxu0  ;;  %v13686_v34 = vpop.permute.xlu0 %8641 }
 0x8cc   : > { %v8534_v42 = vadd.f32 %v13597_v20, %v8533_v45  ;;  %v8535_v25 = vpop.f32.mrb[115].mxu0  ;;  %8789 = vrot.lane.b32.xlu0 %v8531_v9, %s9837_s26  ;;  %v13688_v45 = vpop.permute.xlu1 %8647 }
 0x8ce   : > { %8791 = vrot.lane.b32.xlu1 %v8534_v42, %s9837_s26 }
 0x8cf   : > { %v13691_v42 = vpop.permute.xlu0 %8645 }
 0x8d0   : > { %v13693_v25 = vpop.permute.xlu1 %8651 }
 0x8d9   : > { %v8538_v23 = vpop.f32.mrb[116].mxu0 }
 0x8da   : > { %v8539_v51 = vadd.f32 %v13597_v20, %v8538_v23  ;;  %v8540_v24 = vpop.f32.mrb[117].mxu0  ;;  %v13695_v23 = vpop.permute.xlu0 %8649 }
 0x8db   : > { %v8541_v46 = vpop.f32.mrb[118].mxu0  ;;  %v13697_v24 = vpop.permute.xlu1 %8655 }
 0x8dc   : > { %v8542_v33 = vadd.f32 %v13597_v20, %v8541_v46  ;;  %v8543_v13 = vpop.f32.mrb[119].mxu0  ;;  %8793 = vrot.lane.b32.xlu0 %v8539_v51, %s9837_s26 }
 0x8de   : > { %8795 = vrot.lane.b32.xlu1 %v8542_v33, %s9837_s26 }
 0x8ea   : > { %v8546_v11 = vpop.f32.mrb[120].mxu0 }
 0x8eb   : > { %v8547_v40 = vadd.f32 %v13597_v20, %v8546_v11  ;;  %v8548_v39 = vpop.f32.mrb[121].mxu0 }
 0x8ec   : > { %v8549_v29 = vpop.f32.mrb[122].mxu0  ;;  %v13703_v39 = vpop.permute.xlu0 %8653 }
 0x8ed   : > { %v8550_v26 = vadd.f32 %v13597_v20, %v8549_v29  ;;  %v8551_v0 = vpop.f32.mrb[123].mxu0  ;;  %8797 = vrot.lane.b32.xlu0 %v8547_v40, %s9837_s26  ;;  %v13705_v29 = vpop.permute.xlu1 %8659 }
 0x8ef   : > { %8799 = vrot.lane.b32.xlu1 %v8550_v26, %s9837_s26 }
 0x8f0   : > { %v13713_v26 = vpop.permute.xlu0 %8657 }
 0x8f4   : > { %v13723_v0 = vpop.permute.xlu0 %8661 }
 0x8fa   : > { %v8554_v12 = vpop.f32.mrb[124].mxu0 }
 0x8fb   : > { %v8555_v43 = vadd.f32 %v13597_v20, %v8554_v12  ;;  %v8556_v7 = vpop.f32.mrb[125].mxu0 }
 0x8fc   : > { %v8557_v52 = vpop.f32.mrb[126].mxu0 }
 0x8fd   : > { %v8558_v37 = vadd.f32 %v13597_v20, %v8557_v52  ;;  %v8559_v6 = vpop.f32.mrb[127].mxu0  ;;  %8801 = vrot.lane.b32.xlu0 %v8555_v43, %s9837_s26  ;;  %v13733_v43 = vpop.permute.xlu0 %8665 }
 0x8fe   : > { %v14316_v6 = vld [vmem:[#allocation12_spill] sm:$0xff] }
 0x8ff   : > { %8803 = vrot.lane.b32.xlu1 %v8558_v37, %s9837_s26 }
 0x901   : > { %v13741_v52 = vpop.permute.xlu0 %8669 }
 0x902   : > { %14314 = vst [vmem:[#allocation45_spill] sm:$0xff] %v13741_v52 }
 0x909   : > { %v8562_v35 = vpop.f32.mrb[128].mxu0 }
 0x90a   : > { %v8563_v28 = vadd.f32 %v13597_v20, %v8562_v35  ;;  %v8564_v2 = vpop.f32.mrb[129].mxu0  ;;  %v13749_v35 = vpop.permute.xlu0 %8673 }
 0x90b   : > { %v8565_v53 = vpop.f32.mrb[130].mxu0  ;;  %14317 = vst [vmem:[#allocation46_spill] sm:$0xff] %v13749_v35  ;;  %v14319_v2 = vld [vmem:[#allocation11_spill] sm:$0xff] }
 0x90c   : > { %v8566_v49 = vadd.f32 %v13597_v20, %v8565_v53  ;;  %v8567_v19 = vpop.f32.mrb[131].mxu0  ;;  %8805 = vrot.lane.b32.xlu0 %v8563_v28, %s9837_s26  ;;  %v14318_v28 = vld [vmem:[#allocation15_spill] sm:$0xff] }
 0x90d   : > { %v14322_v19 = vld [vmem:[#allocation14_spill] sm:$0xff] }
 0x90e   : > { %8807 = vrot.lane.b32.xlu1 %v8566_v49, %s9837_s26  ;;  %v13755_v53 = vpop.permute.xlu0 %8677 }
 0x90f   : > { %14320 = vst [vmem:[#allocation41_spill] sm:$0xff] %v13755_v53 }
 0x919   : > { %v8570_v41 = vpop.f32.mrb[132].mxu0 }
 0x91a   : > { %v8571_v14 = vadd.f32 %v13597_v20, %v8570_v41  ;;  %v8572_v10 = vpop.f32.mrb[133].mxu0  ;;  %v14323_v41 = vld [vmem:[#allocation20_spill] sm:$0xff] }
 0x91b   : > { %v8573_v63 = vpop.f32.mrb[134].mxu0  ;;  %v14325_v10 = vld [vmem:[#allocation24_spill] sm:$0xff] }
 0x91c   : > { %v8574_v55 = vadd.f32 %v13597_v20, %v8573_v63  ;;  %v8575_v18 = vpop.f32.mrb[135].mxu0  ;;  %8809 = vrot.lane.b32.xlu0 %v8571_v14, %s9837_s26  ;;  %v13763_v14 = vpop.permute.xlu0 %8681 }
 0x91d   : > { %14324 = vst [vmem:[#allocation42_spill] sm:$0xff] %v13763_v14 }
 0x91e   : > { %8811 = vrot.lane.b32.xlu1 %v8574_v55, %s9837_s26  ;;  %v14327_v55 = vld [vmem:[#allocation19_spill] sm:$0xff] }
 0x920   : > { %v13771_v18 = vpop.permute.xlu0 %8685 }
 0x921   : > { %14328 = vst [vmem:[#allocation38_spill] sm:$0xff] %v13771_v18 }
 0x929   : > { %v8578_v62 = vpop.f32.mrb[136].mxu0 }
 0x92a   : > { %v8579_v36 = vadd.f32 %v13597_v20, %v8578_v62  ;;  %v8580_v61 = vpop.f32.mrb[137].mxu0  ;;  %v14329_v62 = vld [vmem:[#allocation22_spill] sm:$0xff] }
 0x92b   : > { %v8581_v38 = vpop.f32.mrb[138].mxu0  ;;  %v14331_v61 = vld [vmem:[#allocation16_spill] sm:$0xff] }
 0x92c   : > { %v8582_v8 = vadd.f32 %v13597_v20, %v8581_v38  ;;  %v8583_v22 = vpop.f32.mrb[139].mxu0  ;;  %8813 = vrot.lane.b32.xlu0 %v8579_v36, %s9837_s26  ;;  %v13779_v38 = vpop.permute.xlu0 %8689 }
 0x92d   : > { %14332 = vst [vmem:[#allocation44_spill] sm:$0xff] %v13779_v38 }
 0x92e   : > { %8815 = vrot.lane.b32.xlu1 %v8582_v8, %s9837_s26  ;;  %v14333_v8 = vld [vmem:[#allocation17_spill] sm:$0xff] }
 0x939   : > { %v8586_v56 = vpop.f32.mrb[140].mxu0 }
 0x93a   : > { %v8587_v47 = vadd.f32 %v13597_v20, %v8586_v56  ;;  %v8588_v16 = vpop.f32.mrb[141].mxu0  ;;  %v14335_v56 = vld [vmem:[#allocation8_spill] sm:$0xff] }
 0x93b   : > { %v8589_v30 = vpop.f32.mrb[142].mxu0  ;;  %v14337_v16 = vld [vmem:[#allocation9_spill] sm:$0xff] }
 0x93c   : > { %v8590_v27 = vadd.f32 %v13597_v20, %v8589_v30  ;;  %v8591_v9 = vpop.f32.mrb[143].mxu0  ;;  %8817 = vrot.lane.b32.xlu0 %v8587_v47, %s9837_s26  ;;  %v13787_v47 = vpop.permute.xlu0 %8693 }
 0x93d   : > { %14336 = vst [vmem:[#allocation27_spill] sm:$0xff] %v13787_v47  ;;  %v14343_v47 = vld [vmem:[#allocation36_spill] sm:$0xff] }
 0x93e   : > { %8819 = vrot.lane.b32.xlu1 %v8590_v27, %s9837_s26  ;;  %v14339_v27 = vld [vmem:[#allocation28_spill] sm:$0xff] }
 0x940   : > { %v8762_v9 = vpop.permute.xlu0 %8761 }
 0x949   : > { %v8594_v51 = vpop.f32.mrb[144].mxu0 }
 0x94a   : > { %v8595_v46 = vadd.f32 %v13597_v20, %v8594_v51  ;;  %v8596_v33 = vpop.f32.mrb[145].mxu0  ;;  %v14340_v51 = vld [vmem:[#allocation29_spill] sm:$0xff] }
 0x94b   : > { %v8597_v13 = vpop.f32.mrb[146].mxu0  ;;  %v14341_v33 = vld [vmem:[#allocation23_spill] sm:$0xff] }
 0x94c   : > { %v8598_v11 = vadd.f32 %v13597_v20, %v8597_v13  ;;  %v8599_v40 = vpop.f32.mrb[147].mxu0  ;;  %8821 = vrot.lane.b32.xlu0 %v8595_v46, %s9837_s26  ;;  %v13715_v20 = vpop.permute.xlu1 %8663 }
 0x94d   : > { %v8766_v13 = vpop.permute.xlu0 %8765 }
 0x94e   : > { %8823 = vrot.lane.b32.xlu1 %v8598_v11, %s9837_s26  ;;  %v14342_v11 = vld [vmem:[#allocation25_spill] sm:$0xff] }
 0x950   : > { %8857 = vrot.lane.b32.xlu0 %v14265_v57, %s9823_s18  ;;  %v13725_v12 = vpop.permute.xlu1 %8667 }
 0x952   : > { %8859 = vrot.lane.b32.xlu1 %v14269_v21, %s9823_s18 }
 0x954   : > { %8861 = vrot.lane.b32.xlu0 %v14267_v59, %s9823_s18  ;;  %v13735_v7 = vpop.permute.xlu1 %8671 }
 0x955   : > { %14313 = vst [vmem:[#allocation39_spill] sm:$0xff] %v13735_v7 }
 0x956   : > { %8863 = vrot.lane.b32.xlu1 %v14271_v31, %s9823_s18 }
 0x958   : > { %8865 = vrot.lane.b32.xlu0 %v14273_v50, %s9823_s18  ;;  %v13745_v37 = vpop.permute.xlu1 %8675 }
 0x959   : > { %14315 = vst [vmem:[#allocation40_spill] sm:$0xff] %v13745_v37 }
 0x95a   : > { %8867 = vrot.lane.b32.xlu1 %v14270_v44, %s9823_s18 }
 0x95c   : > { %8869 = vrot.lane.b32.xlu0 %v14276_v1, %s9823_s18  ;;  %v13757_v49 = vpop.permute.xlu1 %8679 }
 0x95d   : > { %14321 = vst [vmem:[#allocation43_spill] sm:$0xff] %v13757_v49 }
 0x95e   : > { %8871 = vrot.lane.b32.xlu1 %v14274_v5, %s9823_s18 }
 0x960   : > { %8873 = vrot.lane.b32.xlu0 %v14280_v4, %s9823_s18  ;;  %v13767_v63 = vpop.permute.xlu1 %8683 }
 0x961   : > { %14326 = vst [vmem:[#allocation10_spill] sm:$0xff] %v13767_v63 }
 0x962   : > { %8875 = vrot.lane.b32.xlu1 %v14277_v60, %s9823_s18 }
 0x964   : > { %8877 = vrot.lane.b32.xlu0 %v14284_v48, %s9823_s18  ;;  %v13775_v36 = vpop.permute.xlu1 %8687 }
 0x965   : > { %14330 = vst [vmem:[#allocation6_spill] sm:$0xff] %v13775_v36  ;;  %v14345_v36 = vld [vmem:[#allocation32_spill] sm:$0xff] }
 0x966   : > { %8879 = vrot.lane.b32.xlu1 %v14281_v54, %s9823_s18 }
 0x968   : > { %8881 = vrot.lane.b32.xlu0 %v14316_v6, %s9823_s18  ;;  %v13783_v22 = vpop.permute.xlu1 %8691 }
 0x969   : > { %14334 = vst [vmem:[#allocation13_spill] sm:$0xff] %v13783_v22  ;;  %v14344_v22 = vld [vmem:[#allocation37_spill] sm:$0xff] }
 0x96a   : > { %8883 = vrot.lane.b32.xlu1 %v14318_v28, %s9823_s18 }
 0x96c   : > { %8885 = vrot.lane.b32.xlu0 %v14319_v2, %s9823_s18  ;;  %v13791_v30 = vpop.permute.xlu1 %8695 }
 0x96d   : > { %14338 = vst [vmem:[#allocation7_spill] sm:$0xff] %v13791_v30  ;;  %v8770_v30 = vpop.permute.xlu0 %8769 }
 0x96e   : > { %8887 = vrot.lane.b32.xlu1 %v14322_v19, %s9823_s18 }
 0x970   : > { %8889 = vrot.lane.b32.xlu0 %v14323_v41, %s9823_s18  ;;  %v8764_v46 = vpop.permute.xlu1 %8763 }
 0x971   : > { %v8774_v18 = vpop.permute.xlu0 %8773 }
 0x972   : > { %8891 = vrot.lane.b32.xlu1 %v14325_v10, %s9823_s18 }
 0x974   : > { %8893 = vrot.lane.b32.xlu0 %v14327_v55, %s9823_s18  ;;  %v8768_v40 = vpop.permute.xlu1 %8767 }
 0x975   : > { %v13811_v63 = vpop.permute.xlu0 %8777 }
 0x976   : > { %8895 = vrot.lane.b32.xlu1 %v14329_v62, %s9823_s18 }
 0x978   : > { %8897 = vrot.lane.b32.xlu0 %v14331_v61, %s9823_s18  ;;  %v8772_v38 = vpop.permute.xlu1 %8771 }
 0x97a   : > { %8899 = vrot.lane.b32.xlu1 %v14333_v8, %s9823_s18 }
 0x97c   : > { %8901 = vrot.lane.b32.xlu0 %v14335_v56, %s9823_s18 }
 0x97e   : > { %8903 = vrot.lane.b32.xlu1 %v14337_v16, %s9823_s18 }
 0x980   : > { %8905 = vrot.lane.b32.xlu0 %v14339_v27, %s9823_s18  ;;  %v13815_v27 = vpop.permute.xlu0 %8781 }
 0x982   : > { %8907 = vrot.lane.b32.xlu1 %v14340_v51, %s9823_s18  ;;  %v14346_v51 = vld [vmem:[#allocation33_spill] sm:$0xff] }
 0x984   : > { %8909 = vrot.lane.b32.xlu0 %v14341_v33, %s9823_s18  ;;  %v13809_v33 = vpop.permute.xlu1 %8775  ;;  %v13819_v14 = vpop.permute.xlu0 %8785 }
 0x986   : > { %8911 = vrot.lane.b32.xlu1 %v14342_v11, %s9823_s18 }
 0x988   : > { %8913 = vrot.lane.b32.xlu0 %v14343_v47, %s9823_s18  ;;  %v13813_v11 = vpop.permute.xlu1 %8779  ;;  %v13823_v16 = vpop.permute.xlu0 %8789 }
 0x98a   : > { %8915 = vrot.lane.b32.xlu1 %v14344_v22, %s9823_s18 }
 0x98c   : > { %8917 = vrot.lane.b32.xlu0 %v14345_v36, %s9823_s18  ;;  %v13817_v47 = vpop.permute.xlu1 %8783 }
 0x98e   : > { %8919 = vrot.lane.b32.xlu1 %v14346_v51, %s9823_s18  ;;  %v13827_v51 = vpop.permute.xlu0 %8793  ;;  %s9555_s18 = sshll.u32 %s14398_s10, 8 }
 0x98f   : > { %s13866_s19 = scalar_lea.vmem %s14094_s9, %s9555_s18 }
 0x990   : > { %v13821_v22 = vpop.permute.xlu1 %8787 }
 0x992   : > { %v13831_v56 = vpop.permute.xlu0 %8797 }
 0x993   : > { %14348 = vst [vmem:[#allocation26_spill] sm:$0xff] %v13831_v56 }
 0x994   : > { %v13825_v36 = vpop.permute.xlu1 %8791 }
 0x996   : > { %v13835_v8 = vpop.permute.xlu0 %8801 }
 0x998   : > { %v13829_v49 = vpop.permute.xlu1 %8795 }
 0x999   : > { %14347 = vst [vmem:[#allocation49_spill] sm:$0xff] %v13829_v49 }
 0x99a   : > { %v13839_v61 = vpop.permute.xlu0 %8805 }
 0x99c   : > { %v13833_v53 = vpop.permute.xlu1 %8799 }
 0x99d   : > { %14349 = vst [vmem:[#allocation21_spill] sm:$0xff] %v13833_v53 }
 0x99e   : > { %v13843_v62 = vpop.permute.xlu0 %8809 }
 0x99f   : > { %14351 = vst [vmem:[#allocation18_spill] sm:$0xff] %v13843_v62  ;;  %v8953_v62 = vsel %vm1691_vm7, %v14265_v57, %v13675_v32  ;;  %v8955_v32 = vsel %vm1691_vm7, %v14267_v59, %v13679_v58  ;;  %v8957_v59 = vsel %vm1691_vm7, %v14273_v50, %v13686_v34  ;;  %v8959_v50 = vsel %vm1691_vm7, %v14276_v1, %v13691_v42 }
 0x9a0   : > { %v13837_v37 = vpop.permute.xlu1 %8803  ;;  %v8961_v1 = vsel %vm1691_vm7, %v14280_v4, %v13695_v23  ;;  %v8963_v23 = vsel %vm1691_vm7, %v14284_v48, %v13703_v39  ;;  %v8965_v39 = vsel %vm1691_vm7, %v14316_v6, %v13713_v26  ;;  %v8967_v6 = vsel %vm1691_vm7, %v14319_v2, %v13723_v0 }
 0x9a1   : > { %14350 = vst [vmem:[#allocation51_spill] sm:$0xff] %v13837_v37  ;;  %v8969_v2 = vsel %vm1691_vm7, %v14323_v41, %v13733_v43  ;;  %v14359_v41 = vld [vmem:[#allocation45_spill] sm:$0xff] }
 0x9a2   : > { %v13847_v55 = vpop.permute.xlu0 %8813 }
 0x9a3   : > { %14352 = vst [vmem:[#allocation35_spill] sm:$0xff] %v13847_v55 }
 0x9a4   : > { %v13841_v35 = vpop.permute.xlu1 %8807 }
 0x9a8   : > { %v13845_v7 = vpop.permute.xlu1 %8811 }
 0x9ac   : > { %v13849_v52 = vpop.permute.xlu1 %8815 }
 0x9ad   : > { %14353 = vst [vmem:[#allocation47_spill] sm:$0xff] %v13849_v52 }
 0x9ae   : > { %v13851_v49 = vpop.permute.xlu0 %8817 }
 0x9af   : > { %14354 = vst [vmem:[#allocation53_spill] sm:$0xff] %v13851_v49 }
 0x9b0   : > { %v13853_v56 = vpop.permute.xlu1 %8819 }
 0x9b1   : > { %14355 = vst [vmem:[#allocation34_spill] sm:$0xff] %v13853_v56  ;;  %v8986_v56 = vsel %vm8985_vm2, %v8953_v62, %v8762_v9  ;;  %v8988_v62 = vsel %vm8985_vm2, %v8955_v32, %v8766_v13 }
 0x9be   : > { %v13855_v53 = vpop.permute.xlu0 %8821 }
 0x9bf   : > { %14356 = vst [vmem:[#allocation31_spill] sm:$0xff] %v13855_v53 }
 0x9c0   : > { %v13858_v37 = vpop.permute.xlu1 %8823 }
 0x9c1   : > { %14357 = vst [vmem:[#allocation48_spill] sm:$0xff] %v13858_v37  ;;  %v8954_v37 = vsel %vm1691_vm7, %v14269_v21, %v13670_v15  ;;  %v8956_v21 = vsel %vm1691_vm7, %v14271_v31, %v13677_v17  ;;  %v8958_v31 = vsel %vm1691_vm7, %v14270_v44, %v13681_v3  ;;  %v8960_v44 = vsel %vm1691_vm7, %v14274_v5, %v13688_v45 }
 0x9c2   : > { %v8858_v53 = vpop.permute.xlu0 %8857  ;;  %v8987_v52 = vsel %vm8985_vm2, %v8954_v37, %v8764_v46  ;;  %v8989_v37 = vsel %vm8985_vm2, %v8956_v21, %v8768_v40  ;;  %v8962_v45 = vsel %vm1691_vm7, %v14277_v60, %v13693_v25  ;;  %v8964_v25 = vsel %vm1691_vm7, %v14281_v54, %v13697_v24 }
 0x9c3   : > { %v9019_v49 = vsel %vm9018_vm3, %v8986_v56, %v8858_v53  ;;  %v8995_v40 = vsel %vm8985_vm2, %v8962_v45, %v13813_v11  ;;  %v8997_v32 = vsel %vm8985_vm2, %v8964_v25, %v13817_v47  ;;  %v8966_v24 = vsel %vm1691_vm7, %v14318_v28, %v13705_v29 }
 0x9c4   : > { %9051 = vst [vmem:[%s13866_s19] sm:$0xff] %v9019_v49  ;;  %v8860_v57 = vpop.permute.xlu1 %8859  ;;  %v9000_v21 = vsel %vm8985_vm2, %v8967_v6, %v13823_v16  ;;  %v8968_v28 = vsel %vm1691_vm7, %v14322_v19, %v13715_v20  ;;  %v8970_v19 = vsel %vm1691_vm7, %v14325_v10, %v13725_v12  ;;  %v14362_v10 = vld [vmem:[#allocation39_spill] sm:$0xff] }
 0x9c5   : > { %v9020_v55 = vsel %vm9018_vm3, %v8987_v52, %v8860_v57  ;;  %v8990_v52 = vsel %vm8985_vm2, %v8957_v59, %v8770_v30  ;;  %v8992_v30 = vsel %vm8985_vm2, %v8959_v50, %v8774_v18  ;;  %v8994_v18 = vsel %vm8985_vm2, %v8961_v1, %v13811_v63  ;;  %v14364_v50 = vld [vmem:[#allocation21_spill] sm:$0xff] }
 0x9c6   : > { %9052 = vst [vmem:[%s13866_s19 + $0x8] sm:$0xff] %v9020_v55  ;;  %v8862_v9 = vpop.permute.xlu0 %8861  ;;  %v8991_v55 = vsel %vm8985_vm2, %v8958_v31, %v8772_v38  ;;  %v8993_v38 = vsel %vm8985_vm2, %v8960_v44, %v13809_v33  ;;  %v8996_v57 = vsel %vm8985_vm2, %v8963_v23, %v13815_v27  ;;  %v14366_v44 = vld [vmem:[#allocation16_spill] sm:$0xff]  ;;  %v14370_v23 = vld [vmem:[#allocation41_spill] sm:$0xff] }
 0x9c7   : > { %v9021_v15 = vsel %vm9018_vm3, %v8988_v62, %v8862_v9  ;;  %v8998_v62 = vsel %vm8985_vm2, %v8965_v39, %v13819_v14  ;;  %v8999_v9 = vsel %vm8985_vm2, %v8966_v24, %v13821_v22  ;;  %v14375_v24 = vld [vmem:[#allocation28_spill] sm:$0xff] }
 0x9c8   : > { %9053 = vst [vmem:[%s13866_s19 + $0x10] sm:$0xff] %v9021_v15  ;;  %v8864_v53 = vpop.permute.xlu1 %8863  ;;  %v9001_v15 = vsel %vm8985_vm2, %v8968_v28, %v13825_v36 }
 0x9c9   : > { %v9022_v58 = vsel %vm9018_vm3, %v8989_v37, %v8864_v53  ;;  %v9002_v37 = vsel %vm8985_vm2, %v8969_v2, %v13827_v51  ;;  %v14358_v53 = vld [vmem:[#allocation49_spill] sm:$0xff] }
 0x9ca   : > { %9054 = vst [vmem:[%s13866_s19 + $0x18] sm:$0xff] %v9022_v58  ;;  %v8866_v49 = vpop.permute.xlu0 %8865  ;;  %v9003_v59 = vsel %vm8985_vm2, %v8970_v19, %v14358_v53  ;;  %v14360_v58 = vld [vmem:[#allocation19_spill] sm:$0xff]  ;;  %v14383_v53 = vld [vmem:[#allocation25_spill] sm:$0xff] }
 0x9cb   : > { %v9023_v17 = vsel %vm9018_vm3, %v8990_v52, %v8866_v49  ;;  %v8971_v52 = vsel %vm1691_vm7, %v14360_v58, %v14359_v41  ;;  %v14361_v49 = vld [vmem:[#allocation26_spill] sm:$0xff] }
 0x9cc   : > { %9055 = vst [vmem:[%s13866_s19 + $0x20] sm:$0xff] %v9023_v17  ;;  %v8868_v56 = vpop.permute.xlu1 %8867  ;;  %v9004_v31 = vsel %vm8985_vm2, %v8971_v52, %v14361_v49  ;;  %v14363_v17 = vld [vmem:[#allocation22_spill] sm:$0xff]  ;;  %v14385_v52 = vld [vmem:[#allocation44_spill] sm:$0xff] }
 0x9cd   : > { %v9024_v34 = vsel %vm9018_vm3, %v8991_v55, %v8868_v56  ;;  %v8972_v55 = vsel %vm1691_vm7, %v14363_v17, %v14362_v10 }
 0x9ce   : > { %9056 = vst [vmem:[%s13866_s19 + $0x28] sm:$0xff] %v9024_v34  ;;  %v8870_v46 = vpop.permute.xlu0 %8869  ;;  %v9005_v34 = vsel %vm8985_vm2, %v8972_v55, %v14364_v50  ;;  %v14388_v55 = vld [vmem:[#allocation13_spill] sm:$0xff] }
 0x9cf   : > { %v9025_v3 = vsel %vm9018_vm3, %v8992_v30, %v8870_v46  ;;  %v14365_v46 = vld [vmem:[#allocation46_spill] sm:$0xff] }
 0x9d0   : > { %9057 = vst [vmem:[%s13866_s19 + $0x30] sm:$0xff] %v9025_v3  ;;  %v8872_v13 = vpop.permute.xlu1 %8871  ;;  %v8973_v3 = vsel %vm1691_vm7, %v14366_v44, %v14365_v46 }
 0x9d1   : > { %v9026_v42 = vsel %vm9018_vm3, %v8993_v38, %v8872_v13  ;;  %v9006_v13 = vsel %vm8985_vm2, %v8973_v3, %v13835_v8  ;;  %v14391_v3 = vld [vmem:[#allocation27_spill] sm:$0xff] }
 0x9d2   : > { %9058 = vst [vmem:[%s13866_s19 + $0x38] sm:$0xff] %v9026_v42  ;;  %v8874_v5 = vpop.permute.xlu0 %8873  ;;  %v14367_v42 = vld [vmem:[#allocation40_spill] sm:$0xff] }
 0x9d3   : > { %v9027_v33 = vsel %vm9018_vm3, %v8994_v18, %v8874_v5  ;;  %v14368_v18 = vld [vmem:[#allocation17_spill] sm:$0xff] }
 0x9d4   : > { %9059 = vst [vmem:[%s13866_s19 + $0x40] sm:$0xff] %v9027_v33  ;;  %v8876_v4 = vpop.permute.xlu1 %8875  ;;  %v8974_v5 = vsel %vm1691_vm7, %v14368_v18, %v14367_v42  ;;  %v14369_v33 = vld [vmem:[#allocation51_spill] sm:$0xff] }
 0x9d5   : > { %v9028_v63 = vsel %vm9018_vm3, %v8995_v40, %v8876_v4  ;;  %v9007_v40 = vsel %vm8985_vm2, %v8974_v5, %v14369_v33  ;;  %v14393_v42 = vld [vmem:[#allocation31_spill] sm:$0xff]  ;;  %v14395_v33 = vld [vmem:[#allocation33_spill] sm:$0xff] }
 0x9d6   : > { %9060 = vst [vmem:[%s13866_s19 + $0x48] sm:$0xff] %v9028_v63  ;;  %v8878_v60 = vpop.permute.xlu0 %8877  ;;  %v14371_v63 = vld [vmem:[#allocation8_spill] sm:$0xff] }
 0x9d7   : > { %v9029_v11 = vsel %vm9018_vm3, %v8996_v57, %v8878_v60  ;;  %v8975_v57 = vsel %vm1691_vm7, %v14371_v63, %v14370_v23  ;;  %v14396_v23 = vld [vmem:[#allocation48_spill] sm:$0xff] }
 0x9d8   : > { %9061 = vst [vmem:[%s13866_s19 + $0x50] sm:$0xff] %v9029_v11  ;;  %v8880_v48 = vpop.permute.xlu1 %8879  ;;  %v9008_v60 = vsel %vm8985_vm2, %v8975_v57, %v13839_v61  ;;  %v14372_v11 = vld [vmem:[#allocation43_spill] sm:$0xff] }
 0x9d9   : > { %v9030_v27 = vsel %vm9018_vm3, %v8997_v32, %v8880_v48  ;;  %v14373_v32 = vld [vmem:[#allocation9_spill] sm:$0xff] }
 0x9da   : > { %9062 = vst [vmem:[%s13866_s19 + $0x58] sm:$0xff] %v9030_v27  ;;  %v8882_v54 = vpop.permute.xlu0 %8881  ;;  %v8976_v48 = vsel %vm1691_vm7, %v14373_v32, %v14372_v11 }
 0x9db   : > { %v9031_v47 = vsel %vm9018_vm3, %v8998_v62, %v8882_v54  ;;  %v9009_v27 = vsel %vm8985_vm2, %v8976_v48, %v13841_v35  ;;  %v14374_v54 = vld [vmem:[#allocation42_spill] sm:$0xff] }
 0x9dc   : > { %9063 = vst [vmem:[%s13866_s19 + $0x60] sm:$0xff] %v9031_v47  ;;  %v8884_v26 = vpop.permute.xlu1 %8883  ;;  %v8977_v47 = vsel %vm1691_vm7, %v14375_v24, %v14374_v54 }
 0x9dd   : > { %v9032_v14 = vsel %vm9018_vm3, %v8999_v9, %v8884_v26  ;;  %v14376_v9 = vld [vmem:[#allocation18_spill] sm:$0xff] }
 0x9de   : > { %9064 = vst [vmem:[%s13866_s19 + $0x68] sm:$0xff] %v9032_v14  ;;  %v8886_v29 = vpop.permute.xlu0 %8885  ;;  %v9010_v26 = vsel %vm8985_vm2, %v8977_v47, %v14376_v9  ;;  %v14377_v14 = vld [vmem:[#allocation10_spill] sm:$0xff] }
 0x9df   : > { %v9033_v22 = vsel %vm9018_vm3, %v9000_v21, %v8886_v29  ;;  %v14378_v21 = vld [vmem:[#allocation29_spill] sm:$0xff] }
 0x9e0   : > { %9065 = vst [vmem:[%s13866_s19 + $0x70] sm:$0xff] %v9033_v22  ;;  %v8888_v0 = vpop.permute.xlu1 %8887  ;;  %v8978_v29 = vsel %vm1691_vm7, %v14378_v21, %v14377_v14 }
 0x9e1   : > { %v9034_v16 = vsel %vm9018_vm3, %v9001_v15, %v8888_v0  ;;  %v9011_v28 = vsel %vm8985_vm2, %v8978_v29, %v13845_v7  ;;  %v14379_v15 = vld [vmem:[#allocation38_spill] sm:$0xff]  ;;  %v14380_v0 = vld [vmem:[#allocation23_spill] sm:$0xff] }
 0x9e2   : > { %9066 = vst [vmem:[%s13866_s19 + $0x78] sm:$0xff] %v9034_v16  ;;  %v8890_v20 = vpop.permute.xlu0 %8889  ;;  %v8979_v2 = vsel %vm1691_vm7, %v14380_v0, %v14379_v15 }
 0x9e3   : > { %v9035_v36 = vsel %vm9018_vm3, %v9002_v37, %v8890_v20  ;;  %v14381_v37 = vld [vmem:[#allocation35_spill] sm:$0xff] }
 0x9e4   : > { %9067 = vst [vmem:[%s13866_s19 + $0x80] sm:$0xff] %v9035_v36  ;;  %v8892_v43 = vpop.permute.xlu1 %8891  ;;  %v9012_v20 = vsel %vm8985_vm2, %v8979_v2, %v14381_v37  ;;  %v14382_v36 = vld [vmem:[#allocation6_spill] sm:$0xff] }
 0x9e5   : > { %v9036_v51 = vsel %vm9018_vm3, %v9003_v59, %v8892_v43  ;;  %v8980_v59 = vsel %vm1691_vm7, %v14383_v53, %v14382_v36  ;;  %v14384_v43 = vld [vmem:[#allocation47_spill] sm:$0xff] }
 0x9e6   : > { %9068 = vst [vmem:[%s13866_s19 + $0x88] sm:$0xff] %v9036_v51  ;;  %v8894_v12 = vpop.permute.xlu0 %8893  ;;  %v9013_v41 = vsel %vm8985_vm2, %v8980_v59, %v14384_v43  ;;  %v14386_v51 = vld [vmem:[#allocation36_spill] sm:$0xff] }
 0x9e7   : > { %v9037_v56 = vsel %vm9018_vm3, %v9004_v31, %v8894_v12  ;;  %v8981_v49 = vsel %vm1691_vm7, %v14386_v51, %v14385_v52  ;;  %v14387_v12 = vld [vmem:[#allocation53_spill] sm:$0xff] }
 0x9e8   : > { %9069 = vst [vmem:[%s13866_s19 + $0x90] sm:$0xff] %v9037_v56  ;;  %v8896_v30 = vpop.permute.xlu1 %8895  ;;  %v9014_v10 = vsel %vm8985_vm2, %v8981_v49, %v14387_v12  ;;  %v14389_v56 = vld [vmem:[#allocation37_spill] sm:$0xff] }
 0x9e9   : > { %v9038_v38 = vsel %vm9018_vm3, %v9005_v34, %v8896_v30  ;;  %v8982_v50 = vsel %vm1691_vm7, %v14389_v56, %v14388_v55  ;;  %v14390_v30 = vld [vmem:[#allocation34_spill] sm:$0xff] }
 0x9ea   : > { %9070 = vst [vmem:[%s13866_s19 + $0x98] sm:$0xff] %v9038_v38  ;;  %v8898_v1 = vpop.permute.xlu0 %8897  ;;  %v9015_v46 = vsel %vm8985_vm2, %v8982_v50, %v14390_v30  ;;  %v14392_v38 = vld [vmem:[#allocation32_spill] sm:$0xff] }
 0x9eb   : > { %v9039_v45 = vsel %vm9018_vm3, %v9006_v13, %v8898_v1  ;;  %v8983_v13 = vsel %vm1691_vm7, %v14392_v38, %v14391_v3 }
 0x9ec   : > { %9071 = vst [vmem:[%s13866_s19 + $0xa0] sm:$0xff] %v9039_v45  ;;  %v8900_v4 = vpop.permute.xlu1 %8899  ;;  %v9016_v18 = vsel %vm8985_vm2, %v8983_v13, %v14393_v42  ;;  %v14394_v45 = vld [vmem:[#allocation7_spill] sm:$0xff] }
 0x9ed   : > { %v9040_v8 = vsel %vm9018_vm3, %v9007_v40, %v8900_v4  ;;  %v8984_v40 = vsel %vm1691_vm7, %v14395_v33, %v14394_v45 }
 0x9ee   : > { %9072 = vst [vmem:[%s13866_s19 + $0xa8] sm:$0xff] %v9040_v8  ;;  %v8902_v25 = vpop.permute.xlu0 %8901  ;;  %v9017_v63 = vsel %vm8985_vm2, %v8984_v40, %v14396_v23 }
 0x9ef   : > { %v9041_v39 = vsel %vm9018_vm3, %v9008_v60, %v8902_v25 }
 0x9f0   : > { %9073 = vst [vmem:[%s13866_s19 + $0xb0] sm:$0xff] %v9041_v39  ;;  %v8904_v62 = vpop.permute.xlu1 %8903 }
 0x9f1   : > { %v9042_v61 = vsel %vm9018_vm3, %v9009_v27, %v8904_v62 }
 0x9f2   : > { %9074 = vst [vmem:[%s13866_s19 + $0xb8] sm:$0xff] %v9042_v61  ;;  %v8906_v6 = vpop.permute.xlu0 %8905 }
 0x9f3   : > { %v9043_v35 = vsel %vm9018_vm3, %v9010_v26, %v8906_v6 }
 0x9f4   : > { %9075 = vst [vmem:[%s13866_s19 + $0xc0] sm:$0xff] %v9043_v35  ;;  %v8908_v22 = vpop.permute.xlu1 %8907 }
 0x9f5   : > { %v9044_v16 = vsel %vm9018_vm3, %v9011_v28, %v8908_v22 }
 0x9f6   : > { %9076 = vst [vmem:[%s13866_s19 + $0xc8] sm:$0xff] %v9044_v16  ;;  %v8910_v19 = vpop.permute.xlu0 %8909 }
 0x9f7   : > { %v9045_v7 = vsel %vm9018_vm3, %v9012_v20, %v8910_v19 }
 0x9f8   : > { %9077 = vst [vmem:[%s13866_s19 + $0xd0] sm:$0xff] %v9045_v7  ;;  %v8912_v58 = vpop.permute.xlu1 %8911 }
 0x9f9   : > { %v9046_v31 = vsel %vm9018_vm3, %v9013_v41, %v8912_v58 }
 0x9fa   : > { %9078 = vst [vmem:[%s13866_s19 + $0xd8] sm:$0xff] %v9046_v31  ;;  %v8914_v17 = vpop.permute.xlu0 %8913 }
 0x9fb   : > { %v9047_v34 = vsel %vm9018_vm3, %v9014_v10, %v8914_v17 }
 0x9fc   : > { %9079 = vst [vmem:[%s13866_s19 + $0xe0] sm:$0xff] %v9047_v34  ;;  %v8916_v44 = vpop.permute.xlu1 %8915 }
 0x9fd   : > { %v9048_v1 = vsel %vm9018_vm3, %v9015_v46, %v8916_v44 }
 0x9fe   : > { %9080 = vst [vmem:[%s13866_s19 + $0xe8] sm:$0xff] %v9048_v1  ;;  %v8918_v5 = vpop.permute.xlu0 %8917 }
 0x9ff   : > { %v9049_v4 = vsel %vm9018_vm3, %v9016_v18, %v8918_v5 }
 0xa00   : > { %9081 = vst [vmem:[%s13866_s19 + $0xf0] sm:$0xff] %v9049_v4  ;;  %v8920_v57 = vpop.permute.xlu1 %8919 }
 0xa01   : > { %v9050_v8 = vsel %vm9018_vm3, %v9017_v63, %v8920_v57 }
 0xa02   : > { %9082 = vst [vmem:[%s13866_s19 + $0xf8] sm:$0xff] %v9050_v8 }
 0xa03 PF: > { %s19_s30 = sadd.s32 1, %s9818_s30  }
 0xa04   : > { %p16_p4 = scmp.ge.s32.totalorder %s19_s30, 4  }
 0xa06   :  { %18 = sbr.rel (!%p16_p4) target bundleno = 1 (0x1), region = 97 }

</bundles_post_ra>
